<compile_context>
chip_gen: v7x
topology: tpu7x:2x2x1
jax: 0.10.0
libtpu: 0.0.40
codegen_flags: <defaults>
</compile_context>

<pallas_src>
import jax
import jax.numpy as jnp
from jax.experimental import pallas as pl
from jax.experimental.pallas import tpu as pltpu

N, C0, C1, C2 = 2, 2, 4, 1      # batch, in-ch, mid-ch, out-ch
D = H = W = 8                   # spatial extent
K = 3                           # conv kernel size
EPS = 1e-5

S = D * H * W                   # 512 spatial positions per batch element
P = N * S                       # 1024 flattened (n, d, h, w) positions
NC = N * C0                     # 4 (batch, in-ch) rows of the flattened input
C1P = 8                         # conv1 out-channels padded to a full sublane tile
NTAP = K * K * K                # 27 taps
KC1 = 64                        # conv1 contraction (2*27 = 54) padded to 64 (not 128)
PADG = 128                      # lane guard each side of the flat input scratch
PADL = 128                      # lane guard each side of the flat y1 scratch


def _and_masks(*ms):
    """Combine non-None boolean masks with &; returns None if all are None."""
    out = None
    for m in ms:
        if m is None:
            continue
        out = m if out is None else (out & m)
    return out


def _conv_classifier_kernel(x_ref,             # VMEM (NC, S)    raw input, sublane=(n,ci)
                            w1m_ref,           # VMEM (C1P, KC1) conv1 weights (rows 4..7, cols 54..63 zero)
                            g1_ref, be1_ref,   # VMEM (C1P, 1)   BN1 affine params (padded)
                            w2m_ref,           # VMEM (C1P, 27)  conv2 weights, lane-dense (taps on lanes)
                            g2_ref, be2_ref,   # VMEM (1, 1)     BN2 affine params
                            out_ref,           # VMEM (N, 1)     pooled output
                            xg_ref,            # VMEM scratch (C1P, PADG + S + PADG)
                            patch_ref,         # VMEM scratch (KC1, P)   conv1 im2col patch
                            y1g_ref):          # VMEM scratch (C1P, PADL + P + PADL)
    f32 = jnp.float32
    inv_p = 1.0 / P

    # ---- stage raw input in a guarded flat layout: sublane=(n,ci), lane = d*64+h*8+w --------
    xg_ref[:, 0:PADG] = jnp.zeros((C1P, PADG), f32)
    xg_ref[:, PADG + S:PADG + S + PADG] = jnp.zeros((C1P, PADG), f32)
    xg_ref[0:NC, PADG:PADG + S] = x_ref[...]

    # ---- conv1 (2->4, k3, pad1): build the im2col patch in VMEM, then one MXU dot -----------
    # patch row = 2*tap + ci, patch col = n*512 + s  (matches w1m packing in pack_params)
    lane_c1 = jax.lax.broadcasted_iota(jnp.int32, (NC, S), 1)
    d_c1 = lane_c1 >> 6
    h_c1 = (lane_c1 >> 3) & 7
    w_c1 = lane_c1 & 7
    dmask1 = {-1: d_c1 >= 1, 0: None, 1: d_c1 <= D - 2}
    hmask1 = {-1: h_c1 >= 1, 0: None, 1: h_c1 <= H - 2}
    wmask1 = {-1: w_c1 >= 1, 0: None, 1: w_c1 <= W - 2}

    patch_ref[48:KC1, :] = jnp.zeros((KC1 - 48, P), f32)        # zero pad rows (54..63)

    for kd in range(K):
        dd = kd - 1
        for kh in range(K):
            dh = kh - 1
            m_dh1 = _and_masks(dmask1[dd], hmask1[dh])          # hoisted per (kd, kh)
            for kw in range(K):
                dw = kw - 1
                t = (kd * K + kh) * K + kw
                off = dd * (H * W) + dh * W + dw
                win = xg_ref[0:NC, PADG + off:PADG + off + S]   # (4, 512) shifted read
                mask = _and_masks(m_dh1, wmask1[dw])
                if mask is not None:
                    win = jnp.where(mask, win, 0.0)
                patch_ref[2 * t:2 * t + 2, 0:S] = win[0:2]      # batch 0 columns
                patch_ref[2 * t:2 * t + 2, S:P] = win[2:4]      # batch 1 columns

    # Conv biases omitted: they cancel exactly under training-mode BatchNorm.
    y1 = jnp.dot(w1m_ref[...], patch_ref[...],
                 preferred_element_type=f32)                    # (C1P, P)

    # ---- BN1 (batch stats, biased var, centered two-pass) + ReLU -----------------------------
    mu1 = jnp.sum(y1, axis=1, keepdims=True) * inv_p            # (C1P, 1)
    y1c = y1 - mu1
    var1 = jnp.sum(y1c * y1c, axis=1, keepdims=True) * inv_p
    sc1 = g1_ref[...] * jax.lax.rsqrt(var1 + EPS)
    y1r = jnp.maximum(y1c * sc1 + be1_ref[...], 0.0)            # (C1P, P); padded rows stay 0

    # ---- stage y1 in a guarded flat scratch for conv2's shifted reads ------------------------
    y1g_ref[:, 0:PADL] = jnp.zeros((C1P, PADL), f32)
    y1g_ref[:, PADL + P:PADL + P + PADL] = jnp.zeros((C1P, PADL), f32)
    y1g_ref[:, PADL:PADL + P] = y1r

    # ---- conv2 (4->1, k3, pad1) on the VPU: 27 shifted taps ----------------------------------
    # w-axis masks at full (8,P) (no per-tap sublane broadcast); d/h combos hoisted at (1,P).
    lane8 = jax.lax.broadcasted_iota(jnp.int32, (C1P, P), 1)
    w_pos8 = lane8 & 7
    wmask2 = {-1: w_pos8 >= 1, 0: None, 1: w_pos8 <= W - 2}
    lane1 = jax.lax.broadcasted_iota(jnp.int32, (1, P), 1)
    d_pos1 = (lane1 >> 6) & 7
    h_pos1 = (lane1 >> 3) & 7
    dmask2 = {-1: d_pos1 >= 1, 0: None, 1: d_pos1 <= D - 2}
    hmask2 = {-1: h_pos1 >= 1, 0: None, 1: h_pos1 <= H - 2}

    w2_all = w2m_ref[...]                                       # (C1P, 27): single load
    acc = jnp.zeros((C1P, P), f32)
    for kd in range(K):
        dd = kd - 1
        for kh in range(K):
            dh = kh - 1
            m_dh2 = _and_masks(dmask2[dd], hmask2[dh])          # hoisted per (kd, kh)
            for kw in range(K):
                dw = kw - 1
                t = (kd * K + kh) * K + kw
                off = dd * (H * W) + dh * W + dw
                win = y1g_ref[:, PADL + off:PADL + off + P]     # (C1P, P) shifted read
                mask = _and_masks(m_dh2, wmask2[dw])
                if mask is not None:
                    win = jnp.where(mask, win, 0.0)
                acc = acc + win * w2_all[:, t:t + 1]            # (C1P,P) * (C1P,1)
    o = jnp.sum(acc, axis=0, keepdims=True)                     # (1, P)
    # conv2 bias omitted: cancels under BN2's batch-mean subtraction.

    # ---- BN2 (single channel, batch stats) + ReLU --------------------------------------------
    mu2 = jnp.sum(o, axis=1, keepdims=True) * inv_p             # (1, 1)
    oc = o - mu2
    var2 = jnp.sum(oc * oc, axis=1, keepdims=True) * inv_p
    sc2 = g2_ref[...] * jax.lax.rsqrt(var2 + EPS)
    z = jnp.maximum(oc * sc2 + be2_ref[...], 0.0)               # (1, P)

    # ---- AdaptiveAvgPool3d(1): mean over (D, H, W) per batch element -------------------------
    inv_s = 1.0 / S
    for n in range(N):
        out_ref[n:n + 1, :] = jnp.sum(z[:, n * S:(n + 1) * S], axis=1, keepdims=True) * inv_s

    # TODO(synk): running_mean/running_var momentum updates (training-mode side effect of
    # nn.BatchNorm3d) are not replicated; only the forward output is.


def pack_params(params):
    """One-time packing of module parameters into kernel-friendly layouts (hoisted out
    of the per-call path)."""
    w1, b1, g1, be1, w2, b2, g2, be2 = params
    del b1, b2   # conv biases cancel exactly under training-mode BatchNorm
    # conv1 weights: rows = out-channel (4->8), cols = 2*tap + ci (54->64)
    w1m = jnp.transpose(w1.astype(jnp.float32), (0, 2, 3, 4, 1)).reshape(C1, NTAP * C0)
    w1m = jnp.pad(w1m, ((0, C1P - C1), (0, KC1 - NTAP * C0)))
    # conv2 weights: rows = in-channel (4->8), cols = tap (27), lane-dense
    w2m = jnp.pad(w2.astype(jnp.float32)[0].reshape(C1, NTAP), ((0, C1P - C1), (0, 0)))
    g1p = jnp.pad(g1.astype(jnp.float32), (0, C1P - C1)).reshape(C1P, 1)
    be1p = jnp.pad(be1.astype(jnp.float32), (0, C1P - C1)).reshape(C1P, 1)
    g2m = g2.astype(jnp.float32).reshape(1, 1)
    be2m = be2.astype(jnp.float32).reshape(1, 1)
    return w1m, g1p, be1p, w2m, g2m, be2m


_COST = pl.CostEstimate(
    flops=2 * C1P * KC1 * P + 2 * NTAP * C1P * P,        # conv1 MXU dot + conv2 tap MACs
    transcendentals=C1P + 1,                              # the two rsqrt's
    bytes_accessed=(NC * S + C1P * KC1 + C1P * NTAP + 2 * C1P + 2 + N) * 4,
)


@jax.jit
def conv_classifier_forward(x, packed):
    """x: (N, C0, D, H, W) float32, packed = pack_params(params) -> (N, 1, 1, 1, 1)."""
    w1m, g1p, be1p, w2m, g2m, be2m = packed
    x2d = x.astype(jnp.float32).reshape(NC, S)   # free contiguous reshape: sublane=(n,ci)
    out = pl.pallas_call(
        _conv_classifier_kernel,
        out_shape=jax.ShapeDtypeStruct((N, 1), jnp.float32),
        in_specs=[pl.BlockSpec(memory_space=pltpu.MemorySpace.VMEM) for _ in range(7)],
        out_specs=pl.BlockSpec(memory_space=pltpu.MemorySpace.VMEM),
        scratch_shapes=[
            pltpu.VMEM((C1P, PADG + S + PADG), jnp.float32),   # guarded flat input
            pltpu.VMEM((KC1, P), jnp.float32),                 # conv1 im2col patch
            pltpu.VMEM((C1P, PADL + P + PADL), jnp.float32),   # guarded flat y1
        ],
        cost_estimate=_COST,
    )(x2d, w1m, g1p, be1p, w2m, g2m, be2m)
    return out.reshape(N, C2, 1, 1, 1)


if __name__ == "__main__":
    key = jax.random.PRNGKey(0)
    kx, k1, kb1, k2, kb2 = jax.random.split(key, 5)

    x = jax.random.normal(kx, (N, C0, D, H, W), jnp.float32)

    # Deterministic synthetic parameters (shapes from the module __init__).
    w1 = jax.random.normal(k1, (C1, C0, K, K, K), jnp.float32) * 0.1
    b1 = jax.random.normal(kb1, (C1,), jnp.float32) * 0.1
    g1 = jnp.ones((C1,), jnp.float32)       # BatchNorm3d default affine init
    be1 = jnp.zeros((C1,), jnp.float32)
    w2 = jax.random.normal(k2, (C2, C1, K, K, K), jnp.float32) * 0.1
    b2 = jax.random.normal(kb2, (C2,), jnp.float32) * 0.1
    g2 = jnp.ones((C2,), jnp.float32)
    be2 = jnp.zeros((C2,), jnp.float32)
    params = (w1, b1, g1, be1, w2, b2, g2, be2)

    packed = pack_params(params)            # one-time parameter packing (not per call)
    out = conv_classifier_forward(x, packed)
    jax.block_until_ready(out)

    # Pure-JAX reference (training-mode BatchNorm semantics, like the nn.Module default).
    def conv3d_ref(xx, w, b):
        y = jax.lax.conv_general_dilated(
            xx, w, window_strides=(1, 1, 1),
            padding=((1, 1), (1, 1), (1, 1)),
            dimension_numbers=("NCDHW", "OIDHW", "NCDHW"),
            precision=jax.lax.Precision.HIGHEST)
        return y + b[None, :, None, None, None]

    def bn_relu_ref(y, g, be):
        mu = jnp.mean(y, axis=(0, 2, 3, 4), keepdims=True)
        var = jnp.mean((y - mu) ** 2, axis=(0, 2, 3, 4), keepdims=True)
        yn = (y - mu) / jnp.sqrt(var + EPS)
        yn = yn * g[None, :, None, None, None] + be[None, :, None, None, None]
        return jnp.maximum(yn, 0.0)

    ref = bn_relu_ref(conv3d_ref(x, w1, b1), g1, be1)
    ref = bn_relu_ref(conv3d_ref(ref, w2, b2), g2, be2)
    ref = jnp.mean(ref, axis=(2, 3, 4), keepdims=True)      # (N, 1, 1, 1, 1)

    assert out.shape == (N, C2, 1, 1, 1), out.shape
    # Tolerance allows for MXU f32 rounding vs the XLA HIGHEST-precision conv reference.
    assert jnp.allclose(out, ref, atol=2e-3, rtol=2e-3), (out, ref)
    print("KERNEL_OK")
</pallas_src>

<mosaic_0001>
module attributes {stable_mosaic.version = 11 : i64} {
  func.func @_conv_classifier_kernel(%arg0: memref<4x512xf32, #tpu.memory_space<vmem>>, %arg1: memref<8x64xf32, #tpu.memory_space<vmem>>, %arg2: memref<8x1xf32, #tpu.memory_space<vmem>>, %arg3: memref<8x1xf32, #tpu.memory_space<vmem>>, %arg4: memref<8x27xf32, #tpu.memory_space<vmem>>, %arg5: memref<1x1xf32, #tpu.memory_space<vmem>>, %arg6: memref<1x1xf32, #tpu.memory_space<vmem>>, %arg7: memref<2x1xf32, #tpu.memory_space<vmem>>, %arg8: memref<8x768xf32, #tpu.memory_space<vmem>>, %arg9: memref<64x1024xf32, #tpu.memory_space<vmem>>, %arg10: memref<8x1280xf32, #tpu.memory_space<vmem>>) attributes {dimension_semantics = [], scalar_prefetch = 0 : i64, scratch_operands = 3 : i64, tpu.core_type = #tpu.core_type<tc>} {
    %cst = arith.constant 0.000000e+00 : f32
    %0 = vector.broadcast %cst : f32 to vector<8x128xf32>
    %c0 = arith.constant 0 : index
    %c0_0 = arith.constant 0 : index
    %1 = vector.load %arg8[%c0, %c0_0] : memref<8x768xf32, #tpu.memory_space<vmem>>, vector<8x128xf32>
    tpu.vector_store %arg8[%c0, %c0_0], %0 {strides = array<i32>} : memref<8x768xf32, #tpu.memory_space<vmem>>, vector<8x128xf32>,
    %cst_1 = arith.constant 0.000000e+00 : f32
    %2 = vector.broadcast %cst_1 : f32 to vector<8x128xf32>
    %c0_2 = arith.constant 0 : index
    %c640 = arith.constant 640 : index
    %3 = vector.load %arg8[%c0_2, %c640] : memref<8x768xf32, #tpu.memory_space<vmem>>, vector<8x128xf32>
    tpu.vector_store %arg8[%c0_2, %c640], %2 {strides = array<i32>} : memref<8x768xf32, #tpu.memory_space<vmem>>, vector<8x128xf32>,
    %c0_3 = arith.constant 0 : index
    %c0_4 = arith.constant 0 : index
    %4 = vector.load %arg0[%c0_3, %c0_4] : memref<4x512xf32, #tpu.memory_space<vmem>>, vector<4x512xf32>
    %c0_5 = arith.constant 0 : index
    %c128 = arith.constant 128 : index
    %5 = vector.load %arg8[%c0_5, %c128] : memref<8x768xf32, #tpu.memory_space<vmem>>, vector<4x512xf32>
    tpu.vector_store %arg8[%c0_5, %c128], %4 {strides = array<i32>} : memref<8x768xf32, #tpu.memory_space<vmem>>, vector<4x512xf32>,
    %6 = tpu.iota {dimensions = array<i32: 1>} : vector<4x512xi32>
    %c6_i32 = arith.constant 6 : i32
    %7 = vector.broadcast %c6_i32 : i32 to vector<4x512xi32>
    %8 = arith.shrsi %6, %7 : vector<4x512xi32>
    %c3_i32 = arith.constant 3 : i32
    %9 = vector.broadcast %c3_i32 : i32 to vector<4x512xi32>
    %10 = arith.shrsi %6, %9 : vector<4x512xi32>
    %c7_i32 = arith.constant 7 : i32
    %11 = vector.broadcast %c7_i32 : i32 to vector<4x512xi32>
    %12 = arith.andi %10, %11 : vector<4x512xi32>
    %c7_i32_6 = arith.constant 7 : i32
    %13 = vector.broadcast %c7_i32_6 : i32 to vector<4x512xi32>
    %14 = arith.andi %6, %13 : vector<4x512xi32>
    %c1_i32 = arith.constant 1 : i32
    %15 = vector.broadcast %c1_i32 : i32 to vector<4x512xi32>
    %16 = arith.cmpi sge, %8, %15 : vector<4x512xi32>
    %c6_i32_7 = arith.constant 6 : i32
    %17 = vector.broadcast %c6_i32_7 : i32 to vector<4x512xi32>
    %18 = arith.cmpi sle, %8, %17 : vector<4x512xi32>
    %c1_i32_8 = arith.constant 1 : i32
    %19 = vector.broadcast %c1_i32_8 : i32 to vector<4x512xi32>
    %20 = arith.cmpi sge, %12, %19 : vector<4x512xi32>
    %c6_i32_9 = arith.constant 6 : i32
    %21 = vector.broadcast %c6_i32_9 : i32 to vector<4x512xi32>
    %22 = arith.cmpi sle, %12, %21 : vector<4x512xi32>
    %c1_i32_10 = arith.constant 1 : i32
    %23 = vector.broadcast %c1_i32_10 : i32 to vector<4x512xi32>
    %24 = arith.cmpi sge, %14, %23 : vector<4x512xi32>
    %c6_i32_11 = arith.constant 6 : i32
    %25 = vector.broadcast %c6_i32_11 : i32 to vector<4x512xi32>
    %26 = arith.cmpi sle, %14, %25 : vector<4x512xi32>
    %cst_12 = arith.constant 0.000000e+00 : f32
    %27 = vector.broadcast %cst_12 : f32 to vector<16x1024xf32>
    %c48 = arith.constant 48 : index
    %c0_13 = arith.constant 0 : index
    %28 = vector.load %arg9[%c48, %c0_13] : memref<64x1024xf32, #tpu.memory_space<vmem>>, vector<16x1024xf32>
    tpu.vector_store %arg9[%c48, %c0_13], %27 {strides = array<i32>} : memref<64x1024xf32, #tpu.memory_space<vmem>>, vector<16x1024xf32>,
    %29 = arith.andi %16, %20 : vector<4x512xi1>
    %c0_14 = arith.constant 0 : index
    %c55 = arith.constant 55 : index
    %30 = vector.load %arg8[%c0_14, %c55] : memref<8x768xf32, #tpu.memory_space<vmem>>, vector<4x512xf32>
    %31 = arith.andi %29, %24 : vector<4x512xi1>
    %cst_15 = arith.constant 0.000000e+00 : f32
    %32 = vector.broadcast %cst_15 : f32 to vector<4x512xf32>
    %33 = arith.select %31, %30, %32 : vector<4x512xi1>, vector<4x512xf32>
    %34 = vector.extract_strided_slice %33 {offsets = [0, 0], sizes = [2, 512], strides = [1, 1]} : vector<4x512xf32> to vector<2x512xf32>
    %c0_16 = arith.constant 0 : index
    %c0_17 = arith.constant 0 : index
    %35 = vector.load %arg9[%c0_16, %c0_17] : memref<64x1024xf32, #tpu.memory_space<vmem>>, vector<2x512xf32>
    tpu.vector_store %arg9[%c0_16, %c0_17], %34 {strides = array<i32>} : memref<64x1024xf32, #tpu.memory_space<vmem>>, vector<2x512xf32>,
    %36 = vector.extract_strided_slice %33 {offsets = [2, 0], sizes = [2, 512], strides = [1, 1]} : vector<4x512xf32> to vector<2x512xf32>
    %c0_18 = arith.constant 0 : index
    %c512 = arith.constant 512 : index
    %37 = vector.load %arg9[%c0_18, %c512] : memref<64x1024xf32, #tpu.memory_space<vmem>>, vector<2x512xf32>
    tpu.vector_store %arg9[%c0_18, %c512], %36 {strides = array<i32>} : memref<64x1024xf32, #tpu.memory_space<vmem>>, vector<2x512xf32>,
    %c0_19 = arith.constant 0 : index
    %c56 = arith.constant 56 : index
    %38 = vector.load %arg8[%c0_19, %c56] : memref<8x768xf32, #tpu.memory_space<vmem>>, vector<4x512xf32>
    %cst_20 = arith.constant 0.000000e+00 : f32
    %39 = vector.broadcast %cst_20 : f32 to vector<4x512xf32>
    %40 = arith.select %29, %38, %39 : vector<4x512xi1>, vector<4x512xf32>
    %41 = vector.extract_strided_slice %40 {offsets = [0, 0], sizes = [2, 512], strides = [1, 1]} : vector<4x512xf32> to vector<2x512xf32>
    %c2 = arith.constant 2 : index
    %c0_21 = arith.constant 0 : index
    %42 = vector.load %arg9[%c2, %c0_21] : memref<64x1024xf32, #tpu.memory_space<vmem>>, vector<2x512xf32>
    tpu.vector_store %arg9[%c2, %c0_21], %41 {strides = array<i32>} : memref<64x1024xf32, #tpu.memory_space<vmem>>, vector<2x512xf32>,
    %43 = vector.extract_strided_slice %40 {offsets = [2, 0], sizes = [2, 512], strides = [1, 1]} : vector<4x512xf32> to vector<2x512xf32>
    %c2_22 = arith.constant 2 : index
    %c512_23 = arith.constant 512 : index
    %44 = vector.load %arg9[%c2_22, %c512_23] : memref<64x1024xf32, #tpu.memory_space<vmem>>, vector<2x512xf32>
    tpu.vector_store %arg9[%c2_22, %c512_23], %43 {strides = array<i32>} : memref<64x1024xf32, #tpu.memory_space<vmem>>, vector<2x512xf32>,
    %c0_24 = arith.constant 0 : index
    %c57 = arith.constant 57 : index
    %45 = vector.load %arg8[%c0_24, %c57] : memref<8x768xf32, #tpu.memory_space<vmem>>, vector<4x512xf32>
    %46 = arith.andi %29, %26 : vector<4x512xi1>
    %cst_25 = arith.constant 0.000000e+00 : f32
    %47 = vector.broadcast %cst_25 : f32 to vector<4x512xf32>
    %48 = arith.select %46, %45, %47 : vector<4x512xi1>, vector<4x512xf32>
    %49 = vector.extract_strided_slice %48 {offsets = [0, 0], sizes = [2, 512], strides = [1, 1]} : vector<4x512xf32> to vector<2x512xf32>
    %c4 = arith.constant 4 : index
    %c0_26 = arith.constant 0 : index
    %50 = vector.load %arg9[%c4, %c0_26] : memref<64x1024xf32, #tpu.memory_space<vmem>>, vector<2x512xf32>
    tpu.vector_store %arg9[%c4, %c0_26], %49 {strides = array<i32>} : memref<64x1024xf32, #tpu.memory_space<vmem>>, vector<2x512xf32>,
    %51 = vector.extract_strided_slice %48 {offsets = [2, 0], sizes = [2, 512], strides = [1, 1]} : vector<4x512xf32> to vector<2x512xf32>
    %c4_27 = arith.constant 4 : index
    %c512_28 = arith.constant 512 : index
    %52 = vector.load %arg9[%c4_27, %c512_28] : memref<64x1024xf32, #tpu.memory_space<vmem>>, vector<2x512xf32>
    tpu.vector_store %arg9[%c4_27, %c512_28], %51 {strides = array<i32>} : memref<64x1024xf32, #tpu.memory_space<vmem>>, vector<2x512xf32>,
    %c0_29 = arith.constant 0 : index
    %c63 = arith.constant 63 : index
    %53 = vector.load %arg8[%c0_29, %c63] : memref<8x768xf32, #tpu.memory_space<vmem>>, vector<4x512xf32>
    %54 = arith.andi %16, %24 : vector<4x512xi1>
    %cst_30 = arith.constant 0.000000e+00 : f32
    %55 = vector.broadcast %cst_30 : f32 to vector<4x512xf32>
    %56 = arith.select %54, %53, %55 : vector<4x512xi1>, vector<4x512xf32>
    %57 = vector.extract_strided_slice %56 {offsets = [0, 0], sizes = [2, 512], strides = [1, 1]} : vector<4x512xf32> to vector<2x512xf32>
    %c6 = arith.constant 6 : index
    %c0_31 = arith.constant 0 : index
    %58 = vector.load %arg9[%c6, %c0_31] : memref<64x1024xf32, #tpu.memory_space<vmem>>, vector<2x512xf32>
    tpu.vector_store %arg9[%c6, %c0_31], %57 {strides = array<i32>} : memref<64x1024xf32, #tpu.memory_space<vmem>>, vector<2x512xf32>,
    %59 = vector.extract_strided_slice %56 {offsets = [2, 0], sizes = [2, 512], strides = [1, 1]} : vector<4x512xf32> to vector<2x512xf32>
    %c6_32 = arith.constant 6 : index
    %c512_33 = arith.constant 512 : index
    %60 = vector.load %arg9[%c6_32, %c512_33] : memref<64x1024xf32, #tpu.memory_space<vmem>>, vector<2x512xf32>
    tpu.vector_store %arg9[%c6_32, %c512_33], %59 {strides = array<i32>} : memref<64x1024xf32, #tpu.memory_space<vmem>>, vector<2x512xf32>,
    %c0_34 = arith.constant 0 : index
    %c64 = arith.constant 64 : index
    %61 = vector.load %arg8[%c0_34, %c64] : memref<8x768xf32, #tpu.memory_space<vmem>>, vector<4x512xf32>
    %cst_35 = arith.constant 0.000000e+00 : f32
    %62 = vector.broadcast %cst_35 : f32 to vector<4x512xf32>
    %63 = arith.select %16, %61, %62 : vector<4x512xi1>, vector<4x512xf32>
    %64 = vector.extract_strided_slice %63 {offsets = [0, 0], sizes = [2, 512], strides = [1, 1]} : vector<4x512xf32> to vector<2x512xf32>
    %c8 = arith.constant 8 : index
    %c0_36 = arith.constant 0 : index
    %65 = vector.load %arg9[%c8, %c0_36] : memref<64x1024xf32, #tpu.memory_space<vmem>>, vector<2x512xf32>
    tpu.vector_store %arg9[%c8, %c0_36], %64 {strides = array<i32>} : memref<64x1024xf32, #tpu.memory_space<vmem>>, vector<2x512xf32>,
    %66 = vector.extract_strided_slice %63 {offsets = [2, 0], sizes = [2, 512], strides = [1, 1]} : vector<4x512xf32> to vector<2x512xf32>
    %c8_37 = arith.constant 8 : index
    %c512_38 = arith.constant 512 : index
    %67 = vector.load %arg9[%c8_37, %c512_38] : memref<64x1024xf32, #tpu.memory_space<vmem>>, vector<2x512xf32>
    tpu.vector_store %arg9[%c8_37, %c512_38], %66 {strides = array<i32>} : memref<64x1024xf32, #tpu.memory_space<vmem>>, vector<2x512xf32>,
    %c0_39 = arith.constant 0 : index
    %c65 = arith.constant 65 : index
    %68 = vector.load %arg8[%c0_39, %c65] : memref<8x768xf32, #tpu.memory_space<vmem>>, vector<4x512xf32>
    %69 = arith.andi %16, %26 : vector<4x512xi1>
    %cst_40 = arith.constant 0.000000e+00 : f32
    %70 = vector.broadcast %cst_40 : f32 to vector<4x512xf32>
    %71 = arith.select %69, %68, %70 : vector<4x512xi1>, vector<4x512xf32>
    %72 = vector.extract_strided_slice %71 {offsets = [0, 0], sizes = [2, 512], strides = [1, 1]} : vector<4x512xf32> to vector<2x512xf32>
    %c10 = arith.constant 10 : index
    %c0_41 = arith.constant 0 : index
    %73 = vector.load %arg9[%c10, %c0_41] : memref<64x1024xf32, #tpu.memory_space<vmem>>, vector<2x512xf32>
    tpu.vector_store %arg9[%c10, %c0_41], %72 {strides = array<i32>} : memref<64x1024xf32, #tpu.memory_space<vmem>>, vector<2x512xf32>,
    %74 = vector.extract_strided_slice %71 {offsets = [2, 0], sizes = [2, 512], strides = [1, 1]} : vector<4x512xf32> to vector<2x512xf32>
    %c10_42 = arith.constant 10 : index
    %c512_43 = arith.constant 512 : index
    %75 = vector.load %arg9[%c10_42, %c512_43] : memref<64x1024xf32, #tpu.memory_space<vmem>>, vector<2x512xf32>
    tpu.vector_store %arg9[%c10_42, %c512_43], %74 {strides = array<i32>} : memref<64x1024xf32, #tpu.memory_space<vmem>>, vector<2x512xf32>,
    %76 = arith.andi %16, %22 : vector<4x512xi1>
    %c0_44 = arith.constant 0 : index
    %c71 = arith.constant 71 : index
    %77 = vector.load %arg8[%c0_44, %c71] : memref<8x768xf32, #tpu.memory_space<vmem>>, vector<4x512xf32>
    %78 = arith.andi %76, %24 : vector<4x512xi1>
    %cst_45 = arith.constant 0.000000e+00 : f32
    %79 = vector.broadcast %cst_45 : f32 to vector<4x512xf32>
    %80 = arith.select %78, %77, %79 : vector<4x512xi1>, vector<4x512xf32>
    %81 = vector.extract_strided_slice %80 {offsets = [0, 0], sizes = [2, 512], strides = [1, 1]} : vector<4x512xf32> to vector<2x512xf32>
    %c12 = arith.constant 12 : index
    %c0_46 = arith.constant 0 : index
    %82 = vector.load %arg9[%c12, %c0_46] : memref<64x1024xf32, #tpu.memory_space<vmem>>, vector<2x512xf32>
    tpu.vector_store %arg9[%c12, %c0_46], %81 {strides = array<i32>} : memref<64x1024xf32, #tpu.memory_space<vmem>>, vector<2x512xf32>,
    %83 = vector.extract_strided_slice %80 {offsets = [2, 0], sizes = [2, 512], strides = [1, 1]} : vector<4x512xf32> to vector<2x512xf32>
    %c12_47 = arith.constant 12 : index
    %c512_48 = arith.constant 512 : index
    %84 = vector.load %arg9[%c12_47, %c512_48] : memref<64x1024xf32, #tpu.memory_space<vmem>>, vector<2x512xf32>
    tpu.vector_store %arg9[%c12_47, %c512_48], %83 {strides = array<i32>} : memref<64x1024xf32, #tpu.memory_space<vmem>>, vector<2x512xf32>,
    %c0_49 = arith.constant 0 : index
    %c72 = arith.constant 72 : index
    %85 = vector.load %arg8[%c0_49, %c72] : memref<8x768xf32, #tpu.memory_space<vmem>>, vector<4x512xf32>
    %cst_50 = arith.constant 0.000000e+00 : f32
    %86 = vector.broadcast %cst_50 : f32 to vector<4x512xf32>
    %87 = arith.select %76, %85, %86 : vector<4x512xi1>, vector<4x512xf32>
    %88 = vector.extract_strided_slice %87 {offsets = [0, 0], sizes = [2, 512], strides = [1, 1]} : vector<4x512xf32> to vector<2x512xf32>
    %c14 = arith.constant 14 : index
    %c0_51 = arith.constant 0 : index
    %89 = vector.load %arg9[%c14, %c0_51] : memref<64x1024xf32, #tpu.memory_space<vmem>>, vector<2x512xf32>
    tpu.vector_store %arg9[%c14, %c0_51], %88 {strides = array<i32>} : memref<64x1024xf32, #tpu.memory_space<vmem>>, vector<2x512xf32>,
    %90 = vector.extract_strided_slice %87 {offsets = [2, 0], sizes = [2, 512], strides = [1, 1]} : vector<4x512xf32> to vector<2x512xf32>
    %c14_52 = arith.constant 14 : index
    %c512_53 = arith.constant 512 : index
    %91 = vector.load %arg9[%c14_52, %c512_53] : memref<64x1024xf32, #tpu.memory_space<vmem>>, vector<2x512xf32>
    tpu.vector_store %arg9[%c14_52, %c512_53], %90 {strides = array<i32>} : memref<64x1024xf32, #tpu.memory_space<vmem>>, vector<2x512xf32>,
    %c0_54 = arith.constant 0 : index
    %c73 = arith.constant 73 : index
    %92 = vector.load %arg8[%c0_54, %c73] : memref<8x768xf32, #tpu.memory_space<vmem>>, vector<4x512xf32>
    %93 = arith.andi %76, %26 : vector<4x512xi1>
    %cst_55 = arith.constant 0.000000e+00 : f32
    %94 = vector.broadcast %cst_55 : f32 to vector<4x512xf32>
    %95 = arith.select %93, %92, %94 : vector<4x512xi1>, vector<4x512xf32>
    %96 = vector.extract_strided_slice %95 {offsets = [0, 0], sizes = [2, 512], strides = [1, 1]} : vector<4x512xf32> to vector<2x512xf32>
    %c16 = arith.constant 16 : index
    %c0_56 = arith.constant 0 : index
    %97 = vector.load %arg9[%c16, %c0_56] : memref<64x1024xf32, #tpu.memory_space<vmem>>, vector<2x512xf32>
    tpu.vector_store %arg9[%c16, %c0_56], %96 {strides = array<i32>} : memref<64x1024xf32, #tpu.memory_space<vmem>>, vector<2x512xf32>,
    %98 = vector.extract_strided_slice %95 {offsets = [2, 0], sizes = [2, 512], strides = [1, 1]} : vector<4x512xf32> to vector<2x512xf32>
    %c16_57 = arith.constant 16 : index
    %c512_58 = arith.constant 512 : index
    %99 = vector.load %arg9[%c16_57, %c512_58] : memref<64x1024xf32, #tpu.memory_space<vmem>>, vector<2x512xf32>
    tpu.vector_store %arg9[%c16_57, %c512_58], %98 {strides = array<i32>} : memref<64x1024xf32, #tpu.memory_space<vmem>>, vector<2x512xf32>,
    %c0_59 = arith.constant 0 : index
    %c119 = arith.constant 119 : index
    %100 = vector.load %arg8[%c0_59, %c119] : memref<8x768xf32, #tpu.memory_space<vmem>>, vector<4x512xf32>
    %101 = arith.andi %20, %24 : vector<4x512xi1>
    %cst_60 = arith.constant 0.000000e+00 : f32
    %102 = vector.broadcast %cst_60 : f32 to vector<4x512xf32>
    %103 = arith.select %101, %100, %102 : vector<4x512xi1>, vector<4x512xf32>
    %104 = vector.extract_strided_slice %103 {offsets = [0, 0], sizes = [2, 512], strides = [1, 1]} : vector<4x512xf32> to vector<2x512xf32>
    %c18 = arith.constant 18 : index
    %c0_61 = arith.constant 0 : index
    %105 = vector.load %arg9[%c18, %c0_61] : memref<64x1024xf32, #tpu.memory_space<vmem>>, vector<2x512xf32>
    tpu.vector_store %arg9[%c18, %c0_61], %104 {strides = array<i32>} : memref<64x1024xf32, #tpu.memory_space<vmem>>, vector<2x512xf32>,
    %106 = vector.extract_strided_slice %103 {offsets = [2, 0], sizes = [2, 512], strides = [1, 1]} : vector<4x512xf32> to vector<2x512xf32>
    %c18_62 = arith.constant 18 : index
    %c512_63 = arith.constant 512 : index
    %107 = vector.load %arg9[%c18_62, %c512_63] : memref<64x1024xf32, #tpu.memory_space<vmem>>, vector<2x512xf32>
    tpu.vector_store %arg9[%c18_62, %c512_63], %106 {strides = array<i32>} : memref<64x1024xf32, #tpu.memory_space<vmem>>, vector<2x512xf32>,
    %c0_64 = arith.constant 0 : index
    %c120 = arith.constant 120 : index
    %108 = vector.load %arg8[%c0_64, %c120] : memref<8x768xf32, #tpu.memory_space<vmem>>, vector<4x512xf32>
    %cst_65 = arith.constant 0.000000e+00 : f32
    %109 = vector.broadcast %cst_65 : f32 to vector<4x512xf32>
    %110 = arith.select %20, %108, %109 : vector<4x512xi1>, vector<4x512xf32>
    %111 = vector.extract_strided_slice %110 {offsets = [0, 0], sizes = [2, 512], strides = [1, 1]} : vector<4x512xf32> to vector<2x512xf32>
    %c20 = arith.constant 20 : index
    %c0_66 = arith.constant 0 : index
    %112 = vector.load %arg9[%c20, %c0_66] : memref<64x1024xf32, #tpu.memory_space<vmem>>, vector<2x512xf32>
    tpu.vector_store %arg9[%c20, %c0_66], %111 {strides = array<i32>} : memref<64x1024xf32, #tpu.memory_space<vmem>>, vector<2x512xf32>,
    %113 = vector.extract_strided_slice %110 {offsets = [2, 0], sizes = [2, 512], strides = [1, 1]} : vector<4x512xf32> to vector<2x512xf32>
    %c20_67 = arith.constant 20 : index
    %c512_68 = arith.constant 512 : index
    %114 = vector.load %arg9[%c20_67, %c512_68] : memref<64x1024xf32, #tpu.memory_space<vmem>>, vector<2x512xf32>
    tpu.vector_store %arg9[%c20_67, %c512_68], %113 {strides = array<i32>} : memref<64x1024xf32, #tpu.memory_space<vmem>>, vector<2x512xf32>,
    %c0_69 = arith.constant 0 : index
    %c121 = arith.constant 121 : index
    %115 = vector.load %arg8[%c0_69, %c121] : memref<8x768xf32, #tpu.memory_space<vmem>>, vector<4x512xf32>
    %116 = arith.andi %20, %26 : vector<4x512xi1>
    %cst_70 = arith.constant 0.000000e+00 : f32
    %117 = vector.broadcast %cst_70 : f32 to vector<4x512xf32>
    %118 = arith.select %116, %115, %117 : vector<4x512xi1>, vector<4x512xf32>
    %119 = vector.extract_strided_slice %118 {offsets = [0, 0], sizes = [2, 512], strides = [1, 1]} : vector<4x512xf32> to vector<2x512xf32>
    %c22 = arith.constant 22 : index
    %c0_71 = arith.constant 0 : index
    %120 = vector.load %arg9[%c22, %c0_71] : memref<64x1024xf32, #tpu.memory_space<vmem>>, vector<2x512xf32>
    tpu.vector_store %arg9[%c22, %c0_71], %119 {strides = array<i32>} : memref<64x1024xf32, #tpu.memory_space<vmem>>, vector<2x512xf32>,
    %121 = vector.extract_strided_slice %118 {offsets = [2, 0], sizes = [2, 512], strides = [1, 1]} : vector<4x512xf32> to vector<2x512xf32>
    %c22_72 = arith.constant 22 : index
    %c512_73 = arith.constant 512 : index
    %122 = vector.load %arg9[%c22_72, %c512_73] : memref<64x1024xf32, #tpu.memory_space<vmem>>, vector<2x512xf32>
    tpu.vector_store %arg9[%c22_72, %c512_73], %121 {strides = array<i32>} : memref<64x1024xf32, #tpu.memory_space<vmem>>, vector<2x512xf32>,
    %c0_74 = arith.constant 0 : index
    %c127 = arith.constant 127 : index
    %123 = vector.load %arg8[%c0_74, %c127] : memref<8x768xf32, #tpu.memory_space<vmem>>, vector<4x512xf32>
    %cst_75 = arith.constant 0.000000e+00 : f32
    %124 = vector.broadcast %cst_75 : f32 to vector<4x512xf32>
    %125 = arith.select %24, %123, %124 : vector<4x512xi1>, vector<4x512xf32>
    %126 = vector.extract_strided_slice %125 {offsets = [0, 0], sizes = [2, 512], strides = [1, 1]} : vector<4x512xf32> to vector<2x512xf32>
    %c24 = arith.constant 24 : index
    %c0_76 = arith.constant 0 : index
    %127 = vector.load %arg9[%c24, %c0_76] : memref<64x1024xf32, #tpu.memory_space<vmem>>, vector<2x512xf32>
    tpu.vector_store %arg9[%c24, %c0_76], %126 {strides = array<i32>} : memref<64x1024xf32, #tpu.memory_space<vmem>>, vector<2x512xf32>,
    %128 = vector.extract_strided_slice %125 {offsets = [2, 0], sizes = [2, 512], strides = [1, 1]} : vector<4x512xf32> to vector<2x512xf32>
    %c24_77 = arith.constant 24 : index
    %c512_78 = arith.constant 512 : index
    %129 = vector.load %arg9[%c24_77, %c512_78] : memref<64x1024xf32, #tpu.memory_space<vmem>>, vector<2x512xf32>
    tpu.vector_store %arg9[%c24_77, %c512_78], %128 {strides = array<i32>} : memref<64x1024xf32, #tpu.memory_space<vmem>>, vector<2x512xf32>,
    %c0_79 = arith.constant 0 : index
    %c128_80 = arith.constant 128 : index
    %130 = vector.load %arg8[%c0_79, %c128_80] : memref<8x768xf32, #tpu.memory_space<vmem>>, vector<4x512xf32>
    %131 = vector.extract_strided_slice %130 {offsets = [0, 0], sizes = [2, 512], strides = [1, 1]} : vector<4x512xf32> to vector<2x512xf32>
    %c26 = arith.constant 26 : index
    %c0_81 = arith.constant 0 : index
    %132 = vector.load %arg9[%c26, %c0_81] : memref<64x1024xf32, #tpu.memory_space<vmem>>, vector<2x512xf32>
    tpu.vector_store %arg9[%c26, %c0_81], %131 {strides = array<i32>} : memref<64x1024xf32, #tpu.memory_space<vmem>>, vector<2x512xf32>,
    %133 = vector.extract_strided_slice %130 {offsets = [2, 0], sizes = [2, 512], strides = [1, 1]} : vector<4x512xf32> to vector<2x512xf32>
    %c26_82 = arith.constant 26 : index
    %c512_83 = arith.constant 512 : index
    %134 = vector.load %arg9[%c26_82, %c512_83] : memref<64x1024xf32, #tpu.memory_space<vmem>>, vector<2x512xf32>
    tpu.vector_store %arg9[%c26_82, %c512_83], %133 {strides = array<i32>} : memref<64x1024xf32, #tpu.memory_space<vmem>>, vector<2x512xf32>,
    %c0_84 = arith.constant 0 : index
    %c129 = arith.constant 129 : index
    %135 = vector.load %arg8[%c0_84, %c129] : memref<8x768xf32, #tpu.memory_space<vmem>>, vector<4x512xf32>
    %cst_85 = arith.constant 0.000000e+00 : f32
    %136 = vector.broadcast %cst_85 : f32 to vector<4x512xf32>
    %137 = arith.select %26, %135, %136 : vector<4x512xi1>, vector<4x512xf32>
    %138 = vector.extract_strided_slice %137 {offsets = [0, 0], sizes = [2, 512], strides = [1, 1]} : vector<4x512xf32> to vector<2x512xf32>
    %c28 = arith.constant 28 : index
    %c0_86 = arith.constant 0 : index
    %139 = vector.load %arg9[%c28, %c0_86] : memref<64x1024xf32, #tpu.memory_space<vmem>>, vector<2x512xf32>
    tpu.vector_store %arg9[%c28, %c0_86], %138 {strides = array<i32>} : memref<64x1024xf32, #tpu.memory_space<vmem>>, vector<2x512xf32>,
    %140 = vector.extract_strided_slice %137 {offsets = [2, 0], sizes = [2, 512], strides = [1, 1]} : vector<4x512xf32> to vector<2x512xf32>
    %c28_87 = arith.constant 28 : index
    %c512_88 = arith.constant 512 : index
    %141 = vector.load %arg9[%c28_87, %c512_88] : memref<64x1024xf32, #tpu.memory_space<vmem>>, vector<2x512xf32>
    tpu.vector_store %arg9[%c28_87, %c512_88], %140 {strides = array<i32>} : memref<64x1024xf32, #tpu.memory_space<vmem>>, vector<2x512xf32>,
    %c0_89 = arith.constant 0 : index
    %c135 = arith.constant 135 : index
    %142 = vector.load %arg8[%c0_89, %c135] : memref<8x768xf32, #tpu.memory_space<vmem>>, vector<4x512xf32>
    %143 = arith.andi %22, %24 : vector<4x512xi1>
    %cst_90 = arith.constant 0.000000e+00 : f32
    %144 = vector.broadcast %cst_90 : f32 to vector<4x512xf32>
    %145 = arith.select %143, %142, %144 : vector<4x512xi1>, vector<4x512xf32>
    %146 = vector.extract_strided_slice %145 {offsets = [0, 0], sizes = [2, 512], strides = [1, 1]} : vector<4x512xf32> to vector<2x512xf32>
    %c30 = arith.constant 30 : index
    %c0_91 = arith.constant 0 : index
    %147 = vector.load %arg9[%c30, %c0_91] : memref<64x1024xf32, #tpu.memory_space<vmem>>, vector<2x512xf32>
    tpu.vector_store %arg9[%c30, %c0_91], %146 {strides = array<i32>} : memref<64x1024xf32, #tpu.memory_space<vmem>>, vector<2x512xf32>,
    %148 = vector.extract_strided_slice %145 {offsets = [2, 0], sizes = [2, 512], strides = [1, 1]} : vector<4x512xf32> to vector<2x512xf32>
    %c30_92 = arith.constant 30 : index
    %c512_93 = arith.constant 512 : index
    %149 = vector.load %arg9[%c30_92, %c512_93] : memref<64x1024xf32, #tpu.memory_space<vmem>>, vector<2x512xf32>
    tpu.vector_store %arg9[%c30_92, %c512_93], %148 {strides = array<i32>} : memref<64x1024xf32, #tpu.memory_space<vmem>>, vector<2x512xf32>,
    %c0_94 = arith.constant 0 : index
    %c136 = arith.constant 136 : index
    %150 = vector.load %arg8[%c0_94, %c136] : memref<8x768xf32, #tpu.memory_space<vmem>>, vector<4x512xf32>
    %cst_95 = arith.constant 0.000000e+00 : f32
    %151 = vector.broadcast %cst_95 : f32 to vector<4x512xf32>
    %152 = arith.select %22, %150, %151 : vector<4x512xi1>, vector<4x512xf32>
    %153 = vector.extract_strided_slice %152 {offsets = [0, 0], sizes = [2, 512], strides = [1, 1]} : vector<4x512xf32> to vector<2x512xf32>
    %c32 = arith.constant 32 : index
    %c0_96 = arith.constant 0 : index
    %154 = vector.load %arg9[%c32, %c0_96] : memref<64x1024xf32, #tpu.memory_space<vmem>>, vector<2x512xf32>
    tpu.vector_store %arg9[%c32, %c0_96], %153 {strides = array<i32>} : memref<64x1024xf32, #tpu.memory_space<vmem>>, vector<2x512xf32>,
    %155 = vector.extract_strided_slice %152 {offsets = [2, 0], sizes = [2, 512], strides = [1, 1]} : vector<4x512xf32> to vector<2x512xf32>
    %c32_97 = arith.constant 32 : index
    %c512_98 = arith.constant 512 : index
    %156 = vector.load %arg9[%c32_97, %c512_98] : memref<64x1024xf32, #tpu.memory_space<vmem>>, vector<2x512xf32>
    tpu.vector_store %arg9[%c32_97, %c512_98], %155 {strides = array<i32>} : memref<64x1024xf32, #tpu.memory_space<vmem>>, vector<2x512xf32>,
    %c0_99 = arith.constant 0 : index
    %c137 = arith.constant 137 : index
    %157 = vector.load %arg8[%c0_99, %c137] : memref<8x768xf32, #tpu.memory_space<vmem>>, vector<4x512xf32>
    %158 = arith.andi %22, %26 : vector<4x512xi1>
    %cst_100 = arith.constant 0.000000e+00 : f32
    %159 = vector.broadcast %cst_100 : f32 to vector<4x512xf32>
    %160 = arith.select %158, %157, %159 : vector<4x512xi1>, vector<4x512xf32>
    %161 = vector.extract_strided_slice %160 {offsets = [0, 0], sizes = [2, 512], strides = [1, 1]} : vector<4x512xf32> to vector<2x512xf32>
    %c34 = arith.constant 34 : index
    %c0_101 = arith.constant 0 : index
    %162 = vector.load %arg9[%c34, %c0_101] : memref<64x1024xf32, #tpu.memory_space<vmem>>, vector<2x512xf32>
    tpu.vector_store %arg9[%c34, %c0_101], %161 {strides = array<i32>} : memref<64x1024xf32, #tpu.memory_space<vmem>>, vector<2x512xf32>,
    %163 = vector.extract_strided_slice %160 {offsets = [2, 0], sizes = [2, 512], strides = [1, 1]} : vector<4x512xf32> to vector<2x512xf32>
    %c34_102 = arith.constant 34 : index
    %c512_103 = arith.constant 512 : index
    %164 = vector.load %arg9[%c34_102, %c512_103] : memref<64x1024xf32, #tpu.memory_space<vmem>>, vector<2x512xf32>
    tpu.vector_store %arg9[%c34_102, %c512_103], %163 {strides = array<i32>} : memref<64x1024xf32, #tpu.memory_space<vmem>>, vector<2x512xf32>,
    %165 = arith.andi %18, %20 : vector<4x512xi1>
    %c0_104 = arith.constant 0 : index
    %c183 = arith.constant 183 : index
    %166 = vector.load %arg8[%c0_104, %c183] : memref<8x768xf32, #tpu.memory_space<vmem>>, vector<4x512xf32>
    %167 = arith.andi %165, %24 : vector<4x512xi1>
    %cst_105 = arith.constant 0.000000e+00 : f32
    %168 = vector.broadcast %cst_105 : f32 to vector<4x512xf32>
    %169 = arith.select %167, %166, %168 : vector<4x512xi1>, vector<4x512xf32>
    %170 = vector.extract_strided_slice %169 {offsets = [0, 0], sizes = [2, 512], strides = [1, 1]} : vector<4x512xf32> to vector<2x512xf32>
    %c36 = arith.constant 36 : index
    %c0_106 = arith.constant 0 : index
    %171 = vector.load %arg9[%c36, %c0_106] : memref<64x1024xf32, #tpu.memory_space<vmem>>, vector<2x512xf32>
    tpu.vector_store %arg9[%c36, %c0_106], %170 {strides = array<i32>} : memref<64x1024xf32, #tpu.memory_space<vmem>>, vector<2x512xf32>,
    %172 = vector.extract_strided_slice %169 {offsets = [2, 0], sizes = [2, 512], strides = [1, 1]} : vector<4x512xf32> to vector<2x512xf32>
    %c36_107 = arith.constant 36 : index
    %c512_108 = arith.constant 512 : index
    %173 = vector.load %arg9[%c36_107, %c512_108] : memref<64x1024xf32, #tpu.memory_space<vmem>>, vector<2x512xf32>
    tpu.vector_store %arg9[%c36_107, %c512_108], %172 {strides = array<i32>} : memref<64x1024xf32, #tpu.memory_space<vmem>>, vector<2x512xf32>,
    %c0_109 = arith.constant 0 : index
    %c184 = arith.constant 184 : index
    %174 = vector.load %arg8[%c0_109, %c184] : memref<8x768xf32, #tpu.memory_space<vmem>>, vector<4x512xf32>
    %cst_110 = arith.constant 0.000000e+00 : f32
    %175 = vector.broadcast %cst_110 : f32 to vector<4x512xf32>
    %176 = arith.select %165, %174, %175 : vector<4x512xi1>, vector<4x512xf32>
    %177 = vector.extract_strided_slice %176 {offsets = [0, 0], sizes = [2, 512], strides = [1, 1]} : vector<4x512xf32> to vector<2x512xf32>
    %c38 = arith.constant 38 : index
    %c0_111 = arith.constant 0 : index
    %178 = vector.load %arg9[%c38, %c0_111] : memref<64x1024xf32, #tpu.memory_space<vmem>>, vector<2x512xf32>
    tpu.vector_store %arg9[%c38, %c0_111], %177 {strides = array<i32>} : memref<64x1024xf32, #tpu.memory_space<vmem>>, vector<2x512xf32>,
    %179 = vector.extract_strided_slice %176 {offsets = [2, 0], sizes = [2, 512], strides = [1, 1]} : vector<4x512xf32> to vector<2x512xf32>
    %c38_112 = arith.constant 38 : index
    %c512_113 = arith.constant 512 : index
    %180 = vector.load %arg9[%c38_112, %c512_113] : memref<64x1024xf32, #tpu.memory_space<vmem>>, vector<2x512xf32>
    tpu.vector_store %arg9[%c38_112, %c512_113], %179 {strides = array<i32>} : memref<64x1024xf32, #tpu.memory_space<vmem>>, vector<2x512xf32>,
    %c0_114 = arith.constant 0 : index
    %c185 = arith.constant 185 : index
    %181 = vector.load %arg8[%c0_114, %c185] : memref<8x768xf32, #tpu.memory_space<vmem>>, vector<4x512xf32>
    %182 = arith.andi %165, %26 : vector<4x512xi1>
    %cst_115 = arith.constant 0.000000e+00 : f32
    %183 = vector.broadcast %cst_115 : f32 to vector<4x512xf32>
    %184 = arith.select %182, %181, %183 : vector<4x512xi1>, vector<4x512xf32>
    %185 = vector.extract_strided_slice %184 {offsets = [0, 0], sizes = [2, 512], strides = [1, 1]} : vector<4x512xf32> to vector<2x512xf32>
    %c40 = arith.constant 40 : index
    %c0_116 = arith.constant 0 : index
    %186 = vector.load %arg9[%c40, %c0_116] : memref<64x1024xf32, #tpu.memory_space<vmem>>, vector<2x512xf32>
    tpu.vector_store %arg9[%c40, %c0_116], %185 {strides = array<i32>} : memref<64x1024xf32, #tpu.memory_space<vmem>>, vector<2x512xf32>,
    %187 = vector.extract_strided_slice %184 {offsets = [2, 0], sizes = [2, 512], strides = [1, 1]} : vector<4x512xf32> to vector<2x512xf32>
    %c40_117 = arith.constant 40 : index
    %c512_118 = arith.constant 512 : index
    %188 = vector.load %arg9[%c40_117, %c512_118] : memref<64x1024xf32, #tpu.memory_space<vmem>>, vector<2x512xf32>
    tpu.vector_store %arg9[%c40_117, %c512_118], %187 {strides = array<i32>} : memref<64x1024xf32, #tpu.memory_space<vmem>>, vector<2x512xf32>,
    %c0_119 = arith.constant 0 : index
    %c191 = arith.constant 191 : index
    %189 = vector.load %arg8[%c0_119, %c191] : memref<8x768xf32, #tpu.memory_space<vmem>>, vector<4x512xf32>
    %190 = arith.andi %18, %24 : vector<4x512xi1>
    %cst_120 = arith.constant 0.000000e+00 : f32
    %191 = vector.broadcast %cst_120 : f32 to vector<4x512xf32>
    %192 = arith.select %190, %189, %191 : vector<4x512xi1>, vector<4x512xf32>
    %193 = vector.extract_strided_slice %192 {offsets = [0, 0], sizes = [2, 512], strides = [1, 1]} : vector<4x512xf32> to vector<2x512xf32>
    %c42 = arith.constant 42 : index
    %c0_121 = arith.constant 0 : index
    %194 = vector.load %arg9[%c42, %c0_121] : memref<64x1024xf32, #tpu.memory_space<vmem>>, vector<2x512xf32>
    tpu.vector_store %arg9[%c42, %c0_121], %193 {strides = array<i32>} : memref<64x1024xf32, #tpu.memory_space<vmem>>, vector<2x512xf32>,
    %195 = vector.extract_strided_slice %192 {offsets = [2, 0], sizes = [2, 512], strides = [1, 1]} : vector<4x512xf32> to vector<2x512xf32>
    %c42_122 = arith.constant 42 : index
    %c512_123 = arith.constant 512 : index
    %196 = vector.load %arg9[%c42_122, %c512_123] : memref<64x1024xf32, #tpu.memory_space<vmem>>, vector<2x512xf32>
    tpu.vector_store %arg9[%c42_122, %c512_123], %195 {strides = array<i32>} : memref<64x1024xf32, #tpu.memory_space<vmem>>, vector<2x512xf32>,
    %c0_124 = arith.constant 0 : index
    %c192 = arith.constant 192 : index
    %197 = vector.load %arg8[%c0_124, %c192] : memref<8x768xf32, #tpu.memory_space<vmem>>, vector<4x512xf32>
    %cst_125 = arith.constant 0.000000e+00 : f32
    %198 = vector.broadcast %cst_125 : f32 to vector<4x512xf32>
    %199 = arith.select %18, %197, %198 : vector<4x512xi1>, vector<4x512xf32>
    %200 = vector.extract_strided_slice %199 {offsets = [0, 0], sizes = [2, 512], strides = [1, 1]} : vector<4x512xf32> to vector<2x512xf32>
    %c44 = arith.constant 44 : index
    %c0_126 = arith.constant 0 : index
    %201 = vector.load %arg9[%c44, %c0_126] : memref<64x1024xf32, #tpu.memory_space<vmem>>, vector<2x512xf32>
    tpu.vector_store %arg9[%c44, %c0_126], %200 {strides = array<i32>} : memref<64x1024xf32, #tpu.memory_space<vmem>>, vector<2x512xf32>,
    %202 = vector.extract_strided_slice %199 {offsets = [2, 0], sizes = [2, 512], strides = [1, 1]} : vector<4x512xf32> to vector<2x512xf32>
    %c44_127 = arith.constant 44 : index
    %c512_128 = arith.constant 512 : index
    %203 = vector.load %arg9[%c44_127, %c512_128] : memref<64x1024xf32, #tpu.memory_space<vmem>>, vector<2x512xf32>
    tpu.vector_store %arg9[%c44_127, %c512_128], %202 {strides = array<i32>} : memref<64x1024xf32, #tpu.memory_space<vmem>>, vector<2x512xf32>,
    %c0_129 = arith.constant 0 : index
    %c193 = arith.constant 193 : index
    %204 = vector.load %arg8[%c0_129, %c193] : memref<8x768xf32, #tpu.memory_space<vmem>>, vector<4x512xf32>
    %205 = arith.andi %18, %26 : vector<4x512xi1>
    %cst_130 = arith.constant 0.000000e+00 : f32
    %206 = vector.broadcast %cst_130 : f32 to vector<4x512xf32>
    %207 = arith.select %205, %204, %206 : vector<4x512xi1>, vector<4x512xf32>
    %208 = vector.extract_strided_slice %207 {offsets = [0, 0], sizes = [2, 512], strides = [1, 1]} : vector<4x512xf32> to vector<2x512xf32>
    %c46 = arith.constant 46 : index
    %c0_131 = arith.constant 0 : index
    %209 = vector.load %arg9[%c46, %c0_131] : memref<64x1024xf32, #tpu.memory_space<vmem>>, vector<2x512xf32>
    tpu.vector_store %arg9[%c46, %c0_131], %208 {strides = array<i32>} : memref<64x1024xf32, #tpu.memory_space<vmem>>, vector<2x512xf32>,
    %210 = vector.extract_strided_slice %207 {offsets = [2, 0], sizes = [2, 512], strides = [1, 1]} : vector<4x512xf32> to vector<2x512xf32>
    %c46_132 = arith.constant 46 : index
    %c512_133 = arith.constant 512 : index
    %211 = vector.load %arg9[%c46_132, %c512_133] : memref<64x1024xf32, #tpu.memory_space<vmem>>, vector<2x512xf32>
    tpu.vector_store %arg9[%c46_132, %c512_133], %210 {strides = array<i32>} : memref<64x1024xf32, #tpu.memory_space<vmem>>, vector<2x512xf32>,
    %212 = arith.andi %18, %22 : vector<4x512xi1>
    %c0_134 = arith.constant 0 : index
    %c199 = arith.constant 199 : index
    %213 = vector.load %arg8[%c0_134, %c199] : memref<8x768xf32, #tpu.memory_space<vmem>>, vector<4x512xf32>
    %214 = arith.andi %212, %24 : vector<4x512xi1>
    %cst_135 = arith.constant 0.000000e+00 : f32
    %215 = vector.broadcast %cst_135 : f32 to vector<4x512xf32>
    %216 = arith.select %214, %213, %215 : vector<4x512xi1>, vector<4x512xf32>
    %217 = vector.extract_strided_slice %216 {offsets = [0, 0], sizes = [2, 512], strides = [1, 1]} : vector<4x512xf32> to vector<2x512xf32>
    %c48_136 = arith.constant 48 : index
    %c0_137 = arith.constant 0 : index
    %218 = vector.load %arg9[%c48_136, %c0_137] : memref<64x1024xf32, #tpu.memory_space<vmem>>, vector<2x512xf32>
    tpu.vector_store %arg9[%c48_136, %c0_137], %217 {strides = array<i32>} : memref<64x1024xf32, #tpu.memory_space<vmem>>, vector<2x512xf32>,
    %219 = vector.extract_strided_slice %216 {offsets = [2, 0], sizes = [2, 512], strides = [1, 1]} : vector<4x512xf32> to vector<2x512xf32>
    %c48_138 = arith.constant 48 : index
    %c512_139 = arith.constant 512 : index
    %220 = vector.load %arg9[%c48_138, %c512_139] : memref<64x1024xf32, #tpu.memory_space<vmem>>, vector<2x512xf32>
    tpu.vector_store %arg9[%c48_138, %c512_139], %219 {strides = array<i32>} : memref<64x1024xf32, #tpu.memory_space<vmem>>, vector<2x512xf32>,
    %c0_140 = arith.constant 0 : index
    %c200 = arith.constant 200 : index
    %221 = vector.load %arg8[%c0_140, %c200] : memref<8x768xf32, #tpu.memory_space<vmem>>, vector<4x512xf32>
    %cst_141 = arith.constant 0.000000e+00 : f32
    %222 = vector.broadcast %cst_141 : f32 to vector<4x512xf32>
    %223 = arith.select %212, %221, %222 : vector<4x512xi1>, vector<4x512xf32>
    %224 = vector.extract_strided_slice %223 {offsets = [0, 0], sizes = [2, 512], strides = [1, 1]} : vector<4x512xf32> to vector<2x512xf32>
    %c50 = arith.constant 50 : index
    %c0_142 = arith.constant 0 : index
    %225 = vector.load %arg9[%c50, %c0_142] : memref<64x1024xf32, #tpu.memory_space<vmem>>, vector<2x512xf32>
    tpu.vector_store %arg9[%c50, %c0_142], %224 {strides = array<i32>} : memref<64x1024xf32, #tpu.memory_space<vmem>>, vector<2x512xf32>,
    %226 = vector.extract_strided_slice %223 {offsets = [2, 0], sizes = [2, 512], strides = [1, 1]} : vector<4x512xf32> to vector<2x512xf32>
    %c50_143 = arith.constant 50 : index
    %c512_144 = arith.constant 512 : index
    %227 = vector.load %arg9[%c50_143, %c512_144] : memref<64x1024xf32, #tpu.memory_space<vmem>>, vector<2x512xf32>
    tpu.vector_store %arg9[%c50_143, %c512_144], %226 {strides = array<i32>} : memref<64x1024xf32, #tpu.memory_space<vmem>>, vector<2x512xf32>,
    %c0_145 = arith.constant 0 : index
    %c201 = arith.constant 201 : index
    %228 = vector.load %arg8[%c0_145, %c201] : memref<8x768xf32, #tpu.memory_space<vmem>>, vector<4x512xf32>
    %229 = arith.andi %212, %26 : vector<4x512xi1>
    %cst_146 = arith.constant 0.000000e+00 : f32
    %230 = vector.broadcast %cst_146 : f32 to vector<4x512xf32>
    %231 = arith.select %229, %228, %230 : vector<4x512xi1>, vector<4x512xf32>
    %232 = vector.extract_strided_slice %231 {offsets = [0, 0], sizes = [2, 512], strides = [1, 1]} : vector<4x512xf32> to vector<2x512xf32>
    %c52 = arith.constant 52 : index
    %c0_147 = arith.constant 0 : index
    %233 = vector.load %arg9[%c52, %c0_147] : memref<64x1024xf32, #tpu.memory_space<vmem>>, vector<2x512xf32>
    tpu.vector_store %arg9[%c52, %c0_147], %232 {strides = array<i32>} : memref<64x1024xf32, #tpu.memory_space<vmem>>, vector<2x512xf32>,
    %234 = vector.extract_strided_slice %231 {offsets = [2, 0], sizes = [2, 512], strides = [1, 1]} : vector<4x512xf32> to vector<2x512xf32>
    %c52_148 = arith.constant 52 : index
    %c512_149 = arith.constant 512 : index
    %235 = vector.load %arg9[%c52_148, %c512_149] : memref<64x1024xf32, #tpu.memory_space<vmem>>, vector<2x512xf32>
    tpu.vector_store %arg9[%c52_148, %c512_149], %234 {strides = array<i32>} : memref<64x1024xf32, #tpu.memory_space<vmem>>, vector<2x512xf32>,
    %c0_150 = arith.constant 0 : index
    %c0_151 = arith.constant 0 : index
    %236 = vector.load %arg1[%c0_150, %c0_151] : memref<8x64xf32, #tpu.memory_space<vmem>>, vector<8x64xf32>
    %c0_152 = arith.constant 0 : index
    %c0_153 = arith.constant 0 : index
    %237 = vector.load %arg9[%c0_152, %c0_153] : memref<64x1024xf32, #tpu.memory_space<vmem>>, vector<64x1024xf32>
    %cst_154 = arith.constant dense<0.000000e+00> : vector<8x1024xf32>
    %238 = tpu.matmul %236, %237, %cst_154 {dimension_numbers = #tpu.dot_dimension_numbers<[1], [0], [0], [1], [0, 0, 1, 1], [], []>} : vector<8x64xf32>, vector<64x1024xf32>, vector<8x1024xf32> -> vector<8x1024xf32>
    %cst_155 = arith.constant dense<0.000000e+00> : vector<8xf32>
    %239 = vector.multi_reduction <add>, %238, %cst_155 [1] : vector<8x1024xf32> to vector<8xf32>
    %240 = vector.shape_cast %239 : vector<8xf32> to vector<8x1xf32>
    %cst_156 = arith.constant 9.765625E-4 : f32
    %241 = vector.broadcast %cst_156 : f32 to vector<8x1xf32>
    %242 = arith.mulf %240, %241 : vector<8x1xf32>
    %243 = vector.broadcast %242 : vector<8x1xf32> to vector<8x1024xf32>
    %244 = arith.subf %238, %243 : vector<8x1024xf32>
    %245 = arith.mulf %244, %244 : vector<8x1024xf32>
    %cst_157 = arith.constant dense<0.000000e+00> : vector<8xf32>
    %246 = vector.multi_reduction <add>, %245, %cst_157 [1] : vector<8x1024xf32> to vector<8xf32>
    %247 = vector.shape_cast %246 : vector<8xf32> to vector<8x1xf32>
    %cst_158 = arith.constant 9.765625E-4 : f32
    %248 = vector.broadcast %cst_158 : f32 to vector<8x1xf32>
    %249 = arith.mulf %247, %248 : vector<8x1xf32>
    %c0_159 = arith.constant 0 : index
    %c0_160 = arith.constant 0 : index
    %250 = vector.load %arg2[%c0_159, %c0_160] : memref<8x1xf32, #tpu.memory_space<vmem>>, vector<8x1xf32>
    %cst_161 = arith.constant 9.99999974E-6 : f32
    %251 = vector.broadcast %cst_161 : f32 to vector<8x1xf32>
    %252 = arith.addf %249, %251 : vector<8x1xf32>
    %253 = math.rsqrt %252 : vector<8x1xf32>
    %254 = arith.mulf %250, %253 : vector<8x1xf32>
    %255 = vector.broadcast %254 : vector<8x1xf32> to vector<8x1024xf32>
    %256 = arith.mulf %244, %255 : vector<8x1024xf32>
    %c0_162 = arith.constant 0 : index
    %c0_163 = arith.constant 0 : index
    %257 = vector.load %arg3[%c0_162, %c0_163] : memref<8x1xf32, #tpu.memory_space<vmem>>, vector<8x1xf32>
    %258 = vector.broadcast %257 : vector<8x1xf32> to vector<8x1024xf32>
    %259 = arith.addf %256, %258 : vector<8x1024xf32>
    %cst_164 = arith.constant 0.000000e+00 : f32
    %260 = vector.broadcast %cst_164 : f32 to vector<8x1024xf32>
    %261 = arith.maximumf %259, %260 : vector<8x1024xf32>
    %cst_165 = arith.constant 0.000000e+00 : f32
    %262 = vector.broadcast %cst_165 : f32 to vector<8x128xf32>
    %c0_166 = arith.constant 0 : index
    %c0_167 = arith.constant 0 : index
    %263 = vector.load %arg10[%c0_166, %c0_167] : memref<8x1280xf32, #tpu.memory_space<vmem>>, vector<8x128xf32>
    tpu.vector_store %arg10[%c0_166, %c0_167], %262 {strides = array<i32>} : memref<8x1280xf32, #tpu.memory_space<vmem>>, vector<8x128xf32>,
    %cst_168 = arith.constant 0.000000e+00 : f32
    %264 = vector.broadcast %cst_168 : f32 to vector<8x128xf32>
    %c0_169 = arith.constant 0 : index
    %c1152 = arith.constant 1152 : index
    %265 = vector.load %arg10[%c0_169, %c1152] : memref<8x1280xf32, #tpu.memory_space<vmem>>, vector<8x128xf32>
    tpu.vector_store %arg10[%c0_169, %c1152], %264 {strides = array<i32>} : memref<8x1280xf32, #tpu.memory_space<vmem>>, vector<8x128xf32>,
    %c0_170 = arith.constant 0 : index
    %c128_171 = arith.constant 128 : index
    %266 = vector.load %arg10[%c0_170, %c128_171] : memref<8x1280xf32, #tpu.memory_space<vmem>>, vector<8x1024xf32>
    tpu.vector_store %arg10[%c0_170, %c128_171], %261 {strides = array<i32>} : memref<8x1280xf32, #tpu.memory_space<vmem>>, vector<8x1024xf32>,
    %267 = tpu.iota {dimensions = array<i32: 1>} : vector<8x1024xi32>
    %c7_i32_172 = arith.constant 7 : i32
    %268 = vector.broadcast %c7_i32_172 : i32 to vector<8x1024xi32>
    %269 = arith.andi %267, %268 : vector<8x1024xi32>
    %c1_i32_173 = arith.constant 1 : i32
    %270 = vector.broadcast %c1_i32_173 : i32 to vector<8x1024xi32>
    %271 = arith.cmpi sge, %269, %270 : vector<8x1024xi32>
    %c6_i32_174 = arith.constant 6 : i32
    %272 = vector.broadcast %c6_i32_174 : i32 to vector<8x1024xi32>
    %273 = arith.cmpi sle, %269, %272 : vector<8x1024xi32>
    %274 = tpu.iota {dimensions = array<i32: 1>} : vector<1x1024xi32>
    %c6_i32_175 = arith.constant 6 : i32
    %275 = vector.broadcast %c6_i32_175 : i32 to vector<1x1024xi32>
    %276 = arith.shrsi %274, %275 : vector<1x1024xi32>
    %c7_i32_176 = arith.constant 7 : i32
    %277 = vector.broadcast %c7_i32_176 : i32 to vector<1x1024xi32>
    %278 = arith.andi %276, %277 : vector<1x1024xi32>
    %c3_i32_177 = arith.constant 3 : i32
    %279 = vector.broadcast %c3_i32_177 : i32 to vector<1x1024xi32>
    %280 = arith.shrsi %274, %279 : vector<1x1024xi32>
    %c7_i32_178 = arith.constant 7 : i32
    %281 = vector.broadcast %c7_i32_178 : i32 to vector<1x1024xi32>
    %282 = arith.andi %280, %281 : vector<1x1024xi32>
    %c1_i32_179 = arith.constant 1 : i32
    %283 = vector.broadcast %c1_i32_179 : i32 to vector<1x1024xi32>
    %284 = arith.cmpi sge, %278, %283 : vector<1x1024xi32>
    %c6_i32_180 = arith.constant 6 : i32
    %285 = vector.broadcast %c6_i32_180 : i32 to vector<1x1024xi32>
    %286 = arith.cmpi sle, %278, %285 : vector<1x1024xi32>
    %c1_i32_181 = arith.constant 1 : i32
    %287 = vector.broadcast %c1_i32_181 : i32 to vector<1x1024xi32>
    %288 = arith.cmpi sge, %282, %287 : vector<1x1024xi32>
    %c6_i32_182 = arith.constant 6 : i32
    %289 = vector.broadcast %c6_i32_182 : i32 to vector<1x1024xi32>
    %290 = arith.cmpi sle, %282, %289 : vector<1x1024xi32>
    %c0_183 = arith.constant 0 : index
    %c0_184 = arith.constant 0 : index
    %291 = vector.load %arg4[%c0_183, %c0_184] : memref<8x27xf32, #tpu.memory_space<vmem>>, vector<8x27xf32>
    %cst_185 = arith.constant 0.000000e+00 : f32
    %292 = vector.broadcast %cst_185 : f32 to vector<8x1024xf32>
    %293 = arith.andi %284, %288 : vector<1x1024xi1>
    %c0_186 = arith.constant 0 : index
    %c55_187 = arith.constant 55 : index
    %294 = vector.load %arg10[%c0_186, %c55_187] : memref<8x1280xf32, #tpu.memory_space<vmem>>, vector<8x1024xf32>
    %295 = vector.broadcast %293 : vector<1x1024xi1> to vector<8x1024xi1>
    %296 = arith.andi %295, %271 : vector<8x1024xi1>
    %cst_188 = arith.constant 0.000000e+00 : f32
    %297 = vector.broadcast %cst_188 : f32 to vector<8x1024xf32>
    %298 = arith.select %296, %294, %297 : vector<8x1024xi1>, vector<8x1024xf32>
    %299 = vector.extract_strided_slice %291 {offsets = [0, 0], sizes = [8, 1], strides = [1, 1]} : vector<8x27xf32> to vector<8x1xf32>
    %300 = vector.broadcast %299 : vector<8x1xf32> to vector<8x1024xf32>
    %301 = arith.mulf %298, %300 : vector<8x1024xf32>
    %302 = arith.addf %292, %301 : vector<8x1024xf32>
    %c0_189 = arith.constant 0 : index
    %c56_190 = arith.constant 56 : index
    %303 = vector.load %arg10[%c0_189, %c56_190] : memref<8x1280xf32, #tpu.memory_space<vmem>>, vector<8x1024xf32>
    %cst_191 = arith.constant 0.000000e+00 : f32
    %304 = vector.shape_cast %293 : vector<1x1024xi1> to vector<1x1024xi1>
    %305 = vector.broadcast %304 : vector<1x1024xi1> to vector<8x1024xi1>
    %306 = vector.broadcast %cst_191 : f32 to vector<8x1024xf32>
    %307 = arith.select %305, %303, %306 : vector<8x1024xi1>, vector<8x1024xf32>
    %308 = vector.extract_strided_slice %291 {offsets = [0, 1], sizes = [8, 1], strides = [1, 1]} : vector<8x27xf32> to vector<8x1xf32>
    %309 = vector.broadcast %308 : vector<8x1xf32> to vector<8x1024xf32>
    %310 = arith.mulf %307, %309 : vector<8x1024xf32>
    %311 = arith.addf %302, %310 : vector<8x1024xf32>
    %c0_192 = arith.constant 0 : index
    %c57_193 = arith.constant 57 : index
    %312 = vector.load %arg10[%c0_192, %c57_193] : memref<8x1280xf32, #tpu.memory_space<vmem>>, vector<8x1024xf32>
    %313 = vector.broadcast %293 : vector<1x1024xi1> to vector<8x1024xi1>
    %314 = arith.andi %313, %273 : vector<8x1024xi1>
    %cst_194 = arith.constant 0.000000e+00 : f32
    %315 = vector.broadcast %cst_194 : f32 to vector<8x1024xf32>
    %316 = arith.select %314, %312, %315 : vector<8x1024xi1>, vector<8x1024xf32>
    %317 = vector.extract_strided_slice %291 {offsets = [0, 2], sizes = [8, 1], strides = [1, 1]} : vector<8x27xf32> to vector<8x1xf32>
    %318 = vector.broadcast %317 : vector<8x1xf32> to vector<8x1024xf32>
    %319 = arith.mulf %316, %318 : vector<8x1024xf32>
    %320 = arith.addf %311, %319 : vector<8x1024xf32>
    %c0_195 = arith.constant 0 : index
    %c63_196 = arith.constant 63 : index
    %321 = vector.load %arg10[%c0_195, %c63_196] : memref<8x1280xf32, #tpu.memory_space<vmem>>, vector<8x1024xf32>
    %322 = vector.broadcast %284 : vector<1x1024xi1> to vector<8x1024xi1>
    %323 = arith.andi %322, %271 : vector<8x1024xi1>
    %cst_197 = arith.constant 0.000000e+00 : f32
    %324 = vector.broadcast %cst_197 : f32 to vector<8x1024xf32>
    %325 = arith.select %323, %321, %324 : vector<8x1024xi1>, vector<8x1024xf32>
    %326 = vector.extract_strided_slice %291 {offsets = [0, 3], sizes = [8, 1], strides = [1, 1]} : vector<8x27xf32> to vector<8x1xf32>
    %327 = vector.broadcast %326 : vector<8x1xf32> to vector<8x1024xf32>
    %328 = arith.mulf %325, %327 : vector<8x1024xf32>
    %329 = arith.addf %320, %328 : vector<8x1024xf32>
    %c0_198 = arith.constant 0 : index
    %c64_199 = arith.constant 64 : index
    %330 = vector.load %arg10[%c0_198, %c64_199] : memref<8x1280xf32, #tpu.memory_space<vmem>>, vector<8x1024xf32>
    %cst_200 = arith.constant 0.000000e+00 : f32
    %331 = vector.shape_cast %284 : vector<1x1024xi1> to vector<1x1024xi1>
    %332 = vector.broadcast %331 : vector<1x1024xi1> to vector<8x1024xi1>
    %333 = vector.broadcast %cst_200 : f32 to vector<8x1024xf32>
    %334 = arith.select %332, %330, %333 : vector<8x1024xi1>, vector<8x1024xf32>
    %335 = vector.extract_strided_slice %291 {offsets = [0, 4], sizes = [8, 1], strides = [1, 1]} : vector<8x27xf32> to vector<8x1xf32>
    %336 = vector.broadcast %335 : vector<8x1xf32> to vector<8x1024xf32>
    %337 = arith.mulf %334, %336 : vector<8x1024xf32>
    %338 = arith.addf %329, %337 : vector<8x1024xf32>
    %c0_201 = arith.constant 0 : index
    %c65_202 = arith.constant 65 : index
    %339 = vector.load %arg10[%c0_201, %c65_202] : memref<8x1280xf32, #tpu.memory_space<vmem>>, vector<8x1024xf32>
    %340 = vector.broadcast %284 : vector<1x1024xi1> to vector<8x1024xi1>
    %341 = arith.andi %340, %273 : vector<8x1024xi1>
    %cst_203 = arith.constant 0.000000e+00 : f32
    %342 = vector.broadcast %cst_203 : f32 to vector<8x1024xf32>
    %343 = arith.select %341, %339, %342 : vector<8x1024xi1>, vector<8x1024xf32>
    %344 = vector.extract_strided_slice %291 {offsets = [0, 5], sizes = [8, 1], strides = [1, 1]} : vector<8x27xf32> to vector<8x1xf32>
    %345 = vector.broadcast %344 : vector<8x1xf32> to vector<8x1024xf32>
    %346 = arith.mulf %343, %345 : vector<8x1024xf32>
    %347 = arith.addf %338, %346 : vector<8x1024xf32>
    %348 = arith.andi %284, %290 : vector<1x1024xi1>
    %c0_204 = arith.constant 0 : index
    %c71_205 = arith.constant 71 : index
    %349 = vector.load %arg10[%c0_204, %c71_205] : memref<8x1280xf32, #tpu.memory_space<vmem>>, vector<8x1024xf32>
    %350 = vector.broadcast %348 : vector<1x1024xi1> to vector<8x1024xi1>
    %351 = arith.andi %350, %271 : vector<8x1024xi1>
    %cst_206 = arith.constant 0.000000e+00 : f32
    %352 = vector.broadcast %cst_206 : f32 to vector<8x1024xf32>
    %353 = arith.select %351, %349, %352 : vector<8x1024xi1>, vector<8x1024xf32>
    %354 = vector.extract_strided_slice %291 {offsets = [0, 6], sizes = [8, 1], strides = [1, 1]} : vector<8x27xf32> to vector<8x1xf32>
    %355 = vector.broadcast %354 : vector<8x1xf32> to vector<8x1024xf32>
    %356 = arith.mulf %353, %355 : vector<8x1024xf32>
    %357 = arith.addf %347, %356 : vector<8x1024xf32>
    %c0_207 = arith.constant 0 : index
    %c72_208 = arith.constant 72 : index
    %358 = vector.load %arg10[%c0_207, %c72_208] : memref<8x1280xf32, #tpu.memory_space<vmem>>, vector<8x1024xf32>
    %cst_209 = arith.constant 0.000000e+00 : f32
    %359 = vector.shape_cast %348 : vector<1x1024xi1> to vector<1x1024xi1>
    %360 = vector.broadcast %359 : vector<1x1024xi1> to vector<8x1024xi1>
    %361 = vector.broadcast %cst_209 : f32 to vector<8x1024xf32>
    %362 = arith.select %360, %358, %361 : vector<8x1024xi1>, vector<8x1024xf32>
    %363 = vector.extract_strided_slice %291 {offsets = [0, 7], sizes = [8, 1], strides = [1, 1]} : vector<8x27xf32> to vector<8x1xf32>
    %364 = vector.broadcast %363 : vector<8x1xf32> to vector<8x1024xf32>
    %365 = arith.mulf %362, %364 : vector<8x1024xf32>
    %366 = arith.addf %357, %365 : vector<8x1024xf32>
    %c0_210 = arith.constant 0 : index
    %c73_211 = arith.constant 73 : index
    %367 = vector.load %arg10[%c0_210, %c73_211] : memref<8x1280xf32, #tpu.memory_space<vmem>>, vector<8x1024xf32>
    %368 = vector.broadcast %348 : vector<1x1024xi1> to vector<8x1024xi1>
    %369 = arith.andi %368, %273 : vector<8x1024xi1>
    %cst_212 = arith.constant 0.000000e+00 : f32
    %370 = vector.broadcast %cst_212 : f32 to vector<8x1024xf32>
    %371 = arith.select %369, %367, %370 : vector<8x1024xi1>, vector<8x1024xf32>
    %372 = vector.extract_strided_slice %291 {offsets = [0, 8], sizes = [8, 1], strides = [1, 1]} : vector<8x27xf32> to vector<8x1xf32>
    %373 = vector.broadcast %372 : vector<8x1xf32> to vector<8x1024xf32>
    %374 = arith.mulf %371, %373 : vector<8x1024xf32>
    %375 = arith.addf %366, %374 : vector<8x1024xf32>
    %c0_213 = arith.constant 0 : index
    %c119_214 = arith.constant 119 : index
    %376 = vector.load %arg10[%c0_213, %c119_214] : memref<8x1280xf32, #tpu.memory_space<vmem>>, vector<8x1024xf32>
    %377 = vector.broadcast %288 : vector<1x1024xi1> to vector<8x1024xi1>
    %378 = arith.andi %377, %271 : vector<8x1024xi1>
    %cst_215 = arith.constant 0.000000e+00 : f32
    %379 = vector.broadcast %cst_215 : f32 to vector<8x1024xf32>
    %380 = arith.select %378, %376, %379 : vector<8x1024xi1>, vector<8x1024xf32>
    %381 = vector.extract_strided_slice %291 {offsets = [0, 9], sizes = [8, 1], strides = [1, 1]} : vector<8x27xf32> to vector<8x1xf32>
    %382 = vector.broadcast %381 : vector<8x1xf32> to vector<8x1024xf32>
    %383 = arith.mulf %380, %382 : vector<8x1024xf32>
    %384 = arith.addf %375, %383 : vector<8x1024xf32>
    %c0_216 = arith.constant 0 : index
    %c120_217 = arith.constant 120 : index
    %385 = vector.load %arg10[%c0_216, %c120_217] : memref<8x1280xf32, #tpu.memory_space<vmem>>, vector<8x1024xf32>
    %cst_218 = arith.constant 0.000000e+00 : f32
    %386 = vector.shape_cast %288 : vector<1x1024xi1> to vector<1x1024xi1>
    %387 = vector.broadcast %386 : vector<1x1024xi1> to vector<8x1024xi1>
    %388 = vector.broadcast %cst_218 : f32 to vector<8x1024xf32>
    %389 = arith.select %387, %385, %388 : vector<8x1024xi1>, vector<8x1024xf32>
    %390 = vector.extract_strided_slice %291 {offsets = [0, 10], sizes = [8, 1], strides = [1, 1]} : vector<8x27xf32> to vector<8x1xf32>
    %391 = vector.broadcast %390 : vector<8x1xf32> to vector<8x1024xf32>
    %392 = arith.mulf %389, %391 : vector<8x1024xf32>
    %393 = arith.addf %384, %392 : vector<8x1024xf32>
    %c0_219 = arith.constant 0 : index
    %c121_220 = arith.constant 121 : index
    %394 = vector.load %arg10[%c0_219, %c121_220] : memref<8x1280xf32, #tpu.memory_space<vmem>>, vector<8x1024xf32>
    %395 = vector.broadcast %288 : vector<1x1024xi1> to vector<8x1024xi1>
    %396 = arith.andi %395, %273 : vector<8x1024xi1>
    %cst_221 = arith.constant 0.000000e+00 : f32
    %397 = vector.broadcast %cst_221 : f32 to vector<8x1024xf32>
    %398 = arith.select %396, %394, %397 : vector<8x1024xi1>, vector<8x1024xf32>
    %399 = vector.extract_strided_slice %291 {offsets = [0, 11], sizes = [8, 1], strides = [1, 1]} : vector<8x27xf32> to vector<8x1xf32>
    %400 = vector.broadcast %399 : vector<8x1xf32> to vector<8x1024xf32>
    %401 = arith.mulf %398, %400 : vector<8x1024xf32>
    %402 = arith.addf %393, %401 : vector<8x1024xf32>
    %c0_222 = arith.constant 0 : index
    %c127_223 = arith.constant 127 : index
    %403 = vector.load %arg10[%c0_222, %c127_223] : memref<8x1280xf32, #tpu.memory_space<vmem>>, vector<8x1024xf32>
    %cst_224 = arith.constant 0.000000e+00 : f32
    %404 = vector.broadcast %cst_224 : f32 to vector<8x1024xf32>
    %405 = arith.select %271, %403, %404 : vector<8x1024xi1>, vector<8x1024xf32>
    %406 = vector.extract_strided_slice %291 {offsets = [0, 12], sizes = [8, 1], strides = [1, 1]} : vector<8x27xf32> to vector<8x1xf32>
    %407 = vector.broadcast %406 : vector<8x1xf32> to vector<8x1024xf32>
    %408 = arith.mulf %405, %407 : vector<8x1024xf32>
    %409 = arith.addf %402, %408 : vector<8x1024xf32>
    %c0_225 = arith.constant 0 : index
    %c128_226 = arith.constant 128 : index
    %410 = vector.load %arg10[%c0_225, %c128_226] : memref<8x1280xf32, #tpu.memory_space<vmem>>, vector<8x1024xf32>
    %411 = vector.extract_strided_slice %291 {offsets = [0, 13], sizes = [8, 1], strides = [1, 1]} : vector<8x27xf32> to vector<8x1xf32>
    %412 = vector.broadcast %411 : vector<8x1xf32> to vector<8x1024xf32>
    %413 = arith.mulf %410, %412 : vector<8x1024xf32>
    %414 = arith.addf %409, %413 : vector<8x1024xf32>
    %c0_227 = arith.constant 0 : index
    %c129_228 = arith.constant 129 : index
    %415 = vector.load %arg10[%c0_227, %c129_228] : memref<8x1280xf32, #tpu.memory_space<vmem>>, vector<8x1024xf32>
    %cst_229 = arith.constant 0.000000e+00 : f32
    %416 = vector.broadcast %cst_229 : f32 to vector<8x1024xf32>
    %417 = arith.select %273, %415, %416 : vector<8x1024xi1>, vector<8x1024xf32>
    %418 = vector.extract_strided_slice %291 {offsets = [0, 14], sizes = [8, 1], strides = [1, 1]} : vector<8x27xf32> to vector<8x1xf32>
    %419 = vector.broadcast %418 : vector<8x1xf32> to vector<8x1024xf32>
    %420 = arith.mulf %417, %419 : vector<8x1024xf32>
    %421 = arith.addf %414, %420 : vector<8x1024xf32>
    %c0_230 = arith.constant 0 : index
    %c135_231 = arith.constant 135 : index
    %422 = vector.load %arg10[%c0_230, %c135_231] : memref<8x1280xf32, #tpu.memory_space<vmem>>, vector<8x1024xf32>
    %423 = vector.broadcast %290 : vector<1x1024xi1> to vector<8x1024xi1>
    %424 = arith.andi %423, %271 : vector<8x1024xi1>
    %cst_232 = arith.constant 0.000000e+00 : f32
    %425 = vector.broadcast %cst_232 : f32 to vector<8x1024xf32>
    %426 = arith.select %424, %422, %425 : vector<8x1024xi1>, vector<8x1024xf32>
    %427 = vector.extract_strided_slice %291 {offsets = [0, 15], sizes = [8, 1], strides = [1, 1]} : vector<8x27xf32> to vector<8x1xf32>
    %428 = vector.broadcast %427 : vector<8x1xf32> to vector<8x1024xf32>
    %429 = arith.mulf %426, %428 : vector<8x1024xf32>
    %430 = arith.addf %421, %429 : vector<8x1024xf32>
    %c0_233 = arith.constant 0 : index
    %c136_234 = arith.constant 136 : index
    %431 = vector.load %arg10[%c0_233, %c136_234] : memref<8x1280xf32, #tpu.memory_space<vmem>>, vector<8x1024xf32>
    %cst_235 = arith.constant 0.000000e+00 : f32
    %432 = vector.shape_cast %290 : vector<1x1024xi1> to vector<1x1024xi1>
    %433 = vector.broadcast %432 : vector<1x1024xi1> to vector<8x1024xi1>
    %434 = vector.broadcast %cst_235 : f32 to vector<8x1024xf32>
    %435 = arith.select %433, %431, %434 : vector<8x1024xi1>, vector<8x1024xf32>
    %436 = vector.extract_strided_slice %291 {offsets = [0, 16], sizes = [8, 1], strides = [1, 1]} : vector<8x27xf32> to vector<8x1xf32>
    %437 = vector.broadcast %436 : vector<8x1xf32> to vector<8x1024xf32>
    %438 = arith.mulf %435, %437 : vector<8x1024xf32>
    %439 = arith.addf %430, %438 : vector<8x1024xf32>
    %c0_236 = arith.constant 0 : index
    %c137_237 = arith.constant 137 : index
    %440 = vector.load %arg10[%c0_236, %c137_237] : memref<8x1280xf32, #tpu.memory_space<vmem>>, vector<8x1024xf32>
    %441 = vector.broadcast %290 : vector<1x1024xi1> to vector<8x1024xi1>
    %442 = arith.andi %441, %273 : vector<8x1024xi1>
    %cst_238 = arith.constant 0.000000e+00 : f32
    %443 = vector.broadcast %cst_238 : f32 to vector<8x1024xf32>
    %444 = arith.select %442, %440, %443 : vector<8x1024xi1>, vector<8x1024xf32>
    %445 = vector.extract_strided_slice %291 {offsets = [0, 17], sizes = [8, 1], strides = [1, 1]} : vector<8x27xf32> to vector<8x1xf32>
    %446 = vector.broadcast %445 : vector<8x1xf32> to vector<8x1024xf32>
    %447 = arith.mulf %444, %446 : vector<8x1024xf32>
    %448 = arith.addf %439, %447 : vector<8x1024xf32>
    %449 = arith.andi %286, %288 : vector<1x1024xi1>
    %c0_239 = arith.constant 0 : index
    %c183_240 = arith.constant 183 : index
    %450 = vector.load %arg10[%c0_239, %c183_240] : memref<8x1280xf32, #tpu.memory_space<vmem>>, vector<8x1024xf32>
    %451 = vector.broadcast %449 : vector<1x1024xi1> to vector<8x1024xi1>
    %452 = arith.andi %451, %271 : vector<8x1024xi1>
    %cst_241 = arith.constant 0.000000e+00 : f32
    %453 = vector.broadcast %cst_241 : f32 to vector<8x1024xf32>
    %454 = arith.select %452, %450, %453 : vector<8x1024xi1>, vector<8x1024xf32>
    %455 = vector.extract_strided_slice %291 {offsets = [0, 18], sizes = [8, 1], strides = [1, 1]} : vector<8x27xf32> to vector<8x1xf32>
    %456 = vector.broadcast %455 : vector<8x1xf32> to vector<8x1024xf32>
    %457 = arith.mulf %454, %456 : vector<8x1024xf32>
    %458 = arith.addf %448, %457 : vector<8x1024xf32>
    %c0_242 = arith.constant 0 : index
    %c184_243 = arith.constant 184 : index
    %459 = vector.load %arg10[%c0_242, %c184_243] : memref<8x1280xf32, #tpu.memory_space<vmem>>, vector<8x1024xf32>
    %cst_244 = arith.constant 0.000000e+00 : f32
    %460 = vector.shape_cast %449 : vector<1x1024xi1> to vector<1x1024xi1>
    %461 = vector.broadcast %460 : vector<1x1024xi1> to vector<8x1024xi1>
    %462 = vector.broadcast %cst_244 : f32 to vector<8x1024xf32>
    %463 = arith.select %461, %459, %462 : vector<8x1024xi1>, vector<8x1024xf32>
    %464 = vector.extract_strided_slice %291 {offsets = [0, 19], sizes = [8, 1], strides = [1, 1]} : vector<8x27xf32> to vector<8x1xf32>
    %465 = vector.broadcast %464 : vector<8x1xf32> to vector<8x1024xf32>
    %466 = arith.mulf %463, %465 : vector<8x1024xf32>
    %467 = arith.addf %458, %466 : vector<8x1024xf32>
    %c0_245 = arith.constant 0 : index
    %c185_246 = arith.constant 185 : index
    %468 = vector.load %arg10[%c0_245, %c185_246] : memref<8x1280xf32, #tpu.memory_space<vmem>>, vector<8x1024xf32>
    %469 = vector.broadcast %449 : vector<1x1024xi1> to vector<8x1024xi1>
    %470 = arith.andi %469, %273 : vector<8x1024xi1>
    %cst_247 = arith.constant 0.000000e+00 : f32
    %471 = vector.broadcast %cst_247 : f32 to vector<8x1024xf32>
    %472 = arith.select %470, %468, %471 : vector<8x1024xi1>, vector<8x1024xf32>
    %473 = vector.extract_strided_slice %291 {offsets = [0, 20], sizes = [8, 1], strides = [1, 1]} : vector<8x27xf32> to vector<8x1xf32>
    %474 = vector.broadcast %473 : vector<8x1xf32> to vector<8x1024xf32>
    %475 = arith.mulf %472, %474 : vector<8x1024xf32>
    %476 = arith.addf %467, %475 : vector<8x1024xf32>
    %c0_248 = arith.constant 0 : index
    %c191_249 = arith.constant 191 : index
    %477 = vector.load %arg10[%c0_248, %c191_249] : memref<8x1280xf32, #tpu.memory_space<vmem>>, vector<8x1024xf32>
    %478 = vector.broadcast %286 : vector<1x1024xi1> to vector<8x1024xi1>
    %479 = arith.andi %478, %271 : vector<8x1024xi1>
    %cst_250 = arith.constant 0.000000e+00 : f32
    %480 = vector.broadcast %cst_250 : f32 to vector<8x1024xf32>
    %481 = arith.select %479, %477, %480 : vector<8x1024xi1>, vector<8x1024xf32>
    %482 = vector.extract_strided_slice %291 {offsets = [0, 21], sizes = [8, 1], strides = [1, 1]} : vector<8x27xf32> to vector<8x1xf32>
    %483 = vector.broadcast %482 : vector<8x1xf32> to vector<8x1024xf32>
    %484 = arith.mulf %481, %483 : vector<8x1024xf32>
    %485 = arith.addf %476, %484 : vector<8x1024xf32>
    %c0_251 = arith.constant 0 : index
    %c192_252 = arith.constant 192 : index
    %486 = vector.load %arg10[%c0_251, %c192_252] : memref<8x1280xf32, #tpu.memory_space<vmem>>, vector<8x1024xf32>
    %cst_253 = arith.constant 0.000000e+00 : f32
    %487 = vector.shape_cast %286 : vector<1x1024xi1> to vector<1x1024xi1>
    %488 = vector.broadcast %487 : vector<1x1024xi1> to vector<8x1024xi1>
    %489 = vector.broadcast %cst_253 : f32 to vector<8x1024xf32>
    %490 = arith.select %488, %486, %489 : vector<8x1024xi1>, vector<8x1024xf32>
    %491 = vector.extract_strided_slice %291 {offsets = [0, 22], sizes = [8, 1], strides = [1, 1]} : vector<8x27xf32> to vector<8x1xf32>
    %492 = vector.broadcast %491 : vector<8x1xf32> to vector<8x1024xf32>
    %493 = arith.mulf %490, %492 : vector<8x1024xf32>
    %494 = arith.addf %485, %493 : vector<8x1024xf32>
    %c0_254 = arith.constant 0 : index
    %c193_255 = arith.constant 193 : index
    %495 = vector.load %arg10[%c0_254, %c193_255] : memref<8x1280xf32, #tpu.memory_space<vmem>>, vector<8x1024xf32>
    %496 = vector.broadcast %286 : vector<1x1024xi1> to vector<8x1024xi1>
    %497 = arith.andi %496, %273 : vector<8x1024xi1>
    %cst_256 = arith.constant 0.000000e+00 : f32
    %498 = vector.broadcast %cst_256 : f32 to vector<8x1024xf32>
    %499 = arith.select %497, %495, %498 : vector<8x1024xi1>, vector<8x1024xf32>
    %500 = vector.extract_strided_slice %291 {offsets = [0, 23], sizes = [8, 1], strides = [1, 1]} : vector<8x27xf32> to vector<8x1xf32>
    %501 = vector.broadcast %500 : vector<8x1xf32> to vector<8x1024xf32>
    %502 = arith.mulf %499, %501 : vector<8x1024xf32>
    %503 = arith.addf %494, %502 : vector<8x1024xf32>
    %504 = arith.andi %286, %290 : vector<1x1024xi1>
    %c0_257 = arith.constant 0 : index
    %c199_258 = arith.constant 199 : index
    %505 = vector.load %arg10[%c0_257, %c199_258] : memref<8x1280xf32, #tpu.memory_space<vmem>>, vector<8x1024xf32>
    %506 = vector.broadcast %504 : vector<1x1024xi1> to vector<8x1024xi1>
    %507 = arith.andi %506, %271 : vector<8x1024xi1>
    %cst_259 = arith.constant 0.000000e+00 : f32
    %508 = vector.broadcast %cst_259 : f32 to vector<8x1024xf32>
    %509 = arith.select %507, %505, %508 : vector<8x1024xi1>, vector<8x1024xf32>
    %510 = vector.extract_strided_slice %291 {offsets = [0, 24], sizes = [8, 1], strides = [1, 1]} : vector<8x27xf32> to vector<8x1xf32>
    %511 = vector.broadcast %510 : vector<8x1xf32> to vector<8x1024xf32>
    %512 = arith.mulf %509, %511 : vector<8x1024xf32>
    %513 = arith.addf %503, %512 : vector<8x1024xf32>
    %c0_260 = arith.constant 0 : index
    %c200_261 = arith.constant 200 : index
    %514 = vector.load %arg10[%c0_260, %c200_261] : memref<8x1280xf32, #tpu.memory_space<vmem>>, vector<8x1024xf32>
    %cst_262 = arith.constant 0.000000e+00 : f32
    %515 = vector.shape_cast %504 : vector<1x1024xi1> to vector<1x1024xi1>
    %516 = vector.broadcast %515 : vector<1x1024xi1> to vector<8x1024xi1>
    %517 = vector.broadcast %cst_262 : f32 to vector<8x1024xf32>
    %518 = arith.select %516, %514, %517 : vector<8x1024xi1>, vector<8x1024xf32>
    %519 = vector.extract_strided_slice %291 {offsets = [0, 25], sizes = [8, 1], strides = [1, 1]} : vector<8x27xf32> to vector<8x1xf32>
    %520 = vector.broadcast %519 : vector<8x1xf32> to vector<8x1024xf32>
    %521 = arith.mulf %518, %520 : vector<8x1024xf32>
    %522 = arith.addf %513, %521 : vector<8x1024xf32>
    %c0_263 = arith.constant 0 : index
    %c201_264 = arith.constant 201 : index
    %523 = vector.load %arg10[%c0_263, %c201_264] : memref<8x1280xf32, #tpu.memory_space<vmem>>, vector<8x1024xf32>
    %524 = vector.broadcast %504 : vector<1x1024xi1> to vector<8x1024xi1>
    %525 = arith.andi %524, %273 : vector<8x1024xi1>
    %cst_265 = arith.constant 0.000000e+00 : f32
    %526 = vector.broadcast %cst_265 : f32 to vector<8x1024xf32>
    %527 = arith.select %525, %523, %526 : vector<8x1024xi1>, vector<8x1024xf32>
    %528 = vector.extract_strided_slice %291 {offsets = [0, 26], sizes = [8, 1], strides = [1, 1]} : vector<8x27xf32> to vector<8x1xf32>
    %529 = vector.broadcast %528 : vector<8x1xf32> to vector<8x1024xf32>
    %530 = arith.mulf %527, %529 : vector<8x1024xf32>
    %531 = arith.addf %522, %530 : vector<8x1024xf32>
    %cst_266 = arith.constant dense<0.000000e+00> : vector<1024xf32>
    %532 = vector.multi_reduction <add>, %531, %cst_266 [0] : vector<8x1024xf32> to vector<1024xf32>
    %533 = vector.shape_cast %532 : vector<1024xf32> to vector<1x1024xf32>
    %cst_267 = arith.constant dense<0.000000e+00> : vector<1xf32>
    %534 = vector.multi_reduction <add>, %533, %cst_267 [1] : vector<1x1024xf32> to vector<1xf32>
    %535 = vector.shape_cast %534 : vector<1xf32> to vector<1x1xf32>
    %cst_268 = arith.constant 9.765625E-4 : f32
    %536 = vector.broadcast %cst_268 : f32 to vector<1x1xf32>
    %537 = arith.mulf %535, %536 : vector<1x1xf32>
    %538 = vector.broadcast %537 : vector<1x1xf32> to vector<1x1024xf32>
    %539 = arith.subf %533, %538 : vector<1x1024xf32>
    %540 = arith.mulf %539, %539 : vector<1x1024xf32>
    %cst_269 = arith.constant dense<0.000000e+00> : vector<1xf32>
    %541 = vector.multi_reduction <add>, %540, %cst_269 [1] : vector<1x1024xf32> to vector<1xf32>
    %542 = vector.shape_cast %541 : vector<1xf32> to vector<1x1xf32>
    %cst_270 = arith.constant 9.765625E-4 : f32
    %543 = vector.broadcast %cst_270 : f32 to vector<1x1xf32>
    %544 = arith.mulf %542, %543 : vector<1x1xf32>
    %c0_271 = arith.constant 0 : index
    %c0_272 = arith.constant 0 : index
    %545 = vector.load %arg5[%c0_271, %c0_272] : memref<1x1xf32, #tpu.memory_space<vmem>>, vector<1x1xf32>
    %cst_273 = arith.constant 9.99999974E-6 : f32
    %546 = vector.broadcast %cst_273 : f32 to vector<1x1xf32>
    %547 = arith.addf %544, %546 : vector<1x1xf32>
    %548 = math.rsqrt %547 : vector<1x1xf32>
    %549 = arith.mulf %545, %548 : vector<1x1xf32>
    %550 = vector.broadcast %549 : vector<1x1xf32> to vector<1x1024xf32>
    %551 = arith.mulf %539, %550 : vector<1x1024xf32>
    %c0_274 = arith.constant 0 : index
    %c0_275 = arith.constant 0 : index
    %552 = vector.load %arg6[%c0_274, %c0_275] : memref<1x1xf32, #tpu.memory_space<vmem>>, vector<1x1xf32>
    %553 = vector.broadcast %552 : vector<1x1xf32> to vector<1x1024xf32>
    %554 = arith.addf %551, %553 : vector<1x1024xf32>
    %cst_276 = arith.constant 0.000000e+00 : f32
    %555 = vector.broadcast %cst_276 : f32 to vector<1x1024xf32>
    %556 = arith.maximumf %554, %555 : vector<1x1024xf32>
    %557 = vector.extract_strided_slice %556 {offsets = [0, 0], sizes = [1, 512], strides = [1, 1]} : vector<1x1024xf32> to vector<1x512xf32>
    %cst_277 = arith.constant dense<0.000000e+00> : vector<1xf32>
    %558 = vector.multi_reduction <add>, %557, %cst_277 [1] : vector<1x512xf32> to vector<1xf32>
    %559 = vector.shape_cast %558 : vector<1xf32> to vector<1x1xf32>
    %cst_278 = arith.constant 0.001953125 : f32
    %560 = vector.broadcast %cst_278 : f32 to vector<1x1xf32>
    %561 = arith.mulf %559, %560 : vector<1x1xf32>
    %c0_279 = arith.constant 0 : index
    %c0_280 = arith.constant 0 : index
    %562 = vector.load %arg7[%c0_279, %c0_280] : memref<2x1xf32, #tpu.memory_space<vmem>>, vector<1x1xf32>
    tpu.vector_store %arg7[%c0_279, %c0_280], %561 {strides = array<i32>} : memref<2x1xf32, #tpu.memory_space<vmem>>, vector<1x1xf32>,
    %563 = vector.extract_strided_slice %556 {offsets = [0, 512], sizes = [1, 512], strides = [1, 1]} : vector<1x1024xf32> to vector<1x512xf32>
    %cst_281 = arith.constant dense<0.000000e+00> : vector<1xf32>
    %564 = vector.multi_reduction <add>, %563, %cst_281 [1] : vector<1x512xf32> to vector<1xf32>
    %565 = vector.shape_cast %564 : vector<1xf32> to vector<1x1xf32>
    %cst_282 = arith.constant 0.001953125 : f32
    %566 = vector.broadcast %cst_282 : f32 to vector<1x1xf32>
    %567 = arith.mulf %565, %566 : vector<1x1xf32>
    %c1 = arith.constant 1 : index
    %c0_283 = arith.constant 0 : index
    %568 = vector.load %arg7[%c1, %c0_283] : memref<2x1xf32, #tpu.memory_space<vmem>>, vector<1x1xf32>
    tpu.vector_store %arg7[%c1, %c0_283], %567 {strides = array<i32>} : memref<2x1xf32, #tpu.memory_space<vmem>>, vector<1x1xf32>,
    return
  }
}

</mosaic_0001>

<bundles_post_ra>
// kernel: conv_classifier_forward.1
= control target key start
LH: loop header
LB: loop body
LE: loop exit
PB: predicated region body
PF: predicated region fallthrough
CT: control target
= control target key end

     0   :  { %v4478_v1 = vmov 0.0   ;;  %s4479_s28 = smov 71   ;;  %s4480_s29 = smov 72   ;;  %vm9196_vm4 = vcmask 580608   ;;  %vm9201_vm7 = vcmask 531456   ;;  %vm9199_vm10 = vcmask 515072   ;;  %s9183_s0 = inlined_call_operand.vmem [shape: f32[4,512], index: 0, kind: input, shape index: {}]   ;;  %s9184_s4 = inlined_call_operand.vmem [shape: f32[8,27], index: 4, kind: input, shape index: {}]   ;;  %s9185_s1 = inlined_call_operand.vmem [shape: f32[8,64], index: 1, kind: input, shape index: {}]   ;;  %s9186_s3 = inlined_call_operand.vmem [shape: f32[8,1], index: 3, kind: input, shape index: {}]   ;;  %s9187_s2 = inlined_call_operand.vmem [shape: f32[8,1], index: 2, kind: input, shape index: {}]   ;;  %s9188_s5 = inlined_call_operand.<no memory space> [shape: f32[1,1], index: 5, kind: input, shape index: {}]   ;;  %s9189_s6 = inlined_call_operand.<no memory space> [shape: f32[1,1], index: 6, kind: input, shape index: {}]   ;;  %s9190_s7 = inlined_call_operand.vmem [shape: f32[2,1], index: 7, kind: output, shape index: {}]  }
   0x1   :  { %v32_v0 = vld [vmem:[%s9183_s0] sm:$0xff]  ;;  %30 = vst [vmem:[#allocation2] sm:$0xff] %v4478_v1  ;;  %31 = vst [vmem:[#allocation2 + $0x28] sm:$0xff] %v4478_v1  ;;  %v33_v2 = vld [vmem:[%s9183_s0 + $0x8] sm:$0xff]  ;;  %1814 = vmatprep.mubr.f32.mxu0 %v4478_v1  ;;  %1885 = vmatprep.mubr.f32.mxu1 %v4478_v1  ;;  %s4481_s30 = smov 65   ;;  %s4482_s0 = smov 63  }
   0x2   :  { %89 = vst [vmem:[#allocation3 + $0x180] sm:$0xff] %v4478_v1  ;;  %90 = vst [vmem:[#allocation3 + $0x188] sm:$0xff] %v4478_v1  ;;  %v36_v3 = vcombine.high %v32_v0, %v32_v0  ;;  %v37_v4 = vcombine.high %v33_v2, %v33_v2  ;;  %s4483_s8 = smov 57   ;;  %s4484_s9 = smov 56   ;;  %vm9198_vm11 = vcmask 588800   ;;  %vm9195_vm14 = vcmask 465920  }
   0x3   :  { %91 = vst [vmem:[#allocation3 + $0x190] sm:$0xff] %v4478_v1  ;;  %92 = vst [vmem:[#allocation3 + $0x198] sm:$0xff] %v4478_v1  ;;  %s4485_s10 = smov 73   ;;  %s4486_s11 = smov 64  }
   0x4   :  { %93 = vst [vmem:[#allocation3 + $0x1a0] sm:$0xff] %v4478_v1  ;;  %94 = vst [vmem:[#allocation3 + $0x1a8] sm:$0xff] %v4478_v1  ;;  %s4487_s12 = smov 9   ;;  %s4488_s13 = smov 8  }
   0x5   :  { %95 = vst [vmem:[#allocation3 + $0x1b0] sm:$0xff] %v4478_v1  ;;  %96 = vst [vmem:[#allocation3 + $0x1b8] sm:$0xff] %v4478_v1  ;;  %s4489_s14 = smov 7   ;;  %s4490_s15 = smov 127   ;;  %v9241_v1 = vlaneseq }
   0x6   :  { %40 = vst [vmem:[#allocation2 + $0x8] sm:$0xf] %v32_v0  ;;  %42 = vst [vmem:[#allocation2 + $0x18] sm:$0xf] %v33_v2  ;;  %s4491_s16 = smov 121   ;;  %s4492_s17 = smov 55  }
   0x7   :  { %41 = vst [vmem:[#allocation2 + $0x10] sm:$0xf] %v36_v3  ;;  %43 = vst [vmem:[#allocation2 + $0x20] sm:$0xf] %v37_v4  ;;  %v4618_v4 = vand.u32 127, %v9241_v1  ;;  %s4493_s18 = smov 1  }
   0x8   :  { %v219_v15 = vld [vmem:[#allocation2] sm:$0xf]  ;;  %v1274_v16 = vld [vmem:[#allocation2 + $0x28] sm:$0xf]  ;;  %s4494_s19 = smov 119   ;;  %s4495_s20 = smov 120  }
   0x9   :  { %v166_v17 = vld [vmem:[#allocation2] sm:$0xf]  ;;  %v1214_v20 = vld [vmem:[#allocation2 + $0x28] sm:$0xf]  ;;  %v4405_v21 = vpack.i.bf16 %v1274_v16, %v219_v15 }
   0xa   :  { %v4400_v22 = vpack.i.bf16 %v1214_v20, %v166_v17  ;;  %v402_v23 = vld [vmem:[#allocation2] sm:$0xf]  ;;  %v1446_v24 = vld [vmem:[#allocation2 + $0x28] sm:$0xf] }
   0xb   :  { %v284_v25 = vld [vmem:[#allocation2] sm:$0xf]  ;;  %v1330_v26 = vld [vmem:[#allocation2 + $0x28] sm:$0xf]  ;;  %v4415_v27 = vpack.i.bf16 %v1446_v24, %v402_v23 }
   0xc   :  { %v4410_v28 = vpack.i.bf16 %v1330_v26, %v284_v25  ;;  %v528_v29 = vld [vmem:[#allocation2] sm:$0xf]  ;;  %v1150_v36 = vld [vmem:[#allocation2 + $0x28] sm:$0xf]  ;;  %v9592_v26 = vmov 0 }
   0xd   :  { %v220_v5 = vld [vmem:[#allocation2 + $0x8] sm:$0xf]  ;;  %v463_v30 = vld [vmem:[#allocation2] sm:$0xf]  ;;  %v169_v41 = vld [vmem:[#allocation2 + $0x18] sm:$0xf] }
   0xe   :  { %v167_v6 = vld [vmem:[#allocation2 + $0x8] sm:$0xf]  ;;  %235 = vrot.lane.b32.xlu1 %v220_v5, %s4479_s28  ;;  %v221_v8 = vld [vmem:[#allocation2 + $0x10] sm:$0xf]  ;;  %v109_v35 = vld [vmem:[#allocation2] sm:$0xf] }
   0xf   :  { %178 = vrot.lane.b32.xlu0 %v167_v6, %s4480_s29  ;;  %v285_v7 = vld [vmem:[#allocation2 + $0x8] sm:$0xf]  ;;  %v286_v10 = vld [vmem:[#allocation2 + $0x10] sm:$0xf]  ;;  %v349_v37 = vld [vmem:[#allocation2] sm:$0xf]  ;;  %v4420_v39 = vpack.i.bf16 %v1150_v36, %v109_v35 }
  0x10   :  { %v403_v9 = vld [vmem:[#allocation2 + $0x8] sm:$0xf]  ;;  %v404_v11 = vld [vmem:[#allocation2 + $0x10] sm:$0xf]  ;;  %v170_v42 = vld [vmem:[#allocation2 + $0x20] sm:$0xf] }
  0x11   :  { %v168_v12 = vld [vmem:[#allocation2 + $0x10] sm:$0xf]  ;;  %v464_v14 = vld [vmem:[#allocation2 + $0x8] sm:$0xf]  ;;  %v222_v43 = vld [vmem:[#allocation2 + $0x18] sm:$0xf] }
  0x12   :  { %237 = vrot.lane.b32.xlu1 %v221_v8, %s4479_s28  ;;  %v465_v13 = vld [vmem:[#allocation2 + $0x10] sm:$0xf]  ;;  %v529_v19 = vld [vmem:[#allocation2 + $0x8] sm:$0xf]  ;;  %v223_v44 = vld [vmem:[#allocation2 + $0x20] sm:$0xf] }
  0x13   :  { %300 = vrot.lane.b32.xlu0 %v285_v7, %s4481_s30  ;;  %v530_v18 = vld [vmem:[#allocation2 + $0x10] sm:$0xf]  ;;  %v110_v31 = vld [vmem:[#allocation2 + $0x8] sm:$0xf]  ;;  %v287_v45 = vld [vmem:[#allocation2 + $0x18] sm:$0xf] }
  0x14   :  { %v111_v32 = vld [vmem:[#allocation2 + $0x10] sm:$0xf]  ;;  %v350_v33 = vld [vmem:[#allocation2 + $0x8] sm:$0xf]  ;;  %v288_v46 = vld [vmem:[#allocation2 + $0x20] sm:$0xf] }
  0x15   :  { %v351_v34 = vld [vmem:[#allocation2 + $0x10] sm:$0xf]  ;;  %v1386_v38 = vld [vmem:[#allocation2 + $0x28] sm:$0xf]  ;;  %v405_v47 = vld [vmem:[#allocation2 + $0x18] sm:$0xf] }
  0x16   :  { %302 = vrot.lane.b32.xlu1 %v286_v10, %s4481_s30  ;;  %v4425_v40 = vpack.i.bf16 %v1386_v38, %v349_v37  ;;  %v406_v48 = vld [vmem:[#allocation2 + $0x20] sm:$0xf]  ;;  %v466_v49 = vld [vmem:[#allocation2 + $0x18] sm:$0xf]  ;;  %v647_v53 = vld [vmem:[#allocation2 + $0x8] sm:$0xf] }
  0x17   :  { %418 = vrot.lane.b32.xlu0 %v403_v9, %s4482_s0  ;;  %v467_v50 = vld [vmem:[#allocation2 + $0x20] sm:$0xf]  ;;  %v531_v51 = vld [vmem:[#allocation2 + $0x18] sm:$0xf]  ;;  %v648_v54 = vld [vmem:[#allocation2 + $0x10] sm:$0xf] }
  0x18   :  { %v532_v52 = vld [vmem:[#allocation2 + $0x20] sm:$0xf]  ;;  %v704_v55 = vld [vmem:[#allocation2 + $0x8] sm:$0xf]  ;;  %v705_v56 = vld [vmem:[#allocation2 + $0x10] sm:$0xf] }
  0x19   :  { %v765_v57 = vld [vmem:[#allocation2 + $0x8] sm:$0xf]  ;;  %v766_v58 = vld [vmem:[#allocation2 + $0x10] sm:$0xf]  ;;  %v908_v60 = vld [vmem:[#allocation2 + $0x18] sm:$0xf] }
  0x1a   :  { %420 = vrot.lane.b32.xlu1 %v404_v11, %s4482_s0  ;;  %v907_v59 = vld [vmem:[#allocation2 + $0x10] sm:$0xf]  ;;  %v969_v62 = vld [vmem:[#allocation2 + $0x18] sm:$0xf]  ;;  %v646_v63 = vld [vmem:[#allocation2] sm:$0xf] }
  0x1b   :  { %180 = vrot.lane.b32.xlu0 %v168_v12, %s4480_s29  ;;  %v968_v61 = vld [vmem:[#allocation2 + $0x10] sm:$0xf]  ;;  %v703_v0 = vld [vmem:[#allocation2] sm:$0xf]  ;;  %v906_v3 = vld [vmem:[#allocation2 + $0x8] sm:$0xf] }
  0x1c   :  { %v764_v2 = vld [vmem:[#allocation2] sm:$0xf]  ;;  %v967_v5 = vld [vmem:[#allocation2 + $0x8] sm:$0xf]  ;;  %v112_v6 = vld [vmem:[#allocation2 + $0x18] sm:$0xf] }
  0x1d   :  { %v46_v7 = vadd.s32 128, %v4618_v4  ;;  %v113_v8 = vld [vmem:[#allocation2 + $0x20] sm:$0xf]  ;;  %v352_v9 = vld [vmem:[#allocation2 + $0x18] sm:$0xf] }
  0x1e   :  { %481 = vrot.lane.b32.xlu1 %v465_v13, %s4483_s8  ;;  %v883_v11 = vld [vmem:[#allocation2 + $0x10] sm:$0xf]  ;;  %v353_v13 = vld [vmem:[#allocation2 + $0x20] sm:$0xf]  ;;  %v882_v17 = vld [vmem:[#allocation2 + $0x8] sm:$0xf] }
  0x1f   :  { %479 = vrot.lane.b32.xlu0 %v464_v14, %s4483_s8  ;;  %v54_v10 = vshra.s32 %v46_v7, 3  ;;  %v891_v12 = vrot.slane %v883_v11, 6  ;;  %903 = vst [vmem:[#allocation3 + $0xe8] sm:$0xc] %v883_v11  ;;  %v590_v14 = vld [vmem:[#allocation2 + $0x8] sm:$0xf] }
  0x20   :  { %v4627_v15 = vshra.s32 %v46_v7, 6  ;;  %902 = vst [vmem:[#allocation3 + $0xe0] sm:$0xc] %v882_v17  ;;  %v830_v20 = vld [vmem:[#allocation2 + $0x8] sm:$0xf] }
  0x21   :  { %899 = vst [vmem:[#allocation3 + $0xc8] sm:$0xc] %v891_v12  ;;  %v4629_v16 = vand.u32 7, %v54_v10  ;;  %v589_v23 = vld [vmem:[#allocation2] sm:$0xf]  ;;  %v9603_v12 = vmov 0 }
  0x22   :  { %542 = vrot.lane.b32.xlu1 %v530_v18, %s4484_s9  ;;  %9590 = vst [vmem:[#allocation7_spill] sm:$0xff] %v4627_v15  ;;  %v890_v18 = vrot.slane %v882_v17, 6  ;;  %vm9194_vm0 = vcmp.ge.s32.totalorder %v4627_v15, 1  ;;  %v650_v37 = vld [vmem:[#allocation2 + $0x20] sm:$0xf] }
  0x23   :  { %540 = vrot.lane.b32.xlu0 %v529_v19, %s4484_s9  ;;  %9591 = vst [vmem:[#allocation8_spill] sm:$0xff] %v4629_v16  ;;  %v591_v19 = vld [vmem:[#allocation2 + $0x10] sm:$0xf]  ;;  %vm9192_vm1 = vcmp.ge.s32.totalorder %v4629_v16, 1  ;;  %v706_v38 = vld [vmem:[#allocation2 + $0x18] sm:$0xf] }
  0x24   :  { %898 = vst [vmem:[#allocation3 + $0xc0] sm:$0xc] %v890_v18  ;;  %vm4649_vm3 = vmand %vm9194_vm0, %vm9192_vm1  ;;  %vm9191_vm9 = vcmp.le.s32.totalorder %v4629_v16, 6 }
  0x25   :  { %vm4699_vm13 = vmand %vm9194_vm0, %vm9191_vm9 }
  0x26   :  { %4406 = vrot.lane.b32.xlu1 %v4405_v21, %s4479_s28  ;;  %v62_v21 = vand.u32 7, %v46_v7  ;;  %v970_v7 = vld [vmem:[#allocation2 + $0x20] sm:$0xf] }
  0x27   :  { %4401 = vrot.lane.b32.xlu0 %v4400_v22, %s4480_s29  ;;  %v831_v22 = vld [vmem:[#allocation2 + $0x10] sm:$0xf] }
  0x28   :  { %vm4641_vm2 = vcmp.le.s32.totalorder %v62_v21, 6  ;;  %vm4661_vm6 = vcmp.ge.s32.totalorder %v62_v21, 1 }
  0x29   :  { %v9593_v26 = vsel %vm4641_vm2, 4294967295, %v9592_v26  ;;  %vm225_vm5 = vmand %vm4649_vm3, %vm4641_vm2 }
  0x2a   :  { %4416 = vrot.lane.b32.xlu1 %v4415_v27, %s4482_s0  ;;  %9594 = vst [vmem:[#allocation9_spill] sm:$0xff] %v9593_v26  ;;  %vm290_vm8 = vmand %vm9194_vm0, %vm4661_vm6 }
  0x2b   :  { %4411 = vrot.lane.b32.xlu0 %v4410_v28, %s4481_s30  ;;  %v829_v28 = vld [vmem:[#allocation2] sm:$0xf]  ;;  %vm408_vm12 = vmand %vm9194_vm0, %vm4641_vm2 }
  0x2c   :  { %vm469_vm15 = vmand %vm4699_vm13, %vm4661_vm6 }
  0x2e   :  { %538 = vrot.lane.b32.xlu1 %v528_v29, %s4484_s9  ;;  %v649_v29 = vld [vmem:[#allocation2 + $0x18] sm:$0xf] }
  0x2f   :  { %477 = vrot.lane.b32.xlu0 %v463_v30, %s4483_s8 }
  0x32   :  { %127 = vrot.lane.b32.xlu1 %v111_v32, %s4485_s10 }
  0x33   :  { %125 = vrot.lane.b32.xlu0 %v110_v31, %s4485_s10  ;;  %v9597_v31 = vmov 0 }
  0x34   :  { %v9598_v31 = vsel %vm4661_vm6, 4294967295, %v9597_v31 }
  0x36   :  { %363 = vrot.lane.b32.xlu1 %v351_v34, %s4486_s11 }
  0x37   :  { %361 = vrot.lane.b32.xlu0 %v350_v33, %s4486_s11 }
  0x3a   :  { %4426 = vrot.lane.b32.xlu1 %v4425_v40, %s4486_s11 }
  0x3b   :  { %4421 = vrot.lane.b32.xlu0 %v4420_v39, %s4485_s10 }
  0x3e   :  { %184 = vrot.lane.b32.xlu1 %v170_v42, %s4480_s29 }
  0x3f   :  { %182 = vrot.lane.b32.xlu0 %v169_v41, %s4480_s29 }
  0x42   :  { %241 = vrot.lane.b32.xlu1 %v223_v44, %s4479_s28 }
  0x43   :  { %239 = vrot.lane.b32.xlu0 %v222_v43, %s4479_s28  ;;  %v707_v43 = vld [vmem:[#allocation2 + $0x20] sm:$0xf] }
  0x46   :  { %306 = vrot.lane.b32.xlu1 %v288_v46, %s4481_s30  ;;  %v767_v46 = vld [vmem:[#allocation2 + $0x18] sm:$0xf] }
  0x47   :  { %304 = vrot.lane.b32.xlu0 %v287_v45, %s4481_s30 }
  0x4a   :  { %424 = vrot.lane.b32.xlu1 %v406_v48, %s4482_s0 }
  0x4b   :  { %422 = vrot.lane.b32.xlu0 %v405_v47, %s4482_s0  ;;  %v53_v47 = vshra.s32 %v4618_v4, 3 }
  0x4e   :  { %485 = vrot.lane.b32.xlu1 %v467_v50, %s4483_s8  ;;  %v9599_v50 = vmov 0 }
  0x4f   :  { %483 = vrot.lane.b32.xlu0 %v466_v49, %s4483_s8  ;;  %v9600_v50 = vsel %vm4699_vm13, 4294967295, %v9599_v50 }
  0x52   :  { %546 = vrot.lane.b32.xlu1 %v532_v52, %s4484_s9 }
  0x53   :  { %544 = vrot.lane.b32.xlu0 %v531_v51, %s4484_s9 }
  0x56   :  { %664 = vrot.lane.b32.xlu1 %v648_v54, %s4487_s12 }
  0x57   :  { %662 = vrot.lane.b32.xlu0 %v647_v53, %s4487_s12 }
  0x5a   :  { %717 = vrot.lane.b32.xlu1 %v705_v56, %s4488_s13 }
  0x5b   :  { %715 = vrot.lane.b32.xlu0 %v704_v55, %s4488_s13  ;;  %v768_v55 = vld [vmem:[#allocation2 + $0x20] sm:$0xf] }
  0x5e   :  { %782 = vrot.lane.b32.xlu1 %v766_v58, %s4489_s14  ;;  %v909_v58 = vld [vmem:[#allocation2 + $0x20] sm:$0xf] }
  0x5f   :  { %780 = vrot.lane.b32.xlu0 %v765_v57, %s4489_s14 }
  0x62   :  { %920 = vrot.lane.b32.xlu1 %v908_v60, %s4490_s15  ;;  %v4720_v60 = vand.u32 7, %v53_v47 }
  0x63   :  { %918 = vrot.lane.b32.xlu0 %v907_v59, %s4490_s15  ;;  %v4718_v59 = vshra.s32 %v4618_v4, 6 }
  0x64   :  { %9602 = vst [vmem:[#allocation11_spill] sm:$0xff] %v4720_v60 }
  0x65   :  { %9601 = vst [vmem:[#allocation10_spill] sm:$0xff] %v4718_v59 }
  0x66   :  { %985 = vrot.lane.b32.xlu1 %v969_v62, %s4491_s16 }
  0x67   :  { %983 = vrot.lane.b32.xlu0 %v968_v61, %s4491_s16 }
  0x6a   :  { %713 = vrot.lane.b32.xlu1 %v703_v0, %s4488_s13 }
  0x6b   :  { %660 = vrot.lane.b32.xlu0 %v646_v63, %s4487_s12 }
  0x6e   :  { %916 = vrot.lane.b32.xlu1 %v906_v3, %s4490_s15  ;;  %v61_v3 = vand.u32 7, %v4618_v4 }
  0x6f   :  { %778 = vrot.lane.b32.xlu0 %v764_v2, %s4489_s14  ;;  %v910_v2 = vld [vmem:[#allocation2 + $0x28] sm:$0xf] }
  0x70   :  { %vm4771_vm0 = vcmp.ge.s32.totalorder %v61_v3, 1 }
  0x72   :  { %129 = vrot.lane.b32.xlu1 %v112_v6, %s4485_s10 }
  0x73   :  { %981 = vrot.lane.b32.xlu0 %v967_v5, %s4491_s16 }
  0x76   :  { %365 = vrot.lane.b32.xlu1 %v352_v9, %s4486_s11 }
  0x77   :  { %131 = vrot.lane.b32.xlu0 %v113_v8, %s4485_s10 }
  0x7a   :  { %605 = vrot.lane.b32.xlu1 %v590_v14, %s4492_s17  ;;  %v971_v14 = vld [vmem:[#allocation2 + $0x28] sm:$0xf] }
  0x7b   :  { %367 = vrot.lane.b32.xlu0 %v353_v13, %s4486_s11 }
  0x7e   :  { %841 = vrot.lane.b32.xlu1 %v830_v20, %s4493_s18 }
  0x7f   :  { %607 = vrot.lane.b32.xlu0 %v591_v19, %s4492_s17  ;;  %v1086_v19 = vld [vmem:[#allocation2 + $0x10] sm:$0xf] }
  0x80   :  { %v4637_v24 = vpop.permute.xlu1 %235 }
  0x81   :  { %v4639_v25 = vpop.permute.xlu0 %178 }
  0x82   :  { %603 = vrot.lane.b32.xlu1 %v589_v23, %s4492_s17 }
  0x83   :  { %843 = vrot.lane.b32.xlu0 %v831_v22, %s4493_s18 }
  0x84   :  { %v4665_v32 = vpop.permute.xlu1 %237 }
  0x85   :  { %v4659_v30 = vpop.permute.xlu0 %300  ;;  %v245_v33 = vsel %vm9196_vm4, %v4637_v24, %v4665_v32 }
  0x86   :  { %v253_v34 = vsel %vm225_vm5, %v245_v33, 0.0  ;;  %666 = vrot.lane.b32.xlu1 %v649_v29, %s4487_s12  ;;  %vm9200_vm5 = vcmask 457728   ;;  %v9608_v33 = vmov 0 }
  0x87   :  { %839 = vrot.lane.b32.xlu0 %v829_v28, %s4493_s18  ;;  %v261_v35 = vrot.slane %v253_v34, 4  ;;  %v273_v36 = vrot.slane %v253_v34, 6  ;;  %v9609_v33 = vsel %vm4771_vm0, 4294967295, %v9608_v33  ;;  %v1087_v34 = vld [vmem:[#allocation2 + $0x18] sm:$0xf] }
  0x88   :  { %v4678_v40 = vpop.permute.xlu1 %302 }
  0x89   :  { %v4676_v39 = vpop.permute.xlu0 %418  ;;  %269 = vst [vmem:[#allocation3 + $0x8] sm:$0x30] %v261_v35  ;;  %281 = vst [vmem:[#allocation3 + $0x28] sm:$0x30] %v273_v36  ;;  %v310_v41 = vsel %vm9201_vm7, %v4659_v30, %v4678_v40  ;;  %v1147_v35 = vld [vmem:[#allocation2 + $0x10] sm:$0xf] }
  0x8a   :  { %v318_v42 = vsel %vm290_vm8, %v310_v41, 0.0  ;;  %719 = vrot.lane.b32.xlu1 %v706_v38, %s4488_s13  ;;  %vm9202_vm8 = vcmp.ge.s32.totalorder %v4718_v59, 1 }
  0x8b   :  { %668 = vrot.lane.b32.xlu0 %v650_v37, %s4487_s12  ;;  %v326_v44 = vrot.slane %v318_v42, 2  ;;  %v338_v45 = vrot.slane %v318_v42, 4 }
  0x8c   :  { %v4691_v48 = vpop.permute.xlu1 %420 }
  0x8d   :  { %v4693_v49 = vpop.permute.xlu0 %180  ;;  %334 = vst [vmem:[#allocation3 + $0x8] sm:$0xc0] %v326_v44  ;;  %346 = vst [vmem:[#allocation3 + $0x28] sm:$0xc0] %v338_v45  ;;  %v428_v51 = vsel %vm9199_vm10, %v4676_v39, %v4691_v48  ;;  %v9612_v44 = vmov 0 }
  0x8e   :  { %v188_v52 = vsel %vm9198_vm11, %v4639_v25, %v4693_v49  ;;  %v436_v53 = vsel %vm408_vm12, %v428_v51, 0.0  ;;  %784 = vrot.lane.b32.xlu1 %v767_v46, %s4489_s14  ;;  %vm9193_vm12 = vcmp.ge.s32.totalorder %v4720_v60, 1  ;;  %v1148_v51 = vld [vmem:[#allocation2 + $0x18] sm:$0xf] }
  0x8f   :  { %v196_v54 = vsel %vm4649_vm3, %v188_v52, 0.0  ;;  %721 = vrot.lane.b32.xlu0 %v707_v43, %s4488_s13  ;;  %v444_v56 = vrot.slane %v436_v53, 6  ;;  %456 = vst [vmem:[#allocation3 + $0x68] sm:$0xc] %v436_v53  ;;  %vm4750_vm9 = vmand %vm9202_vm8, %vm9193_vm12  ;;  %vm9197_vm12 = vcmp.le.s32.totalorder %v4720_v60, 6  ;;  %v4810_v53 = vadd.s32 256, %v4618_v4 }
  0x90   :  { %v204_v57 = vrot.slane %v196_v54, 6  ;;  %216 = vst [vmem:[#allocation3 + $0x28] sm:$0xc] %v196_v54  ;;  %v4722_v61 = vpop.permute.xlu1 %481  ;;  %v1211_v52 = vld [vmem:[#allocation2 + $0x10] sm:$0xf] }
  0x91   :  { %v4724_v62 = vpop.permute.xlu0 %479  ;;  %452 = vst [vmem:[#allocation3 + $0x48] sm:$0xc] %v444_v56 }
  0x92   :  { %212 = vst [vmem:[#allocation3 + $0x8] sm:$0xc] %v204_v57  ;;  %v489_v63 = vsel %vm9195_vm14, %v4724_v62, %v4722_v61  ;;  %922 = vrot.lane.b32.xlu1 %v909_v58, %s4490_s15  ;;  %v4821_v58 = vadd.s32 384, %v4618_v4 }
  0x93   :  { %v497_v0 = vsel %vm469_vm15, %v489_v63, 0.0  ;;  %786 = vrot.lane.b32.xlu0 %v768_v55, %s4489_s14  ;;  %vm4742_vm15 = vcmp.le.s32.totalorder %v61_v3, 6 }
  0x94   :  { %v505_v5 = vrot.slane %v497_v0, 4  ;;  %v517_v6 = vrot.slane %v497_v0, 6  ;;  %v4734_v8 = vpop.permute.xlu1 %542  ;;  %v9604_v12 = vsel %vm4742_vm15, 4294967295, %v9603_v12  ;;  %vm224_vm1 = vmand %vm4750_vm9, %vm4742_vm15 }
  0x95   :  { %v541_v9 = vpop.permute.xlu0 %540  ;;  %9605 = vst [vmem:[#allocation12_spill] sm:$0xff] %v9604_v12  ;;  %vm4781_vm14 = vmand %vm9202_vm8, %vm4742_vm15 }
  0x96   :  { %513 = vst [vmem:[#allocation3 + $0x48] sm:$0x30] %v505_v5  ;;  %525 = vst [vmem:[#allocation3 + $0x68] sm:$0x30] %v517_v6  ;;  %v550_v10 = vsel %vm9200_vm5, %v541_v9, %v4734_v8  ;;  %987 = vrot.lane.b32.xlu1 %v970_v7, %s4491_s16  ;;  %v1212_v7 = vld [vmem:[#allocation2 + $0x18] sm:$0xf] }
  0x97   :  { %v558_v11 = vsel %vm4699_vm13, %v550_v10, 0.0  ;;  %924 = vrot.lane.b32.xlu0 %v910_v2, %s4490_s15 }
  0x98   :  { %v566_v17 = vrot.slane %v558_v11, 2  ;;  %v578_v18 = vrot.slane %v558_v11, 4  ;;  %v4754_v20 = vpop.permute.xlu1 %4406 }
  0x99   :  { %v4756_v21 = vpop.permute.xlu0 %4401  ;;  %v4408_v22 = vunpack.i.l.bf16 %v4754_v20 }
  0x9a   :  { %574 = vst [vmem:[#allocation3 + $0x48] sm:$0xc0] %v566_v17  ;;  %586 = vst [vmem:[#allocation3 + $0x68] sm:$0xc0] %v578_v18  ;;  %v4403_v23 = vunpack.i.l.bf16 %v4756_v21  ;;  %1101 = vrot.lane.b32.xlu1 %v1086_v19, %s4494_s19 }
  0x9b   :  { %989 = vrot.lane.b32.xlu0 %v971_v14, %s4491_s16  ;;  %v244_v28 = vsel %vm9196_vm4, %v4408_v22, %v4637_v24  ;;  %vm4802_vm4 = vmand %vm9202_vm8, %vm4771_vm0  ;;  %v55_v14 = vshra.s32 %v4810_v53, 3 }
  0x9c   :  { %v187_v29 = vsel %vm9198_vm11, %v4403_v23, %v4639_v25  ;;  %v252_v36 = vsel %vm224_vm1, %v244_v28, 0.0  ;;  %v4785_v24 = vpop.permute.xlu1 %4416  ;;  %vm4793_vm1 = vmand %vm9202_vm8, %vm9197_vm12  ;;  %vm9206_vm11 = vcmask 596992   ;;  %v56_v23 = vshra.s32 %v4821_v58, 3 }
  0x9d   :  { %v195_v37 = vsel %vm4750_vm9, %v187_v29, 0.0  ;;  %v4787_v25 = vpop.permute.xlu0 %4411  ;;  %v260_v41 = vrot.slane %v252_v36, 4  ;;  %v272_v42 = vrot.slane %v252_v36, 6  ;;  %v9613_v44 = vsel %vm4793_vm1, 4294967295, %v9612_v44  ;;  %vm468_vm12 = vmand %vm4793_vm1, %vm4771_vm0  ;;  %v1383_v36 = vld [vmem:[#allocation2 + $0x10] sm:$0xf] }
  0x9e   :  { %v203_v43 = vrot.slane %v195_v37, 6  ;;  %215 = vst [vmem:[#allocation3 + $0x20] sm:$0xc] %v195_v37  ;;  %v4418_v45 = vunpack.i.l.bf16 %v4785_v24  ;;  %v4413_v47 = vunpack.i.l.bf16 %v4787_v25  ;;  %1162 = vrot.lane.b32.xlu1 %v1147_v35, %s4485_s10  ;;  %v4857_v37 = vshra.s32 %v4810_v53, 6 }
  0x9f   :  { %1103 = vrot.lane.b32.xlu0 %v1087_v34, %s4494_s19  ;;  %268 = vst [vmem:[#allocation3] sm:$0x30] %v260_v41  ;;  %280 = vst [vmem:[#allocation3 + $0x20] sm:$0x30] %v272_v42  ;;  %v1328_v34 = vld [vmem:[#allocation2 + $0x18] sm:$0xf] }
  0xa0   :  { %211 = vst [vmem:[#allocation3] sm:$0xc] %v203_v43  ;;  %v427_v54 = vsel %vm9199_vm10, %v4418_v45, %v4676_v39  ;;  %v309_v55 = vsel %vm9201_vm7, %v4413_v47, %v4659_v30  ;;  %v539_v56 = vpop.permute.xlu1 %538  ;;  %vm9616_vm10 = vcmask 465920   ;;  %9617 = vst [vmem:[#allocation13_spill] sm:$0xff] %v4857_v37  ;;  %v4859_v38 = vand.u32 7, %v55_v14 }
  0xa1   :  { %v478_v57 = vpop.permute.xlu0 %477  ;;  %v435_v63 = vsel %vm4781_vm14, %v427_v54, 0.0  ;;  %v317_v39 = vsel %vm4802_vm4, %v309_v55, 0.0  ;;  %v549_v0 = vsel %vm9200_vm5, %v539_v56, %v541_v9  ;;  %vm115_vm4 = vmand %vm4649_vm3, %vm4661_vm6  ;;  %v1327_v9 = vld [vmem:[#allocation2 + $0x10] sm:$0xf]  ;;  %v4864_v42 = vshra.s32 %v4821_v58, 6 }
  0xa2   :  { %v488_v30 = vsel %vm9616_vm10, %v478_v57, %v4724_v62  ;;  %v443_v2 = vrot.slane %v435_v63, 6  ;;  %455 = vst [vmem:[#allocation3 + $0x60] sm:$0xc] %v435_v63  ;;  %v325_v3 = vrot.slane %v317_v39, 2  ;;  %v337_v5 = vrot.slane %v317_v39, 4  ;;  %1222 = vrot.lane.b32.xlu1 %v1211_v52, %s4480_s29  ;;  %9618 = vst [vmem:[#allocation14_spill] sm:$0xff] %v4859_v38 }
  0xa3   :  { %v557_v6 = vsel %vm4793_vm1, %v549_v0, 0.0  ;;  %1164 = vrot.lane.b32.xlu0 %v1148_v51, %s4485_s10  ;;  %v496_v62 = vsel %vm468_vm12, %v488_v30, 0.0  ;;  %vm9204_vm10 = vcmask 523264   ;;  %9619 = vst [vmem:[#allocation15_spill] sm:$0xff] %v4864_v42  ;;  %v4866_v43 = vand.u32 7, %v56_v23  ;;  %vm114_vm5 = vmand %vm4750_vm9, %vm4771_vm0 }
  0xa4   :  { %v565_v10 = vrot.slane %v557_v6, 2  ;;  %v577_v11 = vrot.slane %v557_v6, 4  ;;  %451 = vst [vmem:[#allocation3 + $0x40] sm:$0xc] %v443_v2  ;;  %333 = vst [vmem:[#allocation3] sm:$0xc0] %v325_v3  ;;  %v4844_v22 = vpop.permute.xlu1 %127 }
  0xa5   :  { %345 = vst [vmem:[#allocation3 + $0x20] sm:$0xc0] %v337_v5  ;;  %v504_v17 = vrot.slane %v496_v62, 4  ;;  %v516_v18 = vrot.slane %v496_v62, 6  ;;  %v126_v19 = vpop.permute.xlu0 %125  ;;  %9620 = vst [vmem:[#allocation16_spill] sm:$0xff] %v4866_v43  ;;  %vm9621_vm3 = vcmp.ge.s32.totalorder %v4627_v15, 1 }
  0xa6   :  { %573 = vst [vmem:[#allocation3 + $0x40] sm:$0xc0] %v565_v10  ;;  %585 = vst [vmem:[#allocation3 + $0x60] sm:$0xc0] %v577_v11  ;;  %v135_v28 = vsel %vm9206_vm11, %v126_v19, %v4844_v22  ;;  %1342 = vrot.lane.b32.xlu1 %v1327_v9, %s4481_s30  ;;  %v1384_v47 = vld [vmem:[#allocation2 + $0x18] sm:$0xf] }
  0xa7   :  { %512 = vst [vmem:[#allocation3 + $0x40] sm:$0x30] %v504_v17  ;;  %524 = vst [vmem:[#allocation3 + $0x60] sm:$0x30] %v516_v18  ;;  %v143_v29 = vsel %vm115_vm4, %v135_v28, 0.0  ;;  %1224 = vrot.lane.b32.xlu0 %v1212_v7, %s4480_s29  ;;  %v63_v54 = vand.u32 7, %v4810_v53 }
  0xa8   :  { %147 = vst [vmem:[#allocation3 + $0x8] sm:$0x3] %v143_v29  ;;  %v155_v35 = vrot.slane %v143_v29, 2  ;;  %v4861_v27 = vpop.permute.xlu1 %363  ;;  %v1443_v52 = vld [vmem:[#allocation2 + $0x10] sm:$0xf]  ;;  %vm9208_vm14 = vcmp.ge.s32.totalorder %v4857_v37, 1 }
  0xa9   :  { %v362_v41 = vpop.permute.xlu0 %361  ;;  %vm9203_vm12 = vcmp.ge.s32.totalorder %v4859_v38, 1  ;;  %v64_v57 = vand.u32 7, %v4821_v58  ;;  %vm9207_vm4 = vcmp.ge.s32.totalorder %v4864_v42, 1  ;;  %vm4902_vm9 = vcmp.le.s32.totalorder %v63_v54, 6  ;;  %v1444_v2 = vld [vmem:[#allocation2 + $0x18] sm:$0xf] }
  0xaa   :  { %163 = vst [vmem:[#allocation3 + $0x28] sm:$0x3] %v155_v35  ;;  %v371_v45 = vsel %vm9204_vm10, %v362_v41, %v4861_v27  ;;  %1394 = vrot.lane.b32.xlu1 %v1383_v36, %s4486_s11  ;;  %vm4896_vm7 = vmand %vm9208_vm14, %vm9203_vm12  ;;  %v9624_v0 = vmov 0  ;;  %v9627_v30 = vmov 0  ;;  %v1085_v3 = vld [vmem:[#allocation2 + $0x8] sm:$0xf] }
  0xab   :  { %v379_v46 = vsel %vm9621_vm3, %v371_v45, 0.0  ;;  %1344 = vrot.lane.b32.xlu0 %v1328_v34, %s4481_s30  ;;  %vm9205_vm3 = vcmp.ge.s32.totalorder %v4866_v43, 1  ;;  %v9625_v0 = vsel %vm4902_vm9, 4294967295, %v9624_v0  ;;  %vm9629_vm12 = vcmp.ge.s32.totalorder %v4718_v59, 1  ;;  %v1146_v36 = vld [vmem:[#allocation2 + $0x8] sm:$0xf] }
  0xac   :  { %383 = vst [vmem:[#allocation3 + $0x48] sm:$0x3] %v379_v46  ;;  %v391_v51 = vrot.slane %v379_v46, 2  ;;  %v4879_v56 = vpop.permute.xlu1 %4426  ;;  %9626 = vst [vmem:[#allocation17_spill] sm:$0xff] %v9625_v0  ;;  %v9630_v10 = vmov 0  ;;  %v9635_v18 = vmov 0 }
  0xad   :  { %v4877_v55 = vpop.permute.xlu0 %4421  ;;  %v4428_v63 = vunpack.i.l.bf16 %v4879_v56  ;;  %vm4910_vm8 = vmand %vm9207_vm4, %vm9205_vm3  ;;  %vm9633_vm3 = vcmask 588800   ;;  %vm4923_vm4 = vcmp.ge.s32.totalorder %v63_v54, 1  ;;  %v9638_v45 = vmov 0  ;;  %v884_v54 = vld [vmem:[#allocation2 + $0x18] sm:$0xf] }
  0xae   :  { %399 = vst [vmem:[#allocation3 + $0x68] sm:$0x3] %v391_v51  ;;  %v4423_v53 = vunpack.i.l.bf16 %v4877_v55  ;;  %1458 = vrot.lane.b32.xlu1 %v1443_v52, %s4482_s0  ;;  %v9628_v30 = vsel %vm4910_vm8, 4294967295, %v9627_v30  ;;  %v9636_v18 = vsel %vm4923_vm4, 4294967295, %v9635_v18  ;;  %vm9643_vm1 = vcmp.ge.s32.totalorder %v4857_v37, 1 }
  0xaf   :  { %1396 = vrot.lane.b32.xlu0 %v1384_v47, %s4486_s11  ;;  %v370_v13 = vsel %vm9204_vm10, %v4428_v63, %v362_v41  ;;  %vm4916_vm10 = vcmp.le.s32.totalorder %v64_v57, 6  ;;  %9637 = vst [vmem:[#allocation19_spill] sm:$0xff] %v9636_v18  ;;  %v1210_v41 = vld [vmem:[#allocation2 + $0x8] sm:$0xf]  ;;  %904 = vst [vmem:[#allocation3 + $0xf0] sm:$0xc] %v884_v54 }
  0xb0   :  { %v134_v39 = vsel %vm9206_vm11, %v4423_v53, %v126_v19  ;;  %v378_v6 = vsel %vm9629_vm12, %v370_v13, 0.0  ;;  %v9631_v10 = vsel %vm4916_vm10, 4294967295, %v9630_v10  ;;  %v185_v11 = vpop.permute.xlu1 %184  ;;  %vm9634_vm11 = vmmov %vm9633_vm3  ;;  %vm4941_vm12 = vcmp.ge.s32.totalorder %v64_v57, 1  ;;  %v1326_v63 = vld [vmem:[#allocation2 + $0x8] sm:$0xf] }
  0xb1   :  { %v142_v5 = vsel %vm114_vm5, %v134_v39, 0.0  ;;  %v183_v7 = vpop.permute.xlu0 %182  ;;  %9632 = vst [vmem:[#allocation18_spill] sm:$0xff] %v9631_v10  ;;  %382 = vst [vmem:[#allocation3 + $0x40] sm:$0x3] %v378_v6  ;;  %v390_v9 = vrot.slane %v378_v6, 2  ;;  %v9639_v45 = vsel %vm4941_vm12, 4294967295, %v9638_v45 }
  0xb2   :  { %146 = vst [vmem:[#allocation3] sm:$0x3] %v142_v5  ;;  %v154_v62 = vrot.slane %v142_v5, 2  ;;  %v189_v14 = vsel %vm9633_vm3, %v4693_v49, %v183_v7  ;;  %v190_v17 = vsel %vm9634_vm11, %v183_v7, %v185_v11  ;;  %1099 = vrot.lane.b32.xlu1 %v1085_v3, %s4494_s19  ;;  %vm226_vm5 = vmand %vm4896_vm7, %vm4902_vm9  ;;  %v1684_v49 = vld [vmem:[#allocation3 + $0x8] sm:$0xff]  ;;  %vm9641_vm3 = vcmask 580608  }
  0xb3   :  { %v197_v19 = vsel %vm4896_vm7, %v189_v14, 0.0  ;;  %v198_v23 = vsel %vm4910_vm8, %v190_v17, 0.0  ;;  %1460 = vrot.lane.b32.xlu0 %v1444_v2, %s4482_s0  ;;  %v1692_v28 = vld [vmem:[#allocation3 + $0x48] sm:$0xff]  ;;  %398 = vst [vmem:[#allocation3 + $0x60] sm:$0x3] %v390_v9  ;;  %vm227_vm11 = vmand %vm4910_vm8, %vm4916_vm10  ;;  %v892_v39 = vrot.slane %v884_v54, 6 }
  0xb4   :  { %162 = vst [vmem:[#allocation3 + $0x20] sm:$0x3] %v154_v62  ;;  %v205_v29 = vrot.slane %v197_v19, 6  ;;  %217 = vst [vmem:[#allocation3 + $0x30] sm:$0xc] %v197_v19  ;;  %v206_v34 = vrot.slane %v198_v23, 6  ;;  %v4291_v35 = vpack.c.bf16 %v1692_v28, %v1684_v49  ;;  %v242_v47 = vpop.permute.xlu1 %241 }
  0xb5   :  { %218 = vst [vmem:[#allocation3 + $0x38] sm:$0xc] %v198_v23  ;;  %9640 = vst [vmem:[#allocation20_spill] sm:$0xff] %v9639_v45  ;;  %v240_v46 = vpop.permute.xlu0 %239  ;;  %v1382_v7 = vld [vmem:[#allocation2 + $0x8] sm:$0xf] }
  0xb6   :  { %213 = vst [vmem:[#allocation3 + $0x10] sm:$0xc] %v205_v29  ;;  %214 = vst [vmem:[#allocation3 + $0x18] sm:$0xc] %v206_v34  ;;  %v246_v51 = vsel %vm9641_vm3, %v4665_v32, %v240_v46  ;;  %4292 = vmatprep.subr.bf16.mxu0 %v4291_v35  ;;  %1220 = vrot.lane.b32.xlu1 %v1210_v41, %s4480_s29  ;;  %v885_v28 = vld [vmem:[#allocation2 + $0x20] sm:$0xf] }
  0xb7   :  { %vm9642_vm14 = vmmov %vm9641_vm3  ;;  %v254_v57 = vsel %vm226_vm5, %v246_v51, 0.0  ;;  %1160 = vrot.lane.b32.xlu0 %v1146_v36, %s4485_s10  ;;  %900 = vst [vmem:[#allocation3 + $0xd0] sm:$0xc] %v892_v39  ;;  %v1442_v35 = vld [vmem:[#allocation2 + $0x8] sm:$0xf]  ;;  %v893_v36 = vrot.slane %v885_v28, 6 }
  0xb8   :  { %v247_v52 = vsel %vm9642_vm14, %v240_v46, %v242_v47  ;;  %vm4959_vm3 = vmand %vm9643_vm1, %vm4923_vm4  ;;  %v262_v13 = vrot.slane %v254_v57, 4  ;;  %v274_v2 = vrot.slane %v254_v57, 6  ;;  %vm9646_vm14 = vcmp.ge.s32.totalorder %v4864_v42, 1  ;;  %v307_v62 = vpop.permute.xlu1 %306  ;;  %v1691_v14 = vld [vmem:[#allocation3 + $0x40] sm:$0xff]  ;;  %905 = vst [vmem:[#allocation3 + $0xf8] sm:$0xc] %v885_v28 }
  0xb9   :  { %v255_v53 = vsel %vm227_vm11, %v247_v52, 0.0  ;;  %vm4967_vm5 = vmand %vm9646_vm14, %vm4941_vm12  ;;  %v305_v11 = vpop.permute.xlu0 %304  ;;  %v1683_v9 = vld [vmem:[#allocation3] sm:$0xff]  ;;  %vm9649_vm11 = vcmask 531456   ;;  %v592_v52 = vld [vmem:[#allocation2 + $0x18] sm:$0xf] }
  0xba   :  { %v263_v3 = vrot.slane %v255_v53, 4  ;;  %v275_v5 = vrot.slane %v255_v53, 6  ;;  %270 = vst [vmem:[#allocation3 + $0x10] sm:$0x30] %v262_v13  ;;  %282 = vst [vmem:[#allocation3 + $0x30] sm:$0x30] %v274_v2  ;;  %v311_v17 = vsel %vm9649_vm11, %v4678_v40, %v305_v11  ;;  %v4293_v23 = vpack.c.bf16 %v1691_v14, %v1683_v9  ;;  %1392 = vrot.lane.b32.xlu1 %v1382_v7, %s4486_s11 }
  0xbb   :  { %vm9650_vm13 = vmmov %vm9649_vm11  ;;  %v319_v29 = vsel %vm4959_vm3, %v311_v17, 0.0  ;;  %1340 = vrot.lane.b32.xlu0 %v1326_v63, %s4481_s30  ;;  %vm9657_vm3 = vcmp.le.s32.totalorder %v4859_v38, 6  ;;  %901 = vst [vmem:[#allocation3 + $0xd8] sm:$0xc] %v893_v36  ;;  %v832_v6 = vld [vmem:[#allocation2 + $0x18] sm:$0xf] }
  0xbc   :  { %271 = vst [vmem:[#allocation3 + $0x18] sm:$0x30] %v263_v3  ;;  %283 = vst [vmem:[#allocation3 + $0x38] sm:$0x30] %v275_v5  ;;  %v312_v19 = vsel %vm9650_vm13, %v305_v11, %v307_v62  ;;  %vm9654_vm13 = vcmp.ge.s32.totalorder %v4864_v42, 1  ;;  %v327_v41 = vrot.slane %v319_v29, 2  ;;  %4294 = vmatpush1.bf16.msra.mxu0 %v4293_v23  ;;  %v425_v53 = vpop.permute.xlu1 %424 }
  0xbd   :  { %vm9651_vm14 = vmmov %vm9643_vm1  ;;  %vm9214_vm1 = vcmp.le.s32.totalorder %v4866_v43, 6  ;;  %v320_v40 = vsel %vm4967_vm5, %v312_v19, 0.0  ;;  %v339_v46 = vrot.slane %v319_v29, 4  ;;  %v423_v57 = vpop.permute.xlu0 %422  ;;  %v593_v5 = vld [vmem:[#allocation2 + $0x20] sm:$0xf] }
  0xbe   :  { %vm4979_vm8 = vmand %vm9651_vm14, %vm4902_vm9  ;;  %v328_v47 = vrot.slane %v320_v40, 2  ;;  %v340_v51 = vrot.slane %v320_v40, 4  ;;  %335 = vst [vmem:[#allocation3 + $0x10] sm:$0xc0] %v327_v41  ;;  %609 = vrot.lane.b32.xlu1 %v592_v52, %s4492_s17  ;;  %v833_v19 = vld [vmem:[#allocation2 + $0x20] sm:$0xf] }
  0xbf   :  { %vm4994_vm11 = vmand %vm9654_vm13, %vm4916_vm10  ;;  %347 = vst [vmem:[#allocation3 + $0x30] sm:$0xc0] %v339_v46  ;;  %1456 = vrot.lane.b32.xlu0 %v1442_v35, %s4482_s0  ;;  %v1033_v23 = vld [vmem:[#allocation2 + $0x10] sm:$0xf]  ;;  %v1566_v58 = vld [vmem:[#allocation2 + $0x8] sm:$0xf] }
  0xc0   :  { %vm9658_vm5 = vmmov %vm9651_vm14  ;;  %336 = vst [vmem:[#allocation3 + $0x18] sm:$0xc0] %v328_v47  ;;  %v486_v11 = vpop.permute.xlu1 %485  ;;  %v1034_v47 = vld [vmem:[#allocation2 + $0x18] sm:$0xf] }
  0xc1   :  { %vm5002_vm14 = vmand %vm9658_vm5, %vm9657_vm3  ;;  %348 = vst [vmem:[#allocation3 + $0x38] sm:$0xc0] %v340_v51  ;;  %vm9663_vm3 = vcmask 515072   ;;  %v484_v7 = vpop.permute.xlu0 %483 }
  0xc2   :  { %vm5010_vm10 = vmand %vm9654_vm13, %vm9214_vm1  ;;  %v429_v63 = vsel %vm9663_vm3, %v4691_v48, %v423_v57  ;;  %845 = vrot.lane.b32.xlu1 %v832_v6, %s4493_s18  ;;  %v1032_v6 = vld [vmem:[#allocation2 + $0x8] sm:$0xf] }
  0xc3   :  { %vm9664_vm5 = vmmov %vm9663_vm3  ;;  %v437_v13 = vsel %vm4979_vm8, %v429_v63, 0.0  ;;  %611 = vrot.lane.b32.xlu0 %v593_v5, %s4492_s17  ;;  %v1271_v63 = vld [vmem:[#allocation2 + $0x10] sm:$0xf]  ;;  %v1272_v5 = vld [vmem:[#allocation2 + $0x18] sm:$0xf] }
  0xc4   :  { %v430_v39 = vsel %vm9664_vm5, %v423_v57, %v425_v53  ;;  %vm470_vm13 = vmand %vm5002_vm14, %vm4923_vm4  ;;  %v445_v3 = vrot.slane %v437_v13, 6  ;;  %457 = vst [vmem:[#allocation3 + $0x70] sm:$0xc] %v437_v13  ;;  %v547_v35 = vpop.permute.xlu1 %546  ;;  %vm9667_vm5 = vcmask 457728  }
  0xc5   :  { %v438_v2 = vsel %vm4994_vm11, %v430_v39, 0.0  ;;  %vm471_vm8 = vmand %vm5010_vm10, %vm4941_vm12  ;;  %vm9665_vm11 = vcmask 465920   ;;  %v545_v34 = vpop.permute.xlu0 %544 }
  0xc6   :  { %v446_v48 = vrot.slane %v438_v2, 6  ;;  %458 = vst [vmem:[#allocation3 + $0x78] sm:$0xc] %v438_v2  ;;  %453 = vst [vmem:[#allocation3 + $0x50] sm:$0xc] %v445_v3  ;;  %v490_v62 = vsel %vm9665_vm11, %v4722_v61, %v484_v7  ;;  %v551_v61 = vsel %vm9667_vm5, %v4734_v8, %v545_v34  ;;  %1044 = vrot.lane.b32.xlu1 %v1033_v23, %s4495_s20  ;;  %v9670_v8 = vmov 0 }
  0xc7   :  { %vm9666_vm3 = vmmov %vm9665_vm11  ;;  %v498_v14 = vsel %vm470_vm13, %v490_v62, 0.0  ;;  %v559_v41 = vsel %vm5002_vm14, %v551_v61, 0.0  ;;  %847 = vrot.lane.b32.xlu0 %v833_v19, %s4493_s18  ;;  %vm9669_vm11 = vcmp.ge.s32.totalorder %v4629_v16, 1  ;;  %v9675_v19 = vmov 0  ;;  %v1270_v23 = vld [vmem:[#allocation2 + $0x8] sm:$0xf] }
  0xc8   :  { %454 = vst [vmem:[#allocation3 + $0x58] sm:$0xc] %v446_v48  ;;  %v491_v9 = vsel %vm9666_vm3, %v484_v7, %v486_v11  ;;  %v506_v49 = vrot.slane %v498_v14, 4  ;;  %v518_v28 = vrot.slane %v498_v14, 6  ;;  %vm9668_vm13 = vmmov %vm9667_vm5  ;;  %v567_v51 = vrot.slane %v559_v41, 2  ;;  %v5055_v13 = vpop.permute.xlu1 %664 }
  0xc9   :  { %v499_v17 = vsel %vm471_vm8, %v491_v9, 0.0  ;;  %v552_v36 = vsel %vm9668_vm13, %v545_v34, %v547_v35  ;;  %vm9215_vm8 = vcmask 72704   ;;  %v579_v52 = vrot.slane %v559_v41, 4  ;;  %vm5049_vm3 = vmand %vm9669_vm11, %vm4661_vm6  ;;  %v5053_v39 = vpop.permute.xlu0 %662  ;;  %v1149_v41 = vld [vmem:[#allocation2 + $0x20] sm:$0xf] }
  0xca   :  { %v507_v29 = vrot.slane %v499_v17, 4  ;;  %v519_v40 = vrot.slane %v499_v17, 6  ;;  %514 = vst [vmem:[#allocation3 + $0x50] sm:$0x30] %v506_v49  ;;  %526 = vst [vmem:[#allocation3 + $0x70] sm:$0x30] %v518_v28  ;;  %v672_v2 = vsel %vm9215_vm8, %v5053_v39, %v5055_v13  ;;  %1286 = vrot.lane.b32.xlu1 %v1271_v63, %s4479_s28 }
  0xcb   :  { %v560_v46 = vsel %vm5010_vm10, %v552_v36, 0.0  ;;  %v9671_v8 = vsel %vm5049_vm3, 4294967295, %v9670_v8  ;;  %575 = vst [vmem:[#allocation3 + $0x50] sm:$0xc0] %v567_v51  ;;  %587 = vst [vmem:[#allocation3 + $0x70] sm:$0xc0] %v579_v52  ;;  %1046 = vrot.lane.b32.xlu0 %v1034_v47, %s4495_s20 }
  0xcc   :  { %515 = vst [vmem:[#allocation3 + $0x58] sm:$0x30] %v507_v29  ;;  %527 = vst [vmem:[#allocation3 + $0x78] sm:$0x30] %v519_v40  ;;  %v568_v57 = vrot.slane %v560_v46, 2  ;;  %v580_v53 = vrot.slane %v560_v46, 4  ;;  %v5064_v11 = vpop.permute.xlu1 %717 }
  0xcd   :  { %9672 = vst [vmem:[#allocation21_spill] sm:$0xff] %v9671_v8  ;;  %v680_v3 = vsel %vm5049_vm3, %v672_v2, 0.0  ;;  %vm9217_vm5 = vcmask 64512   ;;  %v716_v7 = vpop.permute.xlu0 %715  ;;  %vm9673_vm13 = vmmov %vm9669_vm11  ;;  %vm9216_vm11 = vcmask 56320   ;;  %v1088_v49 = vld [vmem:[#allocation2 + $0x20] sm:$0xf] }
  0xce   :  { %576 = vst [vmem:[#allocation3 + $0x58] sm:$0xc0] %v568_v57  ;;  %588 = vst [vmem:[#allocation3 + $0x78] sm:$0xc0] %v580_v53  ;;  %v688_v48 = vrot.slane %v680_v3, 6  ;;  %v725_v62 = vsel %vm9217_vm5, %v716_v7, %v5064_v11  ;;  %1042 = vrot.lane.b32.xlu1 %v1032_v6, %s4495_s20  ;;  %v9679_v63 = vmov 0 }
  0xcf   :  { %700 = vst [vmem:[#allocation3 + $0xa8] sm:$0xc] %v680_v3  ;;  %v733_v9 = vsel %vm9673_vm13, %v725_v62, 0.0  ;;  %1288 = vrot.lane.b32.xlu0 %v1272_v5, %s4479_s28  ;;  %vm9674_vm1 = vmmov %vm9673_vm13  ;;  %v1089_v36 = vld [vmem:[#allocation2 + $0x28] sm:$0xf]  ;;  %vm9219_vm13 = vcmask 990208  }
  0xd0   :  { %696 = vst [vmem:[#allocation3 + $0x88] sm:$0xc] %v688_v48  ;;  %v741_v14 = vrot.slane %v733_v9, 4  ;;  %v753_v17 = vrot.slane %v733_v9, 6  ;;  %vm5076_vm8 = vmand %vm9674_vm1, %vm4641_vm2  ;;  %v5082_v29 = vpop.permute.xlu1 %782  ;;  %vm9218_vm1 = vcmask 1039360  }
  0xd1   :  { %v9676_v19 = vsel %vm5076_vm8, 4294967295, %v9675_v19  ;;  %v5080_v28 = vpop.permute.xlu0 %780  ;;  %v1213_v2 = vld [vmem:[#allocation2 + $0x20] sm:$0xf] }
  0xd2   :  { %9677 = vst [vmem:[#allocation22_spill] sm:$0xff] %v9676_v19  ;;  %749 = vst [vmem:[#allocation3 + $0x88] sm:$0x30] %v741_v14  ;;  %v790_v40 = vsel %vm9216_vm11, %v5080_v28, %v5082_v29  ;;  %1105 = vrot.lane.b32.xlu1 %v1088_v49, %s4494_s19  ;;  %vm9678_vm11 = vcmp.le.s32.totalorder %v4629_v16, 6  ;;  %v1329_v3 = vld [vmem:[#allocation2 + $0x20] sm:$0xf] }
  0xd3   :  { %761 = vst [vmem:[#allocation3 + $0xa8] sm:$0x30] %v753_v17  ;;  %v798_v34 = vsel %vm5076_vm8, %v790_v40, 0.0  ;;  %1284 = vrot.lane.b32.xlu0 %v1270_v23, %s4479_s28  ;;  %vm5103_vm5 = vmand %vm9678_vm11, %vm4661_vm6  ;;  %vm9682_vm11 = vcmp.ge.s32.totalorder %v4720_v60, 1  ;;  %v9683_v17 = vmov 0 }
  0xd4   :  { %v806_v35 = vrot.slane %v798_v34, 2  ;;  %v818_v61 = vrot.slane %v798_v34, 4  ;;  %v5091_v47 = vpop.permute.xlu1 %920  ;;  %v9680_v63 = vsel %vm5103_vm5, 4294967295, %v9679_v63  ;;  %v1385_v23 = vld [vmem:[#allocation2 + $0x20] sm:$0xf]  ;;  %vm9688_vm8 = vmmov %vm9682_vm11 }
  0xd5   :  { %v919_v46 = vpop.permute.xlu0 %918  ;;  %9681 = vst [vmem:[#allocation23_spill] sm:$0xff] %v9680_v63  ;;  %v1445_v49 = vld [vmem:[#allocation2 + $0x20] sm:$0xf] }
  0xd6   :  { %814 = vst [vmem:[#allocation3 + $0x88] sm:$0xc0] %v806_v35  ;;  %826 = vst [vmem:[#allocation3 + $0xa8] sm:$0xc0] %v818_v61  ;;  %v928_v51 = vsel %vm9218_vm1, %v919_v46, %v5091_v47  ;;  %1166 = vrot.lane.b32.xlu1 %v1149_v41, %s4485_s10 }
  0xd7   :  { %v936_v52 = vsel %vm4641_vm2, %v928_v51, 0.0  ;;  %1107 = vrot.lane.b32.xlu0 %v1089_v36, %s4494_s19  ;;  %vm5119_vm1 = vmand %vm9682_vm11, %vm4771_vm0  ;;  %v1567_v51 = vld [vmem:[#allocation2 + $0x10] sm:$0xf]  ;;  %vm9694_vm11 = vcmask 1039360  }
  0xd8   :  { %v944_v57 = vrot.slane %v936_v52, 4  ;;  %v956_v53 = vrot.slane %v936_v52, 6  ;;  %v5107_v5 = vpop.permute.xlu1 %985  ;;  %v9684_v17 = vsel %vm5119_vm1, 4294967295, %v9683_v17 }
  0xd9   :  { %v984_v48 = vpop.permute.xlu0 %983  ;;  %9685 = vst [vmem:[#allocation24_spill] sm:$0xff] %v9684_v17 }
  0xda   :  { %952 = vst [vmem:[#allocation3 + $0xc8] sm:$0x30] %v944_v57  ;;  %964 = vst [vmem:[#allocation3 + $0xe8] sm:$0x30] %v956_v53  ;;  %v993_v6 = vsel %vm9219_vm13, %v984_v48, %v5107_v5  ;;  %1346 = vrot.lane.b32.xlu1 %v1329_v3, %s4481_s30  ;;  %vm9686_vm13 = vcmask 72704  }
  0xdb   :  { %v1001_v62 = vsel %vm5103_vm5, %v993_v6, 0.0  ;;  %1226 = vrot.lane.b32.xlu0 %v1213_v2, %s4480_s29  ;;  %vm9687_vm5 = vcmask 64512  }
  0xdc   :  { %v1009_v9 = vrot.slane %v1001_v62, 2  ;;  %v1021_v14 = vrot.slane %v1001_v62, 4  ;;  %v714_v34 = vpop.permute.xlu1 %713 }
  0xdd   :  { %v661_v40 = vpop.permute.xlu0 %660  ;;  %v724_v61 = vsel %vm9687_vm5, %v714_v34, %v716_v7  ;;  %v1568_v7 = vld [vmem:[#allocation2 + $0x18] sm:$0xf] }
  0xde   :  { %1017 = vst [vmem:[#allocation3 + $0xc8] sm:$0xc0] %v1009_v9  ;;  %1029 = vst [vmem:[#allocation3 + $0xe8] sm:$0xc0] %v1021_v14  ;;  %v671_v35 = vsel %vm9686_vm13, %v661_v40, %v5053_v39  ;;  %v732_v41 = vsel %vm9688_vm8, %v724_v61, 0.0  ;;  %1462 = vrot.lane.b32.xlu1 %v1445_v49, %s4482_s0  ;;  %v9690_v39 = vmov 0 }
  0xdf   :  { %v679_v36 = vsel %vm5119_vm1, %v671_v35, 0.0  ;;  %1398 = vrot.lane.b32.xlu0 %v1385_v23, %s4486_s11  ;;  %v740_v57 = vrot.slane %v732_v41, 4  ;;  %v752_v53 = vrot.slane %v732_v41, 6  ;;  %vm9689_vm13 = vmmov %vm9688_vm8  ;;  %vm9693_vm8 = vcmask 56320   ;;  %v1620_v35 = vld [vmem:[#allocation2 + $0x18] sm:$0xf] }
  0xe0   :  { %v687_v52 = vrot.slane %v679_v36, 6  ;;  %699 = vst [vmem:[#allocation3 + $0xa0] sm:$0xc] %v679_v36  ;;  %vm5136_vm5 = vmand %vm9689_vm13, %vm4742_vm15  ;;  %v917_v3 = vpop.permute.xlu1 %916  ;;  %vm9695_vm13 = vcmp.le.s32.totalorder %v4720_v60, 6  ;;  %v9696_v23 = vmov 0 }
  0xe1   :  { %v9691_v39 = vsel %vm5136_vm5, 4294967295, %v9690_v39  ;;  %v779_v2 = vpop.permute.xlu0 %778  ;;  %748 = vst [vmem:[#allocation3 + $0x80] sm:$0x30] %v740_v57  ;;  %760 = vst [vmem:[#allocation3 + $0xa0] sm:$0x30] %v752_v53  ;;  %v927_v62 = vsel %vm9694_vm11, %v917_v3, %v919_v46  ;;  %vm9699_vm11 = vcmask 990208  }
  0xe2   :  { %9692 = vst [vmem:[#allocation25_spill] sm:$0xff] %v9691_v39  ;;  %695 = vst [vmem:[#allocation3 + $0x80] sm:$0xc] %v687_v52  ;;  %v789_v6 = vsel %vm9693_vm8, %v779_v2, %v5080_v28  ;;  %v935_v14 = vsel %vm4742_vm15, %v927_v62, 0.0  ;;  %1580 = vrot.lane.b32.xlu1 %v1568_v7, %s4484_s9  ;;  %v1619_v28 = vld [vmem:[#allocation2 + $0x10] sm:$0xf] }
  0xe3   :  { %v797_v9 = vsel %vm5136_vm5, %v789_v6, 0.0  ;;  %1578 = vrot.lane.b32.xlu0 %v1567_v51, %s4484_s9  ;;  %vm5153_vm1 = vmand %vm9695_vm13, %vm4771_vm0  ;;  %v943_v40 = vrot.slane %v935_v14, 4  ;;  %v955_v34 = vrot.slane %v935_v14, 6  ;;  %vm9700_vm13 = vcmask 596992  }
  0xe4   :  { %v9697_v23 = vsel %vm5153_vm1, 4294967295, %v9696_v23  ;;  %v805_v46 = vrot.slane %v797_v9, 2  ;;  %v817_v49 = vrot.slane %v797_v9, 4  ;;  %vm116_vm8 = vmand %vm4896_vm7, %vm4923_vm4  ;;  %v130_v36 = vpop.permute.xlu1 %129  ;;  %vm9701_vm7 = vnez %v9628_v30 }
  0xe5   :  { %9698 = vst [vmem:[#allocation26_spill] sm:$0xff] %v9697_v23  ;;  %v982_v61 = vpop.permute.xlu0 %981  ;;  %951 = vst [vmem:[#allocation3 + $0xc0] sm:$0x30] %v943_v40  ;;  %v136_v51 = vsel %vm9700_vm13, %v4844_v22, %v130_v36  ;;  %vm9720_vm5 = vcmp.ge.s32.totalorder %v4859_v38, 1 }
  0xe6   :  { %813 = vst [vmem:[#allocation3 + $0x80] sm:$0xc0] %v805_v46  ;;  %825 = vst [vmem:[#allocation3 + $0xa0] sm:$0xc0] %v817_v49  ;;  %v992_v41 = vsel %vm9699_vm11, %v982_v61, %v984_v48  ;;  %v144_v57 = vsel %vm116_vm8, %v136_v51, 0.0  ;;  %1636 = vrot.lane.b32.xlu1 %v1620_v35, %s4492_s17 }
  0xe7   :  { %963 = vst [vmem:[#allocation3 + $0xe0] sm:$0x30] %v955_v34  ;;  %v1000_v52 = vsel %vm5153_vm1, %v992_v41, 0.0  ;;  %1634 = vrot.lane.b32.xlu0 %v1619_v28, %s4492_s17  ;;  %148 = vst [vmem:[#allocation3 + $0x10] sm:$0x3] %v144_v57  ;;  %v156_v2 = vrot.slane %v144_v57, 2 }
  0xe8   :  { %v1008_v53 = vrot.slane %v1000_v52, 2  ;;  %v1020_v7 = vrot.slane %v1000_v52, 4  ;;  %vm117_vm11 = vmand %vm9701_vm7, %vm4941_vm12  ;;  %v1618_v48 = vld [vmem:[#allocation2 + $0x8] sm:$0xf]  ;;  %v366_v3 = vpop.permute.xlu1 %365  ;;  %vm9704_vm1 = vcmp.ge.s32.totalorder %v4857_v37, 1 }
  0xe9   :  { %v132_v22 = vpop.permute.xlu0 %131  ;;  %164 = vst [vmem:[#allocation3 + $0x30] sm:$0x3] %v156_v2  ;;  %vm9702_vm8 = vmmov %vm9700_vm13  ;;  %vm9703_vm13 = vcmask 523264   ;;  %v1035_v46 = vld [vmem:[#allocation2 + $0x20] sm:$0xf] }
  0xea   :  { %1016 = vst [vmem:[#allocation3 + $0xc0] sm:$0xc0] %v1008_v53  ;;  %1028 = vst [vmem:[#allocation3 + $0xe0] sm:$0xc0] %v1020_v7  ;;  %v137_v6 = vsel %vm9702_vm8, %v130_v36, %v132_v22  ;;  %v372_v62 = vsel %vm9703_vm13, %v4861_v27, %v366_v3  ;;  %1632 = vrot.lane.b32.xlu1 %v1618_v48, %s4492_s17  ;;  %v1036_v49 = vld [vmem:[#allocation2 + $0x28] sm:$0xf]  ;;  %vm9707_vm8 = vnez %v9600_v50 }
  0xeb   :  { %v145_v9 = vsel %vm117_vm11, %v137_v6, 0.0  ;;  %v380_v14 = vsel %vm9704_vm1, %v372_v62, 0.0  ;;  %1576 = vrot.lane.b32.xlu0 %v1566_v58, %s4484_s9  ;;  %vm9705_vm7 = vmmov %vm9703_vm13  ;;  %vm9706_vm11 = vcmp.ge.s32.totalorder %v4864_v42, 1  ;;  %vm9225_vm1 = vcmask 449536   ;;  %v1273_v36 = vld [vmem:[#allocation2 + $0x20] sm:$0xf] }
  0xec   :  { %149 = vst [vmem:[#allocation3 + $0x18] sm:$0x3] %v145_v9  ;;  %v157_v30 = vrot.slane %v145_v9, 2  ;;  %384 = vst [vmem:[#allocation3 + $0x50] sm:$0x3] %v380_v14  ;;  %v392_v28 = vrot.slane %v380_v14, 2  ;;  %v606_v34 = vpop.permute.xlu1 %605 }
  0xed   :  { %v368_v40 = vpop.permute.xlu0 %367  ;;  %vm595_vm13 = vmand %vm9707_vm8, %vm4641_vm2  ;;  %v1511_v41 = vld [vmem:[#allocation2 + $0x10] sm:$0xf]  ;;  %v1512_v50 = vld [vmem:[#allocation2 + $0x18] sm:$0xf] }
  0xee   :  { %165 = vst [vmem:[#allocation3 + $0x38] sm:$0x3] %v157_v30  ;;  %400 = vst [vmem:[#allocation3 + $0x70] sm:$0x3] %v392_v28  ;;  %v373_v27 = vsel %vm9705_vm7, %v366_v3, %v368_v40  ;;  %1050 = vrot.lane.b32.xlu1 %v1036_v49, %s4495_s20  ;;  %vm9224_vm7 = vcmask 7168  }
  0xef   :  { %v381_v35 = vsel %vm9706_vm11, %v373_v27, 0.0  ;;  %1048 = vrot.lane.b32.xlu0 %v1035_v46, %s4495_s20  ;;  %vm9708_vm11 = vnez %v9613_v44  ;;  %v1510_v7 = vld [vmem:[#allocation2 + $0x8] sm:$0xf]  ;;  %v9710_v46 = vmov 0  ;;  %v1569_v40 = vld [vmem:[#allocation2 + $0x20] sm:$0xf] }
  0xf0   :  { %385 = vst [vmem:[#allocation3 + $0x58] sm:$0x3] %v381_v35  ;;  %v393_v61 = vrot.slane %v381_v35, 2  ;;  %v842_v52 = vpop.permute.xlu1 %841  ;;  %vm594_vm8 = vmand %vm9708_vm11, %vm4742_vm15 }
  0xf1   :  { %v5188_v51 = vpop.permute.xlu0 %607 }
  0xf2   :  { %401 = vst [vmem:[#allocation3 + $0x78] sm:$0x3] %v393_v61  ;;  %v615_v57 = vsel %vm9225_vm1, %v606_v34, %v5188_v51  ;;  %1526 = vrot.lane.b32.xlu1 %v1511_v41, %s4483_s8  ;;  %v1685_v61 = vld [vmem:[#allocation3 + $0x10] sm:$0xff] }
  0xf3   :  { %v623_v58 = vsel %vm595_vm13, %v615_v57, 0.0  ;;  %1290 = vrot.lane.b32.xlu0 %v1273_v36, %s4479_s28  ;;  %v1686_v44 = vld [vmem:[#allocation3 + $0x18] sm:$0xff]  ;;  %v1693_v14 = vld [vmem:[#allocation3 + $0x50] sm:$0xff]  ;;  %vm9709_vm13 = vcmp.ge.s32.totalorder %v4859_v38, 1 }
  0xf4   :  { %627 = vst [vmem:[#allocation3 + $0x88] sm:$0x3] %v623_v58  ;;  %v635_v53 = vrot.slane %v623_v58, 2  ;;  %v604_v48 = vpop.permute.xlu1 %603  ;;  %vm5211_vm11 = vmand %vm9709_vm13, %vm4923_vm4  ;;  %v4309_v57 = vpack.c.bf16 %v1693_v14, %v1685_v61  ;;  %vm9714_vm13 = vcmp.ge.s32.totalorder %v4866_v43, 1 }
  0xf5   :  { %v5198_v2 = vpop.permute.xlu0 %843  ;;  %v614_v3 = vsel %vm9225_vm1, %v604_v48, %v606_v34  ;;  %v9711_v46 = vsel %vm5211_vm11, 4294967295, %v9710_v46  ;;  %v1570_v34 = vld [vmem:[#allocation2 + $0x28] sm:$0xf]  ;;  %vm9719_vm1 = vcmask 64512  }
  0xf6   :  { %643 = vst [vmem:[#allocation3 + $0xa8] sm:$0x3] %v635_v53  ;;  %v851_v22 = vsel %vm9224_vm7, %v842_v52, %v5198_v2  ;;  %v622_v62 = vsel %vm594_vm8, %v614_v3, 0.0  ;;  %1524 = vrot.lane.b32.xlu1 %v1510_v7, %s4483_s8  ;;  %9712 = vst [vmem:[#allocation27_spill] sm:$0xff] %v9711_v46  ;;  %vm9713_vm8 = vcmask 72704  }
  0xf7   :  { %v859_v6 = vsel %vm4661_vm6, %v851_v22, 0.0  ;;  %1528 = vrot.lane.b32.xlu0 %v1512_v50, %s4483_s8  ;;  %v1694_v9 = vld [vmem:[#allocation3 + $0x58] sm:$0xff]  ;;  %626 = vst [vmem:[#allocation3 + $0x80] sm:$0x3] %v622_v62  ;;  %v634_v28 = vrot.slane %v622_v62, 2 }
  0xf8   :  { %863 = vst [vmem:[#allocation3 + $0xc8] sm:$0x3] %v859_v6  ;;  %v871_v30 = vrot.slane %v859_v6, 2  ;;  %v4307_v49 = vpack.c.bf16 %v1694_v9, %v1686_v44  ;;  %v667_v35 = vpop.permute.xlu1 %666  ;;  %v1622_v48 = vld [vmem:[#allocation2 + $0x28] sm:$0xf] }
  0xf9   :  { %v840_v27 = vpop.permute.xlu0 %839  ;;  %642 = vst [vmem:[#allocation3 + $0xa0] sm:$0x3] %v634_v28  ;;  %v673_v41 = vsel %vm9713_vm8, %v5055_v13, %v667_v35  ;;  %vm5228_vm8 = vmand %vm9714_vm13, %vm4941_vm12  ;;  %v9715_v13 = vmov 0  ;;  %v1513_v28 = vld [vmem:[#allocation2 + $0x20] sm:$0xf]  ;;  %vm9726_vm13 = vcmask 56320  }
  0xfa   :  { %879 = vst [vmem:[#allocation3 + $0xe8] sm:$0x3] %v871_v30  ;;  %v850_v36 = vsel %vm9224_vm7, %v840_v27, %v842_v52  ;;  %4308 = vmatprep.subr.bf16.mxu1 %v4307_v49  ;;  %v681_v53 = vsel %vm5211_vm11, %v673_v41, 0.0  ;;  %1584 = vrot.lane.b32.xlu1 %v1570_v34, %s4484_s9  ;;  %v9716_v13 = vsel %vm5228_vm8, 4294967295, %v9715_v13  ;;  %v1621_v52 = vld [vmem:[#allocation2 + $0x20] sm:$0xf] }
  0xfb   :  { %v858_v58 = vsel %vm4771_vm0, %v850_v36, 0.0  ;;  %1582 = vrot.lane.b32.xlu0 %v1569_v40, %s4484_s9  ;;  %v689_v7 = vrot.slane %v681_v53, 6  ;;  %701 = vst [vmem:[#allocation3 + $0xb0] sm:$0xc] %v681_v53  ;;  %4310 = vmatpush1.bf16.msra.mxu1 %v4309_v57  ;;  %9717 = vst [vmem:[#allocation28_spill] sm:$0xff] %v9716_v13  ;;  %vm9718_vm7 = vcmask 72704  }
  0xfc   :  { %862 = vst [vmem:[#allocation3 + $0xc0] sm:$0x3] %v858_v58  ;;  %v870_v50 = vrot.slane %v858_v58, 2  ;;  %v720_v3 = vpop.permute.xlu1 %719  ;;  %v1700_v14 = vld [vmem:[#allocation3 + $0x88] sm:$0xff] }
  0xfd   :  { %v669_v22 = vpop.permute.xlu0 %668  ;;  %697 = vst [vmem:[#allocation3 + $0x90] sm:$0xc] %v689_v7  ;;  %v726_v62 = vsel %vm9719_vm1, %v5064_v11, %v720_v3  ;;  %vm9721_vm1 = vmmov %vm9720_vm5  ;;  %v9722_v11 = vmov 0 }
  0xfe   :  { %878 = vst [vmem:[#allocation3 + $0xe0] sm:$0x3] %v870_v50  ;;  %v674_v6 = vsel %vm9718_vm7, %v667_v35, %v669_v22  ;;  %v734_v9 = vsel %vm9720_vm5, %v726_v62, 0.0  ;;  %1640 = vrot.lane.b32.xlu1 %v1622_v48, %s4492_s17  ;;  %vm5245_vm7 = vmand %vm9721_vm1, %vm4902_vm9  ;;  %v1514_v35 = vld [vmem:[#allocation2 + $0x28] sm:$0xf]  ;;  %vm9725_vm5 = vcmask 64512   ;;  %vm9728_vm1 = vnez %v9631_v10 }
  0xff   :  { %v682_v44 = vsel %vm5228_vm8, %v674_v6, 0.0  ;;  %1638 = vrot.lane.b32.xlu0 %v1621_v52, %s4492_s17  ;;  %v1708_v30 = vld [vmem:[#allocation3 + $0xc8] sm:$0xff]  ;;  %v742_v40 = vrot.slane %v734_v9, 4  ;;  %v754_v34 = vrot.slane %v734_v9, 6  ;;  %v9723_v11 = vsel %vm5245_vm7, 4294967295, %v9722_v11 }
 0x100   :  { %v690_v49 = vrot.slane %v682_v44, 6  ;;  %702 = vst [vmem:[#allocation3 + $0xb8] sm:$0xc] %v682_v44  ;;  %9724 = vst [vmem:[#allocation29_spill] sm:$0xff] %v9723_v11  ;;  %v4295_v27 = vpack.c.bf16 %v1708_v30, %v1700_v14  ;;  %v785_v36 = vpop.permute.xlu1 %784  ;;  %vm9727_vm8 = vcmp.ge.s32.totalorder %v4866_v43, 1 }
 0x101   :  { %v722_v61 = vpop.permute.xlu0 %721  ;;  %750 = vst [vmem:[#allocation3 + $0x90] sm:$0x30] %v742_v40  ;;  %762 = vst [vmem:[#allocation3 + $0xb0] sm:$0x30] %v754_v34  ;;  %v791_v57 = vsel %vm9726_vm13, %v5082_v29, %v785_v36  ;;  %v9730_v29 = vmov 0 }
 0x102   :  { %698 = vst [vmem:[#allocation3 + $0x98] sm:$0xc] %v690_v49  ;;  %v727_v41 = vsel %vm9725_vm5, %v720_v3, %v722_v61  ;;  %4296 = vmatprep.subr.bf16.mxu0 %v4295_v27  ;;  %v799_v53 = vsel %vm5245_vm7, %v791_v57, 0.0  ;;  %1532 = vrot.lane.b32.xlu1 %v1514_v35, %s4483_s8  ;;  %vm9729_vm5 = vmmov %vm9727_vm8  ;;  %v1699_v3 = vld [vmem:[#allocation3 + $0x80] sm:$0xff]  ;;  %vm9734_vm7 = vcmask 1039360   ;;  %v9736_v35 = vmov 0 }
 0x103   :  { %v735_v58 = vsel %vm9727_vm8, %v727_v41, 0.0  ;;  %1530 = vrot.lane.b32.xlu0 %v1513_v28, %s4483_s8  ;;  %v1707_v50 = vld [vmem:[#allocation3 + $0xc0] sm:$0xff]  ;;  %v807_v48 = vrot.slane %v799_v53, 2  ;;  %v819_v22 = vrot.slane %v799_v53, 4  ;;  %vm5262_vm13 = vmand %vm9729_vm5, %vm9728_vm1  ;;  %vm9733_vm8 = vcmask 56320  }
 0x104   :  { %v743_v7 = vrot.slane %v735_v58, 4  ;;  %v755_v52 = vrot.slane %v735_v58, 6  ;;  %v9731_v29 = vsel %vm5262_vm13, 4294967295, %v9730_v29  ;;  %v923_v62 = vpop.permute.xlu1 %922  ;;  %v4297_v44 = vpack.c.bf16 %v1707_v50, %v1699_v3 }
 0x105   :  { %9732 = vst [vmem:[#allocation30_spill] sm:$0xff] %v9731_v29  ;;  %v787_v6 = vpop.permute.xlu0 %786  ;;  %815 = vst [vmem:[#allocation3 + $0x90] sm:$0xc0] %v807_v48  ;;  %v929_v14 = vsel %vm9734_vm7, %v5091_v47, %v923_v62  ;;  %vm9735_vm5 = vcmp.le.s32.totalorder %v4859_v38, 6  ;;  %v9741_v48 = vmov 0 }
 0x106   :  { %751 = vst [vmem:[#allocation3 + $0x98] sm:$0x30] %v743_v7  ;;  %763 = vst [vmem:[#allocation3 + $0xb8] sm:$0x30] %v755_v52  ;;  %v792_v9 = vsel %vm9733_vm8, %v785_v36, %v787_v6  ;;  %v937_v28 = vsel %vm4902_vm9, %v929_v14, 0.0  ;;  %4298 = vmatpush1.bf16.msra.mxu0 %v4297_v44  ;;  %vm9739_vm8 = vcmask 990208  }
 0x107   :  { %827 = vst [vmem:[#allocation3 + $0xb0] sm:$0xc0] %v819_v22  ;;  %v800_v30 = vsel %vm5262_vm13, %v792_v9, 0.0  ;;  %v945_v34 = vrot.slane %v937_v28, 4  ;;  %v957_v27 = vrot.slane %v937_v28, 6  ;;  %vm5277_vm11 = vmand %vm9735_vm5, %vm4923_vm4  ;;  %vm9740_vm5 = vcmp.le.s32.totalorder %v4866_v43, 6 }
 0x108   :  { %v808_v49 = vrot.slane %v800_v30, 2  ;;  %v820_v40 = vrot.slane %v800_v30, 4  ;;  %v9737_v35 = vsel %vm5277_vm11, 4294967295, %v9736_v35  ;;  %v988_v61 = vpop.permute.xlu1 %987  ;;  %vm5292_vm13 = vmand %vm9740_vm5, %vm4941_vm12  ;;  %vm9745_vm5 = vcmp.le.s32.totalorder %v4629_v16, 6 }
 0x109   :  { %9738 = vst [vmem:[#allocation31_spill] sm:$0xff] %v9737_v35  ;;  %v925_v47 = vpop.permute.xlu0 %924  ;;  %953 = vst [vmem:[#allocation3 + $0xd0] sm:$0x30] %v945_v34  ;;  %v994_v41 = vsel %vm9739_vm8, %v5107_v5, %v988_v61  ;;  %v9742_v48 = vsel %vm5292_vm13, 4294967295, %v9741_v48  ;;  %v9746_v9 = vmov 0  ;;  %v9750_v28 = vmov 0 }
 0x10a   :  { %816 = vst [vmem:[#allocation3 + $0x98] sm:$0xc0] %v808_v49  ;;  %828 = vst [vmem:[#allocation3 + $0xb8] sm:$0xc0] %v820_v40  ;;  %v930_v36 = vsel %vm9734_vm7, %v923_v62, %v925_v47  ;;  %v1002_v58 = vsel %vm5277_vm11, %v994_v41, 0.0  ;;  %vm9235_vm11 = vcmask 973824  }
 0x10b   :  { %965 = vst [vmem:[#allocation3 + $0xf0] sm:$0x30] %v957_v27  ;;  %v938_v57 = vsel %vm9728_vm1, %v930_v36, 0.0  ;;  %v1010_v7 = vrot.slane %v1002_v58, 2  ;;  %v1022_v52 = vrot.slane %v1002_v58, 4  ;;  %9743 = vst [vmem:[#allocation32_spill] sm:$0xff] %v9742_v48 }
 0x10c   :  { %v946_v53 = vrot.slane %v938_v57, 4  ;;  %v958_v50 = vrot.slane %v938_v57, 6  ;;  %v5296_v5 = vpop.permute.xlu1 %1101  ;;  %vm9744_vm7 = vmmov %vm9739_vm8  ;;  %vm9236_vm8 = vcmp.le.s32.totalorder %v4627_v15, 6  ;;  %v5338_v36 = vld [vmem:[#allocation2] sm:$0xff]  ;;  %v4496_v58 = vmov 8  }
 0x10d   :  { %v990_v22 = vpop.permute.xlu0 %989  ;;  %1018 = vst [vmem:[#allocation3 + $0xd0] sm:$0xc0] %v1010_v7  ;;  %1030 = vst [vmem:[#allocation3 + $0xf0] sm:$0xc0] %v1022_v52  ;;  %v5342_v41 = vpack.i.bf16 %v5338_v36, %v5338_v36  ;;  %4448 = vset.pattern.permute.xlu0 %v4496_v58 }
 0x10e   :  { %954 = vst [vmem:[#allocation3 + $0xd8] sm:$0x30] %v946_v53  ;;  %966 = vst [vmem:[#allocation3 + $0xf8] sm:$0x30] %v958_v50  ;;  %v995_v3 = vsel %vm9744_vm7, %v988_v61, %v990_v22  ;;  %vm9749_vm7 = vcmp.ge.s32.totalorder %v4629_v16, 1 }
 0x10f   :  { %v1003_v6 = vsel %vm5292_vm13, %v995_v3, 0.0  ;;  %vm5306_vm3 = vmand %vm9745_vm5, %vm4641_vm2  ;;  %4437 = vrot.lane.b32.xlu0 %v5342_v41, %s4480_s29 }
 0x110   :  { %v1011_v62 = vrot.slane %v1003_v6, 2  ;;  %v1023_v44 = vrot.slane %v1003_v6, 4  ;;  %v9747_v9 = vsel %vm5306_vm3, 4294967295, %v9746_v9  ;;  %v5312_v30 = vpop.permute.xlu1 %1162  ;;  %vm5318_vm13 = vmand %vm9236_vm8, %vm9749_vm7  ;;  %vm9752_vm7 = vcmask 596992  }
 0x111   :  { %9748 = vst [vmem:[#allocation33_spill] sm:$0xff] %v9747_v9  ;;  %v5310_v14 = vpop.permute.xlu0 %1103  ;;  %v9751_v28 = vsel %vm5318_vm13, 4294967295, %v9750_v28  ;;  %vm1152_vm5 = vmand %vm5318_vm13, %vm4661_vm6 }
 0x112   :  { %1019 = vst [vmem:[#allocation3 + $0xd8] sm:$0xc0] %v1011_v62  ;;  %1031 = vst [vmem:[#allocation3 + $0xf8] sm:$0xc0] %v1023_v44  ;;  %v1111_v49 = vsel %vm9235_vm11, %v5296_v5, %v5310_v14  ;;  %vm9755_vm11 = vcmask 523264  }
 0x113   :  { %v1119_v40 = vsel %vm5306_vm3, %v1111_v49, 0.0  ;;  %2363 = vrot.lane.b32.xlu0 %v5338_v36, %s4479_s28  ;;  %vm9756_vm3 = vcmp.le.s32.totalorder %v4627_v15, 6 }
 0x114   :  { %v1127_v34 = vrot.slane %v1119_v40, 6  ;;  %1139 = vst [vmem:[#allocation3 + $0x128] sm:$0xc] %v1119_v40  ;;  %v5333_v47 = vpop.permute.xlu1 %1222 }
 0x115   :  { %v5331_v27 = vpop.permute.xlu0 %1164 }
 0x116   :  { %1135 = vst [vmem:[#allocation3 + $0x108] sm:$0xc] %v1127_v34  ;;  %v1171_v61 = vsel %vm9752_vm7, %v5312_v30, %v5331_v27  ;;  %vm9753_vm7 = vcmask 588800  }
 0x117   :  { %v1179_v57 = vsel %vm1152_vm5, %v1171_v61, 0.0  ;;  %vm1332_vm5 = vmand %vm9236_vm8, %vm4661_vm6  ;;  %2449 = vrot.lane.b32.xlu0 %v5338_v36, %s4481_s30  ;;  %vm9247_vm8 = vcmp.le.s32.totalorder %v4718_v59, 6  ;;  %vm9758_vm6 = vcmp.le.s32.totalorder %v4720_v60, 6 }
 0x118   :  { %v1187_v53 = vrot.slane %v1179_v57, 4  ;;  %v1199_v50 = vrot.slane %v1179_v57, 6  ;;  %v5348_v52 = vpop.permute.xlu1 %1342 }
 0x119   :  { %v5346_v7 = vpop.permute.xlu0 %1224 }
 0x11a   :  { %1195 = vst [vmem:[#allocation3 + $0x108] sm:$0x30] %v1187_v53  ;;  %1207 = vst [vmem:[#allocation3 + $0x128] sm:$0x30] %v1199_v50  ;;  %v1231_v22 = vsel %vm9753_vm7, %v5333_v47, %v5346_v7  ;;  %vm9754_vm7 = vcmask 531456  }
 0x11b   :  { %v1239_v3 = vsel %vm5318_vm13, %v1231_v22, 0.0  ;;  %vm5385_vm13 = vmand %vm9758_vm6, %vm4742_vm15  ;;  %2511 = vrot.lane.b32.xlu0 %v5338_v36, %s4486_s11  ;;  %vm9765_vm6 = vcmask 515072  }
 0x11c   :  { %v1247_v6 = vrot.slane %v1239_v3, 2  ;;  %v1259_v62 = vrot.slane %v1239_v3, 4  ;;  %v1395_v49 = vpop.permute.xlu1 %1394 }
 0x11d   :  { %v5361_v44 = vpop.permute.xlu0 %1344 }
 0x11e   :  { %1255 = vst [vmem:[#allocation3 + $0x108] sm:$0xc0] %v1247_v6  ;;  %1267 = vst [vmem:[#allocation3 + $0x128] sm:$0xc0] %v1259_v62  ;;  %v1351_v40 = vsel %vm9754_vm7, %v5348_v52, %v5361_v44  ;;  %v9759_v6 = vmov 0 }
 0x11f   :  { %v1359_v34 = vsel %vm1332_vm5, %v1351_v40, 0.0  ;;  %vm9757_vm5 = vmmov %vm9756_vm3  ;;  %v9760_v6 = vsel %vm5385_vm13, 4294967295, %v9759_v6  ;;  %2581 = vrot.lane.b32.xlu0 %v5338_v36, %s4482_s0 }
 0x120   :  { %v1367_v61 = vrot.slane %v1359_v34, 6  ;;  %1379 = vst [vmem:[#allocation3 + $0x168] sm:$0xc] %v1359_v34  ;;  %v5370_v58 = vpop.permute.xlu1 %1458  ;;  %vm1448_vm7 = vmand %vm9757_vm5, %vm4641_vm2  ;;  %vm9766_vm5 = vcmask 973824   ;;  %v4404_v34 = vunpack.i.h.bf16 %v4756_v21 }
 0x121   :  { %v5368_v57 = vpop.permute.xlu0 %1396  ;;  %9761 = vst [vmem:[#allocation34_spill] sm:$0xff] %v9760_v6 }
 0x122   :  { %1375 = vst [vmem:[#allocation3 + $0x148] sm:$0xc] %v1367_v61  ;;  %v1403_v53 = vsel %vm9755_vm11, %v1395_v49, %v5368_v57 }
 0x123   :  { %v1411_v50 = vsel %vm9756_vm3, %v1403_v53, 0.0  ;;  %vm9762_vm3 = vcmp.ge.s32.totalorder %v4720_v60, 1  ;;  %2675 = vrot.lane.b32.xlu0 %v5338_v36, %s4483_s8 }
 0x124   :  { %v1419_v22 = vrot.slane %v1411_v50, 4  ;;  %v1431_v3 = vrot.slane %v1411_v50, 6  ;;  %v1100_v40 = vpop.permute.xlu1 %1099  ;;  %vm5397_vm11 = vmand %vm9247_vm8, %vm9762_vm3 }
 0x125   :  { %v5391_v62 = vpop.permute.xlu0 %1460  ;;  %v1110_v53 = vsel %vm9766_vm5, %v1100_v40, %v5296_v5  ;;  %vm1151_vm3 = vmand %vm5397_vm11, %vm4771_vm0 }
 0x126   :  { %1427 = vst [vmem:[#allocation3 + $0x148] sm:$0x30] %v1419_v22  ;;  %1439 = vst [vmem:[#allocation3 + $0x168] sm:$0x30] %v1431_v3  ;;  %v1467_v61 = vsel %vm9765_vm6, %v5370_v58, %v5391_v62  ;;  %v1118_v1 = vsel %vm5385_vm13, %v1110_v53, 0.0  ;;  %vm9768_vm6 = vcmask 588800  }
 0x127   :  { %v1475_v50 = vsel %vm1448_vm7, %v1467_v61, 0.0  ;;  %v1126_v9 = vrot.slane %v1118_v1, 6  ;;  %1138 = vst [vmem:[#allocation3 + $0x120] sm:$0xc] %v1118_v1  ;;  %vm9767_vm7 = vcmask 596992   ;;  %vm1331_vm5 = vmand %vm9247_vm8, %vm4771_vm0  ;;  %2737 = vrot.lane.b32.xlu0 %v5338_v36, %s4484_s9 }
 0x128   :  { %v1483_v48 = vrot.slane %v1475_v50, 2  ;;  %v1495_v29 = vrot.slane %v1475_v50, 4  ;;  %v1221_v3 = vpop.permute.xlu1 %1220 }
 0x129   :  { %v1161_v22 = vpop.permute.xlu0 %1160  ;;  %1134 = vst [vmem:[#allocation3 + $0x100] sm:$0xc] %v1126_v9  ;;  %v1230_v40 = vsel %vm9768_vm6, %v1221_v3, %v5333_v47  ;;  %vm1447_vm6 = vmand %vm9247_vm8, %vm4742_vm15 }
 0x12a   :  { %1491 = vst [vmem:[#allocation3 + $0x148] sm:$0xc0] %v1483_v48  ;;  %1503 = vst [vmem:[#allocation3 + $0x168] sm:$0xc0] %v1495_v29  ;;  %v1170_v5 = vsel %vm9767_vm7, %v1161_v22, %v5312_v30  ;;  %v1238_v61 = vsel %vm5397_vm11, %v1230_v40, 0.0  ;;  %vm9770_vm7 = vcmask 523264  }
 0x12b   :  { %v1178_v1 = vsel %vm1151_vm3, %v1170_v5, 0.0  ;;  %v1246_v6 = vrot.slane %v1238_v61, 2  ;;  %v1258_v35 = vrot.slane %v1238_v61, 4  ;;  %vm9769_vm3 = vcmask 531456  }
 0x12c   :  { %v1186_v53 = vrot.slane %v1178_v1, 4  ;;  %v1198_v50 = vrot.slane %v1178_v1, 6  ;;  %v1393_v48 = vpop.permute.xlu1 %1392 }
 0x12d   :  { %v1341_v29 = vpop.permute.xlu0 %1340  ;;  %1254 = vst [vmem:[#allocation3 + $0x100] sm:$0xc0] %v1246_v6  ;;  %1266 = vst [vmem:[#allocation3 + $0x120] sm:$0xc0] %v1258_v35  ;;  %v1402_v30 = vsel %vm9770_vm7, %v1393_v48, %v1395_v49  ;;  %v5444_v49 = vld [vmem:[%s9184_s4] sm:$0xff]  ;;  %vm9772_vm7 = vcmask 449536  }
 0x12e   :  { %1194 = vst [vmem:[#allocation3 + $0x100] sm:$0x30] %v1186_v53  ;;  %1206 = vst [vmem:[#allocation3 + $0x120] sm:$0x30] %v1198_v50  ;;  %v1350_v9 = vsel %vm9769_vm3, %v1341_v29, %v5348_v52  ;;  %v1410_v22 = vsel %vm9247_vm8, %v1402_v30, 0.0  ;;  %2850 = vperm.xlu0 %4448, %v5444_v49   ;;  %vm9779_vm8 = vcmp.le.s32.totalorder %v4720_v60, 6 }
 0x12f   :  { %v1358_v47 = vsel %vm1331_vm5, %v1350_v9, 0.0  ;;  %v1418_v5 = vrot.slane %v1410_v22, 4  ;;  %v1430_v40 = vrot.slane %v1410_v22, 6  ;;  %vm596_vm3 = vmand %vm5002_vm14, %vm4902_vm9  ;;  %vm9771_vm5 = vcmask 515072  }
 0x130   :  { %v1366_v3 = vrot.slane %v1358_v47, 6  ;;  %1378 = vst [vmem:[#allocation3 + $0x160] sm:$0xc] %v1358_v47  ;;  %v610_v52 = vpop.permute.xlu1 %609  ;;  %vm597_vm14 = vmand %vm5010_vm10, %vm9728_vm1 }
 0x131   :  { %v1457_v35 = vpop.permute.xlu0 %1456  ;;  %1426 = vst [vmem:[#allocation3 + $0x140] sm:$0x30] %v1418_v5  ;;  %1438 = vst [vmem:[#allocation3 + $0x160] sm:$0x30] %v1430_v40  ;;  %v616_v54 = vsel %vm9772_vm7, %v5188_v51, %v610_v52  ;;  %v4497_v40 = vmov 12  }
 0x132   :  { %1374 = vst [vmem:[#allocation3 + $0x140] sm:$0xc] %v1366_v3  ;;  %v1466_v6 = vsel %vm9771_vm5, %v1457_v35, %v5370_v58  ;;  %v624_v61 = vsel %vm596_vm3, %v616_v54, 0.0  ;;  %vm9773_vm5 = vmmov %vm9772_vm7  ;;  %2807 = vrot.lane.b32.xlu0 %v5338_v36, %s4492_s17  ;;  %vm9249_vm3 = vcmask 982016   ;;  %vm9776_vm7 = vcmp.le.s32.totalorder %v4629_v16, 6 }
 0x133   :  { %v1474_v1 = vsel %vm1447_vm6, %v1466_v6, 0.0  ;;  %628 = vst [vmem:[#allocation3 + $0x90] sm:$0x3] %v624_v61  ;;  %v636_v29 = vrot.slane %v624_v61, 2  ;;  %vm9774_vm6 = vcmask 7168   ;;  %4452 = vset.pattern.permute.xlu0 %v4497_v40 }
 0x134   :  { %v1482_v53 = vrot.slane %v1474_v1, 2  ;;  %v1494_v50 = vrot.slane %v1474_v1, 4  ;;  %v846_v9 = vpop.permute.xlu1 %845  ;;  %vm9775_vm10 = vmmov %vm9774_vm6 }
 0x135   :  { %v612_v48 = vpop.permute.xlu0 %611  ;;  %644 = vst [vmem:[#allocation3 + $0xb0] sm:$0x3] %v636_v29  ;;  %v852_v58 = vsel %vm9774_vm6, %v5198_v2, %v846_v9  ;;  %vm9780_vm6 = vcmp.le.s32.totalorder %v4859_v38, 6 }
 0x136   :  { %1490 = vst [vmem:[#allocation3 + $0x140] sm:$0xc0] %v1482_v53  ;;  %1502 = vst [vmem:[#allocation3 + $0x160] sm:$0xc0] %v1494_v50  ;;  %v617_v51 = vsel %vm9773_vm5, %v610_v52, %v612_v48  ;;  %v860_v47 = vsel %vm4923_vm4, %v852_v58, 0.0  ;;  %3130 = vperm.xlu0 %4452, %v5444_v49   ;;  %v4498_v48 = vmov 14  }
 0x137   :  { %v625_v30 = vsel %vm597_vm14, %v617_v51, 0.0  ;;  %864 = vst [vmem:[#allocation3 + $0xd0] sm:$0x3] %v860_v47  ;;  %v872_v32 = vrot.slane %v860_v47, 2  ;;  %vm9777_vm14 = vnez %v9751_v28  ;;  %vm5495_vm13 = vmand %vm9780_vm6, %vm4902_vm9  ;;  %v9781_v47 = vmov 0 }
 0x138   :  { %629 = vst [vmem:[#allocation3 + $0x98] sm:$0x3] %v625_v30  ;;  %v637_v22 = vrot.slane %v625_v30, 2  ;;  %v1045_v5 = vpop.permute.xlu1 %1044  ;;  %vm1276_vm5 = vmand %vm9777_vm14, %vm4641_vm2  ;;  %vm9252_vm14 = vcmp.le.s32.totalorder %v4864_v42, 6  ;;  %v9782_v47 = vsel %vm5495_vm13, 4294967295, %v9781_v47  ;;  %vm9788_vm6 = vcmp.ge.s32.totalorder %v4866_v43, 1 }
 0x139   :  { %v848_v3 = vpop.permute.xlu0 %847  ;;  %880 = vst [vmem:[#allocation3 + $0xf0] sm:$0x3] %v872_v32  ;;  %9783 = vst [vmem:[#allocation35_spill] sm:$0xff] %v9782_v47 }
 0x13a   :  { %645 = vst [vmem:[#allocation3 + $0xb8] sm:$0x3] %v637_v22  ;;  %v853_v35 = vsel %vm9775_vm10, %v846_v9, %v848_v3  ;;  %2955 = vrot.lane.b32.xlu0 %v5338_v36, %s4488_s13  ;;  %vm9778_vm10 = vcmask 580608  }
 0x13b   :  { %v861_v2 = vsel %vm4941_vm12, %v853_v35, 0.0  ;;  %4454 = vset.pattern.permute.xlu0 %v4498_v48  ;;  %v1701_v35 = vld [vmem:[#allocation3 + $0x90] sm:$0xff] }
 0x13c   :  { %865 = vst [vmem:[#allocation3 + $0xd8] sm:$0x3] %v861_v2  ;;  %v873_v52 = vrot.slane %v861_v2, 2  ;;  %v1287_v54 = vpop.permute.xlu1 %1286 }
 0x13d   :  { %v5466_v6 = vpop.permute.xlu0 %1046 }
 0x13e   :  { %881 = vst [vmem:[#allocation3 + $0xf8] sm:$0x3] %v873_v52  ;;  %v1054_v1 = vsel %vm9249_vm3, %v1045_v5, %v5466_v6  ;;  %v1709_v28 = vld [vmem:[#allocation3 + $0xd0] sm:$0xff]  ;;  %3230 = vperm.xlu0 %4454, %v5444_v49  }
 0x13f   :  { %v1062_v61 = vsel %vm9776_vm7, %v1054_v1, 0.0  ;;  %v1702_v22 = vld [vmem:[#allocation3 + $0x98] sm:$0xff]  ;;  %vm9791_vm7 = vcmask 580608  }
 0x140   :  { %1066 = vst [vmem:[#allocation3 + $0x108] sm:$0x3] %v1062_v61  ;;  %v1074_v53 = vrot.slane %v1062_v61, 2  ;;  %v1043_v29 = vpop.permute.xlu1 %1042  ;;  %v4313_v61 = vpack.c.bf16 %v1709_v28, %v1701_v35  ;;  %v4414_v35 = vunpack.i.h.bf16 %v4787_v25 }
 0x141   :  { %v5478_v50 = vpop.permute.xlu0 %1288  ;;  %v1053_v51 = vsel %vm9249_vm3, %v1043_v29, %v1045_v5  ;;  %vm5512_vm3 = vmand %vm9252_vm14, %vm9788_vm6 }
 0x142   :  { %1082 = vst [vmem:[#allocation3 + $0x128] sm:$0x3] %v1074_v53  ;;  %v1295_v9 = vsel %vm9778_vm10, %v1287_v54, %v5478_v50  ;;  %v1061_v30 = vsel %vm9779_vm8, %v1053_v51, 0.0  ;;  %vm9785_vm8 = vcmp.le.s32.totalorder %v4857_v37, 6  ;;  %vm9797_vm6 = vmand %vm5397_vm11, %vm4742_vm15  ;;  %3087 = vrot.lane.b32.xlu0 %v5338_v36, %s4493_s18 }
 0x143   :  { %v1303_v58 = vsel %vm1276_vm5, %v1295_v9, 0.0  ;;  %v1710_v32 = vld [vmem:[#allocation3 + $0xd8] sm:$0xff]  ;;  %1065 = vst [vmem:[#allocation3 + $0x100] sm:$0x3] %v1061_v30  ;;  %v1073_v5 = vrot.slane %v1061_v30, 2  ;;  %vm9784_vm5 = vcmp.ge.s32.totalorder %v4859_v38, 1  ;;  %vm1154_vm11 = vmand %vm5512_vm3, %vm4941_vm12 }
 0x144   :  { %1307 = vst [vmem:[#allocation3 + $0x148] sm:$0x3] %v1303_v58  ;;  %v1315_v3 = vrot.slane %v1303_v58, 2  ;;  %v4311_v40 = vpack.c.bf16 %v1710_v32, %v1702_v22  ;;  %vm5503_vm10 = vmand %vm9785_vm8, %vm9784_vm5  ;;  %v1106_v1 = vpop.permute.xlu1 %1105  ;;  %vm9792_vm5 = vcmask 973824   ;;  %vm9793_vm8 = vcmp.le.s32.totalorder %v4866_v43, 6 }
 0x145   :  { %v1285_v52 = vpop.permute.xlu0 %1284  ;;  %1081 = vst [vmem:[#allocation3 + $0x120] sm:$0x3] %v1073_v5  ;;  %v1112_v48 = vsel %vm9792_vm5, %v5310_v14, %v1106_v1  ;;  %vm5523_vm0 = vmand %vm9793_vm8, %vm9728_vm1  ;;  %v9794_v9 = vmov 0  ;;  %v4424_v14 = vunpack.i.h.bf16 %v4877_v55  ;;  %v4499_v32 = vmov 17  }
 0x146   :  { %1323 = vst [vmem:[#allocation3 + $0x168] sm:$0x3] %v1315_v3  ;;  %v1294_v29 = vsel %vm9791_vm7, %v1285_v52, %v1287_v54  ;;  %4312 = vmatprep.subr.bf16.mxu1 %v4311_v40  ;;  %v9795_v9 = vsel %vm5523_vm0, 4294967295, %v9794_v9  ;;  %v1120_v54 = vsel %vm5495_vm13, %v1112_v48, 0.0  ;;  %vm1153_vm7 = vmand %vm5503_vm10, %vm4923_vm4  ;;  %4457 = vset.pattern.permute.xlu0 %v4499_v32  ;;  %v4419_v55 = vunpack.i.h.bf16 %v4785_v24 }
 0x147   :  { %9796 = vst [vmem:[#allocation36_spill] sm:$0xff] %v9795_v9  ;;  %v1302_v51 = vsel %vm9797_vm6, %v1294_v29, 0.0  ;;  %4314 = vmatpush1.bf16.msra.mxu1 %v4313_v61  ;;  %v1128_v58 = vrot.slane %v1120_v54, 6  ;;  %1140 = vst [vmem:[#allocation3 + $0x130] sm:$0xc] %v1120_v54  ;;  %vm9798_vm8 = vcmask 596992   ;;  %3448 = vperm.xlu0 %4457, %v5444_v49  }
 0x148   :  { %1306 = vst [vmem:[#allocation3 + $0x140] sm:$0x3] %v1302_v51  ;;  %v1314_v28 = vrot.slane %v1302_v51, 2  ;;  %v1167_v22 = vpop.permute.xlu1 %1166  ;;  %vm9799_vm6 = vmmov %vm9798_vm8  ;;  %vm9820_vm13 = vcmp.le.s32.totalorder %v4864_v42, 6 }
 0x149   :  { %v1108_v30 = vpop.permute.xlu0 %1107  ;;  %1136 = vst [vmem:[#allocation3 + $0x110] sm:$0xc] %v1128_v58  ;;  %v1172_v5 = vsel %vm9798_vm8, %v5331_v27, %v1167_v22  ;;  %v1173_v40 = vsel %vm9799_vm6, %v1167_v22, %v4424_v14  ;;  %v1716_v14 = vld [vmem:[#allocation3 + $0x108] sm:$0xff] }
 0x14a   :  { %1322 = vst [vmem:[#allocation3 + $0x160] sm:$0x3] %v1314_v28  ;;  %v1113_v3 = vsel %vm9792_vm5, %v1106_v1, %v1108_v30  ;;  %v1180_v52 = vsel %vm1153_vm7, %v1172_v5, 0.0  ;;  %v1181_v1 = vsel %vm1154_vm11, %v1173_v40, 0.0  ;;  %vm9800_vm5 = vcmp.le.s32.totalorder %v4857_v37, 6  ;;  %vm5576_vm7 = vmand %vm9252_vm14, %vm4941_vm12 }
 0x14b   :  { %v1121_v21 = vsel %vm5523_vm0, %v1113_v3, 0.0  ;;  %vm5568_vm8 = vmand %vm9800_vm5, %vm4923_vm4  ;;  %v1724_v27 = vld [vmem:[#allocation3 + $0x148] sm:$0xff]  ;;  %v1188_v29 = vrot.slane %v1180_v52, 4  ;;  %v1189_v48 = vrot.slane %v1181_v1, 4  ;;  %v1200_v51 = vrot.slane %v1180_v52, 6 }
 0x14c   :  { %v1129_v61 = vrot.slane %v1121_v21, 6  ;;  %1141 = vst [vmem:[#allocation3 + $0x138] sm:$0xc] %v1121_v21  ;;  %v4429_v28 = vunpack.i.h.bf16 %v4879_v56  ;;  %v1201_v58 = vrot.slane %v1181_v1, 6  ;;  %v1347_v22 = vpop.permute.xlu1 %1346  ;;  %v4299_v32 = vpack.c.bf16 %v1724_v27, %v1716_v14 }
 0x14d   :  { %v1227_v30 = vpop.permute.xlu0 %1226  ;;  %1196 = vst [vmem:[#allocation3 + $0x110] sm:$0x30] %v1188_v29  ;;  %1197 = vst [vmem:[#allocation3 + $0x118] sm:$0x30] %v1189_v48  ;;  %vm9805_vm11 = vcmask 588800   ;;  %vm9807_vm5 = vcmask 531456  }
 0x14e   :  { %1137 = vst [vmem:[#allocation3 + $0x118] sm:$0xc] %v1129_v61  ;;  %1208 = vst [vmem:[#allocation3 + $0x130] sm:$0x30] %v1200_v51  ;;  %v1232_v3 = vsel %vm9805_vm11, %v5346_v7, %v1227_v30  ;;  %v1352_v40 = vsel %vm9807_vm5, %v5361_v44, %v1347_v22  ;;  %4300 = vmatprep.subr.bf16.mxu0 %v4299_v32  ;;  %v1715_v48 = vld [vmem:[#allocation3 + $0x100] sm:$0xff]  ;;  %v4500_v51 = vmov 18  }
 0x14f   :  { %vm9806_vm6 = vmmov %vm9805_vm11  ;;  %1209 = vst [vmem:[#allocation3 + $0x138] sm:$0x30] %v1201_v58  ;;  %v1240_v56 = vsel %vm5503_vm10, %v1232_v3, 0.0  ;;  %v1360_v1 = vsel %vm5568_vm8, %v1352_v40, 0.0  ;;  %vm9809_vm11 = vcmp.le.s32.totalorder %v4857_v37, 6  ;;  %4458 = vset.pattern.permute.xlu0 %v4500_v51  ;;  %vm9819_vm0 = vcmp.le.s32.totalorder %v4857_v37, 6 }
 0x150   :  { %v1233_v5 = vsel %vm9806_vm6, %v1227_v30, %v4404_v34  ;;  %vm9808_vm14 = vmmov %vm9807_vm5  ;;  %v1723_v34 = vld [vmem:[#allocation3 + $0x140] sm:$0xff]  ;;  %v1260_v61 = vrot.slane %v1240_v56, 4  ;;  %1380 = vst [vmem:[#allocation3 + $0x170] sm:$0xc] %v1360_v1  ;;  %v1368_v54 = vrot.slane %v1360_v1, 6  ;;  %v1463_v30 = vpop.permute.xlu1 %1462  ;;  %3542 = vperm.xlu0 %4458, %v5444_v49  }
 0x151   :  { %v1353_v21 = vsel %vm9808_vm14, %v1347_v22, %v4414_v35  ;;  %v1241_v52 = vsel %vm5512_vm3, %v1233_v5, 0.0  ;;  %vm5600_vm6 = vmand %vm9809_vm11, %vm4902_vm9  ;;  %v1248_v35 = vrot.slane %v1240_v56, 2  ;;  %vm9812_vm14 = vcmp.le.s32.totalorder %v4864_v42, 6  ;;  %v1399_v58 = vpop.permute.xlu0 %1398 }
 0x152   :  { %v1361_v7 = vsel %vm5576_vm7, %v1353_v21, 0.0  ;;  %v1249_v27 = vrot.slane %v1241_v52, 2  ;;  %v1261_v29 = vrot.slane %v1241_v52, 4  ;;  %vm5608_vm8 = vmand %vm9812_vm14, %vm9728_vm1  ;;  %v4301_v22 = vpack.c.bf16 %v1723_v34, %v1715_v48  ;;  %1268 = vst [vmem:[#allocation3 + $0x130] sm:$0xc0] %v1260_v61 }
 0x153   :  { %1381 = vst [vmem:[#allocation3 + $0x178] sm:$0xc] %v1361_v7  ;;  %v1369_v14 = vrot.slane %v1361_v7, 6  ;;  %1256 = vst [vmem:[#allocation3 + $0x110] sm:$0xc0] %v1248_v35  ;;  %vm9815_vm7 = vcmask 523264  }
 0x154   :  { %1257 = vst [vmem:[#allocation3 + $0x118] sm:$0xc0] %v1249_v27  ;;  %1269 = vst [vmem:[#allocation3 + $0x138] sm:$0xc0] %v1261_v29  ;;  %v1404_v32 = vsel %vm9815_vm7, %v5368_v57, %v1399_v58  ;;  %vm9817_vm11 = vcmask 515072   ;;  %4302 = vmatpush1.bf16.msra.mxu0 %v4301_v22  ;;  %v5637_v61 = vpop.permute.xlu1 %1580  ;;  %v4501_v29 = vmov 19  }
 0x155   :  { %vm9816_vm5 = vmmov %vm9815_vm7  ;;  %v1468_v5 = vsel %vm9817_vm11, %v5391_v62, %v1463_v30  ;;  %1376 = vst [vmem:[#allocation3 + $0x150] sm:$0xc] %v1368_v54  ;;  %v1412_v21 = vsel %vm9819_vm0, %v1404_v32, 0.0  ;;  %vm9821_vm7 = vcmp.le.s32.totalorder %v4629_v16, 6  ;;  %v1579_v27 = vpop.permute.xlu0 %1578  ;;  %4459 = vset.pattern.permute.xlu0 %v4501_v29  ;;  %vm9825_vm0 = vcmask 457728  }
 0x156   :  { %v1405_v3 = vsel %vm9816_vm5, %v1399_v58, %v4429_v28  ;;  %vm9818_vm14 = vmmov %vm9817_vm11  ;;  %1377 = vst [vmem:[#allocation3 + $0x158] sm:$0xc] %v1369_v14  ;;  %v1476_v57 = vsel %vm5600_vm6, %v1468_v5, 0.0  ;;  %v1420_v62 = vrot.slane %v1412_v21, 4  ;;  %v1432_v24 = vrot.slane %v1412_v21, 6  ;;  %3604 = vperm.xlu0 %4459, %v5444_v49   ;;  %v1712_v58 = vld [vmem:[#allocation3 + $0xe8] sm:$0xff] }
 0x157   :  { %v1469_v40 = vsel %vm9818_vm14, %v1463_v30, %v4419_v55  ;;  %v1413_v56 = vsel %vm9820_vm13, %v1405_v3, 0.0  ;;  %vm9822_vm5 = vcmp.le.s32.totalorder %v4627_v15, 6  ;;  %v1484_v7 = vrot.slane %v1476_v57, 2 }
 0x158   :  { %v1477_v28 = vsel %vm5608_vm8, %v1469_v40, 0.0  ;;  %v1421_v52 = vrot.slane %v1413_v56, 4  ;;  %v1433_v1 = vrot.slane %v1413_v56, 6  ;;  %vm5633_vm11 = vmand %vm9822_vm5, %vm9821_vm7  ;;  %v1496_v44 = vrot.slane %v1476_v57, 4  ;;  %1428 = vst [vmem:[#allocation3 + $0x150] sm:$0x30] %v1420_v62  ;;  %v5648_v14 = vpop.permute.xlu1 %1636 }
 0x159   :  { %v1485_v34 = vrot.slane %v1477_v28, 2  ;;  %v1497_v35 = vrot.slane %v1477_v28, 4  ;;  %1440 = vst [vmem:[#allocation3 + $0x170] sm:$0x30] %v1432_v24  ;;  %v1587_v25 = vsel %vm9825_vm0, %v1579_v27, %v5637_v61  ;;  %1492 = vst [vmem:[#allocation3 + $0x150] sm:$0xc0] %v1484_v7  ;;  %v1635_v54 = vpop.permute.xlu0 %1634 }
 0x15a   :  { %1429 = vst [vmem:[#allocation3 + $0x158] sm:$0x30] %v1421_v52  ;;  %1441 = vst [vmem:[#allocation3 + $0x178] sm:$0x30] %v1433_v1  ;;  %v1595_v48 = vsel %vm5633_vm11, %v1587_v25, 0.0  ;;  %vm9826_vm6 = vcmp.le.s32.totalorder %v4720_v60, 6 }
 0x15b   :  { %1493 = vst [vmem:[#allocation3 + $0x158] sm:$0xc0] %v1485_v34  ;;  %1504 = vst [vmem:[#allocation3 + $0x170] sm:$0xc0] %v1496_v44  ;;  %v1603_v51 = vrot.slane %v1595_v48, 6  ;;  %vm9827_vm8 = vcmp.le.s32.totalorder %v4718_v59, 6 }
 0x15c   :  { %1505 = vst [vmem:[#allocation3 + $0x178] sm:$0xc0] %v1497_v35  ;;  %1615 = vst [vmem:[#allocation3 + $0x1a8] sm:$0xc] %v1595_v48  ;;  %vm9830_vm7 = vcmask 449536   ;;  %v4502_v22 = vmov 20   ;;  %v1633_v21 = vpop.permute.xlu1 %1632  ;;  %v4409_v48 = vunpack.i.h.bf16 %v4754_v20 }
 0x15d   :  { %vm1624_vm13 = vmand %vm5633_vm11, %vm4641_vm2  ;;  %1611 = vst [vmem:[#allocation3 + $0x188] sm:$0xc] %v1603_v51  ;;  %v1643_v30 = vsel %vm9830_vm7, %v1635_v54, %v5648_v14  ;;  %4460 = vset.pattern.permute.xlu0 %v4502_v22  ;;  %v1577_v40 = vpop.permute.xlu0 %1576  ;;  %v4503_v52 = vmov 21  }
 0x15e   :  { %vm5654_vm14 = vmand %vm9827_vm8, %vm9826_vm6  ;;  %v1651_v32 = vsel %vm1624_vm13, %v1643_v30, 0.0  ;;  %3674 = vperm.xlu0 %4460, %v5444_v49   ;;  %v1586_v56 = vsel %vm9825_vm0, %v1577_v40, %v1579_v27  ;;  %vm9832_vm13 = vcmask 982016  }
 0x15f   :  { %v1659_v3 = vrot.slane %v1651_v32, 4  ;;  %v1671_v5 = vrot.slane %v1651_v32, 6  ;;  %vm1623_vm5 = vmand %vm5654_vm14, %vm4742_vm15  ;;  %v1594_v28 = vsel %vm5654_vm14, %v1586_v56, 0.0 }
 0x160   :  { %vm9831_vm6 = vmmov %vm9830_vm7  ;;  %v1602_v24 = vrot.slane %v1594_v28, 6  ;;  %1614 = vst [vmem:[#allocation3 + $0x1a0] sm:$0xc] %v1594_v28  ;;  %v1051_v44 = vpop.permute.xlu1 %1050  ;;  %vm9834_vm7 = vcmp.le.s32.totalorder %v4859_v38, 6 }
 0x161   :  { %1667 = vst [vmem:[#allocation3 + $0x188] sm:$0x30] %v1659_v3  ;;  %1679 = vst [vmem:[#allocation3 + $0x1a8] sm:$0x30] %v1671_v5  ;;  %v1642_v57 = vsel %vm9831_vm6, %v1633_v21, %v1635_v54  ;;  %v1049_v34 = vpop.permute.xlu0 %1048 }
 0x162   :  { %v1650_v62 = vsel %vm1623_vm5, %v1642_v57, 0.0  ;;  %4461 = vset.pattern.permute.xlu0 %v4503_v52  ;;  %1610 = vst [vmem:[#allocation3 + $0x180] sm:$0xc] %v1602_v24  ;;  %v1055_v35 = vsel %vm9832_vm13, %v5466_v6, %v1049_v34  ;;  %vm9833_vm8 = vmmov %vm9832_vm13  ;;  %vm9835_vm5 = vcmp.le.s32.totalorder %v4866_v43, 6  ;;  %v4504_v6 = vmov 22  }
 0x163   :  { %v1658_v1 = vrot.slane %v1650_v62, 4  ;;  %v1670_v7 = vrot.slane %v1650_v62, 6  ;;  %3760 = vperm.xlu0 %4461, %v5444_v49   ;;  %v1056_v27 = vsel %vm9833_vm8, %v1049_v34, %v1051_v44  ;;  %v1063_v29 = vsel %vm9834_vm7, %v1055_v35, 0.0  ;;  %vm1277_vm0 = vmand %vm5503_vm10, %vm4902_vm9 }
 0x164   :  { %v1064_v25 = vsel %vm9835_vm5, %v1056_v27, 0.0  ;;  %1067 = vst [vmem:[#allocation3 + $0x110] sm:$0x3] %v1063_v29  ;;  %v1075_v51 = vrot.slane %v1063_v29, 2  ;;  %vm1278_vm6 = vmand %vm5512_vm3, %vm9728_vm1  ;;  %v1527_v22 = vpop.permute.xlu1 %1526  ;;  %vm9836_vm13 = vcmask 580608   ;;  %vm9838_vm3 = vnez %v9598_v31 }
 0x165   :  { %1666 = vst [vmem:[#allocation3 + $0x180] sm:$0x30] %v1658_v1  ;;  %1678 = vst [vmem:[#allocation3 + $0x1a0] sm:$0x30] %v1670_v7  ;;  %v1076_v54 = vrot.slane %v1064_v25, 2  ;;  %v1291_v30 = vpop.permute.xlu0 %1290  ;;  %vm9839_vm5 = vnez %v9609_v33  ;;  %vm9840_vm10 = vcmask 465920  }
 0x166   :  { %1068 = vst [vmem:[#allocation3 + $0x118] sm:$0x3] %v1064_v25  ;;  %1083 = vst [vmem:[#allocation3 + $0x130] sm:$0x3] %v1075_v51  ;;  %v1296_v20 = vsel %vm9836_vm13, %v5478_v50, %v1291_v30 }
 0x167   :  { %4462 = vset.pattern.permute.xlu0 %v4504_v6  ;;  %1084 = vst [vmem:[#allocation3 + $0x138] sm:$0x3] %v1076_v54  ;;  %vm9837_vm8 = vmmov %vm9836_vm13  ;;  %v1304_v53 = vsel %vm1277_vm0, %v1296_v20, 0.0  ;;  %vm9842_vm0 = vcmp.le.s32.totalorder %v4859_v38, 6 }
 0x168   :  { %3822 = vperm.xlu0 %4462, %v5444_v49   ;;  %v1297_v32 = vsel %vm9837_vm8, %v1291_v30, %v4409_v48  ;;  %vm1516_vm7 = vmand %vm5633_vm11, %vm9838_vm3  ;;  %1308 = vst [vmem:[#allocation3 + $0x150] sm:$0x3] %v1304_v53  ;;  %v1316_v5 = vrot.slane %v1304_v53, 2  ;;  %v1525_v2 = vpop.permute.xlu1 %1524  ;;  %vm9846_vm8 = vcmp.le.s32.totalorder %v4866_v43, 6 }
 0x169   :  { %v1305_v3 = vsel %vm1278_vm6, %v1297_v32, 0.0  ;;  %vm1515_vm13 = vmand %vm5654_vm14, %vm9839_vm5  ;;  %v5703_v50 = vpop.permute.xlu0 %1528  ;;  %vm9843_vm6 = vcmp.le.s32.totalorder %v4857_v37, 6 }
 0x16a   :  { %1309 = vst [vmem:[#allocation3 + $0x158] sm:$0x3] %v1305_v3  ;;  %v1317_v40 = vrot.slane %v1305_v3, 2  ;;  %1324 = vst [vmem:[#allocation3 + $0x170] sm:$0x3] %v1316_v5  ;;  %v1535_v55 = vsel %vm9840_vm10, %v1527_v22, %v5703_v50 }
 0x16b   :  { %vm9841_vm11 = vmmov %vm9840_vm10  ;;  %v1543_v56 = vsel %vm1516_vm7, %v1535_v55, 0.0  ;;  %vm9847_vm10 = vcmp.le.s32.totalorder %v4864_v42, 6  ;;  %vm9850_vm7 = vcmask 457728   ;;  %v1717_v25 = vld [vmem:[#allocation3 + $0x110] sm:$0xff] }
 0x16c   :  { %3289 = vrot.lane.b32.xlu0 %v5338_v36, %s4491_s16  ;;  %1325 = vst [vmem:[#allocation3 + $0x178] sm:$0x3] %v1317_v40  ;;  %v1534_v21 = vsel %vm9841_vm11, %v1525_v2, %v1527_v22  ;;  %vm5714_vm14 = vmand %vm9843_vm6, %vm9842_vm0  ;;  %v1555_v28 = vrot.slane %v1543_v56, 2  ;;  %v1585_v1 = vpop.permute.xlu1 %1584  ;;  %vm9852_vm6 = vcmask 449536  }
 0x16d   :  { %v1542_v57 = vsel %vm1515_vm13, %v1534_v21, 0.0  ;;  %1547 = vst [vmem:[#allocation3 + $0x188] sm:$0x3] %v1543_v56  ;;  %vm5722_vm2 = vmand %vm9847_vm10, %vm9846_vm8  ;;  %v1583_v24 = vpop.permute.xlu0 %1582  ;;  %v1718_v44 = vld [vmem:[#allocation3 + $0x118] sm:$0xff]  ;;  %v1696_v56 = vld [vmem:[#allocation3 + $0x68] sm:$0xff] }
 0x16e   :  { %1546 = vst [vmem:[#allocation3 + $0x180] sm:$0x3] %v1542_v57  ;;  %v1554_v62 = vrot.slane %v1542_v57, 2  ;;  %1563 = vst [vmem:[#allocation3 + $0x1a8] sm:$0x3] %v1555_v28  ;;  %v1588_v7 = vsel %vm9850_vm7, %v5637_v61, %v1583_v24 }
 0x16f   :  { %vm9851_vm13 = vmmov %vm9850_vm7  ;;  %v1596_v35 = vsel %vm5714_vm14, %v1588_v7, 0.0  ;;  %v1725_v48 = vld [vmem:[#allocation3 + $0x150] sm:$0xff] }
 0x170   :  { %1562 = vst [vmem:[#allocation3 + $0x1a0] sm:$0x3] %v1554_v62  ;;  %v1589_v34 = vsel %vm9851_vm13, %v1583_v24, %v1585_v1  ;;  %vm1625_vm11 = vmand %vm5714_vm14, %vm4902_vm9  ;;  %v1604_v51 = vrot.slane %v1596_v35, 6  ;;  %v4317_v6 = vpack.c.bf16 %v1725_v48, %v1717_v25  ;;  %v1641_v22 = vpop.permute.xlu1 %1640  ;;  %vm9854_vm13 = vcmask 465920  }
 0x171   :  { %v1597_v27 = vsel %vm5722_vm2, %v1589_v34, 0.0  ;;  %v1726_v29 = vld [vmem:[#allocation3 + $0x158] sm:$0xff]  ;;  %1616 = vst [vmem:[#allocation3 + $0x1b0] sm:$0xc] %v1596_v35  ;;  %vm1626_vm0 = vmand %vm5722_vm2, %vm9728_vm1  ;;  %v1639_v30 = vpop.permute.xlu0 %1638  ;;  %v1688_v34 = vld [vmem:[#allocation3 + $0x28] sm:$0xff] }
 0x172   :  { %v1605_v61 = vrot.slane %v1597_v27, 6  ;;  %1617 = vst [vmem:[#allocation3 + $0x1b8] sm:$0xc] %v1597_v27  ;;  %v4315_v54 = vpack.c.bf16 %v1726_v29, %v1718_v44  ;;  %1612 = vst [vmem:[#allocation3 + $0x190] sm:$0xc] %v1604_v51  ;;  %v1644_v20 = vsel %vm9852_vm6, %v5648_v14, %v1639_v30  ;;  %v4323_v35 = vpack.c.bf16 %v1696_v56, %v1688_v34  ;;  %v1687_v27 = vld [vmem:[#allocation3 + $0x20] sm:$0xff] }
 0x173   :  { %vm9853_vm8 = vmmov %vm9852_vm6  ;;  %v1652_v53 = vsel %vm1625_vm11, %v1644_v20, 0.0  ;;  %v1695_v29 = vld [vmem:[#allocation3 + $0x60] sm:$0xff]  ;;  %v1714_v34 = vld [vmem:[#allocation3 + $0xf8] sm:$0xff] }
 0x174   :  { %1613 = vst [vmem:[#allocation3 + $0x198] sm:$0xc] %v1605_v61  ;;  %v1645_v32 = vsel %vm9853_vm8, %v1639_v30, %v1641_v22  ;;  %4316 = vmatprep.subr.bf16.mxu1 %v4315_v54  ;;  %vm1517_vm10 = vmand %vm5714_vm14, %vm4923_vm4  ;;  %v1732_v5 = vld [vmem:[#allocation3 + $0x188] sm:$0xff]  ;;  %v1660_v2 = vrot.slane %v1652_v53, 4  ;;  %v1672_v14 = vrot.slane %v1652_v53, 6  ;;  %v1533_v28 = vpop.permute.xlu1 %1532  ;;  %v4325_v51 = vpack.c.bf16 %v1695_v29, %v1687_v27  ;;  %v1703_v22 = vld [vmem:[#allocation3 + $0xa0] sm:$0xff] }
 0x175   :  { %v1653_v3 = vsel %vm1626_vm0, %v1645_v32, 0.0  ;;  %4318 = vmatpush1.bf16.msra.mxu1 %v4317_v6  ;;  %v1731_v40 = vld [vmem:[#allocation3 + $0x180] sm:$0xff]  ;;  %vm1518_vm7 = vmand %vm5722_vm2, %vm4941_vm12  ;;  %v1531_v57 = vpop.permute.xlu0 %1530  ;;  %v4303_v62 = vpack.c.bf16 %v5338_v36, %v1732_v5  ;;  %v1704_v61 = vld [vmem:[#allocation3 + $0xa8] sm:$0xff]  ;;  %vm9856_vm2 = vcmask 523264  }
 0x176   :  { %v1661_v55 = vrot.slane %v1653_v3, 4  ;;  %v1673_v21 = vrot.slane %v1653_v3, 6  ;;  %v4305_v24 = vpack.c.bf16 %v5338_v36, %v1731_v40  ;;  %1668 = vst [vmem:[#allocation3 + $0x190] sm:$0x30] %v1660_v2  ;;  %1680 = vst [vmem:[#allocation3 + $0x1b0] sm:$0x30] %v1672_v14  ;;  %v1536_v1 = vsel %vm9854_vm13, %v5703_v50, %v1531_v57 }
 0x177   :  { %vm9855_vm11 = vmmov %vm9854_vm13  ;;  %v1544_v52 = vsel %vm1517_vm10, %v1536_v1, 0.0  ;;  %4304 = vmatprep.subr.bf16.mxu0 %v4303_v62  ;;  %v5770_v50 = vld [vmem:[%s9185_s1] sm:$0xff]  ;;  %v4327_v54 = vpack.c.bf16 %v1712_v58, %v1704_v61  ;;  %v1711_v6 = vld [vmem:[#allocation3 + $0xe0] sm:$0xff] }
 0x178   :  { %1669 = vst [vmem:[#allocation3 + $0x198] sm:$0x30] %v1661_v55  ;;  %1681 = vst [vmem:[#allocation3 + $0x1b8] sm:$0x30] %v1673_v21  ;;  %v1537_v7 = vsel %vm9855_vm11, %v1531_v57, %v1533_v28  ;;  %v1556_v25 = vrot.slane %v1544_v52, 2  ;;  %4306 = vmatpush1.bf16.msra.mxu0 %v4305_v24  ;;  %v1728_v30 = vld [vmem:[#allocation3 + $0x168] sm:$0xff]  ;;  %v4329_v20 = vpack.c.bf16 %v1711_v6, %v1703_v22 }
 0x179   :  { %v1545_v44 = vsel %vm1518_vm7, %v1537_v7, 0.0  ;;  %1548 = vst [vmem:[#allocation3 + $0x190] sm:$0x3] %v1544_v52  ;;  %4324 = vmatprep.subr.bf16.mxu0 %v4323_v35  ;;  %v1720_v32 = vld [vmem:[#allocation3 + $0x128] sm:$0xff]  ;;  %v1698_v53 = vld [vmem:[#allocation3 + $0x78] sm:$0xff]  ;;  %v1727_v2 = vld [vmem:[#allocation3 + $0x160] sm:$0xff] }
 0x17a   :  { %1549 = vst [vmem:[#allocation3 + $0x198] sm:$0x3] %v1545_v44  ;;  %v1557_v48 = vrot.slane %v1545_v44, 2  ;;  %1564 = vst [vmem:[#allocation3 + $0x1b0] sm:$0x3] %v1556_v25  ;;  %v4331_v3 = vpack.c.bf16 %v1728_v30, %v1720_v32  ;;  %v1736_v21 = vld [vmem:[#allocation3 + $0x1a8] sm:$0xff] }
 0x17b   :  { %4287 = vmatmul.mubr.msk.f32.vlgmr.msra.gmra.mrb[0].mxu0 %vm9856_vm2, %v5770_v50  ;;  %v1719_v56 = vld [vmem:[#allocation3 + $0x120] sm:$0xff]  ;;  %v1690_v57 = vld [vmem:[#allocation3 + $0x38] sm:$0xff]  ;;  %v1697_v24 = vld [vmem:[#allocation3 + $0x70] sm:$0xff]  ;;  %v4335_v1 = vpack.c.bf16 %v5338_v36, %v1736_v21  ;;  %v4512_v21 = vmov 7   ;;  %vm9977_vm7 = vcmp.ge.s32.totalorder %v4720_v60, 1 }
 0x17c   :  { %1565 = vst [vmem:[#allocation3 + $0x1b8] sm:$0x3] %v1557_v48  ;;  %4326 = vmatpush1.bf16.msra.mxu0 %v4325_v51  ;;  %1956 = vmatprep.mubr.f32.mxu0 %v5338_v36  ;;  %v4333_v28 = vpack.c.bf16 %v1727_v2, %v1719_v56  ;;  %v4339_v62 = vpack.c.bf16 %v1698_v53, %v1690_v57  ;;  %v1735_v7 = vld [vmem:[#allocation3 + $0x1a0] sm:$0xff]  ;;  %v1689_v52 = vld [vmem:[#allocation3 + $0x30] sm:$0xff]  ;;  %v1706_v35 = vld [vmem:[#allocation3 + $0xb8] sm:$0xff]  ;;  %v4508_v2 = vmov 3  }
 0x17d   :  { %4328 = vmatprep.subr.bf16.mxu0 %v4327_v54  ;;  %v4341_v44 = vpack.c.bf16 %v1697_v24, %v1689_v52  ;;  %vm9857_vm14 = vmmov %vm9856_vm2  ;;  %v4337_v27 = vpack.c.bf16 %v5338_v36, %v1735_v7  ;;  %v4343_v29 = vpack.c.bf16 %v1714_v34, %v1706_v35  ;;  %v1713_v25 = vld [vmem:[#allocation3 + $0xf0] sm:$0xff]  ;;  %v1730_v48 = vld [vmem:[#allocation3 + $0x178] sm:$0xff]  ;;  %v4513_v56 = vmov 9  }
 0x17e   :  { %v1705_v58 = vld [vmem:[#allocation3 + $0xb0] sm:$0xff]  ;;  %v1722_v61 = vld [vmem:[#allocation3 + $0x138] sm:$0xff]  ;;  %vm9858_vm0 = vmmov %vm9856_vm2  ;;  %v4514_v57 = vmov 10   ;;  %v4516_v24 = vmov 13   ;;  %v4518_v7 = vmov 16   ;;  %v4519_v34 = vmov 23  }
 0x17f   :  { %v4345_v51 = vpack.c.bf16 %v1713_v25, %v1705_v58  ;;  %v4347_v54 = vpack.c.bf16 %v1730_v48, %v1722_v61  ;;  %v1729_v6 = vld [vmem:[#allocation3 + $0x170] sm:$0xff]  ;;  %vm9859_vm6 = vmmov %vm9858_vm0  ;;  %v4520_v52 = vmov 24   ;;  %v4521_v35 = vmov 25  }
 0x180   :  { %v1733_v40 = vld [vmem:[#allocation3 + $0x190] sm:$0xff]  ;;  %4330 = vmatpush1.bf16.msra.mxu0 %v4329_v20  ;;  %v4522_v25 = vmov 26   ;;  %vm9987_vm2 = vcmp.ge.s32.totalorder %v4629_v16, 1 }
 0x181   :  { %v1734_v5 = vld [vmem:[#allocation3 + $0x198] sm:$0xff]  ;;  %v4321_v55 = vpack.c.bf16 %v5338_v36, %v1733_v40  ;;  %4332 = vmatprep.subr.bf16.mxu0 %v4331_v3  ;;  %v1721_v22 = vld [vmem:[#allocation3 + $0x130] sm:$0xff] }
 0x182   :  { %v4319_v14 = vpack.c.bf16 %v5338_v36, %v1734_v5  ;;  %v4349_v20 = vpack.c.bf16 %v1729_v6, %v1721_v22  ;;  %v1737_v53 = vld [vmem:[#allocation3 + $0x1b0] sm:$0xff]  ;;  %v4505_v5 = vmov 0  }
 0x183   :  { %v1738_v30 = vld [vmem:[#allocation3 + $0x1b8] sm:$0xff]  ;;  %v4353_v3 = vpack.c.bf16 %v5338_v36, %v1737_v53  ;;  %4430 = vset.pattern.permute.xlu1 %v4505_v5  ;;  %v2087_v40 = vld [vmem:[%s9186_s3] sm:$0xff]  ;;  %4467 = vset.pattern.permute.xlu0 %v4505_v5 }
 0x184   :  { %4320 = vmatprep.subr.bf16.mxu1 %v4319_v14  ;;  %4334 = vmatpush1.bf16.msra.mxu0 %v4333_v28  ;;  %v4351_v32 = vpack.c.bf16 %v5338_v36, %v1738_v30  ;;  %v4509_v14 = vmov 4   ;;  %v4515_v28 = vmov 11  }
 0x185   :  { %4322 = vmatpush1.bf16.msra.mxu1 %v4321_v55  ;;  %4336 = vmatprep.subr.bf16.mxu0 %v4335_v1  ;;  %v4510_v55 = vmov 5   ;;  %v4517_v1 = vmov 15  }
 0x186   :  { %4340 = vmatprep.subr.bf16.mxu1 %v4339_v62  ;;  %2090 = vperm.xlu1 %4430, %v2087_v40   ;;  %v4476_v62 = vld [vmem:[#allocation2] sm:$0xff] }
 0x188   :  { %4288 = vmatmul.mubr.msk.f32.vlgmr.msra.gmra.mrb[0].mxu1 %vm9857_vm14, %v5770_v50  ;;  %4338 = vmatpush1.bf16.msra.mxu0 %v4337_v27 }
 0x189   :  { %4342 = vmatpush1.bf16.msra.mxu1 %v4341_v44  ;;  %2027 = vmatprep.mubr.f32.mxu1 %v5338_v36  ;;  %v4506_v36 = vmov 1  }
 0x18a   :  { %4344 = vmatprep.subr.bf16.mxu1 %v4343_v29  ;;  %4432 = vrot.lane.b32.xlu1 %v5342_v41, %s4485_s10  ;;  %v4511_v41 = vmov 6  }
 0x18b   :  { %4289 = vmatmul.mubr.msk.f32.vlgmr.msra.gmra.mrb[2].mxu0 %vm9858_vm0, %v5770_v50  ;;  %vm10019_vm0 = vcmask 596992  }
 0x18d   :  { %4346 = vmatpush1.bf16.msra.mxu1 %v4345_v51 }
 0x18e   :  { %4348 = vmatprep.subr.bf16.mxu1 %v4347_v54  ;;  %2274 = vperm.xlu1 %4430, %v5444_v49  }
 0x191   :  { %4350 = vmatpush1.bf16.msra.mxu1 %v4349_v20 }
 0x192   :  { %4352 = vmatprep.subr.bf16.mxu1 %v4351_v32  ;;  %4441 = vset.pattern.permute.xlu1 %v4506_v36 }
 0x193   :  { %2336 = vperm.xlu1 %4441, %v5444_v49  }
 0x195   :  { %4354 = vmatpush1.bf16.msra.mxu1 %v4353_v3  ;;  %v5821_v3 = vpop.permute.xlu0 %4437 }
 0x196   :  { %9860 = vst [vmem:[#allocation37_spill] sm:$0xff] %v5821_v3 }
 0x198   :  { %4290 = vmatmul.mubr.msk.f32.vlgmr.msra.gmra.mrb[2].mxu1 %vm9859_vm6, %v5770_v50  ;;  %v4507_v50 = vmov 2  }
 0x199   :  { %4442 = vset.pattern.permute.xlu1 %v4507_v50 }
 0x19a   :  { %2406 = vperm.xlu1 %4442, %v5444_v49  }
 0x19e   :  { %4443 = vset.pattern.permute.xlu1 %v4508_v2 }
 0x19f   :  { %2492 = vperm.xlu1 %4443, %v5444_v49  }
 0x1a3   :  { %4444 = vset.pattern.permute.xlu1 %v4509_v14 }
 0x1a4   :  { %2554 = vperm.xlu1 %4444, %v5444_v49  }
 0x1a8   :  { %4445 = vset.pattern.permute.xlu1 %v4510_v55 }
 0x1a9   :  { %2624 = vperm.xlu1 %4445, %v5444_v49  }
 0x1ad   :  { %4446 = vset.pattern.permute.xlu1 %v4511_v41 }
 0x1ae   :  { %2718 = vperm.xlu1 %4446, %v5444_v49  }
 0x1b2   :  { %4447 = vset.pattern.permute.xlu1 %v4512_v21 }
 0x1b3   :  { %2780 = vperm.xlu1 %4447, %v5444_v49  }
 0x1b7   :  { %4449 = vset.pattern.permute.xlu1 %v4513_v56 }
 0x1b8   :  { %2936 = vperm.xlu1 %4449, %v5444_v49  }
 0x1bc   :  { %4450 = vset.pattern.permute.xlu1 %v4514_v57 }
 0x1bd   :  { %2998 = vperm.xlu1 %4450, %v5444_v49  }
 0x1c1   :  { %4451 = vset.pattern.permute.xlu1 %v4515_v28 }
 0x1c2   :  { %3068 = vperm.xlu1 %4451, %v5444_v49  }
 0x1c6   :  { %2893 = vrot.lane.b32.xlu1 %v4476_v62, %s4487_s12 }
 0x1c7   :  { %4453 = vset.pattern.permute.xlu1 %v4516_v24 }
 0x1ca   :  { %3150 = vperm.xlu1 %4453, %v5444_v49  }
 0x1ce   :  { %3025 = vrot.lane.b32.xlu1 %v4476_v62, %s4489_s14 }
 0x1cf   :  { %4455 = vset.pattern.permute.xlu1 %v4517_v1 }
 0x1d2   :  { %3316 = vperm.xlu1 %4455, %v5444_v49  }
 0x1d6   :  { %4456 = vset.pattern.permute.xlu1 %v4518_v7 }
 0x1d7   :  { %3378 = vperm.xlu1 %4456, %v5444_v49  }
 0x1db   :  { %3203 = vrot.lane.b32.xlu1 %v4476_v62, %s4490_s15 }
 0x1dc   :  { %4463 = vset.pattern.permute.xlu1 %v4519_v34 }
 0x1df   :  { %3892 = vperm.xlu1 %4463, %v5444_v49  }
 0x1e3   :  { %4464 = vset.pattern.permute.xlu1 %v4520_v52 }
 0x1e4   :  { %3986 = vperm.xlu1 %4464, %v5444_v49  }
 0x1e8   :  { %4465 = vset.pattern.permute.xlu1 %v4521_v35 }
 0x1e9   :  { %4048 = vperm.xlu1 %4465, %v5444_v49  }
 0x1ed   :  { %4466 = vset.pattern.permute.xlu1 %v4522_v25 }
 0x1ee   :  { %4118 = vperm.xlu1 %4466, %v5444_v49  }
 0x1f2   :  { %3733 = vrot.lane.b32.xlu1 %v4476_v62, %s4481_s30 }
 0x1f3   :  { %4468 = vset.pattern.permute.xlu1 %v4505_v5  ;;  %v5825_v5 = vpop.permute.xlu0 %2363 }
 0x1f6   :  { %3795 = vrot.lane.b32.xlu1 %v4476_v62, %s4486_s11 }
 0x1f7   :  { %v5828_v40 = vpop.permute.xlu0 %2449 }
 0x1f8   :  { %9861 = vst [vmem:[#allocation38_spill] sm:$0xff] %v5828_v40 }
 0x1fa   :  { %4021 = vrot.lane.b32.xlu1 %v4476_v62, %s4484_s9 }
 0x1fb   :  { %v5831_v36 = vpop.permute.xlu0 %2511 }
 0x1fc   :  { %9862 = vst [vmem:[#allocation39_spill] sm:$0xff] %v5831_v36 }
 0x1ff   :  { %v5833_v50 = vpop.permute.xlu0 %2581 }
 0x200   :  { %9863 = vst [vmem:[#allocation40_spill] sm:$0xff] %v5833_v50 }
 0x203   :  { %v5835_v2 = vpop.permute.xlu0 %2675 }
 0x204   :  { %9864 = vst [vmem:[#allocation41_spill] sm:$0xff] %v5835_v2 }
 0x207   :  { %v5837_v14 = vpop.permute.xlu0 %2737 }
 0x208   :  { %9865 = vst [vmem:[#allocation42_spill] sm:$0xff] %v5837_v14 }
 0x20b   :  { %v5839_v55 = vpop.permute.xlu0 %2850 }
 0x20c   :  { %9866 = vst [vmem:[#allocation43_spill] sm:$0xff] %v5839_v55 }
 0x20f   :  { %v5841_v41 = vpop.permute.xlu0 %2807 }
 0x210   :  { %9867 = vst [vmem:[#allocation44_spill] sm:$0xff] %v5841_v41 }
 0x213   :  { %v5843_v21 = vpop.permute.xlu0 %3130 }
 0x214   :  { %9868 = vst [vmem:[#allocation45_spill] sm:$0xff] %v5843_v21 }
 0x217   :  { %v5845_v56 = vpop.permute.xlu0 %2955 }
 0x218   :  { %9869 = vst [vmem:[#allocation46_spill] sm:$0xff] %v5845_v56 }
 0x21b   :  { %v5847_v57 = vpop.permute.xlu0 %3230 }
 0x21c   :  { %9870 = vst [vmem:[#allocation47_spill] sm:$0xff] %v5847_v57 }
 0x21f   :  { %v5849_v28 = vpop.permute.xlu0 %3087 }
 0x220   :  { %9871 = vst [vmem:[#allocation48_spill] sm:$0xff] %v5849_v28 }
 0x24e   :  { %v1816_v44 = vpop.f32.mrb[0].mxu0 }
 0x24f   :  { %v1818_v27 = vpop.f32.mrb[1].mxu0 }
 0x250   :  { %v2034_v29 = vadd.f32 %v1818_v27, %v1816_v44 }
 0x25b   :  { %v1887_v48 = vpop.f32.mrb[0].mxu1 }
 0x25c   :  { %v2035_v58 = vadd.f32 %v2034_v29, %v1887_v48  ;;  %v1889_v51 = vpop.f32.mrb[1].mxu1 }
 0x25e   :  { %v2036_v61 = vadd.f32 %v2035_v58, %v1889_v51  ;;  %v1958_v54 = vpop.f32.mrb[2].mxu0 }
 0x25f   :  { %v1960_v30 = vpop.f32.mrb[3].mxu0 }
 0x260   :  { %v2037_v6 = vadd.f32 %v2036_v61, %v1958_v54 }
 0x262   :  { %v2038_v22 = vadd.f32 %v2037_v6, %v1960_v30 }
 0x26b   :  { %v2029_v20 = vpop.f32.mrb[2].mxu1 }
 0x26c   :  { %v2039_v32 = vadd.f32 %v2038_v22, %v2029_v20  ;;  %v2031_v53 = vpop.f32.mrb[3].mxu1 }
 0x26e   :  { %v2040_v49 = vadd.f32 %v2039_v32, %v2031_v53 }
 0x270   :  { %2041 = vadd.xlane.f32.xlu0 %v2040_v49 }
 0x286   :  { %3351 = vrot.lane.b32.xlu0 %v4476_v62, %s4495_s20 }
 0x28a   :  { %3421 = vrot.lane.b32.xlu0 %v4476_v62, %s4494_s19 }
 0x28e   :  { %3647 = vrot.lane.b32.xlu0 %v4476_v62, %s4479_s28 }
 0x292   :  { %3865 = vrot.lane.b32.xlu0 %v4476_v62, %s4482_s0 }
 0x296   :  { %3959 = vrot.lane.b32.xlu0 %v4476_v62, %s4483_s8  ;;  %v5851_v62 = vpop.permute.xlu0 %3448 }
 0x297   :  { %9872 = vst [vmem:[#allocation49_spill] sm:$0xff] %v5851_v62 }
 0x29a   :  { %v5853_v24 = vpop.permute.xlu0 %3542 }
 0x29b   :  { %9873 = vst [vmem:[#allocation50_spill] sm:$0xff] %v5853_v24 }
 0x29e   :  { %v5855_v1 = vpop.permute.xlu0 %3604 }
 0x29f   :  { %9874 = vst [vmem:[#allocation51_spill] sm:$0xff] %v5855_v1 }
 0x2a2   :  { %v5857_v7 = vpop.permute.xlu0 %3674 }
 0x2a3   :  { %9875 = vst [vmem:[#allocation52_spill] sm:$0xff] %v5857_v7 }
 0x2a6   :  { %v5859_v34 = vpop.permute.xlu0 %3760 }
 0x2a7   :  { %9876 = vst [vmem:[#allocation53_spill] sm:$0xff] %v5859_v34 }
 0x2aa   :  { %v5861_v52 = vpop.permute.xlu0 %3822 }
 0x2ab   :  { %9877 = vst [vmem:[#allocation54_spill] sm:$0xff] %v5861_v52 }
 0x2ae   :  { %v5863_v35 = vpop.permute.xlu0 %3289 }
 0x2af   :  { %9878 = vst [vmem:[#allocation55_spill] sm:$0xff] %v5863_v35 }
 0x2fd   :  { %v2042_v29 = vpop.xlane.xlu0 %2041 }
 0x2fe   :  { %v2043_v25 = vmul.f32 0.0009765625, %v2042_v29 }
 0x300   :  { %v5865_v58 = vsub.f32 %v1816_v44, %v2043_v25  ;;  %v5867_v61 = vsub.f32 %v1818_v27, %v2043_v25  ;;  %v5869_v6 = vsub.f32 %v1887_v48, %v2043_v25  ;;  %v5871_v22 = vsub.f32 %v1889_v51, %v2043_v25 }
 0x301   :  { %v5877_v34 = vsub.f32 %v1958_v54, %v2043_v25  ;;  %v2049_v44 = vsub.f32 %v1960_v30, %v2043_v25  ;;  %v5883_v7 = vsub.f32 %v2029_v20, %v2043_v25  ;;  %v2051_v1 = vsub.f32 %v2031_v53, %v2043_v25  ;;  %v5887_v54 = vpop.permute.xlu1 %2090 }
 0x302   :  { %v2052_v32 = vmul.f32 %v5865_v58, %v5865_v58  ;;  %v2053_v49 = vmul.f32 %v5867_v61, %v5867_v61  ;;  %v2054_v52 = vmul.f32 %v5869_v6, %v5869_v6  ;;  %v2055_v27 = vmul.f32 %v5871_v22, %v5871_v22 }
 0x303   :  { %v2056_v51 = vmul.f32 %v5877_v34, %v5877_v34  ;;  %v2057_v9 = vmul.f32 %v2049_v44, %v2049_v44  ;;  %v2058_v47 = vmul.f32 %v5883_v7, %v5883_v7  ;;  %v2059_v30 = vmul.f32 %v2051_v1, %v2051_v1 }
 0x304   :  { %v2060_v29 = vadd.f32 %v2053_v49, %v2052_v32 }
 0x305   :  { %v5891_v63 = vpop.permute.xlu1 %4432 }
 0x306   :  { %v2061_v48 = vadd.f32 %v2060_v29, %v2054_v52  ;;  %9879 = vst [vmem:[#allocation56_spill] sm:$0xff] %v5891_v63 }
 0x308   :  { %v2062_v35 = vadd.f32 %v2061_v48, %v2055_v27 }
 0x309   :  { %v5893_v20 = vpop.permute.xlu1 %2274 }
 0x30a   :  { %v2063_v24 = vadd.f32 %v2062_v35, %v2056_v51 }
 0x30c   :  { %v2064_v32 = vadd.f32 %v2063_v24, %v2057_v9 }
 0x30d   :  { %v5895_v52 = vpop.permute.xlu1 %2336 }
 0x30e   :  { %v2065_v49 = vadd.f32 %v2064_v32, %v2058_v47 }
 0x310   :  { %v2066_v62 = vadd.f32 %v2065_v49, %v2059_v30 }
 0x311   :  { %v5897_v29 = vpop.permute.xlu1 %2406 }
 0x312   :  { %2067 = vadd.xlane.f32.xlu1 %v2066_v62  ;;  %9880 = vst [vmem:[#allocation57_spill] sm:$0xff] %v5897_v29 }
 0x315   :  { %v5899_v53 = vpop.permute.xlu1 %2492 }
 0x316   :  { %9881 = vst [vmem:[#allocation58_spill] sm:$0xff] %v5899_v53 }
 0x319   :  { %v5901_v35 = vpop.permute.xlu1 %2554 }
 0x31a   :  { %9882 = vst [vmem:[#allocation59_spill] sm:$0xff] %v5901_v35 }
 0x31d   :  { %v5903_v25 = vpop.permute.xlu1 %2624 }
 0x31e   :  { %9883 = vst [vmem:[#allocation60_spill] sm:$0xff] %v5903_v25 }
 0x321   :  { %v5905_v27 = vpop.permute.xlu1 %2718 }
 0x322   :  { %9884 = vst [vmem:[#allocation61_spill] sm:$0xff] %v5905_v27 }
 0x325   :  { %v5907_v9 = vpop.permute.xlu1 %2780 }
 0x326   :  { %9885 = vst [vmem:[#allocation62_spill] sm:$0xff] %v5907_v9 }
 0x329   :  { %v5909_v47 = vpop.permute.xlu1 %2936 }
 0x32a   :  { %9886 = vst [vmem:[#allocation63_spill] sm:$0xff] %v5909_v47 }
 0x32d   :  { %v5911_v24 = vpop.permute.xlu1 %2998 }
 0x32e   :  { %9887 = vst [vmem:[#allocation64_spill] sm:$0xff] %v5911_v24 }
 0x331   :  { %v5913_v62 = vpop.permute.xlu1 %3068 }
 0x332   :  { %9888 = vst [vmem:[#allocation65_spill] sm:$0xff] %v5913_v62 }
 0x335   :  { %v5915_v48 = vpop.permute.xlu1 %2893 }
 0x336   :  { %9889 = vst [vmem:[#allocation66_spill] sm:$0xff] %v5915_v48 }
 0x339   :  { %v5917_v51 = vpop.permute.xlu1 %3150 }
 0x33a   :  { %9890 = vst [vmem:[#allocation67_spill] sm:$0xff] %v5917_v51 }
 0x33d   :  { %v5919_v32 = vpop.permute.xlu1 %3025 }
 0x33e   :  { %9891 = vst [vmem:[#allocation68_spill] sm:$0xff] %v5919_v32 }
 0x341   :  { %v5921_v30 = vpop.permute.xlu1 %3316 }
 0x342   :  { %9892 = vst [vmem:[#allocation69_spill] sm:$0xff] %v5921_v30 }
 0x345   :  { %v5923_v49 = vpop.permute.xlu1 %3378 }
 0x346   :  { %9893 = vst [vmem:[#allocation70_spill] sm:$0xff] %v5923_v49 }
 0x349   :  { %v5925_v57 = vpop.permute.xlu1 %3203 }
 0x34a   :  { %9894 = vst [vmem:[#allocation71_spill] sm:$0xff] %v5925_v57 }
 0x34d   :  { %v5927_v23 = vpop.permute.xlu1 %3892 }
 0x34e   :  { %9895 = vst [vmem:[#allocation72_spill] sm:$0xff] %v5927_v23  ;;  %v2070_v23 = vld [vmem:[%s9187_s2] sm:$0xff] }
 0x351   :  { %v5929_v13 = vpop.permute.xlu1 %3986 }
 0x352   :  { %9896 = vst [vmem:[#allocation73_spill] sm:$0xff] %v5929_v13 }
 0x355   :  { %v5931_v21 = vpop.permute.xlu1 %4048 }
 0x356   :  { %9897 = vst [vmem:[#allocation74_spill] sm:$0xff] %v5931_v21  ;;  %v5944_v21 = vpop.permute.xlu0 %3351 }
 0x357   :  { %9902 = vst [vmem:[#allocation79_spill] sm:$0xff] %v5944_v21 }
 0x359   :  { %v5933_v19 = vpop.permute.xlu1 %4118 }
 0x35a   :  { %9898 = vst [vmem:[#allocation75_spill] sm:$0xff] %v5933_v19  ;;  %v5946_v19 = vpop.permute.xlu0 %3421 }
 0x35b   :  { %9903 = vst [vmem:[#allocation80_spill] sm:$0xff] %v5946_v19 }
 0x35d   :  { %v5935_v39 = vpop.permute.xlu1 %3733 }
 0x35e   :  { %9899 = vst [vmem:[#allocation76_spill] sm:$0xff] %v5935_v39  ;;  %v5948_v39 = vpop.permute.xlu0 %3647 }
 0x35f   :  { %9904 = vst [vmem:[#allocation81_spill] sm:$0xff] %v5948_v39 }
 0x361   :  { %v5937_v62 = vpop.permute.xlu1 %3795 }
 0x362   :  { %9900 = vst [vmem:[#allocation77_spill] sm:$0xff] %v5937_v62  ;;  %v5950_v62 = vpop.permute.xlu0 %3865 }
 0x363   :  { %9905 = vst [vmem:[#allocation82_spill] sm:$0xff] %v5950_v62 }
 0x365   :  { %v5939_v28 = vpop.permute.xlu1 %4021 }
 0x366   :  { %9901 = vst [vmem:[#allocation78_spill] sm:$0xff] %v5939_v28  ;;  %v5952_v28 = vpop.permute.xlu0 %3959 }
 0x367   :  { %9906 = vst [vmem:[#allocation83_spill] sm:$0xff] %v5952_v28 }
 0x39f   :  { %v2068_v32 = vpop.xlane.xlu1 %2067 }
 0x3a0   :  { %v2069_v30 = vmul.f32 0.0009765625, %v2068_v32 }
 0x3a2   :  { %v2071_v11 = vadd.f32 1e-05, %v2069_v30 }
 0x3a4   :  { %4471 = vrsqrt.f32 %v2071_v11 }
 0x3ae   :  { %v4472_v57 = vpop.eup %4471 }
 0x3af   :  { %v2073_v13 = vmul.f32 %v4472_v57, %v2070_v23 }
 0x3b1   :  { %2076 = vperm.xlu0 %4467, %v2073_v13  }
 0x430   :  { %v2077_v32 = vpop.permute.xlu0 %2076 }
 0x431   :  { %v2079_v11 = vmul.f32 %v2077_v32, %v5865_v58  ;;  %v2080_v30 = vmul.f32 %v2077_v32, %v5867_v61  ;;  %v2084_v49 = vmul.f32 %v2077_v32, %v2049_v44  ;;  %v2086_v24 = vmul.f32 %v2077_v32, %v2051_v1 }
 0x432   :  { %v2081_v57 = vmul.f32 %v2077_v32, %v5869_v6  ;;  %v2082_v1 = vmul.f32 %v2077_v32, %v5871_v22  ;;  %v2083_v44 = vmul.f32 %v2077_v32, %v5877_v34 }
 0x433   :  { %v2093_v23 = vadd.f32 %v5887_v54, %v2079_v11  ;;  %v2098_v13 = vadd.f32 %v5887_v54, %v2084_v49  ;;  %v2094_v19 = vadd.f32 %v5887_v54, %v2080_v30  ;;  %v2100_v62 = vadd.f32 %v5887_v54, %v2086_v24 }
 0x434   :  { %v2095_v58 = vadd.f32 %v5887_v54, %v2081_v57  ;;  %v2096_v24 = vadd.f32 %v5887_v54, %v2082_v1  ;;  %v2097_v22 = vadd.f32 %v5887_v54, %v2083_v44 }
 0x435   :  { %v5960_v39 = vmax.f32 %v2093_v23, 0.0  ;;  %v5963_v28 = vmax.f32 %v2098_v13, 0.0  ;;  %v5971_v61 = vmax.f32 %v2094_v19, 0.0  ;;  %v5973_v6 = vmax.f32 %v2100_v62, 0.0 }
 0x436   :  { %v5981_v49 = vmax.f32 %v2095_v58, 0.0  ;;  %v2085_v19 = vmul.f32 %v2077_v32, %v5883_v7  ;;  %v5989_v62 = vmax.f32 %v2096_v24, 0.0  ;;  %v5996_v11 = vmax.f32 %v2097_v22, 0.0 }
 0x437   :  { %9907 = vst [vmem:[#allocation84_spill] sm:$0xff] %v5960_v39  ;;  %9908 = vst [vmem:[#allocation85_spill] sm:$0xff] %v5963_v28  ;;  %2232 = vrot.lane.b32.xlu1 %v5960_v39, %s4485_s10  ;;  %2242 = vrot.lane.b32.xlu0 %v5963_v28, %s4485_s10 }
 0x438   :  { %9909 = vst [vmem:[#allocation86_spill] sm:$0xff] %v5971_v61  ;;  %9910 = vst [vmem:[#allocation87_spill] sm:$0xff] %v5981_v49  ;;  %v2099_v34 = vadd.f32 %v5887_v54, %v2085_v19 }
 0x439   :  { %9911 = vst [vmem:[#allocation88_spill] sm:$0xff] %v5989_v62  ;;  %9912 = vst [vmem:[#allocation89_spill] sm:$0xff] %v5996_v11 }
 0x43a   :  { %v6002_v7 = vmax.f32 %v2099_v34, 0.0 }
 0x43b   :  { %2234 = vrot.lane.b32.xlu1 %v5971_v61, %s4485_s10  ;;  %2246 = vrot.lane.b32.xlu0 %v5973_v6, %s4485_s10 }
 0x43c   :  { %9913 = vst [vmem:[#allocation90_spill] sm:$0xff] %v6002_v7 }
 0x43f   :  { %2236 = vrot.lane.b32.xlu1 %v5981_v49, %s4485_s10  ;;  %2297 = vrot.lane.b32.xlu0 %v5971_v61, %s4480_s29 }
 0x443   :  { %2238 = vrot.lane.b32.xlu1 %v5989_v62, %s4485_s10  ;;  %2301 = vrot.lane.b32.xlu0 %v5989_v62, %s4480_s29 }
 0x447   :  { %2240 = vrot.lane.b32.xlu1 %v5996_v11, %s4485_s10  ;;  %2305 = vrot.lane.b32.xlu0 %v5963_v28, %s4480_s29 }
 0x44b   :  { %2244 = vrot.lane.b32.xlu1 %v6002_v7, %s4485_s10  ;;  %2309 = vrot.lane.b32.xlu0 %v5973_v6, %s4480_s29 }
 0x44f   :  { %2295 = vrot.lane.b32.xlu1 %v5960_v39, %s4480_s29  ;;  %2367 = vrot.lane.b32.xlu0 %v5971_v61, %s4479_s28 }
 0x453   :  { %2299 = vrot.lane.b32.xlu1 %v5981_v49, %s4480_s29  ;;  %2371 = vrot.lane.b32.xlu0 %v5989_v62, %s4479_s28 }
 0x457   :  { %2303 = vrot.lane.b32.xlu1 %v5996_v11, %s4480_s29  ;;  %2375 = vrot.lane.b32.xlu0 %v5963_v28, %s4479_s28 }
 0x45b   :  { %2307 = vrot.lane.b32.xlu1 %v6002_v7, %s4480_s29  ;;  %2379 = vrot.lane.b32.xlu0 %v5973_v6, %s4479_s28 }
 0x45f   :  { %2365 = vrot.lane.b32.xlu1 %v5960_v39, %s4479_s28  ;;  %2453 = vrot.lane.b32.xlu0 %v5971_v61, %s4481_s30 }
 0x463   :  { %2369 = vrot.lane.b32.xlu1 %v5981_v49, %s4479_s28  ;;  %2457 = vrot.lane.b32.xlu0 %v5989_v62, %s4481_s30 }
 0x467   :  { %2373 = vrot.lane.b32.xlu1 %v5996_v11, %s4479_s28  ;;  %2461 = vrot.lane.b32.xlu0 %v5963_v28, %s4481_s30 }
 0x46b   :  { %2377 = vrot.lane.b32.xlu1 %v6002_v7, %s4479_s28  ;;  %2465 = vrot.lane.b32.xlu0 %v5973_v6, %s4481_s30 }
 0x46f   :  { %2451 = vrot.lane.b32.xlu1 %v5960_v39, %s4481_s30  ;;  %2515 = vrot.lane.b32.xlu0 %v5971_v61, %s4486_s11 }
 0x473   :  { %2455 = vrot.lane.b32.xlu1 %v5981_v49, %s4481_s30  ;;  %2519 = vrot.lane.b32.xlu0 %v5989_v62, %s4486_s11 }
 0x477   :  { %2459 = vrot.lane.b32.xlu1 %v5996_v11, %s4481_s30  ;;  %2523 = vrot.lane.b32.xlu0 %v5963_v28, %s4486_s11 }
 0x47b   :  { %2463 = vrot.lane.b32.xlu1 %v6002_v7, %s4481_s30  ;;  %2527 = vrot.lane.b32.xlu0 %v5973_v6, %s4486_s11 }
 0x47f   :  { %2513 = vrot.lane.b32.xlu1 %v5960_v39, %s4486_s11  ;;  %2585 = vrot.lane.b32.xlu0 %v5971_v61, %s4482_s0 }
 0x483   :  { %2517 = vrot.lane.b32.xlu1 %v5981_v49, %s4486_s11  ;;  %2589 = vrot.lane.b32.xlu0 %v5989_v62, %s4482_s0 }
 0x487   :  { %2521 = vrot.lane.b32.xlu1 %v5996_v11, %s4486_s11  ;;  %2593 = vrot.lane.b32.xlu0 %v5963_v28, %s4482_s0 }
 0x48b   :  { %2525 = vrot.lane.b32.xlu1 %v6002_v7, %s4486_s11  ;;  %2597 = vrot.lane.b32.xlu0 %v5973_v6, %s4482_s0 }
 0x48f   :  { %2583 = vrot.lane.b32.xlu1 %v5960_v39, %s4482_s0  ;;  %2679 = vrot.lane.b32.xlu0 %v5971_v61, %s4483_s8 }
 0x493   :  { %2587 = vrot.lane.b32.xlu1 %v5981_v49, %s4482_s0  ;;  %2683 = vrot.lane.b32.xlu0 %v5989_v62, %s4483_s8 }
 0x497   :  { %2591 = vrot.lane.b32.xlu1 %v5996_v11, %s4482_s0  ;;  %2687 = vrot.lane.b32.xlu0 %v5963_v28, %s4483_s8 }
 0x49b   :  { %2595 = vrot.lane.b32.xlu1 %v6002_v7, %s4482_s0  ;;  %2691 = vrot.lane.b32.xlu0 %v5973_v6, %s4483_s8 }
 0x49f   :  { %2677 = vrot.lane.b32.xlu1 %v5960_v39, %s4483_s8  ;;  %2741 = vrot.lane.b32.xlu0 %v5971_v61, %s4484_s9 }
 0x4a3   :  { %2681 = vrot.lane.b32.xlu1 %v5981_v49, %s4483_s8  ;;  %2745 = vrot.lane.b32.xlu0 %v5989_v62, %s4484_s9 }
 0x4a7   :  { %2685 = vrot.lane.b32.xlu1 %v5996_v11, %s4483_s8  ;;  %2749 = vrot.lane.b32.xlu0 %v5963_v28, %s4484_s9 }
 0x4a9   :  { %v6100_v54 = vpop.permute.xlu1 %2232  ;;  %v6102_v32 = vpop.permute.xlu0 %2242 }
 0x4ab   :  { %2689 = vrot.lane.b32.xlu1 %v6002_v7, %s4483_s8  ;;  %2753 = vrot.lane.b32.xlu0 %v5973_v6, %s4484_s9 }
 0x4ad   :  { %v6108_v30 = vpop.permute.xlu1 %2234  ;;  %v6110_v23 = vpop.permute.xlu0 %2246 }
 0x4af   :  { %2739 = vrot.lane.b32.xlu1 %v5960_v39, %s4484_s9  ;;  %2811 = vrot.lane.b32.xlu0 %v5971_v61, %s4492_s17 }
 0x4b1   :  { %v6116_v13 = vpop.permute.xlu1 %2236  ;;  %v6118_v57 = vpop.permute.xlu0 %2297 }
 0x4b3   :  { %2743 = vrot.lane.b32.xlu1 %v5981_v49, %s4484_s9  ;;  %2813 = vrot.lane.b32.xlu0 %v5981_v49, %s4492_s17 }
 0x4b5   :  { %v6124_v1 = vpop.permute.xlu1 %2238  ;;  %v6126_v58 = vpop.permute.xlu0 %2301 }
 0x4b7   :  { %2747 = vrot.lane.b32.xlu1 %v5996_v11, %s4484_s9  ;;  %2895 = vrot.lane.b32.xlu0 %v5960_v39, %s4487_s12 }
 0x4b9   :  { %v6132_v44 = vpop.permute.xlu1 %2240  ;;  %v6134_v24 = vpop.permute.xlu0 %2305 }
 0x4bb   :  { %2751 = vrot.lane.b32.xlu1 %v6002_v7, %s4484_s9  ;;  %2959 = vrot.lane.b32.xlu0 %v5971_v61, %s4488_s13 }
 0x4bd   :  { %v6140_v19 = vpop.permute.xlu1 %2244  ;;  %v6142_v22 = vpop.permute.xlu0 %2309 }
 0x4bf   :  { %2809 = vrot.lane.b32.xlu1 %v5960_v39, %s4492_s17  ;;  %2817 = vrot.lane.b32.xlu0 %v5996_v11, %s4492_s17 }
 0x4c1   :  { %v6148_v34 = vpop.permute.xlu1 %2295  ;;  %v6150_v21 = vpop.permute.xlu0 %2367 }
 0x4c3   :  { %2897 = vrot.lane.b32.xlu1 %v5971_v61, %s4487_s12  ;;  %2961 = vrot.lane.b32.xlu0 %v5981_v49, %s4488_s13 }
 0x4c5   :  { %v6156_v56 = vpop.permute.xlu1 %2299  ;;  %v6158_v47 = vpop.permute.xlu0 %2371 }
 0x4c7   :  { %2815 = vrot.lane.b32.xlu1 %v5989_v62, %s4492_s17  ;;  %3027 = vrot.lane.b32.xlu0 %v5960_v39, %s4489_s14 }
 0x4c9   :  { %v6164_v17 = vpop.permute.xlu1 %2303  ;;  %v6166_v46 = vpop.permute.xlu0 %2375 }
 0x4ca   :  { %9914 = vst [vmem:[#allocation91_spill] sm:$0xff] %v6166_v46 }
 0x4cb   :  { %2899 = vrot.lane.b32.xlu1 %v5981_v49, %s4487_s12  ;;  %2963 = vrot.lane.b32.xlu0 %v5989_v62, %s4488_s13 }
 0x4cd   :  { %v6172_v8 = vpop.permute.xlu1 %2307  ;;  %v6174_v48 = vpop.permute.xlu0 %2379 }
 0x4ce   :  { %9915 = vst [vmem:[#allocation92_spill] sm:$0xff] %v6174_v48 }
 0x4cf   :  { %2957 = vrot.lane.b32.xlu1 %v5960_v39, %s4488_s13  ;;  %3091 = vrot.lane.b32.xlu0 %v5971_v61, %s4493_s18 }
 0x4d1   :  { %v6180_v55 = vpop.permute.xlu1 %2365  ;;  %v6182_v41 = vpop.permute.xlu0 %2453 }
 0x4d2   :  { %9916 = vst [vmem:[#allocation93_spill] sm:$0xff] %v6182_v41  ;;  %v6394_v41 = vadd.s32 512, %v4618_v4 }
 0x4d3   :  { %2901 = vrot.lane.b32.xlu1 %v5989_v62, %s4487_s12  ;;  %2821 = vrot.lane.b32.xlu0 %v6002_v7, %s4492_s17 }
 0x4d4   :  { %v2135_v48 = vshra.s32 %v6394_v41, 6 }
 0x4d5   :  { %v6188_v9 = vpop.permute.xlu1 %2369  ;;  %v6190_v14 = vpop.permute.xlu0 %2457 }
 0x4d6   :  { %9917 = vst [vmem:[#allocation94_spill] sm:$0xff] %v6190_v14 }
 0x4d7   :  { %3029 = vrot.lane.b32.xlu1 %v5971_v61, %s4489_s14  ;;  %2965 = vrot.lane.b32.xlu0 %v5996_v11, %s4488_s13 }
 0x4d9   :  { %v6196_v27 = vpop.permute.xlu1 %2373  ;;  %v6198_v2 = vpop.permute.xlu0 %2461 }
 0x4da   :  { %9918 = vst [vmem:[#allocation95_spill] sm:$0xff] %v6196_v27  ;;  %9919 = vst [vmem:[#allocation96_spill] sm:$0xff] %v6198_v2  ;;  %v9982_v27 = vmov 0 }
 0x4db   :  { %2819 = vrot.lane.b32.xlu1 %v5963_v28, %s4492_s17  ;;  %3093 = vrot.lane.b32.xlu0 %v5981_v49, %s4493_s18 }
 0x4dd   :  { %v6204_v25 = vpop.permute.xlu1 %2377  ;;  %v6206_v50 = vpop.permute.xlu0 %2465 }
 0x4de   :  { %9920 = vst [vmem:[#allocation97_spill] sm:$0xff] %v6204_v25  ;;  %9921 = vst [vmem:[#allocation98_spill] sm:$0xff] %v6206_v50  ;;  %v2147_v25 = vshra.s32 %v6394_v41, 3 }
 0x4df   :  { %2903 = vrot.lane.b32.xlu1 %v5996_v11, %s4487_s12  ;;  %2823 = vrot.lane.b32.xlu0 %v5973_v6, %s4492_s17 }
 0x4e0   :  { %v6453_v60 = vand.u32 7, %v2147_v25  ;;  %v9991_v25 = vmov 0 }
 0x4e1   :  { %v6212_v35 = vpop.permute.xlu1 %2451  ;;  %v6214_v36 = vpop.permute.xlu0 %2515 }
 0x4e2   :  { %9922 = vst [vmem:[#allocation99_spill] sm:$0xff] %v6212_v35  ;;  %9923 = vst [vmem:[#allocation100_spill] sm:$0xff] %v6214_v36 }
 0x4e3   :  { %3031 = vrot.lane.b32.xlu1 %v5981_v49, %s4489_s14  ;;  %2967 = vrot.lane.b32.xlu0 %v5963_v28, %s4488_s13  ;;  %9986 = vst [vmem:[#allocation153_spill] sm:$0xff] %v6453_v60 }
 0x4e5   :  { %v6220_v53 = vpop.permute.xlu1 %2455  ;;  %v6222_v2 = vpop.permute.xlu0 %2519 }
 0x4e6   :  { %9924 = vst [vmem:[#allocation101_spill] sm:$0xff] %v6220_v53  ;;  %9925 = vst [vmem:[#allocation102_spill] sm:$0xff] %v6222_v2 }
 0x4e7   :  { %3089 = vrot.lane.b32.xlu1 %v5960_v39, %s4493_s18  ;;  %3095 = vrot.lane.b32.xlu0 %v5989_v62, %s4493_s18 }
 0x4e9   :  { %v6228_v50 = vpop.permute.xlu1 %2459  ;;  %v6230_v14 = vpop.permute.xlu0 %2523 }
 0x4ea   :  { %9926 = vst [vmem:[#allocation103_spill] sm:$0xff] %v6228_v50  ;;  %9927 = vst [vmem:[#allocation104_spill] sm:$0xff] %v6230_v14 }
 0x4eb   :  { %2905 = vrot.lane.b32.xlu1 %v5963_v28, %s4487_s12  ;;  %3189 = vrot.lane.b32.xlu0 %v5971_v61, %s4490_s15 }
 0x4ed   :  { %v6236_v36 = vpop.permute.xlu1 %2463  ;;  %v6238_v53 = vpop.permute.xlu0 %2527 }
 0x4ee   :  { %9928 = vst [vmem:[#allocation105_spill] sm:$0xff] %v6236_v36  ;;  %9929 = vst [vmem:[#allocation106_spill] sm:$0xff] %v6238_v53 }
 0x4ef   :  { %3033 = vrot.lane.b32.xlu1 %v5989_v62, %s4489_s14  ;;  %3037 = vrot.lane.b32.xlu0 %v5963_v28, %s4489_s14 }
 0x4f1   :  { %v6244_v2 = vpop.permute.xlu1 %2513  ;;  %v6246_v50 = vpop.permute.xlu0 %2585 }
 0x4f2   :  { %9930 = vst [vmem:[#allocation107_spill] sm:$0xff] %v6244_v2  ;;  %9931 = vst [vmem:[#allocation108_spill] sm:$0xff] %v6246_v50 }
 0x4f3   :  { %2907 = vrot.lane.b32.xlu1 %v6002_v7, %s4487_s12  ;;  %3193 = vrot.lane.b32.xlu0 %v5989_v62, %s4490_s15 }
 0x4f5   :  { %v6252_v14 = vpop.permute.xlu1 %2517  ;;  %v6254_v36 = vpop.permute.xlu0 %2589 }
 0x4f6   :  { %9932 = vst [vmem:[#allocation109_spill] sm:$0xff] %v6252_v14  ;;  %9933 = vst [vmem:[#allocation110_spill] sm:$0xff] %v6254_v36 }
 0x4f7   :  { %3035 = vrot.lane.b32.xlu1 %v5996_v11, %s4489_s14  ;;  %3275 = vrot.lane.b32.xlu0 %v5971_v61, %s4491_s16 }
 0x4f9   :  { %v6260_v53 = vpop.permute.xlu1 %2521  ;;  %v6262_v2 = vpop.permute.xlu0 %2593 }
 0x4fa   :  { %9934 = vst [vmem:[#allocation111_spill] sm:$0xff] %v6260_v53  ;;  %9935 = vst [vmem:[#allocation112_spill] sm:$0xff] %v6262_v2 }
 0x4fb   :  { %3187 = vrot.lane.b32.xlu1 %v5960_v39, %s4490_s15  ;;  %3099 = vrot.lane.b32.xlu0 %v5963_v28, %s4493_s18 }
 0x4fd   :  { %v6268_v50 = vpop.permute.xlu1 %2525  ;;  %v6270_v14 = vpop.permute.xlu0 %2597 }
 0x4fe   :  { %9936 = vst [vmem:[#allocation113_spill] sm:$0xff] %v6268_v50  ;;  %9937 = vst [vmem:[#allocation114_spill] sm:$0xff] %v6270_v14 }
 0x4ff   :  { %3191 = vrot.lane.b32.xlu1 %v5981_v49, %s4490_s15  ;;  %3279 = vrot.lane.b32.xlu0 %v5989_v62, %s4491_s16 }
 0x501   :  { %v6276_v36 = vpop.permute.xlu1 %2583  ;;  %v6278_v53 = vpop.permute.xlu0 %2679 }
 0x502   :  { %9938 = vst [vmem:[#allocation115_spill] sm:$0xff] %v6276_v36  ;;  %9939 = vst [vmem:[#allocation116_spill] sm:$0xff] %v6278_v53 }
 0x503   :  { %2909 = vrot.lane.b32.xlu1 %v5973_v6, %s4487_s12  ;;  %3337 = vrot.lane.b32.xlu0 %v5971_v61, %s4495_s20 }
 0x505   :  { %v6284_v2 = vpop.permute.xlu1 %2587  ;;  %v6286_v50 = vpop.permute.xlu0 %2683 }
 0x506   :  { %9940 = vst [vmem:[#allocation117_spill] sm:$0xff] %v6284_v2  ;;  %9941 = vst [vmem:[#allocation118_spill] sm:$0xff] %v6286_v50 }
 0x507   :  { %2969 = vrot.lane.b32.xlu1 %v6002_v7, %s4488_s13  ;;  %3197 = vrot.lane.b32.xlu0 %v5963_v28, %s4490_s15 }
 0x509   :  { %v6292_v14 = vpop.permute.xlu1 %2591  ;;  %v6294_v36 = vpop.permute.xlu0 %2687 }
 0x50a   :  { %9942 = vst [vmem:[#allocation119_spill] sm:$0xff] %v6292_v14  ;;  %9943 = vst [vmem:[#allocation120_spill] sm:$0xff] %v6294_v36 }
 0x50b   :  { %3097 = vrot.lane.b32.xlu1 %v5996_v11, %s4493_s18  ;;  %3341 = vrot.lane.b32.xlu0 %v5989_v62, %s4495_s20 }
 0x50d   :  { %v6300_v53 = vpop.permute.xlu1 %2595  ;;  %v6302_v2 = vpop.permute.xlu0 %2691 }
 0x50e   :  { %9944 = vst [vmem:[#allocation121_spill] sm:$0xff] %v6300_v53  ;;  %9945 = vst [vmem:[#allocation122_spill] sm:$0xff] %v6302_v2 }
 0x50f   :  { %3273 = vrot.lane.b32.xlu1 %v5960_v39, %s4491_s16  ;;  %3407 = vrot.lane.b32.xlu0 %v5971_v61, %s4494_s19 }
 0x511   :  { %v6308_v50 = vpop.permute.xlu1 %2677  ;;  %v6310_v14 = vpop.permute.xlu0 %2741 }
 0x512   :  { %9946 = vst [vmem:[#allocation123_spill] sm:$0xff] %v6308_v50  ;;  %9947 = vst [vmem:[#allocation124_spill] sm:$0xff] %v6310_v14 }
 0x513   :  { %3277 = vrot.lane.b32.xlu1 %v5981_v49, %s4491_s16  ;;  %3283 = vrot.lane.b32.xlu0 %v5963_v28, %s4491_s16 }
 0x515   :  { %v6316_v36 = vpop.permute.xlu1 %2681  ;;  %v6318_v53 = vpop.permute.xlu0 %2745 }
 0x516   :  { %9948 = vst [vmem:[#allocation125_spill] sm:$0xff] %v6316_v36  ;;  %9949 = vst [vmem:[#allocation126_spill] sm:$0xff] %v6318_v53 }
 0x517   :  { %2971 = vrot.lane.b32.xlu1 %v5973_v6, %s4488_s13  ;;  %3411 = vrot.lane.b32.xlu0 %v5989_v62, %s4494_s19 }
 0x519   :  { %v6324_v2 = vpop.permute.xlu1 %2685  ;;  %v6326_v50 = vpop.permute.xlu0 %2749 }
 0x51a   :  { %9950 = vst [vmem:[#allocation127_spill] sm:$0xff] %v6324_v2  ;;  %9951 = vst [vmem:[#allocation128_spill] sm:$0xff] %v6326_v50 }
 0x51b   :  { %3039 = vrot.lane.b32.xlu1 %v6002_v7, %s4489_s14  ;;  %3501 = vrot.lane.b32.xlu0 %v5971_v61, %s4485_s10 }
 0x51d   :  { %v6332_v14 = vpop.permute.xlu1 %2689  ;;  %v6334_v36 = vpop.permute.xlu0 %2753 }
 0x51e   :  { %9952 = vst [vmem:[#allocation129_spill] sm:$0xff] %v6332_v14  ;;  %9953 = vst [vmem:[#allocation130_spill] sm:$0xff] %v6334_v36 }
 0x51f   :  { %3195 = vrot.lane.b32.xlu1 %v5996_v11, %s4490_s15  ;;  %3345 = vrot.lane.b32.xlu0 %v5963_v28, %s4495_s20 }
 0x521   :  { %v6340_v53 = vpop.permute.xlu1 %2739  ;;  %v6342_v2 = vpop.permute.xlu0 %2811 }
 0x522   :  { %9954 = vst [vmem:[#allocation131_spill] sm:$0xff] %v6340_v53  ;;  %9955 = vst [vmem:[#allocation132_spill] sm:$0xff] %v6342_v2 }
 0x523   :  { %3335 = vrot.lane.b32.xlu1 %v5960_v39, %s4495_s20  ;;  %3505 = vrot.lane.b32.xlu0 %v5989_v62, %s4485_s10 }
 0x525   :  { %v6348_v50 = vpop.permute.xlu1 %2743  ;;  %v6350_v14 = vpop.permute.xlu0 %2813 }
 0x526   :  { %9956 = vst [vmem:[#allocation133_spill] sm:$0xff] %v6348_v50  ;;  %9957 = vst [vmem:[#allocation134_spill] sm:$0xff] %v6350_v14 }
 0x527   :  { %3339 = vrot.lane.b32.xlu1 %v5981_v49, %s4495_s20  ;;  %3563 = vrot.lane.b32.xlu0 %v5971_v61, %s4480_s29 }
 0x529   :  { %v6356_v36 = vpop.permute.xlu1 %2747  ;;  %v6358_v53 = vpop.permute.xlu0 %2895 }
 0x52a   :  { %9958 = vst [vmem:[#allocation135_spill] sm:$0xff] %v6356_v36  ;;  %9959 = vst [vmem:[#allocation136_spill] sm:$0xff] %v6358_v53 }
 0x52b   :  { %3041 = vrot.lane.b32.xlu1 %v5973_v6, %s4489_s14  ;;  %3347 = vrot.lane.b32.xlu0 %v6002_v7, %s4495_s20 }
 0x52d   :  { %v6364_v2 = vpop.permute.xlu1 %2751  ;;  %v6366_v50 = vpop.permute.xlu0 %2959 }
 0x52e   :  { %9960 = vst [vmem:[#allocation137_spill] sm:$0xff] %v6364_v2  ;;  %9961 = vst [vmem:[#allocation138_spill] sm:$0xff] %v6366_v50 }
 0x52f   :  { %3101 = vrot.lane.b32.xlu1 %v6002_v7, %s4493_s18  ;;  %3507 = vrot.lane.b32.xlu0 %v5996_v11, %s4485_s10 }
 0x531   :  { %v6372_v14 = vpop.permute.xlu1 %2809  ;;  %v6374_v36 = vpop.permute.xlu0 %2817 }
 0x532   :  { %9962 = vst [vmem:[#allocation139_spill] sm:$0xff] %v6372_v14  ;;  %9963 = vst [vmem:[#allocation140_spill] sm:$0xff] %v6374_v36  ;;  %v9339_v36 = vand.u32 7, %v4718_v59  ;;  %v9973_v59 = vmov 0 }
 0x533   :  { %3281 = vrot.lane.b32.xlu1 %v5996_v11, %s4491_s16  ;;  %3631 = vrot.lane.b32.xlu0 %v5960_v39, %s4479_s28 }
 0x534   :  { %vm6410_vm8 = vcmp.ge.s32.totalorder %v9339_v36, 1  ;;  %v9981_v36 = vand.u32 7, %v4857_v37 }
 0x535   :  { %v6380_v53 = vpop.permute.xlu1 %2897  ;;  %v6382_v2 = vpop.permute.xlu0 %2961  ;;  %vm6436_vm13 = vmand %vm6410_vm8, %vm9977_vm7  ;;  %vm9997_vm7 = vcmp.ge.s32.totalorder %v4859_v38, 1 }
 0x536   :  { %9964 = vst [vmem:[#allocation141_spill] sm:$0xff] %v6380_v53  ;;  %9965 = vst [vmem:[#allocation142_spill] sm:$0xff] %v6382_v2  ;;  %v9343_v2 = vand.u32 7, %v4627_v15  ;;  %v6402_v53 = vadd.s32 640, %v4618_v4  ;;  %vm6447_vm11 = vcmp.ge.s32.totalorder %v9981_v36, 1 }
 0x537   :  { %3405 = vrot.lane.b32.xlu1 %v5960_v39, %s4494_s19  ;;  %3635 = vrot.lane.b32.xlu0 %v5981_v49, %s4479_s28  ;;  %v9983_v27 = vsel %vm6447_vm11, 4294967295, %v9982_v27 }
 0x538   :  { %vm6423_vm10 = vcmp.ge.s32.totalorder %v9343_v2, 1  ;;  %v2136_v35 = vshra.s32 %v6402_v53, 6  ;;  %v6441_v2 = vadd.s32 768, %v4618_v4  ;;  %9984 = vst [vmem:[#allocation151_spill] sm:$0xff] %v9983_v27  ;;  %v6525_v27 = vmul.f32 %v5917_v51, %v5960_v39 }
 0x539   :  { %v6388_v50 = vpop.permute.xlu1 %2815  ;;  %v6390_v14 = vpop.permute.xlu0 %3027  ;;  %v9974_v59 = vsel %vm6423_vm10, 4294967295, %v9973_v59  ;;  %vm6464_vm14 = vmand %vm6423_vm10, %vm9987_vm2 }
 0x53a   :  { %9966 = vst [vmem:[#allocation143_spill] sm:$0xff] %v6388_v50  ;;  %9967 = vst [vmem:[#allocation144_spill] sm:$0xff] %v6390_v14  ;;  %v9970_v14 = vmov 0  ;;  %v2125_v38 = vand.u32 7, %v6441_v2 }
 0x53b   :  { %3409 = vrot.lane.b32.xlu1 %v5981_v49, %s4494_s19  ;;  %3417 = vrot.lane.b32.xlu0 %v6002_v7, %s4494_s19  ;;  %v9971_v14 = vsel %vm6410_vm8, 4294967295, %v9970_v14  ;;  %9975 = vst [vmem:[#allocation148_spill] sm:$0xff] %v9974_v59  ;;  %v4434_v59 = vunpack.i.l.bf16 %v5891_v63  ;;  %vm6492_vm2 = vmand %vm6447_vm11, %vm9997_vm7  ;;  %vm10001_vm11 = vcmp.ge.s32.totalorder %v4866_v43, 1  ;;  %v6529_v43 = vmul.f32 %v5917_v51, %v5971_v61 }
 0x53c   :  { %9972 = vst [vmem:[#allocation147_spill] sm:$0xff] %v9971_v14  ;;  %v6456_v14 = vadd.s32 896, %v4618_v4  ;;  %v9990_v4 = vand.u32 7, %v4864_v42  ;;  %v2137_v42 = vshra.s32 %v6441_v2, 6  ;;  %10004 = vst [vmem:[#allocation159_spill] sm:$0xff] %v6525_v27  ;;  %v6542_v27 = vmul.f32 %v5917_v51, %v5981_v49 }
 0x53d   :  { %v6404_v40 = vpop.permute.xlu1 %2899  ;;  %v6406_v50 = vpop.permute.xlu0 %2963  ;;  %10005 = vst [vmem:[#allocation160_spill] sm:$0xff] %v6529_v43  ;;  %v10008_v61 = vmov 0  ;;  %v2248_v29 = vsel %vm10019_vm0, %v4434_v59, %v6100_v54  ;;  %vm10020_vm10 = vmmov %vm10019_vm0  ;;  %vm6599_vm12 = vcmp.ge.s32.totalorder %v2125_v38, 1  ;;  %v10123_v43 = vld [vmem:[#allocation38_spill] sm:$0xff] }
 0x53e   :  { %9968 = vst [vmem:[#allocation145_spill] sm:$0xff] %v6404_v40  ;;  %9969 = vst [vmem:[#allocation146_spill] sm:$0xff] %v6406_v50  ;;  %v2148_v50 = vshra.s32 %v6402_v53, 3  ;;  %vm6477_vm6 = vcmp.ge.s32.totalorder %v9990_v4, 1  ;;  %v2123_v4 = vand.u32 7, %v6394_v41  ;;  %v2138_v63 = vshra.s32 %v6456_v14, 6 }
 0x53f   :  { %3103 = vrot.lane.b32.xlu1 %v5973_v6, %s4493_s18  ;;  %3569 = vrot.lane.b32.xlu0 %v5996_v11, %s4480_s29  ;;  %v9992_v25 = vsel %vm6477_vm6, 4294967295, %v9991_v25  ;;  %vm6515_vm8 = vmand %vm6477_vm6, %vm10001_vm11  ;;  %10007 = vst [vmem:[#allocation162_spill] sm:$0xff] %v6542_v27  ;;  %vm10011_vm6 = vcmp.ge.s32.totalorder %v6453_v60, 1  ;;  %v6564_v27 = vmul.f32 %v5917_v51, %v5989_v62  ;;  %v2249_v60 = vsel %vm10020_vm10, %v6100_v54, %v6108_v30  ;;  %v10112_v41 = vld [vmem:[#allocation97_spill] sm:$0xff] }
 0x540   :  { %9993 = vst [vmem:[#allocation154_spill] sm:$0xff] %v9992_v25  ;;  %vm6544_vm7 = vcmp.ge.s32.totalorder %v2123_v4, 1  ;;  %v6556_v25 = vand.u32 7, %v2137_v42  ;;  %v6575_v42 = vand.u32 7, %v2138_v63  ;;  %v2251_v54 = vsel %vm10019_vm0, %v6116_v13, %v6124_v1 }
 0x541   :  { %v6430_v40 = vpop.permute.xlu1 %2957  ;;  %v6443_v15 = vpop.permute.xlu0 %3091  ;;  %v10009_v61 = vsel %vm6544_vm7, 4294967295, %v10008_v61  ;;  %10018 = vst [vmem:[#allocation167_spill] sm:$0xff] %v6564_v27  ;;  %v10024_v27 = vmov 0  ;;  %v10031_v63 = vmov 0  ;;  %v6620_v62 = vmul.f32 %v5917_v51, %v5996_v11 }
 0x542   :  { %9976 = vst [vmem:[#allocation149_spill] sm:$0xff] %v6430_v40  ;;  %9980 = vst [vmem:[#allocation150_spill] sm:$0xff] %v6443_v15  ;;  %v6451_v40 = vand.u32 7, %v2135_v48  ;;  %v6481_v48 = vand.u32 7, %v2136_v35  ;;  %v6483_v15 = vand.u32 7, %v2148_v50  ;;  %v2149_v35 = vshra.s32 %v6441_v2, 3 }
 0x543   :  { %3199 = vrot.lane.b32.xlu1 %v6002_v7, %s4490_s15  ;;  %3717 = vrot.lane.b32.xlu0 %v5960_v39, %s4481_s30  ;;  %v2126_v2 = vand.u32 7, %v6456_v14  ;;  %10010 = vst [vmem:[#allocation163_spill] sm:$0xff] %v10009_v61  ;;  %10015 = vst [vmem:[#allocation164_spill] sm:$0xff] %v6556_v25  ;;  %v10032_v63 = vsel %vm6599_vm12, 4294967295, %v10031_v63 }
 0x544   :  { %9985 = vst [vmem:[#allocation152_spill] sm:$0xff] %v6451_v40  ;;  %9994 = vst [vmem:[#allocation155_spill] sm:$0xff] %v6481_v48  ;;  %vm10012_vm11 = vcmp.ge.s32.totalorder %v6451_v40, 1  ;;  %vm10028_vm9 = vcmp.ge.s32.totalorder %v6481_v48, 1 }
 0x545   :  { %9995 = vst [vmem:[#allocation156_spill] sm:$0xff] %v6483_v15  ;;  %v6485_v16 = vpop.permute.xlu1 %2901  ;;  %v6499_v50 = vpop.permute.xlu0 %2821  ;;  %vm6552_vm1 = vmand %vm10012_vm11, %vm10011_vm6  ;;  %vm10027_vm6 = vcmp.ge.s32.totalorder %v6483_v15, 1  ;;  %v6624_v15 = vmul.f32 %v5917_v51, %v5963_v28 }
 0x546   :  { %9996 = vst [vmem:[#allocation157_spill] sm:$0xff] %v6485_v16  ;;  %10000 = vst [vmem:[#allocation158_spill] sm:$0xff] %v6499_v50  ;;  %v2150_v16 = vshra.s32 %v6456_v14, 3  ;;  %v2124_v50 = vand.u32 7, %v6402_v53  ;;  %v6558_v14 = vand.u32 7, %v2149_v35 }
 0x547   :  { %3343 = vrot.lane.b32.xlu1 %v5996_v11, %s4495_s20  ;;  %3721 = vrot.lane.b32.xlu0 %v5981_v49, %s4481_s30  ;;  %10021 = vst [vmem:[#allocation168_spill] sm:$0xff] %v6575_v42  ;;  %vm10023_vm11 = vmmov %vm10019_vm0 }
 0x548   :  { %10016 = vst [vmem:[#allocation165_spill] sm:$0xff] %v6558_v14  ;;  %v6577_v35 = vand.u32 7, %v2150_v16  ;;  %v2250_v59 = vsel %vm10023_vm11, %v6108_v30, %v6116_v13  ;;  %vm6587_vm10 = vcmp.ge.s32.totalorder %v2124_v50, 1  ;;  %vm6595_vm15 = vmand %vm10028_vm9, %vm10027_vm6  ;;  %v2252_v30 = vsel %vm10019_vm0, %v6124_v1, %v6132_v44 }
 0x549   :  { %v6538_v53 = vpop.permute.xlu1 %3029  ;;  %v10025_v27 = vsel %vm6587_vm10, 4294967295, %v10024_v27  ;;  %10033 = vst [vmem:[#allocation171_spill] sm:$0xff] %v10032_v63  ;;  %vm6612_vm9 = vcmp.ge.s32.totalorder %v2126_v2, 1  ;;  %v10034_v13 = vmov 0  ;;  %10038 = vst [vmem:[#allocation174_spill] sm:$0xff] %v6620_v62 }
 0x54a   :  { %10006 = vst [vmem:[#allocation161_spill] sm:$0xff] %v6538_v53  ;;  %v6560_v53 = vpop.permute.xlu0 %2965  ;;  %10022 = vst [vmem:[#allocation169_spill] sm:$0xff] %v6577_v35  ;;  %v10035_v13 = vsel %vm6612_vm9, 4294967295, %v10034_v13 }
 0x54b   :  { %10017 = vst [vmem:[#allocation166_spill] sm:$0xff] %v6560_v53  ;;  %3499 = vrot.lane.b32.xlu1 %v5960_v39, %s4485_s10  ;;  %10026 = vst [vmem:[#allocation170_spill] sm:$0xff] %v10025_v27  ;;  %3511 = vrot.lane.b32.xlu0 %v6002_v7, %s4485_s10 }
 0x54c   :  { %10036 = vst [vmem:[#allocation172_spill] sm:$0xff] %v10035_v13  ;;  %10039 = vst [vmem:[#allocation175_spill] sm:$0xff] %v6624_v15 }
 0x54d   :  { %v6616_v53 = vpop.permute.xlu1 %2819  ;;  %vm10040_vm6 = vmand %vm6436_vm13, %vm9839_vm5 }
 0x54e   :  { %10037 = vst [vmem:[#allocation173_spill] sm:$0xff] %v6616_v53  ;;  %v2264_v1 = vsel %vm10040_vm6, %v2248_v29, 0.0  ;;  %vm10041_vm0 = vmand %vm6464_vm14, %vm9838_vm3  ;;  %v6638_v62 = vpop.permute.xlu0 %3093  ;;  %vm10044_vm6 = vnez %v9639_v45 }
 0x54f   :  { %v2265_v53 = vsel %vm10041_vm0, %v2249_v60, 0.0  ;;  %10042 = vst [vmem:[#allocation176_spill] sm:$0xff] %v6638_v62  ;;  %vm10043_vm12 = vmand %vm6492_vm2, %vm4923_vm4  ;;  %3503 = vrot.lane.b32.xlu1 %v5981_v49, %s4485_s10  ;;  %vm6666_vm0 = vcmp.le.s32.totalorder %v2123_v4, 6  ;;  %3639 = vrot.lane.b32.xlu0 %v5996_v11, %s4479_s28  ;;  %v6674_v62 = vmul.f32 %v5917_v51, %v5973_v6  ;;  %v6677_v28 = vmul.f32 %v5893_v20, %v2264_v1 }
 0x550   :  { %v2266_v15 = vsel %vm10043_vm12, %v2250_v59, 0.0  ;;  %vm10045_vm5 = vmand %vm6515_vm8, %vm10044_vm6  ;;  %v10059_v51 = vmov 0  ;;  %vm10068_vm4 = vcmask 588800  }
 0x551   :  { %v2267_v29 = vsel %vm10045_vm5, %v2251_v54, 0.0  ;;  %vm10046_vm12 = vmmov %vm10023_vm11  ;;  %v10048_v54 = vmov 0  ;;  %10051 = vst [vmem:[#allocation178_spill] sm:$0xff] %v6674_v62  ;;  %vm6690_vm11 = vcmp.le.s32.totalorder %v2124_v50, 6  ;;  %v6698_v1 = vpop.permute.xlu1 %2903 }
 0x552   :  { %v2253_v60 = vsel %vm10046_vm12, %v6132_v44, %v6102_v32  ;;  %vm10047_vm5 = vmand %vm6552_vm1, %vm6544_vm7  ;;  %v10049_v54 = vsel %vm6666_vm0, 4294967295, %v10048_v54  ;;  %v6680_v44 = vmul.f32 %v5893_v20, %v2265_v53  ;;  %vm10052_vm12 = vcmp.ge.s32.totalorder %v6558_v14, 1  ;;  %10062 = vst [vmem:[#allocation181_spill] sm:$0xff] %v6698_v1  ;;  %v6725_v1 = vpop.permute.xlu0 %2823 }
 0x553   :  { %v2268_v59 = vsel %vm10047_vm5, %v2252_v30, 0.0  ;;  %10050 = vst [vmem:[#allocation177_spill] sm:$0xff] %v10049_v54  ;;  %vm10053_vm5 = vcmp.ge.s32.totalorder %v6556_v25, 1  ;;  %v10056_v30 = vmov 0  ;;  %vm6694_vm7 = vcmp.le.s32.totalorder %v2125_v38, 6  ;;  %vm10069_vm3 = vmmov %vm10068_vm4  ;;  %3201 = vrot.lane.b32.xlu1 %v5973_v6, %s4490_s15  ;;  %3779 = vrot.lane.b32.xlu0 %v5960_v39, %s4486_s11 }
 0x554   :  { %vm6686_vm9 = vmand %vm10053_vm5, %vm10052_vm12  ;;  %v10057_v30 = vsel %vm6690_vm11, 4294967295, %v10056_v30  ;;  %v10060_v51 = vsel %vm6694_vm7, 4294967295, %v10059_v51  ;;  %v6701_v53 = vmul.f32 %v5893_v20, %v2266_v15  ;;  %v6704_v62 = vmul.f32 %v5893_v20, %v2267_v29  ;;  %10073 = vst [vmem:[#allocation183_spill] sm:$0xff] %v6725_v1 }
 0x555   :  { %10058 = vst [vmem:[#allocation179_spill] sm:$0xff] %v10057_v30  ;;  %10061 = vst [vmem:[#allocation180_spill] sm:$0xff] %v10060_v51  ;;  %vm10063_vm12 = vcmp.ge.s32.totalorder %v6577_v35, 1  ;;  %vm10064_vm5 = vcmp.ge.s32.totalorder %v6575_v42, 1  ;;  %v10067_v38 = vunpack.i.l.bf16 %v5821_v3  ;;  %v2312_v15 = vsel %vm10069_vm3, %v6148_v34, %v6118_v57 }
 0x556   :  { %vm6710_vm6 = vmand %vm10064_vm5, %vm10063_vm12  ;;  %vm6721_vm7 = vcmp.le.s32.totalorder %v2126_v2, 6  ;;  %v10070_v29 = vmov 0  ;;  %v6733_v3 = vmul.f32 %v5893_v20, %v2268_v59  ;;  %vm10076_vm5 = vnez %v10032_v63  ;;  %v6775_v59 = vpop.permute.xlu1 %3031 }
 0x557   :  { %v2311_v14 = vsel %vm10068_vm4, %v10067_v38, %v6148_v34  ;;  %v10071_v29 = vsel %vm6721_vm7, 4294967295, %v10070_v29  ;;  %vm10074_vm12 = vmand %vm6595_vm15, %vm6587_vm10  ;;  %v2314_v34 = vsel %vm10069_vm3, %v6156_v56, %v6126_v58  ;;  %vm10080_vm10 = vnez %v10035_v13  ;;  %10083 = vst [vmem:[#allocation184_spill] sm:$0xff] %v6775_v59  ;;  %3285 = vrot.lane.b32.xlu1 %v6002_v7, %s4491_s16  ;;  %3783 = vrot.lane.b32.xlu0 %v5981_v49, %s4486_s11 }
 0x558   :  { %10072 = vst [vmem:[#allocation182_spill] sm:$0xff] %v10071_v29  ;;  %v2269_v35 = vsel %vm10074_vm12, %v2253_v60, 0.0  ;;  %vm10075_vm4 = vmmov %vm10069_vm3  ;;  %vm10077_vm12 = vcmask 596992   ;;  %v2317_v60 = vsel %vm10069_vm3, %v6134_v24, %v6172_v8  ;;  %vm10081_vm11 = vcmask 596992  }
 0x559   :  { %v2313_v38 = vsel %vm10075_vm4, %v6118_v57, %v6156_v56  ;;  %v2254_v2 = vsel %vm10077_vm12, %v6102_v32, %v6140_v19  ;;  %vm10078_vm7 = vmmov %vm10069_vm3  ;;  %v2255_v32 = vsel %vm10081_vm11, %v6140_v19, %v6110_v23  ;;  %v2282_v1 = vmul.f32 %v5893_v20, %v2269_v35 }
 0x55a   :  { %v2315_v57 = vsel %vm10078_vm7, %v6126_v58, %v6164_v17  ;;  %vm10079_vm4 = vmmov %vm10069_vm3  ;;  %v2327_v58 = vsel %vm6436_vm13, %v2311_v14, 0.0  ;;  %v2329_v42 = vsel %vm6492_vm2, %v2313_v38, 0.0  ;;  %v2330_v23 = vsel %vm6515_vm8, %v2314_v34, 0.0 }
 0x55b   :  { %v2316_v56 = vsel %vm10079_vm4, %v6164_v17, %v6134_v24  ;;  %vm2220_vm12 = vmand %vm6710_vm6, %vm10080_vm10  ;;  %v2328_v17 = vsel %vm6464_vm14, %v2312_v15, 0.0  ;;  %vm10084_vm11 = vnez %v9604_v12  ;;  %v2331_v14 = vsel %vm6552_vm1, %v2315_v57, 0.0  ;;  %3413 = vrot.lane.b32.xlu1 %v5996_v11, %s4494_s19  ;;  %3573 = vrot.lane.b32.xlu0 %v6002_v7, %s4480_s29  ;;  %v10244_v7 = vld [vmem:[#allocation14_spill] sm:$0xff] }
 0x55c   :  { %vm10082_vm7 = vmmov %vm10069_vm3  ;;  %vm10085_vm3 = vcmask 580608   ;;  %v2332_v35 = vsel %vm6595_vm15, %v2316_v56, 0.0  ;;  %v2333_v15 = vsel %vm6686_vm9, %v2317_v60, 0.0  ;;  %vm10088_vm4 = vnez %v9593_v26 }
 0x55d   :  { %v2318_v24 = vsel %vm10082_vm7, %v6172_v8, %v6142_v22  ;;  %v2381_v19 = vsel %vm10085_vm3, %v5825_v5, %v6180_v55  ;;  %v6789_v8 = vpop.permute.xlu0 %2967  ;;  %vm10087_vm7 = vmand %vm6686_vm9, %vm10076_vm5  ;;  %v2271_v5 = vsel %vm2220_vm12, %v2255_v32, 0.0  ;;  %v2339_v38 = vmul.f32 %v5895_v52, %v2327_v58  ;;  %v6837_v58 = vpop.permute.xlu1 %3089 }
 0x55e   :  { %10086 = vst [vmem:[#allocation185_spill] sm:$0xff] %v6789_v8  ;;  %v2270_v22 = vsel %vm10087_vm7, %v2254_v2, 0.0  ;;  %v2340_v34 = vmul.f32 %v5895_v52, %v2328_v17  ;;  %v2334_v2 = vsel %vm6710_vm6, %v2318_v24, 0.0  ;;  %vm10089_vm7 = vnez %v9625_v0  ;;  %vm10090_vm12 = vmmov %vm10085_vm3 }
 0x55f   :  { %v2341_v57 = vmul.f32 %v5895_v52, %v2329_v42  ;;  %v2342_v56 = vmul.f32 %v5895_v52, %v2330_v23  ;;  %v2382_v60 = vsel %vm10090_vm12, %v6180_v55, %v6150_v21  ;;  %vm10091_vm10 = vmand %vm6436_vm13, %vm10084_vm11  ;;  %vm10092_vm5 = vnez %v9631_v10  ;;  %10093 = vst [vmem:[#allocation186_spill] sm:$0xff] %v6837_v58 }
 0x560   :  { %v2397_v32 = vsel %vm10091_vm10, %v2381_v19, 0.0  ;;  %v2343_v42 = vmul.f32 %v5895_v52, %v2331_v14  ;;  %v2344_v17 = vmul.f32 %v5895_v52, %v2332_v35  ;;  %v2345_v24 = vmul.f32 %v5895_v52, %v2333_v15  ;;  %vm10094_vm12 = vmmov %vm10085_vm3  ;;  %v10102_v15 = vld [vmem:[#allocation95_spill] sm:$0xff]  ;;  %3561 = vrot.lane.b32.xlu1 %v5960_v39, %s4480_s29  ;;  %3725 = vrot.lane.b32.xlu0 %v5996_v11, %s4481_s30 }
 0x561   :  { %v2383_v46 = vsel %vm10094_vm12, %v6150_v21, %v6188_v9  ;;  %v6849_v55 = vpop.permute.xlu0 %3095  ;;  %v2283_v23 = vmul.f32 %v5893_v20, %v2270_v22  ;;  %v2284_v19 = vmul.f32 %v5893_v20, %v2271_v5  ;;  %v2346_v14 = vmul.f32 %v5895_v52, %v2334_v2  ;;  %vm10096_vm10 = vmmov %vm10085_vm3  ;;  %v10099_v52 = vld [vmem:[#allocation57_spill] sm:$0xff]  ;;  %v10242_v11 = vld [vmem:[#allocation119_spill] sm:$0xff] }
 0x562   :  { %10095 = vst [vmem:[#allocation187_spill] sm:$0xff] %v6849_v55  ;;  %v2384_v35 = vsel %vm10096_vm10, %v6188_v9, %v6158_v47  ;;  %vm10097_vm3 = vnez %v10057_v30  ;;  %v2347_v21 = vadd.f32 %v2339_v38, %v6677_v28  ;;  %v2348_v22 = vadd.f32 %v2340_v34, %v6680_v44  ;;  %vm10098_vm13 = vmand %vm6464_vm14, %vm10088_vm4  ;;  %v6891_v38 = vpop.permute.xlu1 %2905 }
 0x563   :  { %v2398_v20 = vsel %vm10098_vm13, %v2382_v60, 0.0  ;;  %v2409_v9 = vmul.f32 %v10099_v52, %v2397_v32  ;;  %vm10100_vm10 = vnez %v10060_v51  ;;  %v2349_v28 = vadd.f32 %v2341_v57, %v6701_v53  ;;  %vm10101_vm14 = vmand %vm6492_vm2, %vm10089_vm7  ;;  %10105 = vst [vmem:[#allocation57_spill] sm:$0xff] %v6891_v38  ;;  %v10115_v32 = vld [vmem:[#allocation148_spill] sm:$0xff] }
 0x564   :  { %v2350_v44 = vadd.f32 %v2342_v56, %v6704_v62  ;;  %v2399_v37 = vsel %vm10101_vm14, %v2383_v46, 0.0  ;;  %vm10103_vm13 = vmmov %vm10094_vm12  ;;  %vm10104_vm4 = vnez %v10071_v29  ;;  %v2351_v53 = vadd.f32 %v2343_v42, %v6733_v3  ;;  %v10111_v3 = vld [vmem:[#allocation91_spill] sm:$0xff]  ;;  %v10118_v46 = vld [vmem:[#allocation92_spill] sm:$0xff]  ;;  %3565 = vrot.lane.b32.xlu1 %v5981_v49, %s4480_s29  ;;  %3849 = vrot.lane.b32.xlu0 %v5960_v39, %s4482_s0 }
 0x565   :  { %v2385_v5 = vsel %vm10103_vm13, %v6158_v47, %v10102_v15  ;;  %v2352_v62 = vadd.f32 %v2344_v17, %v2282_v1  ;;  %v2353_v34 = vadd.f32 %v2345_v24, %v2283_v23  ;;  %vm10106_vm2 = vmand %vm6515_vm8, %vm10092_vm5  ;;  %vm10107_vm14 = vnez %v9609_v33  ;;  %v10108_v47 = vld [vmem:[#allocation147_spill] sm:$0xff]  ;;  %v6903_v2 = vpop.permute.xlu0 %3189 }
 0x566   :  { %v2400_v36 = vsel %vm10106_vm2, %v2384_v35, 0.0  ;;  %vm10109_vm13 = vnez %v10108_v47  ;;  %10110 = vst [vmem:[#allocation95_spill] sm:$0xff] %v6903_v2  ;;  %v6905_v57 = vadd.f32 %v2346_v14, %v2284_v19  ;;  %v2410_v56 = vmul.f32 %v10099_v52, %v2398_v20  ;;  %vm10113_vm11 = vmmov %vm10094_vm12  ;;  %v10120_v19 = vld [vmem:[#allocation151_spill] sm:$0xff]  ;;  %v10125_v20 = vld [vmem:[#allocation93_spill] sm:$0xff] }
 0x567   :  { %v2386_v1 = vsel %vm10094_vm12, %v10102_v15, %v10111_v3  ;;  %v2387_v60 = vsel %vm10113_vm11, %v10111_v3, %v10112_v41  ;;  %v6920_v42 = vadd.f32 %v2409_v9, %v2347_v21  ;;  %v2411_v17 = vmul.f32 %v10099_v52, %v2399_v37  ;;  %vm10117_vm12 = vmand %vm6552_vm1, %vm6666_vm0  ;;  %v10122_v35 = vld [vmem:[#allocation99_spill] sm:$0xff]  ;;  %v10128_v37 = vld [vmem:[#allocation154_spill] sm:$0xff]  ;;  %v6951_v3 = vpop.permute.xlu1 %3033 }
 0x568   :  { %v2401_v24 = vsel %vm10117_vm12, %v2385_v5, 0.0  ;;  %v2388_v23 = vsel %vm10113_vm11, %v10112_v41, %v10118_v46  ;;  %vm10119_vm7 = vnez %v9636_v18  ;;  %vm10121_vm5 = vnez %v10120_v19  ;;  %v10130_v15 = vld [vmem:[#allocation101_spill] sm:$0xff]  ;;  %10132 = vst [vmem:[#allocation147_spill] sm:$0xff] %v6951_v3  ;;  %v10135_v46 = vld [vmem:[#allocation94_spill] sm:$0xff]  ;;  %3287 = vrot.lane.b32.xlu1 %v5973_v6, %s4491_s16  ;;  %3853 = vrot.lane.b32.xlu0 %v5981_v49, %s4482_s0 }
 0x569   :  { %v2412_v14 = vmul.f32 %v10099_v52, %v2400_v36  ;;  %vm10124_vm2 = vcmask 531456   ;;  %vm10138_vm12 = vcmp.ge.s32.totalorder %v6451_v40, 1  ;;  %v2419_v55 = vadd.f32 %v2411_v17, %v2349_v28  ;;  %v10198_v17 = vld [vmem:[#allocation156_spill] sm:$0xff] }
 0x56a   :  { %v2467_v21 = vsel %vm10124_vm2, %v10123_v43, %v10122_v35  ;;  %vm10126_vm1 = vmmov %vm10124_vm2  ;;  %v10141_v43 = vld [vmem:[#allocation103_spill] sm:$0xff] }
 0x56b   :  { %v2468_v9 = vsel %vm10126_vm1, %v10122_v35, %v10125_v20  ;;  %vm10131_vm8 = vmmov %vm10126_vm1  ;;  %v7035_v2 = vpop.permute.xlu1 %2907 }
 0x56c   :  { %v2469_v5 = vsel %vm10131_vm8, %v10125_v20, %v10130_v15  ;;  %vm10133_vm2 = vmand %vm6595_vm15, %vm10097_vm3  ;;  %v2418_v20 = vadd.f32 %v2410_v56, %v2348_v22  ;;  %10165 = vst [vmem:[#allocation97_spill] sm:$0xff] %v7035_v2  ;;  %3575 = vrot.lane.b32.xlu0 %v5973_v6, %s4480_s29  ;;  %v10215_v2 = vld [vmem:[#allocation40_spill] sm:$0xff] }
 0x56d   :  { %v2402_v36 = vsel %vm10133_vm2, %v2386_v1, 0.0  ;;  %vm10134_vm1 = vmand %vm6686_vm9, %vm10100_vm10  ;;  %v6977_v1 = vpop.permute.xlu0 %3037 }
 0x56e   :  { %v2403_v41 = vsel %vm10134_vm1, %v2387_v60, 0.0  ;;  %vm10136_vm0 = vmmov %vm10131_vm8  ;;  %vm10137_vm8 = vnez %v10009_v61  ;;  %10143 = vst [vmem:[#allocation91_spill] sm:$0xff] %v6977_v1  ;;  %v2413_v60 = vmul.f32 %v10099_v52, %v2401_v24 }
 0x56f   :  { %v2470_v35 = vsel %vm10136_vm0, %v10130_v15, %v10135_v46  ;;  %vm6970_vm11 = vmand %vm10138_vm12, %vm10137_vm8  ;;  %vm10146_vm12 = vcmp.ge.s32.totalorder %v6481_v48, 1  ;;  %vm10157_vm8 = vcmp.ge.s32.totalorder %v6556_v25, 1  ;;  %v2415_v1 = vmul.f32 %v10099_v52, %v2403_v41  ;;  %v10167_v41 = vld [vmem:[#allocation58_spill] sm:$0xff] }
 0x570   :  { %vm10142_vm15 = vmmov %vm10136_vm0  ;;  %vm10145_vm0 = vnez %v10025_v27  ;;  %v2421_v28 = vadd.f32 %v2413_v60, %v2351_v53 }
 0x571   :  { %v2471_v4 = vsel %vm10142_vm15, %v10135_v46, %v10141_v43  ;;  %vm10144_vm9 = vmand %vm6710_vm6, %vm10104_vm4  ;;  %v10149_v46 = vld [vmem:[#allocation96_spill] sm:$0xff]  ;;  %v7040_v3 = vpop.permute.xlu0 %3193  ;;  %v2423_v60 = vadd.f32 %v2415_v1, %v2353_v34  ;;  %v10182_v34 = vld [vmem:[#allocation109_spill] sm:$0xff] }
 0x572   :  { %v2404_v15 = vsel %vm10144_vm9, %v2388_v23, 0.0  ;;  %vm6989_vm2 = vmand %vm10146_vm12, %vm10145_vm0  ;;  %vm10153_vm9 = vnez %v9598_v31  ;;  %vm10156_vm0 = vnez %v10032_v63  ;;  %v2487_v38 = vsel %vm6970_vm11, %v2471_v4, 0.0  ;;  %10166 = vst [vmem:[#allocation148_spill] sm:$0xff] %v7040_v3 }
 0x573   :  { %vm10150_vm1 = vmmov %vm10142_vm15  ;;  %vm10152_vm15 = vnez %v10115_v32  ;;  %v2416_v58 = vmul.f32 %v10099_v52, %v2404_v15  ;;  %v2499_v8 = vmul.f32 %v10167_v41, %v2487_v38  ;;  %v10175_v38 = vld [vmem:[#allocation107_spill] sm:$0xff]  ;;  %v10218_v3 = vmov 0 }
 0x574   :  { %v2472_v22 = vsel %vm10150_vm1, %v10141_v43, %v10149_v46  ;;  %vm10151_vm6 = vmand %vm10109_vm13, %vm10107_vm14 }
 0x575   :  { %v2483_v50 = vsel %vm10151_vm6, %v2467_v21, 0.0  ;;  %vm10154_vm12 = vmand %vm10152_vm15, %vm10153_vm9  ;;  %v10160_v21 = vld [vmem:[#allocation105_spill] sm:$0xff]  ;;  %vm10161_vm6 = vcmask 531456  }
 0x576   :  { %v2484_v56 = vsel %vm10154_vm12, %v2468_v9, 0.0  ;;  %vm10155_vm1 = vmand %vm10121_vm5, %vm10119_vm7  ;;  %v2473_v43 = vsel %vm10161_vm6, %v10149_v46, %v10160_v21  ;;  %v2414_v9 = vmul.f32 %v10099_v52, %v2402_v36  ;;  %vm10162_vm12 = vnez %v10128_v37 }
 0x577   :  { %v2485_v24 = vsel %vm10155_vm1, %v2469_v5, 0.0  ;;  %vm7017_vm4 = vmand %vm10157_vm8, %vm10156_vm0  ;;  %vm10163_vm1 = vnez %v9639_v45  ;;  %v2420_v46 = vadd.f32 %v2412_v14, %v2350_v44  ;;  %v2488_v36 = vsel %vm6989_vm2, %v2472_v22, 0.0  ;;  %v10169_v44 = vld [vmem:[#allocation168_spill] sm:$0xff]  ;;  %v10173_v14 = vld [vmem:[#allocation98_spill] sm:$0xff] }
 0x578   :  { %vm10164_vm7 = vmand %vm10162_vm12, %vm10163_vm1  ;;  %v2495_v39 = vmul.f32 %v10167_v41, %v2483_v50  ;;  %v2496_v59 = vmul.f32 %v10167_v41, %v2484_v56  ;;  %v2489_v16 = vsel %vm7017_vm4, %v2473_v43, 0.0  ;;  %vm10170_vm11 = vcmp.ge.s32.totalorder %v10169_v44, 1  ;;  %v10176_v22 = vld [vmem:[#allocation39_spill] sm:$0xff]  ;;  %v7072_v56 = vpop.permute.xlu1 %3035  ;;  %v7086_v43 = vpop.permute.xlu0 %3275 }
 0x579   :  { %v2486_v5 = vsel %vm10164_vm7, %v2470_v35, 0.0  ;;  %v2497_v35 = vmul.f32 %v10167_v41, %v2485_v24  ;;  %vm10168_vm7 = vnez %v10035_v13  ;;  %vm10174_vm2 = vmmov %vm10161_vm6  ;;  %v2422_v53 = vadd.f32 %v2414_v9, %v2352_v62  ;;  %10179 = vst [vmem:[#allocation92_spill] sm:$0xff] %v7072_v56 }
 0x57a   :  { %v2498_v52 = vmul.f32 %v10167_v41, %v2486_v5  ;;  %vm7055_vm8 = vmand %vm10170_vm11, %vm10168_vm7  ;;  %v2474_v4 = vsel %vm10174_vm2, %v10160_v21, %v10173_v14  ;;  %v2500_v15 = vmul.f32 %v10167_v41, %v2488_v36  ;;  %vm10177_vm4 = vcmask 523264   ;;  %v10180_v21 = vld [vmem:[#allocation100_spill] sm:$0xff]  ;;  %10185 = vst [vmem:[#allocation151_spill] sm:$0xff] %v7086_v43  ;;  %v10187_v36 = vld [vmem:[#allocation153_spill] sm:$0xff] }
 0x57b   :  { %v2529_v50 = vsel %vm10177_vm4, %v10176_v22, %v10175_v38  ;;  %vm10178_vm6 = vnez %v9604_v12  ;;  %v2424_v24 = vadd.f32 %v2416_v58, %v6905_v57  ;;  %v2501_v23 = vmul.f32 %v10167_v41, %v2489_v16  ;;  %vm10181_vm2 = vmmov %vm10177_vm4  ;;  %v10188_v16 = vld [vmem:[#allocation85_spill] sm:$0xff] }
 0x57c   :  { %v2530_v62 = vsel %vm10181_vm2, %v10175_v38, %v10180_v21  ;;  %vm10183_vm7 = vmmov %vm10181_vm2  ;;  %vm10184_vm4 = vnez %v9593_v26  ;;  %v2503_v9 = vadd.f32 %v2495_v39, %v6920_v42  ;;  %v7089_v58 = vadd.f32 %v2496_v59, %v2418_v20  ;;  %3415 = vrot.lane.b32.xlu1 %v10188_v16, %s4494_s19  ;;  %v10200_v38 = vld [vmem:[#allocation104_spill] sm:$0xff]  ;;  %3727 = vrot.lane.b32.xlu0 %v10188_v16, %s4481_s30 }
 0x57d   :  { %v2531_v1 = vsel %vm10183_vm7, %v10180_v21, %v10182_v34  ;;  %v7091_v57 = vadd.f32 %v2497_v35, %v2419_v55  ;;  %v2490_v5 = vsel %vm7055_vm8, %v2474_v4, 0.0  ;;  %v7102_v14 = vadd.f32 %v2498_v52, %v2420_v46  ;;  %v10189_v55 = vld [vmem:[#allocation102_spill] sm:$0xff]  ;;  %vm10190_vm8 = vmmov %vm10183_vm7  ;;  %v7135_v4 = vpop.permute.xlu1 %3187 }
 0x57e   :  { %v7104_v39 = vadd.f32 %v2499_v8, %v2421_v28  ;;  %v2545_v59 = vsel %vm10109_vm13, %v2529_v50, 0.0  ;;  %v2532_v42 = vsel %vm10190_vm8, %v10182_v34, %v10189_v55  ;;  %v7117_v20 = vadd.f32 %v2500_v15, %v2422_v53  ;;  %v10192_v28 = vld [vmem:[#allocation111_spill] sm:$0xff]  ;;  %vm10193_vm11 = vmmov %vm10183_vm7  ;;  %10199 = vst [vmem:[#allocation99_spill] sm:$0xff] %v7135_v4  ;;  %v10202_v50 = vld [vmem:[#allocation113_spill] sm:$0xff] }
 0x57f   :  { %v2546_v46 = vsel %vm10152_vm15, %v2530_v62, 0.0  ;;  %v2547_v35 = vsel %vm10121_vm5, %v2531_v1, 0.0  ;;  %v2533_v52 = vsel %vm10193_vm11, %v10189_v55, %v10192_v28  ;;  %vm10194_vm8 = vnez %v10049_v54  ;;  %vm10201_vm2 = vmmov %vm10193_vm11  ;;  %v10207_v34 = vld [vmem:[#allocation11_spill] sm:$0xff]  ;;  %v10213_v55 = vld [vmem:[#allocation106_spill] sm:$0xff] }
 0x580   :  { %vm10195_vm1 = vcmp.ge.s32.totalorder %v6451_v40, 1  ;;  %v10196_v8 = vmov 0  ;;  %v2502_v53 = vmul.f32 %v10167_v41, %v2490_v5  ;;  %v7138_v15 = vadd.f32 %v2501_v23, %v2423_v60  ;;  %vm10203_vm11 = vmmov %vm10201_vm2  ;;  %v7162_v60 = vpop.permute.xlu0 %3099  ;;  %v10212_v23 = vld [vmem:[#allocation59_spill] sm:$0xff]  ;;  %v10228_v4 = vld [vmem:[#allocation8_spill] sm:$0xff] }
 0x581   :  { %vm7130_vm7 = vmand %vm10195_vm1, %vm10194_vm8  ;;  %v2534_v22 = vsel %vm10201_vm2, %v10192_v28, %v10200_v38  ;;  %v2535_v21 = vsel %vm10203_vm11, %v10200_v38, %v10202_v50  ;;  %vm10204_vm1 = vcmp.ge.s32.totalorder %v6481_v48, 1  ;;  %v10205_v62 = vmov 0  ;;  %10211 = vst [vmem:[#allocation38_spill] sm:$0xff] %v7162_v60  ;;  %v10214_v38 = vld [vmem:[#allocation115_spill] sm:$0xff] }
 0x582   :  { %v10197_v8 = vsel %vm7130_vm7, 4294967295, %v10196_v8  ;;  %vm7150_vm8 = vmand %vm10204_vm1, %vm10097_vm3  ;;  %vm10208_vm0 = vcmp.le.s32.totalorder %v10207_v34, 6  ;;  %v2557_v1 = vmul.f32 %v10212_v23, %v2545_v59  ;;  %v2548_v5 = vsel %vm10162_vm12, %v2532_v42, 0.0  ;;  %v10220_v59 = vld [vmem:[#allocation165_spill] sm:$0xff]  ;;  %v10221_v42 = vld [vmem:[#allocation88_spill] sm:$0xff]  ;;  %v7224_v34 = vpop.permute.xlu1 %3191 }
 0x583   :  { %v10206_v62 = vsel %vm7150_vm8, 4294967295, %v10205_v62  ;;  %vm7158_vm7 = vmand %vm10109_vm13, %vm10208_vm0  ;;  %v2536_v28 = vsel %vm10201_vm2, %v10202_v50, %v10213_v55  ;;  %vm10216_vm11 = vcmask 515072   ;;  %vm10217_vm0 = vcmp.ge.s32.totalorder %v6556_v25, 1  ;;  %3567 = vrot.lane.b32.xlu1 %v10221_v42, %s4480_s29  ;;  %v10223_v55 = vld [vmem:[#allocation108_spill] sm:$0xff]  ;;  %10239 = vst [vmem:[#allocation93_spill] sm:$0xff] %v7224_v34  ;;  %3855 = vrot.lane.b32.xlu0 %v10221_v42, %s4482_s0 }
 0x584   :  { %v2599_v30 = vsel %vm10216_vm11, %v10215_v2, %v10214_v38  ;;  %vm7177_vm1 = vmand %vm10217_vm0, %vm10100_vm10  ;;  %v2558_v60 = vmul.f32 %v10212_v23, %v2546_v46  ;;  %v2559_v50 = vmul.f32 %v10212_v23, %v2547_v35  ;;  %vm10222_vm2 = vcmp.ge.s32.totalorder %v6451_v40, 1  ;;  %v10232_v35 = vld [vmem:[#allocation169_spill] sm:$0xff]  ;;  %v10367_v46 = vld [vmem:[#allocation140_spill] sm:$0xff] }
 0x585   :  { %v10219_v3 = vsel %vm7177_vm1, 4294967295, %v10218_v3  ;;  %v2549_v2 = vsel %vm10222_vm2, %v2533_v52, 0.0  ;;  %v2600_v51 = vsel %vm10216_vm11, %v10214_v38, %v10223_v55  ;;  %vm10224_vm0 = vnez %v10071_v29  ;;  %v10235_v29 = vld [vmem:[#allocation117_spill] sm:$0xff] }
 0x586   :  { %vm10225_vm10 = vcmp.ge.s32.totalorder %v10169_v44, 1  ;;  %vm10229_vm3 = vcmp.le.s32.totalorder %v10228_v4, 6  ;;  %vm10233_vm11 = vcmp.ge.s32.totalorder %v6481_v48, 1  ;;  %v10237_v4 = vld [vmem:[#allocation110_spill] sm:$0xff]  ;;  %v2565_v47 = vadd.f32 %v2557_v1, %v2503_v9  ;;  %v10255_v9 = vld [vmem:[#allocation16_spill] sm:$0xff]  ;;  %v7290_v37 = vpop.permute.xlu1 %2909 }
 0x587   :  { %vm7195_vm1 = vmand %vm10225_vm10, %vm10224_vm0  ;;  %v2550_v52 = vsel %vm10233_vm11, %v2534_v22, 0.0  ;;  %vm10234_vm10 = vcmp.ge.s32.totalorder %v6556_v25, 1  ;;  %vm10236_vm0 = vcmask 515072   ;;  %v2560_v22 = vmul.f32 %v10212_v23, %v2548_v5  ;;  %v7245_v5 = vpop.permute.xlu0 %3279  ;;  %v10259_v1 = vld [vmem:[#allocation60_spill] sm:$0xff]  ;;  %10262 = vst [vmem:[#allocation101_spill] sm:$0xff] %v7290_v37 }
 0x588   :  { %vm7203_vm8 = vmand %vm10152_vm15, %vm10229_vm3  ;;  %v2551_v38 = vsel %vm10234_vm10, %v2535_v21, 0.0  ;;  %v2601_v49 = vsel %vm10236_vm0, %v10223_v55, %v10235_v29  ;;  %vm10240_vm11 = vcmp.ge.s32.totalorder %v10169_v44, 1  ;;  %10248 = vst [vmem:[#allocation154_spill] sm:$0xff] %v7245_v5  ;;  %v2561_v54 = vmul.f32 %v10212_v23, %v2549_v2 }
 0x589   :  { %vm10238_vm3 = vmmov %vm10236_vm0  ;;  %v2552_v21 = vsel %vm10240_vm11, %v2536_v28, 0.0  ;;  %v2510_v28 = vadd.f32 %v2502_v53, %v2424_v24  ;;  %v2562_v5 = vmul.f32 %v10212_v23, %v2550_v52  ;;  %v2563_v24 = vmul.f32 %v10212_v23, %v2551_v38 }
 0x58a   :  { %v2602_v56 = vsel %vm10238_vm3, %v10235_v29, %v10237_v4  ;;  %vm10241_vm0 = vmand %vm10109_vm13, %vm10178_vm6  ;;  %v10257_v53 = vmov 0  ;;  %v2566_v19 = vadd.f32 %v2558_v60, %v7089_v58  ;;  %v2567_v52 = vadd.f32 %v2559_v50, %v7091_v57  ;;  %v10263_v60 = vld [vmem:[#allocation112_spill] sm:$0xff] }
 0x58b   :  { %v2615_v55 = vsel %vm10241_vm0, %v2599_v30, 0.0  ;;  %vm10243_vm10 = vmmov %vm10238_vm3  ;;  %vm10245_vm3 = vcmp.le.s32.totalorder %v10244_v7, 6  ;;  %vm10251_vm0 = vnez %v9625_v0  ;;  %v2568_v38 = vadd.f32 %v2560_v22, %v7102_v14  ;;  %v10269_v22 = vld [vmem:[#allocation121_spill] sm:$0xff] }
 0x58c   :  { %v2603_v29 = vsel %vm10243_vm10, %v10237_v4, %v10242_v11  ;;  %vm7241_vm2 = vmand %vm10121_vm5, %vm10245_vm3  ;;  %v10250_v4 = vld [vmem:[#allocation86_spill] sm:$0xff]  ;;  %v2627_v2 = vmul.f32 %v10259_v1, %v2615_v55  ;;  %v2569_v57 = vadd.f32 %v2561_v54, %v7104_v39  ;;  %v2570_v55 = vadd.f32 %v2562_v5, %v7117_v20 }
 0x58d   :  { %vm10249_vm13 = vmand %vm10152_vm15, %vm10184_vm4  ;;  %3633 = vrot.lane.b32.xlu1 %v10250_v4, %s4479_s28  ;;  %vm10253_vm15 = vnez %v9631_v10  ;;  %v2571_v54 = vadd.f32 %v2563_v24, %v7138_v15  ;;  %vm10275_vm4 = vcmp.ge.s32.totalorder %v6481_v48, 1  ;;  %3945 = vrot.lane.b32.xlu0 %v10250_v4, %s4483_s8  ;;  %v10280_v24 = vld [vmem:[#allocation123_spill] sm:$0xff] }
 0x58e   :  { %v2616_v30 = vsel %vm10249_vm13, %v2600_v51, 0.0  ;;  %vm10252_vm10 = vmand %vm10121_vm5, %vm10251_vm0  ;;  %vm10256_vm13 = vcmp.le.s32.totalorder %v10255_v9, 6  ;;  %vm10260_vm5 = vnez %v10197_v8  ;;  %v2635_v5 = vadd.f32 %v2627_v2, %v2565_v47  ;;  %v10286_v47 = vld [vmem:[#allocation116_spill] sm:$0xff] }
 0x58f   :  { %v2617_v32 = vsel %vm10252_vm10, %v2601_v49, 0.0  ;;  %vm10254_vm3 = vmand %vm10162_vm12, %vm10253_vm15  ;;  %v2564_v49 = vmul.f32 %v10212_v23, %v2552_v21  ;;  %vm10261_vm10 = vnez %v9636_v18  ;;  %v2628_v58 = vmul.f32 %v10259_v1, %v2616_v30  ;;  %v7306_v21 = vpop.permute.xlu0 %3337 }
 0x590   :  { %v2618_v51 = vsel %vm10254_vm3, %v2602_v56, 0.0  ;;  %vm7275_vm11 = vmand %vm10162_vm12, %vm10256_vm13  ;;  %v2619_v56 = vsel %vm10260_vm5, %v2603_v29, 0.0  ;;  %vm10264_vm3 = vcmask 515072   ;;  %vm10265_vm13 = vcmp.le.s32.totalorder %v10187_v36, 6  ;;  %v10272_v29 = vld [vmem:[#allocation114_spill] sm:$0xff] }
 0x591   :  { %v10258_v53 = vsel %vm7275_vm11, 4294967295, %v10257_v53  ;;  %v2604_v23 = vsel %vm10264_vm3, %v10242_v11, %v10263_v60  ;;  %vm10266_vm5 = vcmp.ge.s32.totalorder %v6451_v40, 1  ;;  %v2629_v14 = vmul.f32 %v10259_v1, %v2617_v32  ;;  %vm10270_vm12 = vmmov %vm10264_vm3  ;;  %3349 = vrot.lane.b32.xlu1 %v5973_v6, %s4495_s20  ;;  %3645 = vrot.lane.b32.xlu0 %v5973_v6, %s4479_s28  ;;  %v10321_v40 = vld [vmem:[#allocation42_spill] sm:$0xff] }
 0x592   :  { %vm7302_vm15 = vmand %vm10266_vm5, %vm10265_vm13  ;;  %v2630_v50 = vmul.f32 %v10259_v1, %v2618_v51  ;;  %v2605_v11 = vsel %vm10270_vm12, %v10263_v60, %v10269_v22  ;;  %v2631_v39 = vmul.f32 %v10259_v1, %v2619_v56  ;;  %v10276_v32 = vmov 0  ;;  %v10281_v51 = vld [vmem:[#allocation41_spill] sm:$0xff]  ;;  %v7345_v60 = vpop.permute.xlu1 %2969 }
 0x593   :  { %vm10273_vm5 = vmmov %vm10270_vm12  ;;  %vm10274_vm12 = vcmp.le.s32.totalorder %v10198_v17, 6  ;;  %v2572_v20 = vadd.f32 %v2564_v49, %v2510_v28  ;;  %vm10279_vm13 = vnez %v10206_v62  ;;  %vm10282_vm0 = vcmask 465920   ;;  %10284 = vst [vmem:[#allocation103_spill] sm:$0xff] %v7345_v60  ;;  %v10288_v49 = vld [vmem:[#allocation125_spill] sm:$0xff] }
 0x594   :  { %v2606_v30 = vsel %vm10273_vm5, %v10269_v22, %v10272_v29  ;;  %vm7330_vm6 = vmand %vm10275_vm4, %vm10274_vm12  ;;  %v2620_v15 = vsel %vm10279_vm13, %v2604_v23, 0.0  ;;  %v2693_v56 = vsel %vm10282_vm0, %v10281_v51, %v10280_v24  ;;  %v7347_v22 = vadd.f32 %v2628_v58, %v2566_v19  ;;  %v7365_v19 = vpop.permute.xlu0 %3197  ;;  %v10295_v29 = vld [vmem:[#allocation118_spill] sm:$0xff] }
 0x595   :  { %v10277_v32 = vsel %vm7330_vm6, 4294967295, %v10276_v32  ;;  %vm10285_vm12 = vnez %v10219_v3  ;;  %vm10287_vm3 = vmmov %vm10282_vm0  ;;  %vm10291_vm11 = vcmp.ge.s32.totalorder %v6556_v25, 1  ;;  %v10292_v23 = vmov 0  ;;  %3509 = vrot.lane.b32.xlu1 %v10188_v16, %s4485_s10  ;;  %v10320_v25 = vld [vmem:[#allocation131_spill] sm:$0xff]  ;;  %3789 = vrot.lane.b32.xlu0 %v10188_v16, %s4486_s11 }
 0x596   :  { %10278 = vst [vmem:[#allocation94_spill] sm:$0xff] %v10277_v32  ;;  %v2621_v28 = vsel %vm10285_vm12, %v2605_v11, 0.0  ;;  %v2694_v62 = vsel %vm10287_vm3, %v10280_v24, %v10286_v47  ;;  %vm10289_vm13 = vmmov %vm10282_vm0  ;;  %vm10290_vm0 = vcmp.le.s32.totalorder %v10220_v59, 6  ;;  %v2637_v3 = vadd.f32 %v2629_v14, %v2567_v52  ;;  %v10302_v14 = vld [vmem:[#allocation127_spill] sm:$0xff]  ;;  %v10323_v59 = vld [vmem:[#allocation124_spill] sm:$0xff] }
 0x597   :  { %v2695_v2 = vsel %vm10289_vm13, %v10286_v47, %v10288_v49  ;;  %vm7361_vm4 = vmand %vm10291_vm11, %vm10290_vm0  ;;  %v2638_v58 = vadd.f32 %v2630_v50, %v2568_v38  ;;  %v2622_v11 = vsel %vm7195_vm1, %v2606_v30, 0.0  ;;  %v2696_v24 = vsel %vm10287_vm3, %v10288_v49, %v10295_v29  ;;  %v10313_v49 = vld [vmem:[#allocation129_spill] sm:$0xff] }
 0x598   :  { %v10293_v23 = vsel %vm7361_vm4, 4294967295, %v10292_v23  ;;  %vm10296_vm12 = vcmp.le.s32.totalorder %v10232_v35, 6  ;;  %vm10297_vm13 = vcmp.ge.s32.totalorder %v10169_v44, 1  ;;  %v2632_v52 = vmul.f32 %v10259_v1, %v2620_v15  ;;  %vm10300_vm1 = vmand %vm7158_vm7, %vm10107_vm14  ;;  %v10305_v15 = vld [vmem:[#allocation120_spill] sm:$0xff] }
 0x599   :  { %10294 = vst [vmem:[#allocation96_spill] sm:$0xff] %v10293_v23  ;;  %vm7376_vm5 = vmand %vm10297_vm13, %vm10296_vm12  ;;  %v2639_v38 = vadd.f32 %v2631_v39, %v2569_v57  ;;  %v2709_v43 = vsel %vm10300_vm1, %v2693_v56, 0.0  ;;  %vm10301_vm11 = vnez %v10025_v27  ;;  %v2697_v50 = vsel %vm10287_vm3, %v10295_v29, %v10302_v14  ;;  %v10315_v29 = vld [vmem:[#allocation122_spill] sm:$0xff]  ;;  %3637 = vrot.lane.b32.xlu1 %v10221_v42, %s4479_s28  ;;  %3949 = vrot.lane.b32.xlu0 %v10221_v42, %s4483_s8 }
 0x59a   :  { %v2633_v57 = vmul.f32 %v10259_v1, %v2621_v28  ;;  %vm10303_vm12 = vmand %vm7203_vm8, %vm10153_vm9  ;;  %v7415_v28 = vpop.permute.xlu1 %3097  ;;  %v2634_v47 = vmul.f32 %v10259_v1, %v2622_v11  ;;  %vm10310_vm9 = vnez %v9639_v45  ;;  %v7433_v1 = vpop.permute.xlu0 %3341  ;;  %v10317_v11 = vld [vmem:[#allocation61_spill] sm:$0xff] }
 0x59b   :  { %v2710_v39 = vsel %vm10303_vm12, %v2694_v62, 0.0  ;;  %vm10304_vm13 = vmand %vm7241_vm2, %vm10261_vm10  ;;  %10308 = vst [vmem:[#allocation105_spill] sm:$0xff] %v7415_v28  ;;  %vm10309_vm12 = vnez %v10258_v53  ;;  %v2721_v44 = vmul.f32 %v10317_v11, %v2709_v43 }
 0x59c   :  { %v2711_v30 = vsel %vm10304_vm13, %v2695_v2, 0.0  ;;  %vm10306_vm1 = vmmov %vm10287_vm3  ;;  %vm10307_vm3 = vnez %v10032_v63  ;;  %vm10312_vm13 = vnez %v10035_v13  ;;  %v2722_v43 = vmul.f32 %v10317_v11, %v2710_v39  ;;  %v10329_v63 = vld [vmem:[#allocation126_spill] sm:$0xff] }
 0x59d   :  { %v2698_v56 = vsel %vm10306_vm1, %v10302_v14, %v10305_v15  ;;  %vm10311_vm14 = vmand %vm10309_vm12, %vm10310_vm9  ;;  %v2642_v37 = vadd.f32 %v2634_v47, %v2572_v20  ;;  %v2729_v35 = vadd.f32 %v2721_v44, %v2635_v5  ;;  %3719 = vrot.lane.b32.xlu1 %v10250_v4, %s4481_s30  ;;  %v10336_v20 = vld [vmem:[#allocation62_spill] sm:$0xff]  ;;  %4007 = vrot.lane.b32.xlu0 %v10250_v4, %s4484_s9 }
 0x59e   :  { %v2712_v62 = vsel %vm10311_vm14, %v2696_v24, 0.0  ;;  %vm10314_vm10 = vmmov %vm10306_vm1  ;;  %vm10318_vm14 = vnez %v10009_v61  ;;  %v7482_v60 = vpop.permute.xlu0 %3407 }
 0x59f   :  { %v2699_v2 = vsel %vm10314_vm10, %v10305_v15, %v10313_v49  ;;  %vm10316_vm0 = vmmov %vm10306_vm1  ;;  %vm10322_vm1 = vcmask 457728   ;;  %10331 = vst [vmem:[#allocation58_spill] sm:$0xff] %v7482_v60 }
 0x5a0   :  { %v2700_v14 = vsel %vm10316_vm0, %v10313_v49, %v10315_v29  ;;  %vm10319_vm9 = vmand %vm7302_vm15, %vm10318_vm14  ;;  %v2755_v48 = vsel %vm10322_vm1, %v10321_v40, %v10320_v25  ;;  %v2640_v49 = vadd.f32 %v2632_v52, %v2570_v55  ;;  %v2723_v29 = vmul.f32 %v10317_v11, %v2711_v30  ;;  %v10328_v52 = vld [vmem:[#allocation133_spill] sm:$0xff]  ;;  %v7472_v30 = vpop.permute.xlu1 %3273 }
 0x5a1   :  { %v2713_v24 = vsel %vm10319_vm9, %v2697_v50, 0.0  ;;  %vm10324_vm10 = vmmov %vm10322_vm1  ;;  %v2724_v40 = vmul.f32 %v10317_v11, %v2712_v62  ;;  %v2771_v62 = vsel %vm7158_vm7, %v2755_v48, 0.0  ;;  %3419 = vrot.lane.b32.xlu1 %v5973_v6, %s4494_s19 }
 0x5a2   :  { %v2756_v15 = vsel %vm10324_vm10, %v10320_v25, %v10323_v59  ;;  %vm10325_vm9 = vmand %vm7330_vm6, %vm10301_vm11  ;;  %v2757_v39 = vsel %vm10324_vm10, %v10323_v59, %v10328_v52  ;;  %v2783_v5 = vmul.f32 %v10336_v20, %v2771_v62  ;;  %v2731_v13 = vadd.f32 %v2723_v29, %v2637_v3  ;;  %v10345_v3 = vld [vmem:[#allocation128_spill] sm:$0xff] }
 0x5a3   :  { %v2714_v50 = vsel %vm10325_vm9, %v2698_v56, 0.0  ;;  %vm10326_vm0 = vmand %vm7361_vm4, %vm10307_vm3  ;;  %v2725_v56 = vmul.f32 %v10317_v11, %v2713_v24  ;;  %v2773_v44 = vsel %vm7241_vm2, %v2757_v39, 0.0  ;;  %v2730_v39 = vadd.f32 %v2722_v43, %v7347_v22 }
 0x5a4   :  { %v2715_v25 = vsel %vm10326_vm0, %v2699_v2, 0.0  ;;  %vm10327_vm1 = vmand %vm7376_vm5, %vm10312_vm13  ;;  %v2772_v2 = vsel %vm7203_vm8, %v2756_v15, 0.0  ;;  %v2726_v59 = vmul.f32 %v10317_v11, %v2714_v50  ;;  %vm10332_vm0 = vnez %v9625_v0  ;;  %v10333_v15 = vld [vmem:[#allocation134_spill] sm:$0xff]  ;;  %v10339_v50 = vld [vmem:[#allocation44_spill] sm:$0xff] }
 0x5a5   :  { %v2716_v55 = vsel %vm10327_vm1, %v2700_v14, 0.0  ;;  %vm10330_vm9 = vmmov %vm10324_vm10  ;;  %v2641_v14 = vadd.f32 %v2633_v57, %v2571_v54  ;;  %v2727_v24 = vmul.f32 %v10317_v11, %v2715_v25  ;;  %vm10335_vm10 = vcmask 449536   ;;  %3571 = vrot.lane.b32.xlu1 %v10188_v16, %s4480_s29  ;;  %v10484_v0 = vld [vmem:[#allocation70_spill] sm:$0xff] }
 0x5a6   :  { %v2758_v45 = vsel %vm10330_vm9, %v10328_v52, %v10329_v63  ;;  %v2728_v48 = vmul.f32 %v10317_v11, %v2716_v55  ;;  %v10334_v52 = vld [vmem:[#allocation132_spill] sm:$0xff]  ;;  %v2784_v57 = vmul.f32 %v10336_v20, %v2772_v2  ;;  %vm10337_vm9 = vnez %v9604_v12  ;;  %v10338_v11 = vld [vmem:[#allocation139_spill] sm:$0xff]  ;;  %v7511_v55 = vpop.permute.xlu1 %3277  ;;  %v7514_v2 = vpop.permute.xlu0 %3283  ;;  %vm10342_vm1 = vmand %vm7241_vm2, %vm10332_vm0 }
 0x5a7   :  { %v2827_v54 = vsel %vm10335_vm10, %v10334_v52, %v10333_v15  ;;  %v2774_v47 = vsel %vm10309_vm12, %v2758_v45, 0.0  ;;  %v2825_v25 = vsel %vm10335_vm10, %v10339_v50, %v10338_v11  ;;  %v2732_v62 = vadd.f32 %v2724_v40, %v2638_v58  ;;  %10340 = vst [vmem:[#allocation98_spill] sm:$0xff] %v7514_v2  ;;  %v10343_v50 = vld [vmem:[#allocation135_spill] sm:$0xff] }
 0x5a8   :  { %v2733_v17 = vadd.f32 %v2725_v56, %v2639_v38  ;;  %v7516_v27 = vadd.f32 %v2726_v59, %v2640_v49  ;;  %v2843_v45 = vsel %vm10342_vm1, %v2827_v54, 0.0  ;;  %v2785_v9 = vmul.f32 %v10336_v20, %v2773_v44  ;;  %v10353_v56 = vld [vmem:[#allocation43_spill] sm:$0xff]  ;;  %v10355_v54 = vld [vmem:[#allocation136_spill] sm:$0xff] }
 0x5a9   :  { %vm10344_vm10 = vcmask 457728   ;;  %v2786_v22 = vmul.f32 %v10336_v20, %v2774_v47  ;;  %vm10347_vm13 = vnez %v9593_v26  ;;  %vm10348_vm1 = vcmask 449536   ;;  %v10357_v47 = vld [vmem:[#allocation145_spill] sm:$0xff]  ;;  %3723 = vrot.lane.b32.xlu1 %v10221_v42, %s4481_s30 }
 0x5aa   :  { %10341 = vst [vmem:[#allocation107_spill] sm:$0xff] %v7516_v27  ;;  %v2759_v60 = vsel %vm10344_vm10, %v10329_v63, %v10343_v50  ;;  %vm10346_vm3 = vmmov %vm10344_vm10  ;;  %v2826_v34 = vsel %vm10348_vm1, %v10338_v11, %v10334_v52  ;;  %v7547_v38 = vadd.f32 %v2727_v24, %v2641_v14  ;;  %v7549_v49 = vadd.f32 %v2728_v48, %v2642_v37  ;;  %v7551_v40 = vpop.permute.xlu1 %2971  ;;  %v10354_v52 = vld [vmem:[#allocation141_spill] sm:$0xff]  ;;  %v7562_v24 = vpop.permute.xlu0 %3411  ;;  %v10397_v27 = vld [vmem:[#allocation184_spill] sm:$0xff] }
 0x5ab   :  { %v2760_v58 = vsel %vm10346_vm3, %v10343_v50, %v10345_v3  ;;  %vm2800_vm2 = vmand %vm7203_vm8, %vm10347_vm13  ;;  %v2791_v43 = vadd.f32 %v2783_v5, %v2729_v35  ;;  %v2792_v29 = vadd.f32 %v2784_v57, %v2730_v39  ;;  %10352 = vst [vmem:[#allocation109_spill] sm:$0xff] %v7551_v40  ;;  %v2855_v59 = vmul.f32 %v10353_v56, %v2843_v45  ;;  %v10360_v35 = vld [vmem:[#allocation66_spill] sm:$0xff]  ;;  %v10365_v45 = vld [vmem:[#allocation177_spill] sm:$0xff] }
 0x5ac   :  { %vm10349_vm10 = vmand %vm7158_vm7, %vm10337_vm9  ;;  %10350 = vst [vmem:[#allocation39_spill] sm:$0xff] %v7547_v38  ;;  %v2775_v41 = vsel %vm7302_vm15, %v2759_v60, 0.0  ;;  %vm10356_vm7 = vcmask 72704   ;;  %v2776_v48 = vsel %vm7330_vm6, %v2760_v58, 0.0  ;;  %v2842_v60 = vsel %vm2800_vm2, %v2826_v34, 0.0  ;;  %v10368_v50 = vld [vmem:[#allocation143_spill] sm:$0xff] }
 0x5ad   :  { %v2841_v63 = vsel %vm10349_vm10, %v2825_v25, 0.0  ;;  %10351 = vst [vmem:[#allocation100_spill] sm:$0xff] %v7549_v49  ;;  %v2912_v44 = vsel %vm10356_vm7, %v10355_v54, %v10354_v52  ;;  %vm10358_vm3 = vmmov %vm10356_vm7  ;;  %v2793_v57 = vadd.f32 %v2785_v9, %v2731_v13  ;;  %v7577_v11 = vadd.f32 %v2786_v22, %v2732_v62  ;;  %v10363_v25 = vld [vmem:[#allocation137_spill] sm:$0xff]  ;;  %v10370_v34 = vld [vmem:[#allocation90_spill] sm:$0xff]  ;;  %3781 = vrot.lane.b32.xlu1 %v10250_v4, %s4486_s11 }
 0x5ae   :  { %v2913_v14 = vsel %vm10358_vm3, %v10354_v52, %v10357_v47  ;;  %10359 = vst [vmem:[#allocation153_spill] sm:$0xff] %v7562_v24  ;;  %vm10361_vm1 = vmmov %vm10358_vm3  ;;  %v2853_v5 = vmul.f32 %v10353_v56, %v2841_v63  ;;  %vm10364_vm10 = vcmask 457728   ;;  %vm10366_vm7 = vnez %v10365_v45  ;;  %3791 = vrot.lane.b32.xlu0 %v10370_v34, %s4486_s11  ;;  %v10371_v9 = vld [vmem:[#allocation142_spill] sm:$0xff]  ;;  %v10374_v63 = vld [vmem:[#allocation21_spill] sm:$0xff] }
 0x5af   :  { %v2911_v37 = vsel %vm10361_vm1, %v10360_v35, %v10355_v54  ;;  %10362 = vst [vmem:[#allocation102_spill] sm:$0xff] %v7577_v11  ;;  %v2761_v39 = vsel %vm10364_vm10, %v10345_v3, %v10363_v25  ;;  %vm2803_vm3 = vmand %vm7302_vm15, %vm10366_vm7  ;;  %vm10369_vm8 = vcmask 449536   ;;  %v2787_v13 = vmul.f32 %v10336_v20, %v2775_v41  ;;  %v10372_v62 = vld [vmem:[#allocation138_spill] sm:$0xff]  ;;  %v10376_v52 = vld [vmem:[#allocation27_spill] sm:$0xff]  ;;  %v7599_v54 = vpop.permute.xlu1 %3039 }
 0x5b0   :  { %v2829_v58 = vsel %vm10369_vm8, %v10368_v50, %v10367_v46  ;;  %vm10373_vm2 = vcmask 64512   ;;  %vm10375_vm1 = vnez %v10374_v63  ;;  %vm10377_vm10 = vnez %v10376_v52  ;;  %10378 = vst [vmem:[#allocation111_spill] sm:$0xff] %v7599_v54  ;;  %v10379_v35 = vld [vmem:[#allocation24_spill] sm:$0xff]  ;;  %v10382_v38 = vld [vmem:[#allocation130_spill] sm:$0xff]  ;;  %v7612_v63 = vpop.permute.xlu0 %3501  ;;  %v10396_v54 = vld [vmem:[#allocation89_spill] sm:$0xff] }
 0x5b1   :  { %v2975_v22 = vsel %vm10373_vm2, %v10372_v62, %v10371_v9  ;;  %v2928_v3 = vsel %vm10375_vm1, %v2912_v44, 0.0  ;;  %v2929_v8 = vsel %vm10377_vm10, %v2913_v14, 0.0  ;;  %vm10380_vm15 = vnez %v10379_v35  ;;  %10384 = vst [vmem:[#allocation113_spill] sm:$0xff] %v7612_v63  ;;  %v10394_v35 = vld [vmem:[#allocation46_spill] sm:$0xff]  ;;  %v10398_v24 = vld [vmem:[#allocation161_spill] sm:$0xff]  ;;  %3513 = vrot.lane.b32.xlu1 %v5973_v6, %s4485_s10 }
 0x5b2   :  { %v2927_v40 = vsel %vm10380_vm15, %v2911_v37, 0.0  ;;  %v7604_v49 = vmul.f32 %v10336_v20, %v2776_v48  ;;  %vm10383_vm8 = vcmask 457728   ;;  %v2854_v11 = vmul.f32 %v10353_v56, %v2842_v60  ;;  %v10388_v48 = vld [vmem:[#allocation181_spill] sm:$0xff]  ;;  %3951 = vrot.lane.b32.xlu0 %v10396_v54, %s4483_s8  ;;  %v10495_v45 = vld [vmem:[#allocation34_spill] sm:$0xff] }
 0x5b3   :  { %v7609_v41 = vsel %vm10383_vm8, %v10363_v25, %v10382_v38  ;;  %v2777_v44 = vsel %vm7361_vm4, %v2761_v39, 0.0  ;;  %v2861_v14 = vadd.f32 %v2853_v5, %v2791_v43  ;;  %v2845_v52 = vsel %vm2803_vm3, %v2829_v58, 0.0  ;;  %v10389_v38 = vld [vmem:[#allocation157_spill] sm:$0xff]  ;;  %v10392_v43 = vld [vmem:[#allocation63_spill] sm:$0xff] }
 0x5b4   :  { %10381 = vst [vmem:[#allocation104_spill] sm:$0xff] %v7604_v49  ;;  %vm10385_vm2 = vcmp.ge.s32.totalorder %v10187_v36, 1  ;;  %vm10390_vm10 = vcmask 72704   ;;  %vm10391_vm15 = vcmp.ge.s32.totalorder %v10244_v7, 1  ;;  %v2940_v5 = vmul.f32 %v10392_v43, %v2928_v3  ;;  %v10393_v58 = vld [vmem:[#allocation149_spill] sm:$0xff]  ;;  %v7650_v54 = vpop.permute.xlu0 %3345  ;;  %v10413_v3 = vld [vmem:[#allocation146_spill] sm:$0xff] }
 0x5b5   :  { %vm7620_vm1 = vmand %vm10385_vm2, %vm10318_vm14  ;;  %v2915_v25 = vsel %vm10390_vm10, %v10389_v38, %v10388_v48  ;;  %v2991_v60 = vsel %vm10391_vm15, %v2975_v22, 0.0  ;;  %v2941_v39 = vmul.f32 %v10392_v43, %v2929_v8  ;;  %vm10395_vm3 = vcmask 64512   ;;  %v7642_v22 = vpop.permute.xlu1 %3195  ;;  %10400 = vst [vmem:[#allocation59_spill] sm:$0xff] %v7650_v54  ;;  %v10406_v37 = vld [vmem:[#allocation29_spill] sm:$0xff]  ;;  %3641 = vrot.lane.b32.xlu1 %v10188_v16, %s4479_s28 }
 0x5b6   :  { %v2973_v63 = vsel %vm10395_vm3, %v10394_v35, %v10393_v58  ;;  %v2939_v23 = vmul.f32 %v10392_v43, %v2927_v40  ;;  %v2795_v48 = vadd.f32 %v2787_v13, %v2733_v17  ;;  %v2863_v49 = vadd.f32 %v2855_v59, %v2793_v57  ;;  %v10402_v40 = vld [vmem:[#allocation64_spill] sm:$0xff]  ;;  %v10403_v13 = vld [vmem:[#allocation11_spill] sm:$0xff]  ;;  %vm10405_vm10 = vmmov %vm10395_vm3 }
 0x5b7   :  { %vm10399_vm8 = vcmask 56320   ;;  %v2862_v8 = vadd.f32 %v2854_v11, %v2792_v29  ;;  %v2857_v35 = vmul.f32 %v10353_v56, %v2845_v52  ;;  %v2931_v32 = vsel %vm7620_vm1, %v2915_v25, 0.0  ;;  %v10427_v56 = vld [vmem:[#allocation176_spill] sm:$0xff] }
 0x5b8   :  { %v3045_v9 = vsel %vm10399_vm8, %v10398_v24, %v10397_v27  ;;  %v7653_v17 = vmul.f32 %v10336_v20, %v2777_v44  ;;  %v3003_v59 = vmul.f32 %v10402_v40, %v2991_v60  ;;  %v2947_v57 = vadd.f32 %v2939_v23, %v2861_v14  ;;  %v10408_v44 = vld [vmem:[#allocation84_spill] sm:$0xff]  ;;  %vm10411_vm15 = vmmov %vm10399_vm8 }
 0x5b9   :  { %vm10404_vm2 = vcmp.ge.s32.totalorder %v10403_v13, 1  ;;  %v2948_v29 = vadd.f32 %v2940_v5, %v2862_v8  ;;  %v2949_v11 = vadd.f32 %v2941_v39, %v2863_v49  ;;  %v2974_v52 = vsel %vm10405_vm10, %v10393_v58, %v10372_v62  ;;  %4075 = vrot.lane.b32.xlu0 %v10408_v44, %s4492_s17  ;;  %v10409_v60 = vld [vmem:[#allocation144_spill] sm:$0xff]  ;;  %v10418_v5 = vld [vmem:[#allocation147_spill] sm:$0xff]  ;;  %vm10419_vm10 = vmmov %vm10411_vm15  ;;  %v7685_v58 = vpop.permute.xlu1 %3335  ;;  %v7694_v44 = vpop.permute.xlu0 %3505  ;;  %3785 = vrot.lane.b32.xlu1 %v10221_v42, %s4486_s11 }
 0x5ba   :  { %10401 = vst [vmem:[#allocation106_spill] sm:$0xff] %v7653_v17  ;;  %v2989_v27 = vsel %vm10404_vm2, %v2973_v63, 0.0  ;;  %vm10407_vm1 = vnez %v10406_v37  ;;  %v10410_v23 = vld [vmem:[#allocation68_spill] sm:$0xff]  ;;  %v10412_v63 = vld [vmem:[#allocation166_spill] sm:$0xff]  ;;  %v2943_v49 = vmul.f32 %v10392_v43, %v2931_v32  ;;  %vm10414_vm8 = vcmp.ge.s32.totalorder %v10187_v36, 1  ;;  %10424 = vst [vmem:[#allocation115_spill] sm:$0xff] %v7694_v44 }
 0x5bb   :  { %v3061_v25 = vsel %vm10407_vm1, %v3045_v9, 0.0  ;;  %v3043_v14 = vsel %vm10411_vm15, %v10410_v23, %v10409_v60  ;;  %v2977_v54 = vsel %vm10395_vm3, %v10413_v3, %v10412_v63  ;;  %vm7678_vm2 = vmand %vm10414_vm8, %vm10366_vm7  ;;  %v10417_v9 = vld [vmem:[#allocation92_spill] sm:$0xff]  ;;  %v2865_v8 = vadd.f32 %v2857_v35, %v2795_v48  ;;  %v10421_v23 = vld [vmem:[#allocation186_spill] sm:$0xff] }
 0x5bc   :  { %v3047_v39 = vsel %vm10419_vm10, %v10418_v5, %v10417_v9  ;;  %v3001_v37 = vmul.f32 %v10402_v40, %v2989_v27  ;;  %vm10420_vm1 = vmmov %vm10419_vm10  ;;  %v10422_v63 = vld [vmem:[#allocation48_spill] sm:$0xff]  ;;  %vm10423_vm15 = vcmask 7168   ;;  %v10428_v9 = vld [vmem:[#allocation150_spill] sm:$0xff] }
 0x5bd   :  { %v3044_v32 = vsel %vm10420_vm1, %v10409_v60, %v10398_v24  ;;  %v3105_v17 = vsel %vm10423_vm15, %v10422_v63, %v10421_v23  ;;  %v10425_v43 = vld [vmem:[#allocation8_spill] sm:$0xff]  ;;  %vm10429_vm8 = vmmov %vm10423_vm15  ;;  %v10430_v48 = vld [vmem:[#allocation65_spill] sm:$0xff]  ;;  %vm10435_vm15 = vcmp.ge.s32.totalorder %v10187_v36, 1  ;;  %v3063_v44 = vsel %vm7678_vm2, %v3047_v39, 0.0  ;;  %v7729_v39 = vpop.permute.xlu0 %3563  ;;  %3851 = vrot.lane.b32.xlu1 %v10250_v4, %s4482_s0 }
 0x5be   :  { %vm10426_vm3 = vcmp.ge.s32.totalorder %v10425_v43, 1  ;;  %v3107_v5 = vsel %vm10429_vm8, %v10428_v9, %v10427_v56  ;;  %v3073_v35 = vmul.f32 %v10430_v48, %v3061_v25  ;;  %v10431_v27 = vld [vmem:[#allocation187_spill] sm:$0xff]  ;;  %vm10432_vm10 = vmmov %vm10429_vm8  ;;  %v10433_v24 = vld [vmem:[#allocation25_spill] sm:$0xff]  ;;  %v2993_v63 = vsel %vm10435_vm15, %v2977_v54, 0.0  ;;  %10441 = vst [vmem:[#allocation40_spill] sm:$0xff] %v7729_v39 }
 0x5bf   :  { %v2990_v3 = vsel %vm10426_vm3, %v2974_v52, 0.0  ;;  %v3109_v46 = vsel %vm10432_vm10, %v10431_v27, %v7415_v28  ;;  %vm10434_vm1 = vnez %v10433_v24  ;;  %v3011_v52 = vadd.f32 %v3003_v59, %v2949_v11  ;;  %v10436_v56 = vld [vmem:[#allocation87_spill] sm:$0xff]  ;;  %v10437_v25 = vld [vmem:[#allocation22_spill] sm:$0xff]  ;;  %v7722_v24 = vpop.permute.xlu1 %3339 }
 0x5c0   :  { %v3059_v60 = vsel %vm10434_vm1, %v3043_v14, 0.0  ;;  %4079 = vrot.lane.b32.xlu0 %v10436_v56, %s4492_s17  ;;  %vm10438_vm3 = vnez %v10437_v25  ;;  %v2951_v28 = vadd.f32 %v2943_v49, %v2865_v8  ;;  %v3106_v27 = vsel %vm10429_vm8, %v10421_v23, %v10428_v9  ;;  %v10507_v4 = vld [vmem:[#allocation158_spill] sm:$0xff] }
 0x5c1   :  { %v3060_v7 = vsel %vm10438_vm3, %v3044_v32, 0.0  ;;  %vm10439_vm10 = vnez %v9609_v33  ;;  %v3002_v54 = vmul.f32 %v10402_v40, %v2990_v3  ;;  %v3009_v59 = vadd.f32 %v3001_v37, %v2947_v57  ;;  %v10445_v32 = vld [vmem:[#allocation95_spill] sm:$0xff]  ;;  %3643 = vrot.lane.b32.xlu1 %v10370_v34, %s4479_s28 }
 0x5c2   :  { %v3121_v14 = vsel %vm10439_vm10, %v3105_v17, 0.0  ;;  %vm10440_vm2 = vnez %v9636_v18  ;;  %v3125_v62 = vsel %vm10318_vm14, %v3109_v46, 0.0  ;;  %vm10442_vm1 = vcmask 449536  }
 0x5c3   :  { %v3123_v11 = vsel %vm10440_vm2, %v3107_v5, 0.0  ;;  %v2828_v49 = vsel %vm10442_vm1, %v10333_v15, %v10368_v50  ;;  %v3005_v9 = vmul.f32 %v10402_v40, %v2993_v63  ;;  %v3081_v17 = vadd.f32 %v3073_v35, %v3011_v52  ;;  %v10444_v5 = vld [vmem:[#allocation45_spill] sm:$0xff] }
 0x5c4   :  { %v3075_v8 = vmul.f32 %v10430_v48, %v3063_v44  ;;  %v3071_v3 = vmul.f32 %v10430_v48, %v3059_v60  ;;  %v3072_v57 = vmul.f32 %v10430_v48, %v3060_v7  ;;  %vm10443_vm15 = vnez %v9598_v31  ;;  %3793 = vrot.lane.b32.xlu0 %v5973_v6, %s4486_s11  ;;  %v10446_v44 = vld [vmem:[#allocation99_spill] sm:$0xff]  ;;  %v7750_v60 = vpop.permute.xlu1 %3041 }
 0x5c5   :  { %v3122_v46 = vsel %vm10443_vm15, %v3106_v27, 0.0  ;;  %v3133_v37 = vmul.f32 %v10444_v5, %v3121_v14  ;;  %v3135_v15 = vmul.f32 %v10444_v5, %v3123_v11  ;;  %v3013_v50 = vadd.f32 %v3005_v9, %v2951_v28  ;;  %v7760_v28 = vpop.permute.xlu0 %3347 }
 0x5c6   :  { %vm10447_vm3 = vcmask 1039360   ;;  %v3137_v35 = vmul.f32 %v10444_v5, %v3125_v62  ;;  %v3010_v7 = vadd.f32 %v3002_v54, %v2948_v29  ;;  %vm10448_vm8 = vcmask 72704   ;;  %10450 = vst [vmem:[#allocation108_spill] sm:$0xff] %v7760_v28  ;;  %v10452_v54 = vld [vmem:[#allocation151_spill] sm:$0xff] }
 0x5c7   :  { %v3205_v23 = vsel %vm10447_vm3, %v10446_v44, %v10445_v32  ;;  %v7755_v27 = vsel %vm10448_vm8, %v10357_v47, %v10389_v38  ;;  %v3079_v63 = vadd.f32 %v3071_v3, %v3009_v59  ;;  %vm10449_vm1 = vmmov %vm10447_vm3  ;;  %vm10451_vm2 = vnez %v9631_v10 }
 0x5c8   :  { %v3209_v52 = vsel %vm10449_vm1, %v7642_v22, %v7365_v19  ;;  %vm2802_vm3 = vmand %vm10309_vm12, %vm10451_vm2  ;;  %v3143_v25 = vadd.f32 %v3135_v15, %v3081_v17  ;;  %v3134_v29 = vmul.f32 %v10444_v5, %v3122_v46  ;;  %v3083_v14 = vadd.f32 %v3075_v8, %v3013_v50  ;;  %3953 = vrot.lane.b32.xlu0 %v10188_v16, %s4483_s8  ;;  %v10455_v17 = vld [vmem:[#allocation93_spill] sm:$0xff]  ;;  %v10456_v8 = vld [vmem:[#allocation148_spill] sm:$0xff] }
 0x5c9   :  { %vm10453_vm8 = vcmask 990208   ;;  %v10454_v38 = vsel %vm7376_vm5, %v7609_v41, 0.0  ;;  %v3080_v11 = vadd.f32 %v3072_v57, %v3010_v7  ;;  %v3141_v62 = vadd.f32 %v3133_v37, %v3079_v63  ;;  %v7791_v57 = vpop.permute.xlu1 %3101  ;;  %v10458_v37 = vld [vmem:[#allocation28_spill] sm:$0xff]  ;;  %v10460_v50 = vld [vmem:[#allocation26_spill] sm:$0xff]  ;;  %v10464_v7 = vld [vmem:[#allocation47_spill] sm:$0xff] }
 0x5ca   :  { %v3291_v47 = vsel %vm10453_vm8, %v7472_v30, %v10452_v54  ;;  %v7777_v59 = vmul.f32 %v10336_v20, %v10454_v38  ;;  %v3221_v9 = vsel %vm10337_vm9, %v3205_v23, 0.0  ;;  %v3206_v30 = vsel %vm10449_vm1, %v10445_v32, %v10455_v17  ;;  %vm10457_vm8 = vmmov %vm10449_vm1  ;;  %v7806_v23 = vpop.permute.xlu0 %3507  ;;  %v10465_v63 = vld [vmem:[#allocation162_spill] sm:$0xff] }
 0x5cb   :  { %v3207_v3 = vsel %vm10457_vm8, %v10455_v17, %v10456_v8  ;;  %v3145_v41 = vadd.f32 %v3137_v35, %v3083_v14  ;;  %v3225_v20 = vsel %vm10366_vm7, %v3209_v52, 0.0  ;;  %v2844_v46 = vsel %vm2802_vm3, %v2828_v49, 0.0  ;;  %10463 = vst [vmem:[#allocation117_spill] sm:$0xff] %v7806_v23  ;;  %v10526_v23 = vld [vmem:[#allocation180_spill] sm:$0xff] }
 0x5cc   :  { %vm10459_vm9 = vnez %v10458_v37  ;;  %vm10461_vm1 = vnez %v10460_v50  ;;  %vm10462_vm8 = vcmask 982016   ;;  %v3142_v35 = vadd.f32 %v3134_v29, %v3080_v11  ;;  %4081 = vrot.lane.b32.xlu0 %v10221_v42, %s4492_s17  ;;  %v10476_v50 = vld [vmem:[#allocation23_spill] sm:$0xff] }
 0x5cd   :  { %v3307_v32 = vsel %vm10461_vm1, %v3291_v47, 0.0  ;;  %v3353_v44 = vsel %vm10462_vm8, %v7685_v58, %v7306_v21  ;;  %v3233_v53 = vmul.f32 %v10464_v7, %v3221_v9  ;;  %v3163_v52 = vadd.f32 %v10465_v63, %v3143_v25  ;;  %v10467_v47 = vld [vmem:[#allocation154_spill] sm:$0xff]  ;;  %v10473_v9 = vld [vmem:[#allocation69_spill] sm:$0xff] }
 0x5ce   :  { %vm10466_vm12 = vcmask 990208   ;;  %v3222_v14 = vsel %vm10347_vm13, %v3206_v30, 0.0  ;;  %v3223_v58 = vsel %vm10332_vm0, %v3207_v3, 0.0  ;;  %v3237_v38 = vmul.f32 %v10464_v7, %v3225_v20  ;;  %v10474_v30 = vld [vmem:[#allocation174_spill] sm:$0xff]  ;;  %v7838_v20 = vpop.permute.xlu1 %3281 }
 0x5cf   :  { %v3292_v49 = vsel %vm10466_vm12, %v10452_v54, %v7511_v55  ;;  %vm10468_vm3 = vmmov %vm10466_vm12  ;;  %vm10469_vm1 = vcmp.le.s32.totalorder %v10187_v36, 6  ;;  %v10472_v54 = vld [vmem:[#allocation159_spill] sm:$0xff]  ;;  %v3319_v17 = vmul.f32 %v10473_v9, %v3307_v32  ;;  %v3165_v3 = vadd.f32 %v10474_v30, %v3145_v41  ;;  %v10487_v25 = vld [vmem:[#allocation14_spill] sm:$0xff] }
 0x5d0   :  { %v3293_v29 = vsel %vm10468_vm3, %v7511_v55, %v10467_v47  ;;  %vm7829_vm8 = vmand %vm10469_vm1, %vm10318_vm14  ;;  %v3161_v11 = vadd.f32 %v10472_v54, %v3141_v62  ;;  %vm10475_vm12 = vcmp.le.s32.totalorder %v10403_v13, 6  ;;  %vm10477_vm3 = vnez %v10476_v50  ;;  %v7848_v54 = vpop.permute.xlu0 %3631  ;;  %v10482_v30 = vld [vmem:[#allocation31_spill] sm:$0xff]  ;;  %3863 = vrot.lane.b32.xlu0 %v5973_v6, %s4482_s0 }
 0x5d1   :  { %v3369_v55 = vsel %vm10475_vm12, %v3353_v44, 0.0  ;;  %v3308_v63 = vsel %vm10477_vm3, %v3292_v49, 0.0  ;;  %vm10478_vm1 = vcmask 982016   ;;  %10480 = vst [vmem:[#allocation110_spill] sm:$0xff] %v7848_v54  ;;  %vm10481_vm14 = vcmask 990208  }
 0x5d2   :  { %v3354_v15 = vsel %vm10478_vm1, %v7306_v21, %v7722_v24  ;;  %vm10479_vm0 = vmmov %vm10478_vm1  ;;  %v3295_v41 = vsel %vm10481_vm14, %v7838_v20, %v7514_v2  ;;  %v3234_v32 = vmul.f32 %v10464_v7, %v3222_v14  ;;  %v3235_v44 = vmul.f32 %v10464_v7, %v3223_v58  ;;  %v10485_v14 = vld [vmem:[#allocation160_spill] sm:$0xff]  ;;  %v3406_v26 = vpop.permute.xlu1 %3405  ;;  %v10576_v7 = vld [vmem:[#allocation103_spill] sm:$0xff] }
 0x5d3   :  { %v3355_v62 = vsel %vm10479_vm0, %v7722_v24, %v7433_v1  ;;  %vm10483_vm12 = vnez %v10482_v30  ;;  %v3311_v21 = vsel %vm7829_vm8, %v3295_v41, 0.0  ;;  %v3241_v24 = vadd.f32 %v3233_v53, %v3161_v11 }
 0x5d4   :  { %v3309_v49 = vsel %vm10483_vm12, %v3293_v29, 0.0  ;;  %v3245_v50 = vadd.f32 %v3237_v38, %v3165_v3  ;;  %v3381_v61 = vmul.f32 %v10484_v0, %v3369_v55  ;;  %v3323_v54 = vmul.f32 %v10473_v9, %v3311_v21  ;;  %v7874_v3 = vpop.permute.xlu0 %3635  ;;  %v10490_v55 = vld [vmem:[#allocation58_spill] sm:$0xff]  ;;  %4015 = vrot.lane.b32.xlu0 %v10188_v16, %s4484_s9 }
 0x5d5   :  { %v3162_v58 = vadd.f32 %v10485_v14, %v3142_v35  ;;  %v3320_v30 = vmul.f32 %v10473_v9, %v3308_v63  ;;  %vm10486_vm14 = vcmp.le.s32.totalorder %v10425_v43, 6  ;;  %vm10488_vm0 = vcmp.le.s32.totalorder %v10487_v25, 6  ;;  %10489 = vst [vmem:[#allocation119_spill] sm:$0xff] %v7874_v3  ;;  %v10492_v35 = vld [vmem:[#allocation173_spill] sm:$0xff]  ;;  %v10493_v14 = vld [vmem:[#allocation140_spill] sm:$0xff] }
 0x5d6   :  { %v3370_v29 = vsel %vm10486_vm14, %v3354_v15, 0.0  ;;  %v3371_v41 = vsel %vm10488_vm0, %v3355_v62, 0.0  ;;  %v3327_v53 = vadd.f32 %v3319_v17, %v3241_v24  ;;  %v3321_v38 = vmul.f32 %v10473_v9, %v3309_v49  ;;  %v10497_v17 = vld [vmem:[#allocation89_spill] sm:$0xff]  ;;  %v10498_v49 = vld [vmem:[#allocation179_spill] sm:$0xff]  ;;  %v10547_v9 = vld [vmem:[#allocation172_spill] sm:$0xff] }
 0x5d7   :  { %v7872_v11 = vadd.f32 %v3323_v54, %v3245_v50  ;;  %vm10491_vm8 = vcmask 973824   ;;  %vm10494_vm3 = vcmask 449536   ;;  %v3242_v12 = vadd.f32 %v3234_v32, %v3162_v58  ;;  %3787 = vrot.lane.b32.xlu1 %v10497_v17, %s4486_s11  ;;  %v10501_v3 = vld [vmem:[#allocation49_spill] sm:$0xff]  ;;  %v10503_v32 = vld [vmem:[#allocation146_spill] sm:$0xff]  ;;  %v10523_v54 = vld [vmem:[#allocation107_spill] sm:$0xff] }
 0x5d8   :  { %v3423_v21 = vsel %vm10491_vm8, %v3406_v26, %v10490_v55  ;;  %v2830_v63 = vsel %vm10494_vm3, %v10493_v14, %v10492_v35  ;;  %v3243_v15 = vadd.f32 %v3235_v44, %v3163_v52  ;;  %vm10496_vm1 = vnez %v10495_v45  ;;  %v10502_v45 = vld [vmem:[#allocation43_spill] sm:$0xff]  ;;  %v10504_v44 = vld [vmem:[#allocation142_spill] sm:$0xff]  ;;  %vm10508_vm8 = vmmov %vm10494_vm3  ;;  %v7907_v42 = vpop.permute.xlu0 %3417  ;;  %4017 = vrot.lane.b32.xlu0 %v10370_v34, %s4484_s9 }
 0x5d9   :  { %v3439_v62 = vsel %vm10496_vm1, %v3423_v21, 0.0  ;;  %vm10499_vm12 = vnez %v10498_v49  ;;  %v3389_v24 = vadd.f32 %v3381_v61, %v3327_v53  ;;  %v3382_v26 = vmul.f32 %v10484_v0, %v3370_v29  ;;  %v10506_v21 = vld [vmem:[#allocation183_spill] sm:$0xff]  ;;  %v3410_v53 = vpop.permute.xlu1 %3409  ;;  %v10509_v29 = vld [vmem:[#allocation182_spill] sm:$0xff]  ;;  %10511 = vst [vmem:[#allocation60_spill] sm:$0xff] %v7907_v42 }
 0x5da   :  { %v3383_v50 = vmul.f32 %v10484_v0, %v3371_v41  ;;  %v3451_v14 = vmul.f32 %v10501_v3, %v3439_v62  ;;  %v2856_v52 = vmul.f32 %v10502_v45, %v2844_v46  ;;  %vm10505_vm0 = vcmask 64512  }
 0x5db   :  { %v2976_v58 = vsel %vm10505_vm0, %v10504_v44, %v10503_v32  ;;  %v2832_v39 = vsel %vm10508_vm8, %v10507_v4, %v10506_v21  ;;  %v3328_v61 = vadd.f32 %v3320_v30, %v3242_v12  ;;  %vm10510_vm3 = vnez %v10509_v29  ;;  %v10513_v32 = vld [vmem:[#allocation153_spill] sm:$0xff]  ;;  %v10516_v30 = vld [vmem:[#allocation63_spill] sm:$0xff]  ;;  %vm10517_vm8 = vmand %vm7330_vm6, %vm10499_vm12 }
 0x5dc   :  { %v3329_v41 = vadd.f32 %v3321_v38, %v3243_v15  ;;  %v7905_v62 = vadd.f32 %v3451_v14, %v3389_v24  ;;  %vm10512_vm14 = vcmask 973824   ;;  %v10515_v12 = vsel %vm10459_vm9, %v7755_v27, 0.0  ;;  %v10518_v15 = vld [vmem:[#allocation33_spill] sm:$0xff]  ;;  %v10520_v14 = vld [vmem:[#allocation35_spill] sm:$0xff]  ;;  %4087 = vrot.lane.b32.xlu0 %v10370_v34, %s4492_s17 }
 0x5dd   :  { %v3424_v46 = vsel %vm10512_vm14, %v10490_v55, %v3410_v53  ;;  %vm10514_vm0 = vmmov %vm10512_vm14  ;;  %v2942_v21 = vmul.f32 %v10516_v30, %v10515_v12  ;;  %v2846_v38 = vsel %vm10517_vm8, %v2830_v63, 0.0  ;;  %vm10519_vm1 = vnez %v10518_v15  ;;  %v10524_v63 = vld [vmem:[#allocation104_spill] sm:$0xff]  ;;  %v10525_v15 = vld [vmem:[#allocation102_spill] sm:$0xff] }
 0x5de   :  { %v3425_v44 = vsel %vm10514_vm0, %v3410_v53, %v10513_v32  ;;  %v3440_v24 = vsel %vm10519_vm1, %v3424_v46, 0.0  ;;  %vm10521_vm14 = vnez %v10520_v14  ;;  %v10522_v53 = vld [vmem:[#allocation84_spill] sm:$0xff]  ;;  %v3390_v37 = vadd.f32 %v3382_v26, %v3328_v61  ;;  %vm10530_vm0 = vmand %vm7376_vm5, %vm10510_vm3  ;;  %v3104_v61 = vpop.permute.xlu1 %3103 }
 0x5df   :  { %v3441_v55 = vsel %vm10521_vm14, %v3425_v44, 0.0  ;;  %3943 = vrot.lane.b32.xlu1 %v10522_v53, %s4483_s8  ;;  %v3391_v42 = vadd.f32 %v3383_v50, %v3329_v41  ;;  %v3452_v27 = vmul.f32 %v10501_v3, %v3440_v24  ;;  %v2796_v32 = vadd.f32 %v10524_v63, %v10523_v54  ;;  %v10531_v41 = vld [vmem:[#allocation16_spill] sm:$0xff]  ;;  %v10538_v54 = vld [vmem:[#allocation57_spill] sm:$0xff] }
 0x5e0   :  { %v3453_v12 = vmul.f32 %v10501_v3, %v3441_v55  ;;  %v2864_v46 = vadd.f32 %v2856_v52, %v10525_v15  ;;  %vm10527_vm6 = vnez %v10526_v23  ;;  %vm10529_vm1 = vcmask 449536   ;;  %v10534_v14 = vld [vmem:[#allocation156_spill] sm:$0xff]  ;;  %v10544_v15 = vld [vmem:[#allocation39_spill] sm:$0xff]  ;;  %v10573_v23 = vld [vmem:[#allocation166_spill] sm:$0xff]  ;;  %4089 = vrot.lane.b32.xlu0 %v5973_v6, %s4492_s17 }
 0x5e1   :  { %vm2805_vm9 = vmand %vm7361_vm4, %vm10527_vm6  ;;  %v2831_v26 = vsel %vm10529_vm1, %v10492_v35, %v10507_v4  ;;  %v2848_v50 = vsel %vm10530_vm0, %v2832_v39, 0.0  ;;  %vm10532_vm8 = vcmp.ge.s32.totalorder %v10531_v41, 1  ;;  %vm10535_vm14 = vcmp.ge.s32.totalorder %v10534_v14, 1  ;;  %v10539_v4 = vld [vmem:[#allocation181_spill] sm:$0xff]  ;;  %v7965_v39 = vpop.permute.xlu0 %3569 }
 0x5e2   :  { %v2992_v24 = vsel %vm10532_vm8, %v2976_v58, 0.0  ;;  %vm7954_vm13 = vmand %vm10535_vm14, %vm10301_vm11  ;;  %vm10540_vm1 = vcmask 72704   ;;  %v7961_v35 = vadd.f32 %v3452_v27, %v3390_v37  ;;  %v7963_v63 = vadd.f32 %v3453_v12, %v3391_v42  ;;  %10543 = vst [vmem:[#allocation114_spill] sm:$0xff] %v7965_v39  ;;  %v10545_v58 = vld [vmem:[#allocation106_spill] sm:$0xff]  ;;  %v10549_v41 = vld [vmem:[#allocation169_spill] sm:$0xff]  ;;  %v8004_v44 = vpop.permute.xlu1 %3199 }
 0x5e3   :  { %v2916_v51 = vsel %vm10540_vm1, %v10539_v4, %v10538_v54  ;;  %v7969_v3 = vadd.f32 %v10545_v58, %v10544_v15  ;;  %v2950_v16 = vadd.f32 %v2942_v21, %v2864_v46  ;;  %v2858_v2 = vmul.f32 %v10502_v45, %v2846_v38  ;;  %v10553_v37 = vld [vmem:[#allocation101_spill] sm:$0xff]  ;;  %vm10555_vm14 = vmmov %vm10540_vm1  ;;  %3947 = vrot.lane.b32.xlu1 %v10436_v56, %s4483_s8  ;;  %v10556_v12 = vld [vmem:[#allocation100_spill] sm:$0xff] }
 0x5e4   :  { %10541 = vst [vmem:[#allocation112_spill] sm:$0xff] %v7961_v35  ;;  %10542 = vst [vmem:[#allocation121_spill] sm:$0xff] %v7963_v63  ;;  %vm10548_vm5 = vnez %v10547_v9  ;;  %vm10550_vm0 = vcmp.ge.s32.totalorder %v10549_v41, 1  ;;  %v10554_v42 = vld [vmem:[#allocation97_spill] sm:$0xff]  ;;  %v2798_v21 = vadd.f32 %v7777_v59, %v10556_v12  ;;  %v2847_v38 = vsel %vm2805_vm9, %v2831_v26, 0.0  ;;  %v10557_v4 = vld [vmem:[#allocation10_spill] sm:$0xff] }
 0x5e5   :  { %10546 = vst [vmem:[#allocation123_spill] sm:$0xff] %v7969_v3  ;;  %vm7976_vm8 = vmand %vm10550_vm0, %vm10548_vm5  ;;  %v2918_v27 = vsel %vm10555_vm14, %v10554_v42, %v10553_v37  ;;  %v2860_v46 = vmul.f32 %v10502_v45, %v2848_v50  ;;  %v10558_v15 = vand.u32 7, %v10557_v4  ;;  %v10559_v58 = vmov 0  ;;  %v10562_v12 = vld [vmem:[#allocation7_spill] sm:$0xff]  ;;  %v10567_v39 = vld [vmem:[#allocation13_spill] sm:$0xff] }
 0x5e6   :  { %v3004_v37 = vmul.f32 %v10402_v40, %v2992_v24  ;;  %v2932_v59 = vsel %vm7954_vm13, %v2916_v51, 0.0  ;;  %v10563_v26 = vand.u32 7, %v10562_v12  ;;  %v10564_v50 = vmov 0  ;;  %v10575_v51 = vld [vmem:[#allocation109_spill] sm:$0xff] }
 0x5e7   :  { %vm7997_vm1 = vcmp.le.s32.totalorder %v10558_v15, 6  ;;  %v10568_v3 = vand.u32 7, %v10567_v39  ;;  %v10569_v4 = vmov 0  ;;  %v10572_v15 = vld [vmem:[#allocation185_spill] sm:$0xff]  ;;  %vm10574_vm0 = vcmask 64512   ;;  %3729 = vrot.lane.b32.xlu1 %v10370_v34, %s4481_s30 }
 0x5e8   :  { %v10560_v58 = vsel %vm7997_vm1, 4294967295, %v10559_v58  ;;  %vm8008_vm4 = vcmp.le.s32.totalorder %v10563_v26, 6  ;;  %v2978_v24 = vsel %vm10574_vm0, %v10573_v23, %v10572_v15  ;;  %v2934_v55 = vsel %vm7976_vm8, %v2918_v27, 0.0  ;;  %vm10577_vm13 = vmmov %vm10574_vm0  ;;  %v8026_v26 = vpop.permute.xlu0 %3717  ;;  %v10581_v23 = vld [vmem:[#allocation147_spill] sm:$0xff]  ;;  %v10582_v15 = vld [vmem:[#allocation184_spill] sm:$0xff] }
 0x5e9   :  { %10561 = vst [vmem:[#allocation41_spill] sm:$0xff] %v10560_v58  ;;  %v10565_v50 = vsel %vm8008_vm4, 4294967295, %v10564_v50  ;;  %vm8014_vm9 = vcmp.le.s32.totalorder %v10568_v3, 6  ;;  %v2980_v12 = vsel %vm10577_vm13, %v10576_v7, %v10575_v51  ;;  %10578 = vst [vmem:[#allocation118_spill] sm:$0xff] %v8026_v26  ;;  %vm10579_vm14 = vcmask 1039360  }
 0x5ea   :  { %10566 = vst [vmem:[#allocation116_spill] sm:$0xff] %v10565_v50  ;;  %v10570_v4 = vsel %vm8014_vm9, 4294967295, %v10569_v4  ;;  %v8031_v3 = vsel %vm10579_vm14, %v7365_v19, %v8004_v44  ;;  %v8034_v39 = vmul.f32 %v10502_v45, %v2847_v38  ;;  %v2866_v63 = vadd.f32 %v2858_v2, %v2796_v32  ;;  %v10587_v45 = vld [vmem:[#allocation187_spill] sm:$0xff]  ;;  %v10588_v38 = vld [vmem:[#allocation176_spill] sm:$0xff] }
 0x5eb   :  { %10571 = vst [vmem:[#allocation125_spill] sm:$0xff] %v10570_v4  ;;  %v3012_v35 = vadd.f32 %v3004_v37, %v2950_v16  ;;  %vm10583_vm0 = vcmask 56320   ;;  %vm10584_vm8 = vcmp.ge.s32.totalorder %v10549_v41, 1  ;;  %v2868_v19 = vadd.f32 %v2860_v46, %v2798_v21  ;;  %v10590_v32 = vld [vmem:[#allocation111_spill] sm:$0xff]  ;;  %3857 = vrot.lane.b32.xlu1 %v10497_v17, %s4482_s0  ;;  %v10632_v4 = vld [vmem:[#allocation113_spill] sm:$0xff] }
 0x5ec   :  { %10580 = vst [vmem:[#allocation127_spill] sm:$0xff] %v8034_v39  ;;  %v3046_v28 = vsel %vm10583_vm0, %v10582_v15, %v10581_v23  ;;  %vm8043_vm13 = vmand %vm10584_vm8, %vm10510_vm3  ;;  %vm10589_vm14 = vcmask 7168   ;;  %v2944_v2 = vmul.f32 %v10516_v30, %v2932_v59  ;;  %v3050_v37 = vsel %vm10583_vm0, %v10590_v32, %v7750_v60  ;;  %v10598_v46 = vld [vmem:[#allocation91_spill] sm:$0xff]  ;;  %v10599_v59 = vld [vmem:[#allocation92_spill] sm:$0xff]  ;;  %v8086_v58 = vpop.permute.xlu0 %3721 }
 0x5ed   :  { %v3108_v16 = vsel %vm10589_vm14, %v10588_v38, %v10587_v45  ;;  %vm10591_vm8 = vcmp.ge.s32.totalorder %v10403_v13, 1  ;;  %vm10594_vm6 = vcmp.ge.s32.totalorder %v10534_v14, 1  ;;  %v3048_v51 = vsel %vm10583_vm0, %v10599_v59, %v10598_v46  ;;  %v3344_v38 = vpop.permute.xlu1 %3343  ;;  %v10601_v13 = vld [vmem:[#allocation30_spill] sm:$0xff]  ;;  %10604 = vst [vmem:[#allocation120_spill] sm:$0xff] %v8086_v58  ;;  %v10606_v39 = vld [vmem:[#allocation59_spill] sm:$0xff]  ;;  %v10611_v46 = vld [vmem:[#allocation105_spill] sm:$0xff] }
 0x5ee   :  { %vm8062_vm7 = vmand %vm7997_vm1, %vm10591_vm8  ;;  %v2994_v21 = vsel %vm10594_vm6, %v2978_v24, 0.0  ;;  %v2946_v23 = vmul.f32 %v10516_v30, %v2934_v55  ;;  %vm10600_vm8 = vcmp.ge.s32.totalorder %v10549_v41, 1  ;;  %vm10603_vm1 = vcmask 7168   ;;  %v10608_v55 = vld [vmem:[#allocation20_spill] sm:$0xff]  ;;  %v10725_v15 = vld [vmem:[#allocation119_spill] sm:$0xff] }
 0x5ef   :  { %vm10595_vm14 = vmmov %vm10594_vm6  ;;  %v2996_v45 = vsel %vm10600_vm8, %v2980_v12, 0.0  ;;  %vm10602_vm6 = vnez %v10601_v13  ;;  %v3112_v26 = vsel %vm10603_vm1, %v7791_v57, %v3104_v61  ;;  %v10610_v12 = vld [vmem:[#allocation38_spill] sm:$0xff]  ;;  %v3006_v50 = vmul.f32 %v10402_v40, %v2994_v21  ;;  %4005 = vrot.lane.b32.xlu1 %v10522_v53, %s4484_s9 }
 0x5f0   :  { %vm8072_vm3 = vmand %vm10595_vm14, %vm10499_vm12  ;;  %v3062_v24 = vsel %vm10602_vm6, %v3046_v28, 0.0  ;;  %vm10605_vm14 = vcmask 982016   ;;  %vm10609_vm12 = vnez %v10608_v55  ;;  %v3066_v28 = vsel %vm8043_vm13, %v3050_v37, 0.0  ;;  %v10728_v37 = vld [vmem:[#allocation52_spill] sm:$0xff] }
 0x5f1   :  { %v8090_v34 = vsel %vm10605_vm14, %v7433_v1, %v3344_v38  ;;  %vm10607_vm0 = vmmov %vm10605_vm14  ;;  %v3124_v41 = vsel %vm10609_vm12, %v3108_v16, 0.0  ;;  %v2952_v1 = vadd.f32 %v2944_v2, %v2866_v63  ;;  %v3064_v16 = vsel %vm8072_vm3, %v3048_v51, 0.0  ;;  %v3500_v51 = vpop.permute.xlu1 %3499 }
 0x5f2   :  { %v3357_v59 = vsel %vm10607_vm0, %v3344_v38, %v10606_v39  ;;  %vm10612_vm8 = vmmov %vm10603_vm1  ;;  %vm10613_vm1 = vcmp.le.s32.totalorder %v10187_v36, 6  ;;  %vm10614_vm13 = vcmp.ge.s32.totalorder %v10425_v43, 1  ;;  %v3074_v38 = vmul.f32 %v10430_v48, %v3062_v24  ;;  %v10623_v24 = vld [vmem:[#allocation165_spill] sm:$0xff]  ;;  %v8155_v43 = vpop.permute.xlu0 %3511 }
 0x5f3   :  { %v3110_v13 = vsel %vm10612_vm8, %v10611_v46, %v10610_v12  ;;  %v3373_v61 = vsel %vm10613_vm1, %v3357_v59, 0.0  ;;  %v3008_v46 = vmul.f32 %v10402_v40, %v2996_v45  ;;  %vm8117_vm14 = vmand %vm8008_vm4, %vm10614_vm13  ;;  %vm10617_vm0 = vcmask 72704   ;;  %v10621_v59 = vld [vmem:[#allocation171_spill] sm:$0xff]  ;;  %4009 = vrot.lane.b32.xlu1 %v10436_v56, %s4484_s9 }
 0x5f4   :  { %v3385_v27 = vmul.f32 %v10484_v0, %v3373_v61  ;;  %v2917_v63 = vsel %vm10617_vm0, %v10538_v54, %v10554_v42  ;;  %v2954_v2 = vadd.f32 %v2946_v23, %v2868_v19  ;;  %v3128_v60 = vsel %vm10548_vm5, %v3112_v26, 0.0  ;;  %v10627_v26 = vld [vmem:[#allocation15_spill] sm:$0xff] }
 0x5f5   :  { %vm10618_vm3 = vcmp.ge.s32.totalorder %v10487_v25, 1  ;;  %vm10622_vm1 = vnez %v10621_v59  ;;  %vm10624_vm13 = vcmp.ge.s32.totalorder %v10623_v24, 1  ;;  %v3126_v54 = vsel %vm10301_vm11, %v3110_v13, 0.0 }
 0x5f6   :  { %vm8131_vm8 = vmand %vm8014_vm9, %vm10618_vm3  ;;  %v3078_v42 = vmul.f32 %v10430_v48, %v3066_v28  ;;  %v10628_v19 = vand.u32 7, %v10627_v26  ;;  %v10629_v23 = vmov 0  ;;  %v8153_v25 = vadd.f32 %v3385_v27, %v7872_v11 }
 0x5f7   :  { %vm8139_vm6 = vmand %vm10624_vm13, %vm10622_vm1  ;;  %vm10633_vm3 = vcmask 596992   ;;  %v3136_v13 = vmul.f32 %v10444_v5, %v3124_v41  ;;  %v3076_v28 = vmul.f32 %v10430_v48, %v3064_v16  ;;  %v3016_v11 = vadd.f32 %v3008_v46, %v2954_v2  ;;  %v10636_v16 = vld [vmem:[#allocation50_spill] sm:$0xff]  ;;  %v3504_v2 = vpop.permute.xlu1 %3503  ;;  %3731 = vrot.lane.b32.xlu1 %v5973_v6, %s4481_s30 }
 0x5f8   :  { %vm8148_vm0 = vcmp.le.s32.totalorder %v10628_v19, 6  ;;  %v3517_v58 = vsel %vm10633_vm3, %v3500_v51, %v10632_v4  ;;  %vm10634_vm13 = vmand %vm8062_vm7, %vm10439_vm10  ;;  %vm10635_vm9 = vcmask 1039360   ;;  %v3140_v21 = vmul.f32 %v10444_v5, %v3128_v60 }
 0x5f9   :  { %v10630_v23 = vsel %vm8148_vm0, 4294967295, %v10629_v23  ;;  %v3533_v26 = vsel %vm10634_vm13, %v3517_v58, 0.0  ;;  %v3208_v41 = vsel %vm10635_vm9, %v10456_v8, %v7642_v22  ;;  %vm10637_vm4 = vnez %v9636_v18  ;;  %v8188_v8 = vpop.permute.xlu0 %3639  ;;  %vm10638_vm9 = vmmov %vm10633_vm3 }
 0x5fa   :  { %10631 = vst [vmem:[#allocation129_spill] sm:$0xff] %v10630_v23  ;;  %v3545_v27 = vmul.f32 %v10636_v16, %v3533_v26  ;;  %vm3493_vm13 = vmand %vm8131_vm8, %vm10637_vm4  ;;  %v3082_v53 = vadd.f32 %v3074_v38, %v3012_v35  ;;  %v2933_v58 = vsel %vm8139_vm6, %v2917_v63, 0.0  ;;  %v3014_v51 = vadd.f32 %v3006_v50, %v2952_v1  ;;  %v10639_v26 = vld [vmem:[#allocation115_spill] sm:$0xff] }
 0x5fb   :  { %v3138_v46 = vmul.f32 %v10444_v5, %v3126_v54  ;;  %v3086_v19 = vadd.f32 %v3078_v42, %v3016_v11  ;;  %v3518_v60 = vsel %vm10638_vm9, %v10632_v4, %v3504_v2  ;;  %v3519_v18 = vsel %vm10633_vm3, %v3504_v2, %v10639_v26  ;;  %vm10640_vm6 = vmand %vm8117_vm14, %vm10443_vm15  ;;  %v10642_v42 = vld [vmem:[#allocation185_spill] sm:$0xff]  ;;  %v3202_v56 = vpop.permute.xlu1 %3201  ;;  %v10652_v2 = vld [vmem:[#allocation32_spill] sm:$0xff] }
 0x5fc   :  { %v8186_v22 = vadd.f32 %v3545_v27, %v7905_v62  ;;  %v3084_v35 = vadd.f32 %v3076_v28, %v3014_v51  ;;  %v3224_v38 = vsel %vm10451_vm2, %v3208_v41, 0.0  ;;  %v3534_v50 = vsel %vm10640_vm6, %v3518_v60, 0.0  ;;  %v10645_v41 = vld [vmem:[#allocation112_spill] sm:$0xff] }
 0x5fd   :  { %v3535_v62 = vsel %vm3493_vm13, %v3519_v18, 0.0  ;;  %vm10641_vm9 = vcmask 990208   ;;  %v3148_v1 = vadd.f32 %v3140_v21, %v3086_v19  ;;  %v3546_v63 = vmul.f32 %v10636_v16, %v3534_v50  ;;  %v8220_v21 = vpop.permute.xlu0 %3779 }
 0x5fe   :  { %v3294_v4 = vsel %vm10641_vm9, %v10467_v47, %v7838_v20  ;;  %v3547_v61 = vmul.f32 %v10636_v16, %v3535_v62  ;;  %v3144_v54 = vadd.f32 %v3136_v13, %v3082_v53  ;;  %vm10643_vm3 = vcmask 64512   ;;  %v10646_v47 = vld [vmem:[#allocation121_spill] sm:$0xff]  ;;  %10647 = vst [vmem:[#allocation122_spill] sm:$0xff] %v8220_v21  ;;  %v10649_v53 = vld [vmem:[#allocation71_spill] sm:$0xff]  ;;  %v10657_v62 = vld [vmem:[#allocation178_spill] sm:$0xff] }
 0x5ff   :  { %v2979_v28 = vsel %vm10643_vm3, %v10642_v42, %v10576_v7  ;;  %v3146_v11 = vadd.f32 %v3138_v46, %v3084_v35  ;;  %vm10644_vm13 = vnez %v10498_v49  ;;  %v8215_v27 = vadd.f32 %v3546_v63, %v10645_v41  ;;  %v10651_v46 = vld [vmem:[#allocation47_spill] sm:$0xff]  ;;  %v10655_v35 = vld [vmem:[#allocation108_spill] sm:$0xff]  ;;  %v8265_v41 = vpop.permute.xlu1 %3285 }
 0x600   :  { %v3226_v18 = vsel %vm10644_vm13, %v8031_v3, 0.0  ;;  %v8218_v20 = vadd.f32 %v3547_v61, %v10646_v47  ;;  %vm10648_vm6 = vcmask 1039360   ;;  %v2945_v51 = vmul.f32 %v10516_v30, %v2933_v58  ;;  %v10667_v42 = vld [vmem:[#allocation175_spill] sm:$0xff]  ;;  %v10669_v47 = vld [vmem:[#allocation180_spill] sm:$0xff] }
 0x601   :  { %v8224_v13 = vsel %vm10648_vm6, %v8004_v44, %v3202_v56  ;;  %vm10650_vm9 = vmmov %vm10648_vm6  ;;  %v3236_v3 = vmul.f32 %v10651_v46, %v3224_v38  ;;  %vm10653_vm3 = vnez %v10652_v2  ;;  %vm10654_vm4 = vnez %v10509_v29  ;;  %v10686_v58 = vld [vmem:[#allocation127_spill] sm:$0xff] }
 0x602   :  { %v3212_v7 = vsel %vm10650_vm9, %v3202_v56, %v10649_v53  ;;  %v3310_v19 = vsel %vm10653_vm3, %v3294_v4, 0.0  ;;  %vm10656_vm6 = vcmask 982016   ;;  %v3238_v50 = vmul.f32 %v10651_v46, %v3226_v18  ;;  %v10662_v4 = vld [vmem:[#allocation167_spill] sm:$0xff] }
 0x603   :  { %v3228_v60 = vsel %vm10654_vm4, %v3212_v7, 0.0  ;;  %v3358_v44 = vsel %vm10656_vm6, %v10606_v39, %v10655_v35  ;;  %v3168_v63 = vadd.f32 %v10657_v62, %v3148_v1  ;;  %vm10658_vm9 = vcmp.le.s32.totalorder %v10534_v14, 6  ;;  %v10663_v39 = vld [vmem:[#allocation16_spill] sm:$0xff]  ;;  %v10676_v7 = vld [vmem:[#allocation69_spill] sm:$0xff] }
 0x604   :  { %v3240_v30 = vmul.f32 %v10651_v46, %v3228_v60  ;;  %vm8246_vm3 = vmand %vm10658_vm9, %vm10301_vm11  ;;  %vm10661_vm4 = vcmp.ge.s32.totalorder %v10623_v24, 1  ;;  %v3164_v61 = vadd.f32 %v10662_v4, %v3144_v54  ;;  %vm10664_vm6 = vcmp.ge.s32.totalorder %v10663_v39, 1  ;;  %v8281_v60 = vpop.permute.xlu0 %3783 }
 0x605   :  { %v2995_v38 = vsel %vm10661_vm4, %v2979_v28, 0.0  ;;  %vm8257_vm15 = vmand %vm8148_vm0, %vm10664_vm6  ;;  %v3166_v18 = vadd.f32 %v10667_v42, %v3146_v11  ;;  %vm10668_vm9 = vcmp.le.s32.totalorder %v10663_v39, 6  ;;  %vm10670_vm4 = vnez %v10669_v47  ;;  %v10674_v28 = vld [vmem:[#allocation91_spill] sm:$0xff]  ;;  %10677 = vst [vmem:[#allocation61_spill] sm:$0xff] %v8281_v60  ;;  %v10780_v47 = vld [vmem:[#allocation37_spill] sm:$0xff] }
 0x606   :  { %v3372_v56 = vsel %vm10668_vm9, %v8090_v34, 0.0  ;;  %vm10671_vm10 = vcmp.ge.s32.totalorder %v10623_v24, 1  ;;  %vm10675_vm6 = vcmask 56320   ;;  %v3322_v11 = vmul.f32 %v10676_v7, %v3310_v19  ;;  %v10678_v34 = vld [vmem:[#allocation98_spill] sm:$0xff]  ;;  %v10682_v19 = vld [vmem:[#allocation85_spill] sm:$0xff] }
 0x607   :  { %vm8271_vm2 = vmand %vm10671_vm10, %vm10670_vm4  ;;  %v3049_v53 = vsel %vm10675_vm6, %v10674_v28, %v10590_v32  ;;  %v8279_v2 = vadd.f32 %v3240_v30, %v3168_v63  ;;  %vm10679_vm9 = vcmask 990208   ;;  %v3244_v4 = vadd.f32 %v3236_v3, %v3164_v61  ;;  %3859 = vrot.lane.b32.xlu1 %v10682_v19, %s4482_s0  ;;  %v10683_v63 = vld [vmem:[#allocation117_spill] sm:$0xff] }
 0x608   :  { %v3296_v62 = vsel %vm10679_vm9, %v10678_v34, %v8265_v41  ;;  %vm10680_vm10 = vcmp.le.s32.totalorder %v10534_v14, 6  ;;  %vm10681_vm0 = vcmask 7168   ;;  %vm3494_vm6 = vmand %vm8257_vm15, %vm10609_vm12  ;;  %vm10684_vm9 = vcmask 596992   ;;  %v8310_v55 = vpop.permute.xlu0 %3573 }
 0x609   :  { %v3374_v42 = vsel %vm10680_vm10, %v3358_v44, 0.0  ;;  %v3111_v39 = vsel %vm10681_vm0, %v10610_v12, %v7791_v57  ;;  %v3312_v32 = vsel %vm8246_vm3, %v3296_v62, 0.0  ;;  %v3520_v3 = vsel %vm10684_vm9, %v10639_v26, %v10683_v63  ;;  %v10685_v12 = vld [vmem:[#allocation123_spill] sm:$0xff]  ;;  %v3414_v62 = vpop.permute.xlu1 %3413  ;;  %v10687_v26 = vld [vmem:[#allocation153_spill] sm:$0xff] }
 0x60a   :  { %v3246_v44 = vadd.f32 %v3238_v50, %v3166_v18  ;;  %v3384_v30 = vmul.f32 %v10484_v0, %v3372_v56  ;;  %v3324_v57 = vmul.f32 %v10676_v7, %v3312_v32  ;;  %v2867_v61 = vadd.f32 %v10686_v58, %v10685_v12  ;;  %v10689_v12 = vld [vmem:[#allocation36_spill] sm:$0xff] }
 0x60b   :  { %v3007_v28 = vmul.f32 %v10402_v40, %v2995_v38  ;;  %v3065_v34 = vsel %vm8271_vm2, %v3049_v53, 0.0  ;;  %v3386_v60 = vmul.f32 %v10484_v0, %v3374_v42  ;;  %v3330_v21 = vadd.f32 %v3322_v11, %v3244_v4  ;;  %v10691_v38 = vld [vmem:[#allocation88_spill] sm:$0xff]  ;;  %v10692_v11 = vld [vmem:[#allocation49_spill] sm:$0xff] }
 0x60c   :  { %v3332_v23 = vadd.f32 %v3324_v57, %v3246_v44  ;;  %vm10688_vm0 = vcmask 973824   ;;  %v2953_v18 = vadd.f32 %v2945_v51, %v2867_v61  ;;  %v3536_v56 = vsel %vm3494_vm6, %v3520_v3, 0.0  ;;  %4011 = vrot.lane.b32.xlu1 %v10691_v38, %s4484_s9  ;;  %v10693_v61 = vld [vmem:[#allocation40_spill] sm:$0xff] }
 0x60d   :  { %v3426_v50 = vsel %vm10688_vm0, %v10687_v26, %v3414_v62  ;;  %v3127_v32 = vsel %vm10622_vm1, %v3111_v39, 0.0  ;;  %vm10690_vm3 = vnez %v10689_v12  ;;  %v3077_v54 = vmul.f32 %v10430_v48, %v3065_v34  ;;  %v3562_v57 = vpop.permute.xlu1 %3561  ;;  %v8324_v39 = vpop.permute.xlu0 %3725  ;;  %v10695_v48 = vld [vmem:[#allocation86_spill] sm:$0xff] }
 0x60e   :  { %v3442_v40 = vsel %vm10690_vm3, %v3426_v50, 0.0  ;;  %v3392_v53 = vadd.f32 %v3384_v30, %v3330_v21  ;;  %v3394_v42 = vadd.f32 %v3386_v60, %v3332_v23  ;;  %v3015_v44 = vadd.f32 %v3007_v28, %v2953_v18  ;;  %v10696_v23 = vld [vmem:[#allocation51_spill] sm:$0xff] }
 0x60f   :  { %v3454_v4 = vmul.f32 %v10692_v11, %v3442_v40  ;;  %v3548_v51 = vmul.f32 %v10636_v16, %v3536_v56  ;;  %v3139_v3 = vmul.f32 %v10444_v5, %v3127_v32  ;;  %vm10694_vm2 = vcmask 588800   ;;  %v10698_v40 = vld [vmem:[#allocation90_spill] sm:$0xff] }
 0x610   :  { %v3579_v26 = vsel %vm10694_vm2, %v3562_v57, %v10693_v61  ;;  %4077 = vrot.lane.b32.xlu1 %v10695_v48, %s4492_s17  ;;  %v3085_v21 = vadd.f32 %v3077_v54, %v3015_v44  ;;  %v3227_v5 = vsel %vm10670_vm4, %v8224_v13, 0.0  ;;  %vm10697_vm10 = vmmov %vm10694_vm2  ;;  %vm10699_vm6 = vcmp.le.s32.totalorder %v10623_v24, 6  ;;  %v10708_v48 = vld [vmem:[#allocation177_spill] sm:$0xff]  ;;  %v10713_v13 = vld [vmem:[#allocation60_spill] sm:$0xff] }
 0x611   :  { %v3462_v58 = vadd.f32 %v3454_v4, %v3392_v53  ;;  %v3595_v50 = vsel %vm8062_vm7, %v3579_v26, 0.0  ;;  %v3566_v28 = vpop.permute.xlu1 %3565  ;;  %v8339_v56 = vpop.permute.xlu0 %3849  ;;  %vm8351_vm9 = vmand %vm10699_vm6, %vm10622_vm1  ;;  %v3239_v54 = vmul.f32 %v10651_v46, %v3227_v5  ;;  %v10703_v4 = vld [vmem:[#allocation169_spill] sm:$0xff]  ;;  %vm10705_vm2 = vcmask 990208  }
 0x612   :  { %v3607_v60 = vmul.f32 %v10696_v23, %v3595_v50  ;;  %v3147_v34 = vadd.f32 %v3139_v3, %v3085_v21  ;;  %v3580_v32 = vsel %vm10697_vm10, %v10693_v61, %v3566_v28  ;;  %vm10704_vm0 = vcmp.le.s32.totalorder %v10703_v4, 6  ;;  %v10706_v61 = vld [vmem:[#allocation55_spill] sm:$0xff]  ;;  %vm10707_vm10 = vmmov %vm10705_vm2 }
 0x613   :  { %v3556_v30 = vadd.f32 %v3548_v51, %v3462_v58  ;;  %v3596_v12 = vsel %vm8117_vm14, %v3580_v32, 0.0  ;;  %vm3272_vm3 = vmand %vm10704_vm0, %vm10548_vm5  ;;  %vm10709_vm6 = vnez %v10708_v48  ;;  %vm10710_vm0 = vcmp.le.s32.totalorder %v10187_v36, 6 }
 0x614   :  { %v8337_v18 = vadd.f32 %v3607_v60, %v8186_v22  ;;  %3861 = vrot.lane.b32.xlu1 %v10698_v40, %s4482_s0  ;;  %v10702_v22 = vld [vmem:[#allocation67_spill] sm:$0xff]  ;;  %v3608_v53 = vmul.f32 %v10696_v23, %v3596_v12  ;;  %vm3401_vm5 = vmand %vm10710_vm0, %vm10709_vm6  ;;  %vm10715_vm0 = vcmask 588800   ;;  %vm10763_vm6 = vcmp.le.s32.totalorder %v10703_v4, 6 }
 0x615   :  { %v3159_v38 = vmul.f32 %v10702_v22, %v10698_v40  ;;  %v3288_v44 = vpop.permute.xlu1 %3287  ;;  %v8364_v3 = vpop.permute.xlu0 %3853 }
 0x616   :  { %v3616_v51 = vadd.f32 %v3608_v53, %v8215_v27  ;;  %v3297_v58 = vsel %vm10705_vm2, %v8265_v41, %v3288_v44  ;;  %v3298_v26 = vsel %vm10707_vm10, %v3288_v44, %v10706_v61  ;;  %vm10711_vm2 = vcmp.le.s32.totalorder %v10534_v14, 6  ;;  %v10716_v61 = vld [vmem:[#allocation114_spill] sm:$0xff] }
 0x617   :  { %v3167_v57 = vadd.f32 %v3159_v38, %v3147_v34  ;;  %v3313_v46 = vsel %vm8351_vm9, %v3297_v58, 0.0  ;;  %v3314_v50 = vsel %vm3272_vm3, %v3298_v26, 0.0  ;;  %vm3402_vm10 = vmand %vm10711_vm2, %vm10644_vm13  ;;  %vm10712_vm9 = vcmask 973824  }
 0x618   :  { %4013 = vrot.lane.b32.xlu1 %v10497_v17, %s4484_s9  ;;  %v3325_v21 = vmul.f32 %v10676_v7, %v3313_v46  ;;  %v3326_v41 = vmul.f32 %v10676_v7, %v3314_v50  ;;  %vm10714_vm3 = vmmov %vm10712_vm9  ;;  %v10718_v50 = vld [vmem:[#allocation12_spill] sm:$0xff] }
 0x619   :  { %v3247_v27 = vadd.f32 %v3239_v54, %v3167_v57  ;;  %v3416_v60 = vpop.permute.xlu1 %3415  ;;  %v8385_v32 = vpop.permute.xlu0 %3575  ;;  %vm10717_vm2 = vmmov %vm10715_vm0 }
 0x61a   :  { %v3334_v34 = vadd.f32 %v3326_v41, %v8279_v2  ;;  %v3427_v12 = vsel %vm10712_vm9, %v3414_v62, %v3416_v60  ;;  %v3428_v22 = vsel %vm10714_vm3, %v3416_v60, %v10713_v13  ;;  %v10723_v60 = vld [vmem:[#allocation110_spill] sm:$0xff] }
 0x61b   :  { %v3333_v5 = vadd.f32 %v3325_v21, %v3247_v27  ;;  %v3443_v38 = vsel %vm3401_vm5, %v3427_v12, 0.0  ;;  %v3444_v54 = vsel %vm3402_vm10, %v3428_v22, 0.0  ;;  %vm10719_vm5 = vnez %v10718_v50  ;;  %v10722_v21 = vld [vmem:[#allocation155_spill] sm:$0xff] }
 0x61c   :  { %3955 = vrot.lane.b32.xlu1 %v10698_v40, %s4483_s8  ;;  %v3455_v7 = vmul.f32 %v10692_v11, %v3443_v38  ;;  %v3456_v53 = vmul.f32 %v10692_v11, %v3444_v54  ;;  %vm3623_vm10 = vmand %vm8062_vm7, %vm10719_vm5  ;;  %v10727_v38 = vld [vmem:[#allocation152_spill] sm:$0xff] }
 0x61d   :  { %v3568_v44 = vpop.permute.xlu1 %3567  ;;  %v8398_v26 = vpop.permute.xlu0 %3727  ;;  %vm9569_vm13 = vcmp.le.s32.totalorder %v10727_v38, 6 }
 0x61e   :  { %v3463_v57 = vadd.f32 %v3455_v7, %v8153_v25  ;;  %v3464_v2 = vadd.f32 %v3456_v53, %v3394_v42  ;;  %v3581_v58 = vsel %vm10715_vm0, %v3566_v28, %v3568_v44  ;;  %v3582_v62 = vsel %vm10717_vm2, %v3568_v44, %v10716_v61  ;;  %v10720_v28 = vld [vmem:[#allocation9_spill] sm:$0xff] }
 0x61f   :  { %v3597_v46 = vsel %vm8131_vm8, %v3581_v58, 0.0  ;;  %v3598_v40 = vsel %vm8257_vm15, %v3582_v62, 0.0  ;;  %vm10721_vm9 = vnez %v10720_v28  ;;  %vm10724_vm2 = vcmask 580608  }
 0x620   :  { %4083 = vrot.lane.b32.xlu1 %v10497_v17, %s4492_s17  ;;  %v3609_v25 = vmul.f32 %v10696_v23, %v3597_v46  ;;  %v3610_v42 = vmul.f32 %v10696_v23, %v3598_v40  ;;  %vm3624_vm3 = vmand %vm8117_vm14, %vm10721_vm9  ;;  %vm10729_vm14 = vcmp.ge.s32.totalorder %v10187_v36, 1  ;;  %vm10740_vm9 = vcmp.le.s32.totalorder %v10703_v4, 6 }
 0x621   :  { %v3634_v27 = vpop.permute.xlu1 %3633  ;;  %vm10726_vm7 = vmmov %vm10724_vm2 }
 0x622   :  { %v3617_v41 = vadd.f32 %v3609_v25, %v8218_v20  ;;  %v3618_v17 = vadd.f32 %v3610_v42, %v3556_v30  ;;  %v3649_v12 = vsel %vm10724_vm2, %v10723_v60, %v3634_v27  ;;  %v3650_v22 = vsel %vm10726_vm7, %v3634_v27, %v10725_v15  ;;  %vm8431_vm0 = vmand %vm9569_vm13, %vm10729_vm14  ;;  %v8435_v30 = vpop.permute.xlu0 %3855  ;;  %v10737_v42 = vld [vmem:[#allocation79_spill] sm:$0xff] }
 0x623   :  { %v3665_v54 = vsel %vm3623_vm10, %v3649_v12, 0.0  ;;  %v3666_v7 = vsel %vm3624_vm3, %v3650_v22, 0.0  ;;  %vm10732_vm10 = vcmp.ge.s32.totalorder %v10534_v14, 1  ;;  %vm10733_vm3 = vcmp.le.s32.totalorder %v10722_v21, 6  ;;  %v10741_v22 = vld [vmem:[#allocation163_spill] sm:$0xff] }
 0x624   :  { %3957 = vrot.lane.b32.xlu1 %v5973_v6, %s4483_s8  ;;  %v3677_v53 = vmul.f32 %v10728_v37, %v3665_v54  ;;  %v3678_v44 = vmul.f32 %v10728_v37, %v3666_v7  ;;  %vm8441_vm2 = vmand %vm10733_vm3, %vm10732_vm10  ;;  %vm10736_vm7 = vcmask 982016   ;;  %vm10739_vm13 = vcmp.le.s32.totalorder %v10623_v24, 6 }
 0x625   :  { %v3350_v58 = vpop.permute.xlu1 %3349  ;;  %vm10738_vm14 = vmmov %vm10736_vm7  ;;  %vm10742_vm10 = vnez %v10741_v22 }
 0x626   :  { %v3685_v46 = vadd.f32 %v3677_v53, %v8337_v18  ;;  %v3686_v40 = vadd.f32 %v3678_v44, %v3616_v51  ;;  %v3359_v25 = vsel %vm10736_vm7, %v10655_v35, %v3350_v58  ;;  %v3360_v27 = vsel %vm10738_vm14, %v3350_v58, %v10737_v42  ;;  %vm3495_vm3 = vmand %vm8431_vm0, %vm10742_vm10  ;;  %v8470_v44 = vpop.permute.xlu0 %3945 }
 0x627   :  { %v3375_v60 = vsel %vm10739_vm13, %v3359_v25, 0.0  ;;  %v3376_v12 = vsel %vm10740_vm9, %v3360_v27, 0.0  ;;  %vm3496_vm13 = vmand %vm8441_vm2, %vm10301_vm11  ;;  %vm10743_vm9 = vcmask 596992  }
 0x628   :  { %4085 = vrot.lane.b32.xlu1 %v10682_v19, %s4492_s17  ;;  %v3387_v18 = vmul.f32 %v10484_v0, %v3375_v60  ;;  %v3388_v35 = vmul.f32 %v10484_v0, %v3376_v12  ;;  %vm10744_vm7 = vmmov %vm10743_vm9  ;;  %v10745_v0 = vld [vmem:[#allocation17_spill] sm:$0xff] }
 0x629   :  { %v3510_v51 = vpop.permute.xlu1 %3509  ;;  %vm10746_vm14 = vnez %v10745_v0 }
 0x62a   :  { %v3395_v54 = vadd.f32 %v3387_v18, %v3333_v5  ;;  %v3396_v7 = vadd.f32 %v3388_v35, %v3334_v34  ;;  %v3521_v19 = vsel %vm10743_vm9, %v10683_v63, %v3510_v51  ;;  %v3522_v53 = vsel %vm10744_vm7, %v3510_v51, %v8155_v43  ;;  %vm3625_vm11 = vmand %vm8131_vm8, %vm10746_vm14  ;;  %v4477_v18 = vld [vmem:[#allocation2] sm:$0xff] }
 0x62b   :  { %v3537_v58 = vsel %vm3495_vm3, %v3521_v19, 0.0  ;;  %v3538_v25 = vsel %vm3496_vm13, %v3522_v53, 0.0  ;;  %vm10747_vm9 = vnez %v9631_v10  ;;  %vm10748_vm3 = vcmask 580608   ;;  %v10751_v35 = vld [vmem:[#allocation41_spill] sm:$0xff] }
 0x62c   :  { %4019 = vrot.lane.b32.xlu1 %v5973_v6, %s4484_s9  ;;  %v3549_v5 = vmul.f32 %v10636_v16, %v3537_v58  ;;  %v3550_v34 = vmul.f32 %v10636_v16, %v3538_v25  ;;  %vm3626_vm7 = vmand %vm8257_vm15, %vm10747_vm9  ;;  %vm10750_vm8 = vnez %v9609_v33  ;;  %vm10752_vm5 = vnez %v10751_v35  ;;  %v10756_v58 = vld [vmem:[#allocation118_spill] sm:$0xff]  ;;  %v10833_v35 = vld [vmem:[#allocation8_spill] sm:$0xff] }
 0x62d   :  { %v3638_v63 = vpop.permute.xlu1 %3637  ;;  %vm10749_vm13 = vmmov %vm10748_vm3  ;;  %vm10753_vm15 = vnez %v9598_v31 }
 0x62e   :  { %v3557_v42 = vadd.f32 %v3549_v5, %v3463_v57  ;;  %v3558_v27 = vadd.f32 %v3550_v34, %v3464_v2  ;;  %v3651_v6 = vsel %vm10748_vm3, %v10725_v15, %v3638_v63  ;;  %v3652_v60 = vsel %vm10749_vm13, %v3638_v63, %v8188_v8  ;;  %vm3709_vm14 = vmand %vm10752_vm5, %vm10750_vm8  ;;  %v10754_v2 = vld [vmem:[#allocation116_spill] sm:$0xff]  ;;  %v8499_v15 = vpop.permute.xlu0 %3645 }
 0x62f   :  { %v3667_v45 = vsel %vm3625_vm11, %v3651_v6, 0.0  ;;  %v3668_v12 = vsel %vm3626_vm7, %v3652_v60, 0.0  ;;  %vm10755_vm3 = vnez %v10754_v2  ;;  %vm10757_vm11 = vcmask 531456   ;;  %v10758_v5 = vld [vmem:[#allocation120_spill] sm:$0xff]  ;;  %v10761_v60 = vld [vmem:[#allocation53_spill] sm:$0xff] }
 0x630   :  { %4091 = vrot.lane.b32.xlu1 %v4477_v18, %s4492_s17  ;;  %v3679_v1 = vmul.f32 %v10728_v37, %v3667_v45  ;;  %v3680_v57 = vmul.f32 %v10728_v37, %v3668_v12  ;;  %vm3710_vm9 = vmand %vm10755_vm3, %vm10753_vm15  ;;  %vm10760_vm13 = vcmp.le.s32.totalorder %v10623_v24, 6  ;;  %vm10762_vm15 = vnez %v10509_v29 }
 0x631   :  { %v3720_v51 = vpop.permute.xlu1 %3719  ;;  %vm10759_vm7 = vmmov %vm10757_vm11  ;;  %v10842_v2 = vmov 0 }
 0x632   :  { %v3687_v19 = vadd.f32 %v3679_v1, %v3617_v41  ;;  %v3688_v53 = vadd.f32 %v3680_v57, %v3618_v17  ;;  %v3735_v25 = vsel %vm10757_vm11, %v10756_v58, %v3720_v51  ;;  %v3736_v34 = vsel %vm10759_vm7, %v3720_v51, %v10758_v5  ;;  %vm3403_vm8 = vmand %vm10760_vm13, %vm10670_vm4  ;;  %v10765_v57 = vld [vmem:[#allocation80_spill] sm:$0xff]  ;;  %v8519_v58 = vpop.permute.xlu0 %3789 }
 0x633   :  { %v3751_v63 = vsel %vm3709_vm14, %v3735_v25, 0.0  ;;  %v3752_v6 = vsel %vm3710_vm9, %v3736_v34, 0.0  ;;  %vm3404_vm10 = vmand %vm10763_vm6, %vm10762_vm15  ;;  %vm10764_vm14 = vcmask 973824   ;;  %vm10767_vm6 = vcmask 588800  }
 0x634   :  { %v3763_v45 = vmul.f32 %v10761_v60, %v3751_v63  ;;  %v3764_v12 = vmul.f32 %v10761_v60, %v3752_v6  ;;  %vm10766_vm9 = vmmov %vm10764_vm14  ;;  %vm10800_vm15 = vcmp.le.s32.totalorder %v10727_v38, 6 }
 0x635   :  { %v3420_v41 = vpop.permute.xlu1 %3419  ;;  %vm10768_vm11 = vmmov %vm10767_vm6 }
 0x636   :  { %v3771_v17 = vadd.f32 %v3763_v45, %v3685_v46  ;;  %v3772_v18 = vadd.f32 %v3764_v12, %v3686_v40  ;;  %v3429_v1 = vsel %vm10764_vm14, %v10713_v13, %v3420_v41  ;;  %v3430_v51 = vsel %vm10766_vm9, %v3420_v41, %v10765_v57  ;;  %v10769_v12 = vld [vmem:[#allocation19_spill] sm:$0xff]  ;;  %v10771_v41 = vld [vmem:[#allocation125_spill] sm:$0xff] }
 0x637   :  { %v3445_v25 = vsel %vm3403_vm8, %v3429_v1, 0.0  ;;  %v3446_v34 = vsel %vm3404_vm10, %v3430_v51, 0.0  ;;  %vm10770_vm10 = vnez %v10769_v12  ;;  %vm10772_vm8 = vnez %v10771_v41  ;;  %v8542_v1 = vpop.permute.xlu0 %3949 }
 0x638   :  { %v3457_v63 = vmul.f32 %v10692_v11, %v3445_v25  ;;  %v3458_v6 = vmul.f32 %v10692_v11, %v3446_v34  ;;  %vm3711_vm7 = vmand %vm10772_vm8, %vm10770_vm10  ;;  %v4440_v12 = vunpack.i.h.bf16 %v10780_v47  ;;  %vm10781_vm9 = vcmp.ge.s32.totalorder %v10623_v24, 1  ;;  %v10788_v47 = vld [vmem:[#allocation122_spill] sm:$0xff] }
 0x639   :  { %v3572_v14 = vpop.permute.xlu1 %3571 }
 0x63a   :  { %v3465_v52 = vadd.f32 %v3457_v63, %v3395_v54  ;;  %v3466_v10 = vadd.f32 %v3458_v6, %v3396_v7  ;;  %v3583_v46 = vsel %vm10767_vm6, %v10716_v61, %v3572_v14  ;;  %v3584_v13 = vsel %vm10768_vm11, %v3572_v14, %v8310_v55  ;;  %v10773_v7 = vld [vmem:[#allocation20_spill] sm:$0xff]  ;;  %v10774_v61 = vld [vmem:[#allocation129_spill] sm:$0xff] }
 0x63b   :  { %v3599_v40 = vsel %vm8431_vm0, %v3583_v46, 0.0  ;;  %v3600_v45 = vsel %vm8441_vm2, %v3584_v13, 0.0  ;;  %vm10775_vm13 = vnez %v10774_v61  ;;  %v10776_v14 = vld [vmem:[#allocation164_spill] sm:$0xff]  ;;  %vm10777_vm6 = vcmask 531456  }
 0x63c   :  { %v3611_v11 = vmul.f32 %v10696_v23, %v3599_v40  ;;  %v3612_v54 = vmul.f32 %v10696_v23, %v3600_v45  ;;  %vm3712_vm14 = vmand %vm10775_vm13, %vm10609_vm12  ;;  %v10779_v6 = vld [vmem:[#allocation168_spill] sm:$0xff]  ;;  %vm10782_vm10 = vcmp.le.s32.totalorder %v10776_v14, 6 }
 0x63d   :  { %v3724_v57 = vpop.permute.xlu1 %3723  ;;  %vm10778_vm11 = vmmov %vm10777_vm6  ;;  %vm9581_vm4 = vcmp.le.s32.totalorder %v10779_v6, 6 }
 0x63e   :  { %v3619_v51 = vadd.f32 %v3611_v11, %v3557_v42  ;;  %v8544_v25 = vadd.f32 %v3612_v54, %v3558_v27  ;;  %v3737_v34 = vsel %vm10777_vm6, %v10758_v5, %v3724_v57  ;;  %v3738_v63 = vsel %vm10778_vm11, %v3724_v57, %v8324_v39  ;;  %vm8558_vm12 = vmand %vm10782_vm10, %vm10781_vm9 }
 0x63f   :  { %v3753_v46 = vsel %vm3711_vm7, %v3737_v34, 0.0  ;;  %v3754_v13 = vsel %vm3712_vm14, %v3738_v63, 0.0  ;;  %v10783_v42 = vmov 0  ;;  %vm10785_vm6 = vcmp.ge.s32.totalorder %v10703_v4, 1  ;;  %v10790_v34 = vld [vmem:[#allocation61_spill] sm:$0xff]  ;;  %vm3497_vm9 = vmand %vm8558_vm12, %vm10622_vm1 }
 0x640   :  { %v3765_v40 = vmul.f32 %v10761_v60, %v3753_v46  ;;  %v3766_v45 = vmul.f32 %v10761_v60, %v3754_v13  ;;  %v10784_v42 = vsel %vm8558_vm12, 4294967295, %v10783_v42  ;;  %vm8566_vm7 = vmand %vm9581_vm4, %vm10785_vm6  ;;  %vm10789_vm14 = vcmask 523264   ;;  %v8576_v46 = vpop.permute.xlu0 %4007 }
 0x641   :  { %v3782_v27 = vpop.permute.xlu1 %3781  ;;  %vm10791_vm10 = vmmov %vm10789_vm14  ;;  %vm10793_vm11 = vcmask 588800   ;;  %vm10795_vm6 = vnez %v10547_v9  ;;  %vm10797_vm4 = vcmask 596992   ;;  %vm10799_vm1 = vnez %v10741_v22  ;;  %v10875_v22 = vld [vmem:[#allocation82_spill] sm:$0xff] }
 0x642   :  { %v3773_v11 = vadd.f32 %v3765_v40, %v3687_v19  ;;  %v8570_v54 = vadd.f32 %v3766_v45, %v3688_v53  ;;  %v3797_v57 = vsel %vm10789_vm14, %v10788_v47, %v3782_v27  ;;  %v3798_v63 = vsel %vm10791_vm10, %v3782_v27, %v10790_v34  ;;  %v10792_v19 = vld [vmem:[#allocation56_spill] sm:$0xff]  ;;  %v10794_v45 = vld [vmem:[#allocation54_spill] sm:$0xff]  ;;  %vm3498_vm14 = vmand %vm8566_vm7, %vm10795_vm6 }
 0x643   :  { %v3813_v13 = vsel %vm10752_vm5, %v3797_v57, 0.0  ;;  %v3814_v4 = vsel %vm10755_vm3, %v3798_v63, 0.0  ;;  %v4435_v53 = vunpack.i.h.bf16 %v10792_v19  ;;  %v3586_v40 = vsel %vm10793_vm11, %v8385_v32, %v4440_v12  ;;  %vm10796_vm10 = vmmov %vm10793_vm11 }
 0x644   :  { %v3825_v27 = vmul.f32 %v10794_v45, %v3813_v13  ;;  %v3826_v47 = vmul.f32 %v10794_v45, %v3814_v4  ;;  %v3585_v57 = vsel %vm10796_vm10, %v8310_v55, %v8385_v32  ;;  %vm10798_vm11 = vmmov %vm10797_vm4  ;;  %v3602_v4 = vsel %vm8566_vm7, %v3586_v40, 0.0  ;;  %v8622_v40 = vpop.permute.xlu0 %3791 }
 0x645   :  { %v3514_v63 = vpop.permute.xlu1 %3513  ;;  %vm8607_vm6 = vmand %vm10800_vm15, %vm10799_vm1  ;;  %vm10804_vm10 = vnez %v10708_v48 }
 0x646   :  { %v3833_v24 = vadd.f32 %v3825_v27, %v3771_v17  ;;  %v3834_v59 = vadd.f32 %v3826_v47, %v3772_v18  ;;  %v3523_v19 = vsel %vm10797_vm4, %v8155_v43, %v3514_v63  ;;  %v3524_v12 = vsel %vm10798_vm11, %v3514_v63, %v4435_v53  ;;  %vm3627_vm15 = vmand %vm8431_vm0, %vm10804_vm10 }
 0x647   :  { %v3539_v55 = vsel %vm3497_vm9, %v3523_v19, 0.0  ;;  %v3540_v32 = vsel %vm3498_vm14, %v3524_v12, 0.0  ;;  %v3601_v17 = vsel %vm8558_vm12, %v3585_v57, 0.0  ;;  %vm10803_vm4 = vcmask 531456  }
 0x648   :  { %v3739_v43 = vsel %vm10803_vm4, %v8324_v39, %v8398_v26  ;;  %v3551_v18 = vmul.f32 %v10636_v16, %v3539_v55  ;;  %v3552_v53 = vmul.f32 %v10636_v16, %v3540_v32  ;;  %v3614_v47 = vmul.f32 %v10696_v23, %v3602_v4 }
 0x649   :  { %v3642_v27 = vpop.permute.xlu1 %3641  ;;  %vm10805_vm9 = vcmask 580608   ;;  %v3613_v39 = vmul.f32 %v10696_v23, %v3601_v17  ;;  %v3755_v16 = vsel %vm8607_vm6, %v3739_v43, 0.0  ;;  %vm10806_vm14 = vnez %v10745_v0  ;;  %v8645_v17 = vpop.permute.xlu0 %3951 }
 0x64a   :  { %v3559_v63 = vadd.f32 %v3551_v18, %v3465_v52  ;;  %v3560_v57 = vadd.f32 %v3552_v53, %v3466_v10  ;;  %v3653_v19 = vsel %vm10805_vm9, %v8188_v8, %v3642_v27  ;;  %vm3843_vm0 = vmand %vm10772_vm8, %vm10806_vm14  ;;  %vm10807_vm11 = vcmask 515072   ;;  %v10812_v53 = vld [vmem:[#allocation72_spill] sm:$0xff] }
 0x64b   :  { %v3669_v12 = vsel %vm3627_vm15, %v3653_v19, 0.0  ;;  %v3869_v20 = vsel %vm10807_vm11, %v8364_v3, %v8435_v30  ;;  %v3767_v23 = vmul.f32 %v10761_v60, %v3755_v16  ;;  %vm10808_vm6 = vcmask 523264  }
 0x64c   :  { %v8637_v52 = vadd.f32 %v3614_v47, %v3560_v57  ;;  %v3681_v10 = vmul.f32 %v10728_v37, %v3669_v12  ;;  %v8640_v4 = vadd.f32 %v3613_v39, %v3559_v63  ;;  %v3885_v32 = vsel %vm3843_vm0, %v3869_v20, 0.0 }
 0x64d   :  { %v3786_v8 = vpop.permute.xlu1 %3785  ;;  %vm10809_vm4 = vnez %v10718_v50  ;;  %vm10810_vm9 = vnez %v10720_v28  ;;  %v3897_v47 = vmul.f32 %v10812_v53, %v3885_v32  ;;  %vm10813_vm0 = vcmask 515072  }
 0x64e   :  { %v3689_v13 = vadd.f32 %v3681_v10, %v3619_v51  ;;  %v3799_v55 = vsel %vm10808_vm6, %v10790_v34, %v3786_v8  ;;  %vm3841_vm15 = vmand %vm10752_vm5, %vm10809_vm4  ;;  %vm10815_vm10 = vnez %v10498_v49  ;;  %vm10848_vm12 = vcmask 465920  }
 0x64f   :  { %v3815_v43 = vsel %vm10772_vm8, %v3799_v55, 0.0  ;;  %vm3842_vm11 = vmand %vm10755_vm3, %vm10810_vm9  ;;  %vm10838_vm9 = vcmask 465920  }
 0x650   :  { %v3827_v18 = vmul.f32 %v10794_v45, %v3815_v43  ;;  %v8658_v51 = vadd.f32 %v3767_v23, %v3689_v13  ;;  %vm10814_vm6 = vmmov %vm10813_vm0 }
 0x651   :  { %v3852_v34 = vpop.permute.xlu1 %3851  ;;  %vm3628_vm14 = vmand %vm8441_vm2, %vm10815_vm10  ;;  %vm10818_vm2 = vcmask 523264   ;;  %vm10837_vm10 = vnez %v9609_v33 }
 0x652   :  { %10811 = vst [vmem:[#allocation131_spill] sm:$0xff] %v8658_v51  ;;  %v3835_v63 = vadd.f32 %v3827_v18, %v3773_v11  ;;  %v3867_v57 = vsel %vm10813_vm0, %v8339_v56, %v3852_v34  ;;  %v3868_v19 = vsel %vm10814_vm6, %v3852_v34, %v8364_v3  ;;  %v8673_v11 = vpop.permute.xlu0 %4075  ;;  %vm10824_vm0 = vnez %v10509_v29 }
 0x653   :  { %v3883_v39 = vsel %vm3841_vm15, %v3867_v57, 0.0  ;;  %v3884_v16 = vsel %vm3842_vm11, %v3868_v19, 0.0  ;;  %vm10816_vm15 = vcmask 580608   ;;  %vm3630_vm6 = vmand %vm8566_vm7, %vm10824_vm0  ;;  %vm10831_vm7 = vcmask 580608  }
 0x654   :  { %v3895_v12 = vmul.f32 %v10812_v53, %v3883_v39  ;;  %v3896_v20 = vmul.f32 %v10812_v53, %v3884_v16  ;;  %v8671_v10 = vadd.f32 %v3897_v47, %v3835_v63  ;;  %vm10832_vm0 = vcmask 523264  }
 0x655   :  { %v8675_v23 = vpop.permute.xlu1 %3643 }
 0x656   :  { %v8677_v56 = vadd.f32 %v3895_v12, %v3833_v24  ;;  %v8679_v3 = vadd.f32 %v3896_v20, %v3834_v59  ;;  %v3654_v13 = vsel %vm10816_vm15, %v3642_v27, %v8675_v23  ;;  %v8691_v34 = vpop.permute.xlu0 %4079  ;;  %v10820_v20 = vld [vmem:[#allocation16_spill] sm:$0xff] }
 0x657   :  { %v3670_v55 = vsel %vm3628_vm14, %v3654_v13, 0.0  ;;  %vm10821_vm14 = vcmp.le.s32.totalorder %v10820_v20, 6 }
 0x658   :  { %v3682_v32 = vmul.f32 %v10728_v37, %v3670_v55  ;;  %vm8711_vm11 = vmand %vm10775_vm13, %vm10821_vm14  ;;  %v10825_v55 = vld [vmem:[#allocation11_spill] sm:$0xff]  ;;  %vm10829_vm14 = vnez %v10773_v7 }
 0x659   :  { %v8684_v43 = vpop.permute.xlu1 %3787  ;;  %vm10826_vm15 = vcmp.le.s32.totalorder %v10825_v55, 6 }
 0x65a   :  { %v8687_v62 = vadd.f32 %v3682_v32, %v8544_v25  ;;  %v3800_v18 = vsel %vm10818_vm2, %v3786_v8, %v8684_v43  ;;  %v3794_v63 = vpop.permute.xlu0 %3793  ;;  %vm8725_vm2 = vmand %vm10752_vm5, %vm10826_vm15  ;;  %vm10834_vm5 = vcmp.le.s32.totalorder %v10833_v35, 6 }
 0x65b   :  { %v3816_v59 = vsel %vm10775_vm13, %v3800_v18, 0.0  ;;  %vm8745_vm15 = vmand %vm10755_vm3, %vm10834_vm5  ;;  %v3803_v35 = vsel %vm10832_vm0, %v8622_v40, %v3794_v63  ;;  %vm10840_vm3 = vcmp.le.s32.totalorder %v10187_v36, 6  ;;  %vm10841_vm5 = vcmp.le.s32.totalorder %v10727_v38, 6 }
 0x65c   :  { %10817 = vst [vmem:[#allocation42_spill] sm:$0xff] %v8687_v62  ;;  %v3828_v24 = vmul.f32 %v10794_v45, %v3816_v59  ;;  %v10830_v59 = vld [vmem:[#allocation81_spill] sm:$0xff]  ;;  %vm3935_vm13 = vmand %vm8725_vm2, %vm10837_vm10  ;;  %vm10844_vm10 = vcmp.le.s32.totalorder %v10722_v21, 6 }
 0x65d   :  { %v3944_v47 = vpop.permute.xlu1 %3943  ;;  %v3656_v5 = vsel %vm10831_vm7, %v8499_v15, %v10830_v59  ;;  %vm10839_vm7 = vmmov %vm10838_vm9 }
 0x65e   :  { %v8697_v27 = vadd.f32 %v3828_v24, %v8570_v54  ;;  %v8701_v25 = vpop.permute.xlu0 %3953  ;;  %v3802_v24 = vsel %vm10832_vm0, %v8519_v58, %v8622_v40  ;;  %v3961_v55 = vsel %vm10838_vm9, %v3944_v47, %v8470_v44  ;;  %v3964_v59 = vsel %vm10839_vm7, %v8542_v1, %v8645_v17  ;;  %vm8764_vm4 = vmand %vm10841_vm5, %vm10840_vm3  ;;  %v10845_v47 = vld [vmem:[#allocation77_spill] sm:$0xff] }
 0x65f   :  { %v10843_v2 = vsel %vm8764_vm4, 4294967295, %v10842_v2  ;;  %v3672_v33 = vsel %vm3630_vm6, %v3656_v5, 0.0  ;;  %v3818_v62 = vsel %vm10844_vm10, %v3802_v24, 0.0  ;;  %vm10846_vm9 = vmmov %vm10832_vm0  ;;  %vm10847_vm7 = vnez %v9598_v31 }
 0x660   :  { %10819 = vst [vmem:[#allocation124_spill] sm:$0xff] %v8697_v27  ;;  %v3804_v51 = vsel %vm10846_vm9, %v3794_v63, %v10845_v47  ;;  %vm3936_vm0 = vmand %vm8745_vm15, %vm10847_vm7  ;;  %v3977_v27 = vsel %vm3935_vm13, %v3961_v55, 0.0  ;;  %vm10849_vm6 = vcmask 457728   ;;  %vm10851_vm5 = vcmp.le.s32.totalorder %v10776_v14, 6  ;;  %v10855_v55 = vld [vmem:[#allocation14_spill] sm:$0xff] }
 0x661   :  { %v3948_v57 = vpop.permute.xlu1 %3947  ;;  %vm10850_vm3 = vmand %vm8711_vm11, %vm10829_vm14  ;;  %v3819_v31 = vsel %vm10851_vm5, %v3803_v35, 0.0  ;;  %v3684_v24 = vmul.f32 %v10728_v37, %v3672_v33  ;;  %vm10854_vm13 = vcmp.le.s32.totalorder %v10779_v6, 6  ;;  %vm10856_vm14 = vcmp.le.s32.totalorder %v10855_v55, 6  ;;  %v10860_v33 = vld [vmem:[#allocation73_spill] sm:$0xff] }
 0x662   :  { %v8705_v8 = vpop.permute.xlu0 %4081  ;;  %v3962_v36 = vsel %vm10848_vm12, %v8470_v44, %v3948_v57  ;;  %v3980_v63 = vsel %vm10850_vm3, %v3964_v59, 0.0  ;;  %vm3939_vm12 = vmand %vm8764_vm4, %vm10799_vm1  ;;  %v3820_v7 = vsel %vm10854_vm13, %v3804_v51, 0.0  ;;  %vm10859_vm7 = vcmask 465920  }
 0x663   :  { %vm10852_vm10 = vmmov %vm10849_vm6  ;;  %v3978_v35 = vsel %vm3936_vm0, %v3962_v36, 0.0  ;;  %v3989_v47 = vmul.f32 %v10860_v33, %v3977_v27  ;;  %v8826_v36 = vmul.f32 %v10860_v33, %v3980_v63  ;;  %v10865_v27 = vld [vmem:[#allocation180_spill] sm:$0xff]  ;;  %vm10867_vm0 = vnez %v10784_v42 }
 0x664   :  { %vm8807_vm9 = vmand %vm10772_vm8, %vm10856_vm14  ;;  %vm10866_vm8 = vnez %v10865_v27  ;;  %vm10868_vm13 = vcmask 580608   ;;  %vm10869_vm14 = vcmask 457728   ;;  %vm10874_vm1 = vnez %v10745_v0 }
 0x665   :  { %v8699_v19 = vpop.permute.xlu1 %3729  ;;  %vm10863_vm5 = vmmov %vm10859_vm7  ;;  %vm10884_vm4 = vcmp.le.s32.totalorder %v10779_v6, 6 }
 0x666   :  { %v8719_v54 = vpop.permute.xlu0 %3863  ;;  %v3963_v51 = vsel %vm10863_vm5, %v3948_v57, %v8542_v1  ;;  %v3655_v1 = vsel %vm10868_vm13, %v8675_v23, %v8499_v15  ;;  %vm10871_vm13 = vcmask 449536  }
 0x667   :  { %v4095_v23 = vsel %vm10871_vm13, %v8691_v34, %v8705_v8  ;;  %vm10876_vm13 = vcmask 515072  }
 0x668   :  { %vm10880_vm5 = vmmov %vm10876_vm13 }
 0x669   :  { %v8703_v39 = vpop.permute.xlu1 %3857 }
 0x66a   :  { %v8772_v49 = vpop.permute.xlu0 %4015 }
 0x66d   :  { %v4006_v16 = vpop.permute.xlu1 %4005 }
 0x66e   :  { %v4023_v5 = vsel %vm10849_vm6, %v4006_v16, %v8576_v46  ;;  %v8799_v16 = vmul.f32 %v10794_v45, %v3818_v62  ;;  %v10861_v62 = vld [vmem:[#allocation19_spill] sm:$0xff]  ;;  %v8843_v63 = vpop.permute.xlu0 %4017 }
 0x66f   :  { %vm10862_vm6 = vnez %v10861_v62  ;;  %v4039_v41 = vsel %vm8725_vm2, %v4023_v5, 0.0  ;;  %v8841_v5 = vmul.f32 %v10794_v45, %v3820_v7 }
 0x670   :  { %10853 = vst [vmem:[#allocation133_spill] sm:$0xff] %v8799_v16  ;;  %vm3937_vm3 = vmand %vm8807_vm9, %vm10862_vm6 }
 0x671   :  { %v4010_v12 = vpop.permute.xlu1 %4009 }
 0x672   :  { %v4024_v44 = vsel %vm10852_vm10, %v8576_v46, %v4010_v12  ;;  %v3965_v46 = vsel %vm10859_vm7, %v8645_v17, %v8701_v25  ;;  %v8829_v17 = vmul.f32 %v10794_v45, %v3819_v31  ;;  %vm3629_vm10 = vmand %vm10867_vm0, %vm10866_vm8  ;;  %v3990_v31 = vmul.f32 %v10860_v33, %v3978_v35  ;;  %v8925_v32 = vpop.permute.xlu0 %4087 }
 0x673   :  { %v4040_v57 = vsel %vm8745_vm15, %v4024_v44, 0.0  ;;  %vm10870_vm7 = vnez %v10718_v50  ;;  %v3981_v15 = vsel %vm3939_vm12, %v3965_v46, 0.0  ;;  %v3671_v7 = vsel %vm3629_vm10, %v3655_v1, 0.0  ;;  %v10891_v50 = vld [vmem:[#allocation170_spill] sm:$0xff] }
 0x674   :  { %10864 = vst [vmem:[#allocation126_spill] sm:$0xff] %v8829_v17  ;;  %v8847_v17 = vadd.f32 %v3684_v24, %v8637_v52  ;;  %v3979_v52 = vsel %vm3937_vm3, %v3963_v51, 0.0  ;;  %v3874_v24 = vsel %vm10876_vm13, %v8719_v54, %v10875_v22  ;;  %v3997_v35 = vadd.f32 %v3989_v47, %v8677_v56  ;;  %v10877_v51 = vld [vmem:[#allocation18_spill] sm:$0xff]  ;;  %v10914_v47 = vld [vmem:[#allocation76_spill] sm:$0xff] }
 0x675   :  { %v8733_v18 = vpop.permute.xlu1 %3731  ;;  %vm10878_vm6 = vnez %v10877_v51  ;;  %vm10879_vm3 = vnez %v10774_v61  ;;  %vm10881_vm0 = vcmask 449536   ;;  %vm10883_vm13 = vnez %v10509_v29  ;;  %v10898_v61 = vld [vmem:[#allocation156_spill] sm:$0xff] }
 0x676   :  { %vm3844_vm12 = vmand %vm10879_vm3, %vm10878_vm6 }
 0x677   :  { %vm10882_vm10 = vmmov %vm10881_vm0 }
 0x678   :  { %vm8904_vm8 = vmand %vm10884_vm4, %vm10883_vm13  ;;  %vm10889_vm4 = vcmask 523264   ;;  %vm10939_vm13 = vcmask 465920  }
 0x679   :  { %v8780_v40 = vpop.permute.xlu1 %3859 }
 0x67e   :  { %v8823_v55 = vpop.permute.xlu1 %4011 }
 0x67f   :  { %v4025_v16 = vsel %vm10869_vm14, %v4010_v12, %v8823_v55  ;;  %v10872_v12 = vld [vmem:[#allocation74_spill] sm:$0xff]  ;;  %vm10873_vm14 = vnez %v10720_v28 }
 0x680   :  { %v4051_v44 = vmul.f32 %v10872_v12, %v4039_v41  ;;  %v4052_v46 = vmul.f32 %v10872_v12, %v4040_v57  ;;  %v3870_v41 = vsel %vm10880_vm5, %v8435_v30, %v8703_v39  ;;  %v4041_v42 = vsel %vm8807_vm9, %v4025_v16, 0.0  ;;  %vm10887_vm5 = vmand %vm8725_vm2, %vm10870_vm7 }
 0x681   :  { %v3991_v57 = vmul.f32 %v10860_v33, %v3979_v52  ;;  %v3998_v30 = vadd.f32 %v3990_v31, %v8679_v3  ;;  %v3801_v16 = vsel %vm10889_vm4, %v8684_v43, %v8519_v58  ;;  %v10890_v52 = vld [vmem:[#allocation75_spill] sm:$0xff]  ;;  %vm10892_vm2 = vnez %v10891_v50 }
 0x682   :  { %v4078_v62 = vpop.permute.xlu1 %4077  ;;  %v4059_v22 = vadd.f32 %v4051_v44, %v3997_v35  ;;  %vm10893_vm7 = vcmp.le.s32.totalorder %v10722_v21, 6  ;;  %v3886_v58 = vsel %vm3844_vm12, %v3870_v41, 0.0  ;;  %v4053_v31 = vmul.f32 %v10872_v12, %v4041_v42 }
 0x683   :  { %v4093_v1 = vsel %vm10881_vm0, %v8673_v11, %v4078_v62  ;;  %v4094_v56 = vsel %vm10882_vm10, %v4078_v62, %v8691_v34  ;;  %vm10888_vm0 = vmand %vm8745_vm15, %vm10873_vm14  ;;  %vm10896_vm15 = vcmask 531456   ;;  %v4060_v43 = vadd.f32 %v4052_v46, %v3998_v30 }
 0x684   :  { %v4109_v11 = vsel %vm10887_vm5, %v4093_v1, 0.0  ;;  %v4110_v34 = vsel %vm10888_vm0, %v4094_v56, 0.0  ;;  %vm8931_vm10 = vmand %vm10893_vm7, %vm10892_vm2  ;;  %v3740_v28 = vsel %vm10896_vm15, %v8398_v26, %v8699_v19  ;;  %v8945_v35 = vmul.f32 %v10860_v33, %v3981_v15 }
 0x685   :  { %v4121_v62 = vmul.f32 %v10890_v52, %v4109_v11  ;;  %v4122_v3 = vmul.f32 %v10890_v52, %v4110_v34  ;;  %vm10897_vm14 = vmand %vm8807_vm9, %vm10874_vm1  ;;  %v3890_v26 = vsel %vm8904_vm8, %v3874_v24, 0.0  ;;  %vm10899_vm5 = vcmp.le.s32.totalorder %v10898_v61, 6 }
 0x686   :  { %v3862_v44 = vpop.permute.xlu1 %3861  ;;  %v4111_v1 = vsel %vm10897_vm14, %v4095_v23, 0.0  ;;  %vm10900_vm12 = vmmov %vm10893_vm7  ;;  %v3683_v15 = vmul.f32 %v10728_v37, %v3671_v7  ;;  %vm10903_vm0 = vcmp.le.s32.totalorder %v10727_v38, 6  ;;  %v3999_v0 = vadd.f32 %v3991_v57, %v8671_v10  ;;  %v10904_v23 = vld [vmem:[#allocation171_spill] sm:$0xff] }
 0x687   :  { %vm8958_vm3 = vmand %vm10900_vm12, %vm10899_vm5  ;;  %v4129_v41 = vadd.f32 %v4121_v62, %v4059_v22  ;;  %v3817_v59 = vsel %vm10903_vm0, %v3801_v16, 0.0  ;;  %vm10905_vm9 = vnez %v10904_v23  ;;  %vm10906_vm8 = vcmp.le.s32.totalorder %v10776_v14, 6  ;;  %v10934_v10 = vld [vmem:[#allocation131_spill] sm:$0xff]  ;;  %v10951_v23 = vld [vmem:[#allocation126_spill] sm:$0xff] }
 0x688   :  { %vm8970_vm1 = vmand %vm10906_vm8, %vm10905_vm9  ;;  %v4130_v42 = vadd.f32 %v4122_v3, %v4060_v43  ;;  %vm10909_vm4 = vcmask 457728   ;;  %v3756_v37 = vsel %vm8931_vm10, %v3740_v28, 0.0  ;;  %v3898_v7 = vmul.f32 %v10812_v53, %v3886_v58  ;;  %v9015_v58 = vpop.permute.xlu0 %4089 }
 0x689   :  { %v4028_v56 = vsel %vm10909_vm4, %v8772_v49, %v8843_v63  ;;  %vm10910_vm7 = vnez %v10547_v9  ;;  %vm10911_vm15 = vcmp.le.s32.totalorder %v10779_v6, 6  ;;  %vm10915_vm5 = vcmask 531456  }
 0x68a   :  { %vm8984_vm14 = vmand %vm10911_vm15, %vm10910_vm7  ;;  %v3742_v57 = vsel %vm10915_vm5, %v8733_v18, %v10914_v47  ;;  %vm10917_vm10 = vnez %v10708_v48  ;;  %vm10920_vm4 = vcmask 515072   ;;  %v4061_v16 = vadd.f32 %v4053_v31, %v3999_v0  ;;  %v4014_v62 = vpop.permute.xlu1 %4013  ;;  %v10922_v31 = vld [vmem:[#allocation165_spill] sm:$0xff]  ;;  %v10928_v0 = vld [vmem:[#allocation179_spill] sm:$0xff] }
 0x68b   :  { %vm10916_vm12 = vmmov %vm10915_vm5  ;;  %v3871_v34 = vsel %vm10920_vm4, %v8703_v39, %v8780_v40  ;;  %v4137_v22 = vrot.slane %v4129_v41, 4  ;;  %v4123_v3 = vmul.f32 %v10890_v52, %v4111_v1  ;;  %v9007_v20 = vmul.f32 %v10812_v53, %v3890_v26 }
 0x68c   :  { %v3741_v30 = vsel %vm10916_vm12, %v8699_v19, %v8733_v18  ;;  %vm8998_vm8 = vmand %vm10903_vm0, %vm10917_vm10  ;;  %v3829_v19 = vmul.f32 %v10794_v45, %v3817_v59  ;;  %vm10921_vm15 = vcmask 457728   ;;  %v3691_v18 = vadd.f32 %v3683_v15, %v8640_v4  ;;  %v10927_v4 = vld [vmem:[#allocation124_spill] sm:$0xff] }
 0x68d   :  { %v4026_v38 = vsel %vm10921_vm15, %v8823_v55, %v4014_v62  ;;  %v4044_v28 = vsel %vm8958_vm3, %v4028_v56, 0.0  ;;  %v3758_v39 = vsel %vm8984_vm14, %v3742_v57, 0.0  ;;  %v4143_v43 = vrot.slane %v4130_v42, 4 }
 0x68e   :  { %vm10923_vm5 = vcmp.le.s32.totalorder %v10922_v31, 6  ;;  %vm10924_vm12 = vcmp.le.s32.totalorder %v10776_v14, 6  ;;  %v3768_v55 = vmul.f32 %v10761_v60, %v3756_v37  ;;  %v3906_v1 = vadd.f32 %v3898_v7, %v10927_v4  ;;  %v3956_v7 = vpop.permute.xlu1 %3955  ;;  %v10944_v4 = vld [vmem:[#allocation169_spill] sm:$0xff] }
 0x68f   :  { %vm9023_vm0 = vmand %vm10924_vm12, %vm10923_vm5  ;;  %v3757_v26 = vsel %vm8970_vm1, %v3741_v30, 0.0  ;;  %v3887_v61 = vsel %vm8998_vm8, %v3871_v34, 0.0  ;;  %v4131_v15 = vadd.f32 %v4123_v3, %v4061_v16  ;;  %v4138_v59 = vadd.f32 %v4137_v22, %v4129_v41 }
 0x690   :  { %vm10929_vm14 = vnez %v10928_v0  ;;  %vm10930_vm4 = vcmp.le.s32.totalorder %v10722_v21, 6  ;;  %vm10933_vm5 = vcmask 515072   ;;  %v4042_v24 = vsel %vm8711_vm11, %v4026_v38, 0.0 }
 0x691   :  { %vm9037_vm15 = vmand %vm10930_vm4, %vm10929_vm14  ;;  %v3872_v37 = vsel %vm10933_vm5, %v8780_v40, %v3862_v44  ;;  %v3837_v47 = vadd.f32 %v3829_v19, %v10934_v10  ;;  %v9047_v57 = vmul.f32 %v10872_v12, %v4044_v28  ;;  %vm10935_vm1 = vcmask 449536  }
 0x692   :  { %v4099_v21 = vsel %vm10935_vm1, %v8925_v32, %v9015_v58  ;;  %v3770_v41 = vmul.f32 %v10761_v60, %v3758_v39  ;;  %vm10936_vm8 = vnez %v10865_v27  ;;  %v3769_v30 = vmul.f32 %v10761_v60, %v3757_v26  ;;  %vm3940_vm1 = vmand %vm8958_vm3, %vm10892_vm2  ;;  %v4084_v19 = vpop.permute.xlu1 %4083 }
 0x693   :  { %vm9057_vm4 = vmand %vm10924_vm12, %vm10936_vm8  ;;  %v4144_v11 = vadd.f32 %v4143_v43, %v4130_v42  ;;  %v3873_v34 = vsel %vm10933_vm5, %v3862_v44, %v8719_v54  ;;  %v3966_v16 = vsel %vm10939_vm13, %v8701_v25, %v3956_v7  ;;  %v3899_v14 = vmul.f32 %v10812_v53, %v3887_v61  ;;  %v10941_v54 = vld [vmem:[#allocation42_spill] sm:$0xff]  ;;  %v10949_v61 = vld [vmem:[#allocation133_spill] sm:$0xff] }
 0x694   :  { %v3888_v22 = vsel %vm9037_vm15, %v3872_v37, 0.0  ;;  %vm10940_vm12 = vcmask 457728   ;;  %v4054_v42 = vmul.f32 %v10872_v12, %v4042_v24  ;;  %vm4070_vm5 = vmand %vm8711_vm11, %vm10878_vm6  ;;  %v3776_v50 = vadd.f32 %v3768_v55, %v10941_v54 }
 0x695   :  { %v4027_v60 = vsel %vm10940_vm12, %v4014_v62, %v8772_v49  ;;  %v4149_v44 = vrot.slane %v4131_v15, 4  ;;  %v4139_v3 = vrot.slane %v4138_v59, 2  ;;  %v4000_v25 = vadd.f32 %v8826_v36, %v3906_v1  ;;  %vm4073_vm11 = vmand %vm9023_vm0, %vm10936_vm8 }
 0x696   :  { %v3778_v38 = vadd.f32 %v3770_v41, %v8847_v17  ;;  %v3889_v28 = vsel %vm9057_vm4, %v3873_v34, 0.0  ;;  %v3982_v49 = vsel %vm3940_vm1, %v3966_v16, 0.0  ;;  %vm10942_vm13 = vcmask 449536   ;;  %v3958_v24 = vpop.permute.xlu1 %3957  ;;  %vm3941_vm1 = vmand %vm9023_vm0, %vm10905_vm9  ;;  %v10952_v34 = vld [vmem:[#allocation83_spill] sm:$0xff] }
 0x697   :  { %v4096_v62 = vsel %vm10942_vm13, %v8705_v8, %v4084_v19  ;;  %v4145_v13 = vrot.slane %v4144_v11, 2  ;;  %v3900_v51 = vmul.f32 %v10812_v53, %v3888_v22  ;;  %vm10943_vm6 = vnez %v10843_v2  ;;  %vm4072_vm13 = vmand %vm8958_vm3, %vm10929_vm14 }
 0x698   :  { %v4043_v36 = vsel %vm10943_vm6, %v4027_v60, 0.0  ;;  %v4112_v39 = vsel %vm4070_vm5, %v4096_v62, 0.0  ;;  %v3777_v17 = vadd.f32 %v3769_v30, %v3691_v18  ;;  %v3907_v43 = vadd.f32 %v3899_v14, %v3837_v47  ;;  %vm4071_vm8 = vmand %vm10943_vm6, %vm10917_vm10 }
 0x699   :  { %v4062_v31 = vadd.f32 %v4054_v42, %v4000_v25  ;;  %v4124_v55 = vmul.f32 %v10890_v52, %v4112_v39  ;;  %vm10945_vm2 = vcmp.le.s32.totalorder %v10944_v4, 6  ;;  %vm10946_vm15 = vcmp.le.s32.totalorder %v10779_v6, 6 }
 0x69a   :  { %vm9099_vm4 = vmand %vm10946_vm15, %vm10945_vm2  ;;  %v4150_v1 = vadd.f32 %v4149_v44, %v4131_v15  ;;  %v4140_v26 = vadd.f32 %v4139_v3, %v4138_v59  ;;  %v3838_v56 = vadd.f32 %v10949_v61, %v3776_v50  ;;  %v3994_v37 = vmul.f32 %v10860_v33, %v3982_v49  ;;  %v4086_v14 = vpop.permute.xlu1 %4085 }
 0x69b   :  { %v3901_v18 = vmul.f32 %v10812_v53, %v3889_v28  ;;  %v4055_v10 = vmul.f32 %v10872_v12, %v4043_v36  ;;  %v4132_v47 = vadd.f32 %v4124_v55, %v4062_v31  ;;  %vm10950_vm12 = vcmask 465920   ;;  %vm3942_vm5 = vmand %vm9099_vm4, %vm10910_vm7 }
 0x69c   :  { %v3967_v6 = vsel %vm10950_vm12, %v3956_v7, %v3958_v24  ;;  %v4115_v15 = vsel %vm4073_vm11, %v4099_v21, 0.0  ;;  %v3840_v59 = vadd.f32 %v8841_v5, %v3778_v38  ;;  %v4146_v41 = vadd.f32 %v4145_v13, %v4144_v11  ;;  %vm10953_vm9 = vmmov %vm10950_vm12  ;;  %v10957_v13 = vld [vmem:[#allocation78_spill] sm:$0xff] }
 0x69d   :  { %v3908_v53 = vadd.f32 %v3900_v51, %v3838_v56  ;;  %v3839_v40 = vadd.f32 %v10951_v23, %v3777_v17  ;;  %v4001_v30 = vadd.f32 %v8945_v35, %v3907_v43  ;;  %v4155_v7 = vrot.slane %v4132_v47, 4 }
 0x69e   :  { %v3968_v16 = vsel %vm10953_vm9, %v3958_v24, %v10952_v34  ;;  %v4151_v27 = vrot.slane %v4150_v1, 2  ;;  %v4141_v5 = vrot.slane %v4140_v26, 1  ;;  %v3983_v11 = vsel %vm3941_vm1, %v3967_v6, 0.0  ;;  %v4020_v9 = vpop.permute.xlu1 %4019 }
 0x69f   :  { %v4002_v21 = vadd.f32 %v3994_v37, %v3908_v53  ;;  %v3909_v35 = vadd.f32 %v3901_v18, %v3839_v40  ;;  %v4063_v22 = vadd.f32 %v4055_v10, %v4001_v30  ;;  %v4156_v60 = vadd.f32 %v4155_v7, %v4132_v47 }
 0x6a0   :  { %vm10954_vm11 = vcmask 449536   ;;  %v4147_v54 = vrot.slane %v4146_v41, 1  ;;  %v3984_v48 = vsel %vm3942_vm5, %v3968_v16, 0.0  ;;  %v3995_v46 = vmul.f32 %v10860_v33, %v3983_v11 }
 0x6a1   :  { %v4097_v42 = vsel %vm10954_vm11, %v4084_v19, %v4086_v14  ;;  %vm10955_vm10 = vmmov %vm10954_vm11  ;;  %v4157_v50 = vrot.slane %v4156_v60, 2  ;;  %v4152_v25 = vadd.f32 %v4151_v27, %v4150_v1  ;;  %v9144_v38 = vadd.f32 %v4141_v5, %v4140_v26 }
 0x6a2   :  { %v4098_v2 = vsel %vm10955_vm10, %v4086_v14, %v8925_v32  ;;  %v4113_v0 = vsel %vm4071_vm8, %v4097_v42, 0.0  ;;  %v4064_v19 = vadd.f32 %v9047_v57, %v4002_v21  ;;  %vm10956_vm3 = vcmask 457728   ;;  %vm10960_vm6 = vmmov %vm10955_vm10 }
 0x6a3   :  { %v4114_v44 = vsel %vm4072_vm13, %v4098_v2, 0.0  ;;  %v4125_v3 = vmul.f32 %v10890_v52, %v4113_v0  ;;  %v4158_v49 = vadd.f32 %v4157_v50, %v4156_v60  ;;  %v4029_v32 = vsel %vm10956_vm3, %v8843_v63, %v4020_v9  ;;  %vm10958_vm7 = vmmov %vm10956_vm3 }
 0x6a4   :  { %v4126_v28 = vmul.f32 %v10890_v52, %v4114_v44  ;;  %v4030_v51 = vsel %vm10958_vm7, %v4020_v9, %v10957_v13  ;;  %v3996_v36 = vmul.f32 %v10860_v33, %v3984_v48  ;;  %v4045_v17 = vsel %vm9023_vm0, %v4029_v32, 0.0  ;;  %v4092_v33 = vpop.permute.xlu1 %4091 }
 0x6a5   :  { %v4133_v62 = vadd.f32 %v4125_v3, %v4063_v22  ;;  %v4046_v57 = vsel %vm9099_vm4, %v4030_v51, 0.0  ;;  %v4148_v43 = vadd.f32 %v4147_v54, %v4146_v41  ;;  %v4003_v31 = vadd.f32 %v3995_v46, %v3909_v35 }
 0x6a6   :  { %v4134_v39 = vadd.f32 %v4126_v28, %v4064_v19  ;;  %v4057_v4 = vmul.f32 %v10872_v12, %v4045_v17  ;;  %v4127_v1 = vmul.f32 %v10890_v52, %v4115_v15  ;;  %v3910_v63 = vadd.f32 %v9007_v20, %v3840_v59 }
 0x6a7   :  { %v4161_v55 = vrot.slane %v4133_v62, 4  ;;  %v4058_v61 = vmul.f32 %v10872_v12, %v4046_v57  ;;  %vm10959_vm14 = vnez %v10509_v29  ;;  %v4153_v45 = vrot.slane %v4152_v25, 1 }
 0x6a8   :  { %v4167_v26 = vrot.slane %v4134_v39, 4  ;;  %vm4074_vm0 = vmand %vm9099_vm4, %vm10959_vm14  ;;  %v4159_v56 = vrot.slane %v4158_v49, 1  ;;  %v4065_v24 = vadd.f32 %v4057_v4, %v4003_v31  ;;  %v4004_v18 = vadd.f32 %v3996_v36, %v3910_v63 }
 0x6a9   :  { %v4162_v37 = vadd.f32 %v4161_v55, %v4133_v62  ;;  %v4100_v47 = vsel %vm10960_vm6, %v9015_v58, %v4092_v33  ;;  %v4185_v20 = vadd.f32 %v4148_v43, %v9144_v38  ;;  %v4154_v41 = vadd.f32 %v4153_v45, %v4152_v25 }
 0x6aa   :  { %v4168_v10 = vadd.f32 %v4167_v26, %v4134_v39  ;;  %v4135_v15 = vadd.f32 %v4127_v1, %v4065_v24  ;;  %v4116_v12 = vsel %vm4074_vm0, %v4100_v47, 0.0  ;;  %v4066_v29 = vadd.f32 %v4058_v61, %v4004_v18 }
 0x6ab   :  { %v4163_v6 = vrot.slane %v4162_v37, 2  ;;  %v4128_v8 = vmul.f32 %v10890_v52, %v4116_v12  ;;  %v4160_v53 = vadd.f32 %v4159_v56, %v4158_v49  ;;  %v4186_v27 = vadd.f32 %v4185_v20, %v4154_v41 }
 0x6ac   :  { %v4169_v59 = vrot.slane %v4168_v10, 2  ;;  %v4173_v40 = vrot.slane %v4135_v15, 4  ;;  %v14_v24 = vstv %s9189_s6  ;;  %vm4274_vm2 = vcmask 0  }
 0x6ad   :  { %v4164_v23 = vadd.f32 %v4163_v6, %v4162_v37  ;;  %v4136_v7 = vadd.f32 %v4128_v8, %v4066_v29  ;;  %v4187_v14 = vadd.f32 %v4186_v27, %v4160_v53  ;;  %v12_v37 = vstv %s9188_s5  ;;  %15 = vst [vmem:[#allocation6] sm:$0x1] %v14_v24 }
 0x6ae   :  { %v4170_v30 = vadd.f32 %v4169_v59, %v4168_v10  ;;  %v4174_v16 = vadd.f32 %v4173_v40, %v4135_v15  ;;  %13 = vst [vmem:[#allocation5] sm:$0x1] %v12_v37  ;;  %v10961_v59 = vlaneseq }
 0x6af   :  { %v4165_v34 = vrot.slane %v4164_v23, 1  ;;  %v4179_v5 = vrot.slane %v4136_v7, 4 }
 0x6b0   :  { %v4171_v21 = vrot.slane %v4170_v30, 1  ;;  %v4175_v11 = vrot.slane %v4174_v16, 2  ;;  %v4231_v29 = vshrl.u32 %v10961_v59, 7 }
 0x6b1   :  { %v4166_v58 = vadd.f32 %v4165_v34, %v4164_v23  ;;  %v4180_v35 = vadd.f32 %v4179_v5, %v4136_v7 }
 0x6b2   :  { %v4176_v22 = vadd.f32 %v4175_v11, %v4174_v16  ;;  %v4172_v54 = vadd.f32 %v4171_v21, %v4170_v30  ;;  %v4232_v8 = vsub.s32 0, %v4231_v29 }
 0x6b3   :  { %v4188_v60 = vadd.f32 %v4187_v14, %v4166_v58  ;;  %v4181_v42 = vrot.slane %v4180_v35, 2 }
 0x6b4   :  { %v4177_v52 = vrot.slane %v4176_v22, 1  ;;  %v4242_v18 = vld [vmem:[#allocation6] sm:$0x1] }
 0x6b5   :  { %v4182_v48 = vadd.f32 %v4181_v42, %v4180_v35  ;;  %v4189_v0 = vadd.f32 %v4188_v60, %v4172_v54  ;;  %v4221_v6 = vld [vmem:[#allocation5] sm:$0x1] }
 0x6b6   :  { %v4178_v2 = vadd.f32 %v4177_v52, %v4176_v22 }
 0x6b7   :  { %v4183_v50 = vrot.slane %v4182_v48, 1 }
 0x6b8   :  { %v4190_v46 = vadd.f32 %v4189_v0, %v4178_v2 }
 0x6b9   :  { %v4184_v44 = vadd.f32 %v4183_v50, %v4182_v48 }
 0x6bb   :  { %v4191_v3 = vadd.f32 %v4190_v46, %v4184_v44 }
 0x6bd   :  { %4192 = vadd.xlane.f32.xlu0 %v4191_v3 }
 0x74a   :  { %v4193_v25 = vpop.xlane.xlu0 %4192 }
 0x74b   :  { %v4194_v19 = vmul.f32 0.0009765625, %v4193_v25 }
 0x74d   :  { %v4195_v28 = vsub.f32 %v9144_v38, %v4194_v19  ;;  %v4196_v9 = vsub.f32 %v4148_v43, %v4194_v19  ;;  %v4197_v49 = vsub.f32 %v4154_v41, %v4194_v19  ;;  %v4198_v62 = vsub.f32 %v4160_v53, %v4194_v19 }
 0x74e   :  { %v4199_v51 = vsub.f32 %v4166_v58, %v4194_v19  ;;  %v4200_v17 = vsub.f32 %v4172_v54, %v4194_v19  ;;  %v4201_v55 = vsub.f32 %v4178_v2, %v4194_v19  ;;  %v4202_v63 = vsub.f32 %v4184_v44, %v4194_v19 }
 0x74f   :  { %v4203_v32 = vmul.f32 %v4195_v28, %v4195_v28  ;;  %v4204_v13 = vmul.f32 %v4196_v9, %v4196_v9  ;;  %v4205_v36 = vmul.f32 %v4197_v49, %v4197_v49  ;;  %v4206_v57 = vmul.f32 %v4198_v62, %v4198_v62 }
 0x750   :  { %v4207_v4 = vmul.f32 %v4199_v51, %v4199_v51  ;;  %v4208_v26 = vmul.f32 %v4200_v17, %v4200_v17  ;;  %v4209_v33 = vmul.f32 %v4201_v55, %v4201_v55  ;;  %v4210_v38 = vmul.f32 %v4202_v63, %v4202_v63 }
 0x751   :  { %v4211_v39 = vadd.f32 %v4204_v13, %v4203_v32 }
 0x753   :  { %v4212_v31 = vadd.f32 %v4211_v39, %v4205_v36 }
 0x755   :  { %v4213_v1 = vadd.f32 %v4212_v31, %v4206_v57 }
 0x757   :  { %v4214_v61 = vadd.f32 %v4213_v1, %v4207_v4 }
 0x759   :  { %v4215_v45 = vadd.f32 %v4214_v61, %v4208_v26 }
 0x75b   :  { %v4216_v43 = vadd.f32 %v4215_v45, %v4209_v33 }
 0x75d   :  { %v4217_v56 = vadd.f32 %v4216_v43, %v4210_v38 }
 0x75f   :  { %4218 = vadd.xlane.f32.xlu1 %v4217_v56 }
 0x770   :  { %4245 = vperm.xlu1 %4468, %v4242_v18  }
 0x7ec   :  { %v4219_v10 = vpop.xlane.xlu1 %4218 }
 0x7ed   :  { %v4220_v47 = vmul.f32 0.0009765625, %v4219_v10 }
 0x7ef   :  { %v4222_v20 = vadd.f32 1e-05, %v4220_v47 }
 0x7f0   :  { %v4246_v41 = vpop.permute.xlu1 %4245 }
 0x7f1   :  { %4473 = vrsqrt.f32 %v4222_v20  ;;  %v4251_v40 = vrot.slane %v4246_v41, %v4232_v8 }
 0x7fb   :  { %v4474_v15 = vpop.eup %4473 }
 0x7fc   :  { %v4224_v12 = vmul.f32 %v4474_v15, %v4221_v6 }
 0x7fe   :  { %4227 = vperm.xlu0 %4467, %v4224_v12  }
 0x87d   :  { %v4228_v53 = vpop.permute.xlu0 %4227 }
 0x87e   :  { %v4233_v23 = vrot.slane %v4228_v53, %v4232_v8 }
 0x880   :  { %v4238_v30 = vmul.f32 %v4233_v23, %v4199_v51  ;;  %v4239_v7 = vmul.f32 %v4233_v23, %v4200_v17  ;;  %v4240_v34 = vmul.f32 %v4233_v23, %v4201_v55  ;;  %v4241_v16 = vmul.f32 %v4233_v23, %v4202_v63 }
 0x881   :  { %v4234_v27 = vmul.f32 %v4233_v23, %v4195_v28  ;;  %v4235_v5 = vmul.f32 %v4233_v23, %v4196_v9  ;;  %v4236_v58 = vmul.f32 %v4233_v23, %v4197_v49  ;;  %v4237_v21 = vmul.f32 %v4233_v23, %v4198_v62 }
 0x882   :  { %v4256_v11 = vadd.f32 %v4251_v40, %v4238_v30  ;;  %v4257_v14 = vadd.f32 %v4251_v40, %v4239_v7  ;;  %v4258_v35 = vadd.f32 %v4251_v40, %v4240_v34  ;;  %v4259_v54 = vadd.f32 %v4251_v40, %v4241_v16 }
 0x883   :  { %v4252_v22 = vadd.f32 %v4251_v40, %v4234_v27  ;;  %v4253_v60 = vadd.f32 %v4251_v40, %v4235_v5  ;;  %v4254_v42 = vadd.f32 %v4251_v40, %v4236_v58  ;;  %v4255_v2 = vadd.f32 %v4251_v40, %v4237_v21 }
 0x884   :  { %v4264_v52 = vmax.f32 %v4256_v11, 0.0  ;;  %v4265_v48 = vmax.f32 %v4257_v14, 0.0  ;;  %v4266_v46 = vmax.f32 %v4258_v35, 0.0  ;;  %v4267_v19 = vmax.f32 %v4259_v54, 0.0 }
 0x885   :  { %v4260_v0 = vmax.f32 %v4252_v22, 0.0  ;;  %v4261_v50 = vmax.f32 %v4253_v60, 0.0  ;;  %v4262_v3 = vmax.f32 %v4254_v42, 0.0  ;;  %v4263_v9 = vmax.f32 %v4255_v2, 0.0 }
 0x886   :  { %v4276_v44 = vadd.f32 %v4265_v48, %v4264_v52 }
 0x887   :  { %v4268_v25 = vadd.f32 %v4261_v50, %v4260_v0 }
 0x888   :  { %v4277_v28 = vadd.f32 %v4276_v44, %v4266_v46 }
 0x889   :  { %v4269_v49 = vadd.f32 %v4268_v25, %v4262_v3 }
 0x88a   :  { %v4278_v62 = vadd.f32 %v4277_v28, %v4267_v19 }
 0x88b   :  { %v4270_v32 = vadd.f32 %v4269_v49, %v4263_v9 }
 0x88c   :  { %4279 = vadd.xlane.f32.xlu0 %v4278_v62 }
 0x88d   :  { %4271 = vadd.xlane.f32.xlu1 %v4270_v32 }
 0x919   :  { %v4280_v13 = vpop.xlane.xlu0 %4279 }
 0x91a   :  { %v4281_v51 = vmul.f32 0.001953125, %v4280_v13  ;;  %v4272_v36 = vpop.xlane.xlu1 %4271 }
 0x91b   :  { %v4273_v39 = vmul.f32 0.001953125, %v4272_v36 }
 0x91c   :  { %4282 = vst.msk [vmem:[%s9190_s7 + $0x1] sm:$0x1] %vm4274_vm2, %v4281_v51 }
 0x91d   :  { %4275 = vst.msk [vmem:[%s9190_s7] sm:$0x1] %vm4274_vm2, %v4273_v39 }

</bundles_post_ra>
